<compile_context>
chip_gen: v7x
topology: tpu7x:2x2x1
jax: 0.10.0
libtpu: 0.0.40
codegen_flags: <defaults>
</compile_context>

<pallas_src>
import functools

import jax
import jax.numpy as jnp
from jax.experimental import pallas as pl
from jax.experimental.pallas import tpu as pltpu


_VMEM_LIMIT = 32 * 1024 * 1024  # safe scoped limit on v5e/v6e (128 MiB) and v7x (64 MiB)


def _round_up(x, m):
    return ((x + m - 1) // m) * m


_GEN_CACHE = None


def _tpu_generation():
    """Best-effort TPU generation (5/6/7); used only for tile-size choices."""
    global _GEN_CACHE
    if _GEN_CACHE is not None:
        return _GEN_CACHE
    gen = 6
    try:
        kind = jax.devices()[0].device_kind.lower()
        for g in (7, 6, 5, 4):
            if "v%d" % g in kind:
                gen = g
                break
    except Exception:  # pragma: no cover - conservative default
        gen = 6
    _GEN_CACHE = gen
    return gen


# ---------------------------------------------------------------------------
# Pallas kernels
# ---------------------------------------------------------------------------
def _matmul_kernel(x_ref, w_ref, *refs, act, emit_stats):
    if emit_stats:
        o_ref, stats_ref, acc_ref = refs
    else:
        o_ref, acc_ref = refs

    @pl.when(pl.program_id(3) == 0)
    def _():
        acc_ref[...] = jnp.zeros_like(acc_ref)

    acc_ref[...] += jnp.dot(
        x_ref[...], w_ref[...], preferred_element_type=jnp.float32
    )

    @pl.when(pl.program_id(3) == pl.num_programs(3) - 1)
    def _():
        acc = acc_ref[...]
        if emit_stats:
            # Per-channel partial sum / sum-of-squares of this M-tile.
            # Two direct sub-row stores; rows 2..7 are never read downstream.
            stats_ref[0:1, :] = jnp.sum(acc, axis=0, keepdims=True)
            stats_ref[1:2, :] = jnp.sum(acc * acc, axis=0, keepdims=True)
        y = acc
        if act == "relu":
            y = jnp.maximum(y, 0.0)
        elif act == "tanh":
            y = jnp.tanh(y)
        o_ref[...] = y.astype(o_ref.dtype)


def _affine_act_kernel(y_ref, scale_ref, shift_ref, o_ref, *, act):
    v = y_ref[...].astype(jnp.float32) * scale_ref[...] + shift_ref[...]
    if act == "relu":
        v = jnp.maximum(v, 0.0)
    elif act == "tanh":
        v = jnp.tanh(v)
    o_ref[...] = v.astype(o_ref.dtype)


# ---------------------------------------------------------------------------
# Pallas wrappers
# ---------------------------------------------------------------------------
def _choose_tiles(M, K, N):
    gen = _tpu_generation()
    # N tile: 256 feeds the full 2x256x256 MXU on v6e/v7x; v5e (4x128x128)
    # gets no benefit, keep 128 there (and when the layer only has 128 cols).
    tn = 256 if (gen >= 6 and _round_up(N, 128) >= 256) else 128
    n_pad = _round_up(N, tn)
    m_pad = _round_up(M, 8)
    tm = min(512, m_pad)
    m_pad = _round_up(m_pad, tm)
    # K tile large enough that gk == 1 for every layer of this model
    # (max K = 4*512 = 2048): few-step grids are dominated by ~0.35us/step
    # pipeline overhead otherwise.  Worst-case double-buffered tiles stay
    # ~13 MiB, under the 32 MiB scoped limit on all generations (incl. v7x).
    k_pad = _round_up(K, 128)
    tk = min(4096, k_pad)
    k_pad = _round_up(k_pad, tk)
    return m_pad, k_pad, n_pad, tm, tk, tn


def pallas_conv_matmul(patches, wmat, *, act=None, emit_stats=False,
                       out_dtype=jnp.bfloat16):
    """patches (P, M, K) bf16 @ wmat (P, K, N) bf16 -> (P, Mp, Np) out_dtype.

    P is the sub-pixel phase axis (1 for the stride-1 layer).  If
    `emit_stats`, also returns f32 per-(phase, M-tile) column sum /
    sum-of-squares partials of shape (P, gm*8, Np) (rows 0/1 of each 8-row
    group).  `act` ('relu'/'tanh'/None) is fused into the epilogue.
    """
    P, M, K = patches.shape
    _, K2, N = wmat.shape
    m_pad, k_pad, n_pad, tm, tk, tn = _choose_tiles(M, K, N)

    x = patches
    if (m_pad, k_pad) != (M, K):
        x = jnp.pad(x, ((0, 0), (0, m_pad - M), (0, k_pad - K)))
    w = wmat
    if (k_pad, n_pad) != (K2, N):
        w = jnp.pad(w, ((0, 0), (0, k_pad - K2), (0, n_pad - N)))

    gm, gn, gk = m_pad // tm, n_pad // tn, k_pad // tk

    if emit_stats:
        out_shape = (
            jax.ShapeDtypeStruct((P, m_pad, n_pad), out_dtype),
            jax.ShapeDtypeStruct((P, gm * 8, n_pad), jnp.float32),
        )
        out_specs = [
            pl.BlockSpec((None, tm, tn), lambda p, i, j, k: (p, i, j)),
            pl.BlockSpec((None, 8, tn), lambda p, i, j, k: (p, i, j)),
        ]
    else:
        out_shape = jax.ShapeDtypeStruct((P, m_pad, n_pad), out_dtype)
        out_specs = pl.BlockSpec((None, tm, tn), lambda p, i, j, k: (p, i, j))

    cost = pl.CostEstimate(
        flops=2 * P * m_pad * n_pad * k_pad,
        transcendentals=P * m_pad * n_pad if act == "tanh" else 0,
        bytes_accessed=P * ((m_pad * k_pad + k_pad * n_pad) * 2
                            + m_pad * n_pad * jnp.dtype(out_dtype).itemsize),
    )

    call = pl.pallas_call(
        functools.partial(_matmul_kernel, act=act, emit_stats=emit_stats),
        out_shape=out_shape,
        grid_spec=pltpu.PrefetchScalarGridSpec(
            num_scalar_prefetch=0,
            grid=(P, gm, gn, gk),
            in_specs=[
                pl.BlockSpec((None, tm, tk), lambda p, i, j, k: (p, i, k)),
                pl.BlockSpec((None, tk, tn), lambda p, i, j, k: (p, k, j)),
            ],
            out_specs=out_specs,
            scratch_shapes=[pltpu.VMEM((tm, tn), jnp.float32)],
        ),
        compiler_params=pltpu.CompilerParams(
            dimension_semantics=("parallel", "parallel", "parallel", "arbitrary"),
            vmem_limit_bytes=_VMEM_LIMIT,
        ),
        cost_estimate=cost,
    )

    if emit_stats:
        return call(x, w)
    return call(x, w), None


def _pick_row_tile(m_pad, n_pad):
    # Elementwise kernels only approach the HBM roofline with big tiles;
    # allow up to 4096 rows at narrow widths (block stays < ~4 MiB).
    cap = 4096 if n_pad <= 128 else (2048 if n_pad <= 256 else 1024)
    for cand in (4096, 2048, 1024, 512, 256, 128, 64, 32, 16, 8):
        if cand <= cap and m_pad % cand == 0:
            return cand
    return m_pad


def pallas_affine_act(y, scale, shift, *, act, out_dtype=jnp.bfloat16):
    """out = act(y * scale + shift); scale/shift broadcast over rows (bf16 in/out)."""
    m_pad, n_pad = y.shape
    tm = _pick_row_tile(m_pad, n_pad)
    in_bytes = jnp.dtype(y.dtype).itemsize
    cost = pl.CostEstimate(
        flops=3 * m_pad * n_pad,
        transcendentals=m_pad * n_pad if act == "tanh" else 0,
        bytes_accessed=m_pad * n_pad * (in_bytes + jnp.dtype(out_dtype).itemsize)
        + 2 * n_pad * 4,
    )
    return pl.pallas_call(
        functools.partial(_affine_act_kernel, act=act),
        out_shape=jax.ShapeDtypeStruct((m_pad, n_pad), out_dtype),
        grid_spec=pltpu.PrefetchScalarGridSpec(
            num_scalar_prefetch=0,
            grid=(m_pad // tm,),
            in_specs=[
                pl.BlockSpec((tm, n_pad), lambda i: (i, 0)),
                pl.BlockSpec((1, n_pad), lambda i: (0, 0)),
                pl.BlockSpec((1, n_pad), lambda i: (0, 0)),
            ],
            out_specs=pl.BlockSpec((tm, n_pad), lambda i: (i, 0)),
        ),
        compiler_params=pltpu.CompilerParams(
            dimension_semantics=("parallel",),
            vmem_limit_bytes=_VMEM_LIMIT,
        ),
        cost_estimate=cost,
    )(y, scale.reshape(1, n_pad), shift.reshape(1, n_pad))


# ---------------------------------------------------------------------------
# XLA glue: transposed conv -> GEMM form (NHWC, bf16)
# ---------------------------------------------------------------------------
def _subpixel_patches_and_weights(x_nhwc, w):
    """Sub-pixel decomposition of a stride-2, pad-1, k=4 ConvTranspose2d.

    out[b, 2m+py, 2n+px, co] = sum_{dy,dx,ci} x_pad[b, m+py+dy, n+px+dx, ci]
                               * w[ci, co, (3-py)-2dy, (3-px)-2dx]
    Returns patches (4, N*H*W, 4*Cin) and weights (4, 4*Cin, Cout) in bf16;
    phase p = 2*py + px.  No zero-inserted upsampled tensor, K is 4x smaller
    than the naive im2col and every MXU FLOP is a real tap.
    """
    n, h, wd, cin = x_nhwc.shape
    cout = w.shape[1]
    x_pad = jnp.pad(x_nhwc, ((0, 0), (1, 1), (1, 1), (0, 0)))
    patches, wmats = [], []
    for py in range(2):
        for px in range(2):
            taps = [
                x_pad[:, py + dy: py + dy + h, px + dx: px + dx + wd, :]
                for dy in range(2)
                for dx in range(2)
            ]
            p = jnp.stack(taps, axis=3)                 # (N, H, W, 4, Cin)
            patches.append(p.reshape(n * h * wd, 4 * cin))
            # kernel taps (ky, kx) = ((3 - py) - 2*dy, (3 - px) - 2*dx)
            w_sub = w[:, :, 3 - py::-2, 3 - px::-2]     # (Cin, Cout, 2, 2), (dy, dx)
            wmats.append(w_sub.transpose(2, 3, 0, 1).reshape(4 * cin, cout))
    return (jnp.stack(patches, axis=0).astype(jnp.bfloat16),
            jnp.stack(wmats, axis=0).astype(jnp.bfloat16))


def _s1_patches_and_weight(x_nhwc, w, p):
    """Generic stride-1 ConvTranspose2d im2col (only used for the tiny first
    layer whose input is 1x1).  Returns patches (1, M, k*k*Cin),
    weight (1, k*k*Cin, Cout), hout, wout."""
    n, h, wd, c = x_nhwc.shape
    cin, cout, k, _ = w.shape
    pad = k - 1 - p
    x_pad = jnp.pad(x_nhwc, ((0, 0), (pad, pad), (pad, pad), (0, 0)))
    hout, wout = h - 1 - 2 * p + k, wd - 1 - 2 * p + k
    cols = [
        x_pad[:, ky:ky + hout, kx:kx + wout, :]
        for ky in range(k)
        for kx in range(k)
    ]
    patches = jnp.stack(cols, axis=3).reshape(n * hout * wout, k * k * c)
    wflip = w[:, :, ::-1, ::-1]
    wmat = wflip.transpose(2, 3, 0, 1).reshape(k * k * cin, cout)
    return (patches[None].astype(jnp.bfloat16),
            wmat[None].astype(jnp.bfloat16), hout, wout)


def layer_forward(x_nhwc, w, gamma, beta, *, stride, padding, eps=1e-5):
    """One ConvTranspose2d (+ BN(batch stats) + ReLU, or + Tanh), NHWC in/out."""
    n, h, wd, _ = x_nhwc.shape
    cout, k = w.shape[1], w.shape[2]

    if stride == 2 and padding == 1 and k == 4:
        patches, wmats = _subpixel_patches_and_weights(x_nhwc, w)
        hout, wout = 2 * h, 2 * wd
        rows = n * h * wd                      # real rows per phase
        subpixel = True
    else:
        patches, wmats, hout, wout = _s1_patches_and_weight(x_nhwc, w, padding)
        rows = n * hout * wout
        subpixel = False
    m_true = patches.shape[0] * rows           # total real conv-output pixels

    if gamma is None:
        # Final layer: tanh fused into the matmul epilogue, bf16 output,
        # no extra pass.
        y, _ = pallas_conv_matmul(patches, wmats, act="tanh", emit_stats=False)
    else:
        # BN layer: the matmul also emits per-channel sum / sumsq partials so
        # batch statistics never re-read the conv output from HBM; the
        # intermediate itself is bf16 (halves the round trip to the fused
        # affine+ReLU kernel).
        # TODO(synk): eval-mode (running-stats) BN could be folded into wmats
        # plus a bias row with ReLU fused into the matmul epilogue, deleting
        # this second pass entirely; the module here runs training-mode BN.
        y, stats = pallas_conv_matmul(patches, wmats, act=None, emit_stats=True)

    n_phase, m_pad, n_pad = y.shape

    if gamma is not None:
        stats = stats.reshape(n_phase, -1, 8, n_pad)
        col_sum = stats[:, :, 0, :].sum(axis=(0, 1))
        col_sumsq = stats[:, :, 1, :].sum(axis=(0, 1))
        mean = col_sum / m_true
        var = jnp.maximum(col_sumsq / m_true - mean * mean, 0.0)  # biased (torch BN)
        gamma_p = jnp.pad(gamma, (0, n_pad - cout))
        beta_p = jnp.pad(beta, (0, n_pad - cout))
        scale = gamma_p * jax.lax.rsqrt(var + eps)
        shift = beta_p - mean * scale
        y = pallas_affine_act(
            y.reshape(n_phase * m_pad, n_pad), scale, shift, act="relu"
        ).reshape(n_phase, m_pad, n_pad)

    out = y[:, :rows, :cout]
    if subpixel:
        # Interleave the 4 (py, px) phases back into (N, 2H, 2W, C).
        out = out.reshape(2, 2, n, h, wd, cout).transpose(2, 3, 0, 4, 1, 5)
    return out.reshape(n, hout, wout, cout)


# ---------------------------------------------------------------------------
# Generator (stage1 of the PyTorch module; stage2 is unused in forward)
# ---------------------------------------------------------------------------
_CHANNEL_SPECS = [(None, 512), (512, 256), (256, 128), (128, 64), (64, 3)]
_STRIDES = [1, 2, 2, 2, 2]
_PADS = [0, 1, 1, 1, 1]


def init_params(key, nz):
    params = []
    for i, (cin, cout) in enumerate(_CHANNEL_SPECS):
        cin = nz if cin is None else cin
        key, wk = jax.random.split(key)
        w = jax.random.normal(wk, (cin, cout, 4, 4), jnp.float32) * 0.02
        if i < len(_CHANNEL_SPECS) - 1:
            gamma = jnp.ones((cout,), jnp.float32)
            beta = jnp.zeros((cout,), jnp.float32)
        else:
            gamma = beta = None
        params.append((w, gamma, beta))
    return params


@jax.jit
def generator_forward(params, z):
    # z: (N, nz, 1, 1) NCHW -> NHWC pipeline in bf16; single final transpose.
    x = z.astype(jnp.bfloat16).transpose(0, 2, 3, 1)      # (N, 1, 1, nz)
    for i, (w, gamma, beta) in enumerate(params):
        x = layer_forward(
            x, w, gamma, beta, stride=_STRIDES[i], padding=_PADS[i]
        )
    return x.transpose(0, 3, 1, 2).astype(jnp.float32)    # (N, 3, 64, 64)


if __name__ == "__main__":
    key = jax.random.PRNGKey(0)
    pkey, zkey = jax.random.split(key)
    nz = 8
    batch = 2
    params = init_params(pkey, nz)
    z = jax.random.normal(zkey, (batch, nz, 1, 1), jnp.float32)

    out = generator_forward(params, z)
    out = jax.block_until_ready(out)

    assert out.shape == (batch, 3, 64, 64), out.shape
    assert bool(jnp.all(jnp.isfinite(out)))
    assert bool(jnp.all(jnp.abs(out) <= 1.0 + 1e-6))  # tanh range
    print("KERNEL_OK")
</pallas_src>

<mosaic_0001>
module attributes {stable_mosaic.version = 11 : i64} {
  func.func @_matmul_kernel(%arg0: i32, %arg1: i32, %arg2: i32, %arg3: i32, %arg4: memref<1x32x128xbf16, #tpu.memory_space<vmem>>, %arg5: memref<1x128x256xbf16, #tpu.memory_space<vmem>>, %arg6: memref<1x32x256xbf16, #tpu.memory_space<vmem>>, %arg7: memref<1x8x256xf32, #tpu.memory_space<vmem>>, %arg8: memref<32x256xf32, #tpu.memory_space<vmem>>) attributes {dimension_semantics = [#tpu.dimension_semantics<parallel>, #tpu.dimension_semantics<parallel>, #tpu.dimension_semantics<parallel>, #tpu.dimension_semantics<arbitrary>], iteration_bounds = array<i64: 1, 1, 2, 1>, scalar_prefetch = 0 : i64, scratch_operands = 1 : i64, tpu.core_type = #tpu.core_type<tc>, window_params = [{transform_indices = @transform_0, window_bounds = array<i64: 1, 32, 128>}, {transform_indices = @transform_1, window_bounds = array<i64: 1, 128, 256>}, {transform_indices = @transform_2, window_bounds = array<i64: 1, 32, 256>}, {transform_indices = @transform_3, window_bounds = array<i64: 1, 8, 256>}]} {
    %c0_i32 = arith.constant 0 : i32
    %0 = arith.cmpi eq, %arg3, %c0_i32 : i32
    %1 = arith.extui %0 : i1 to i32
    %c0_i32_0 = arith.constant 0 : i32
    %2 = arith.cmpi ne, %1, %c0_i32_0 : i32
    scf.if %2 {
      %cst_12 = arith.constant 0.000000e+00 : f32
      %14 = vector.broadcast %cst_12 : f32 to vector<32x256xf32>
      %c0_13 = arith.constant 0 : index
      %c0_14 = arith.constant 0 : index
      %15 = vector.load %arg8[%c0_13, %c0_14] : memref<32x256xf32, #tpu.memory_space<vmem>>, vector<32x256xf32>
      tpu.vector_store %arg8[%c0_13, %c0_14], %14 {strides = array<i32>} : memref<32x256xf32, #tpu.memory_space<vmem>>, vector<32x256xf32>,
    } else {
    }
    %c0 = arith.constant 0 : index
    %c0_1 = arith.constant 0 : index
    %3 = vector.load %arg8[%c0, %c0_1] : memref<32x256xf32, #tpu.memory_space<vmem>>, vector<32x256xf32>
    %c0_2 = arith.constant 0 : index
    %c0_3 = arith.constant 0 : index
    %c0_4 = arith.constant 0 : index
    %4 = vector.load %arg4[%c0_2, %c0_3, %c0_4] : memref<1x32x128xbf16, #tpu.memory_space<vmem>>, vector<1x32x128xbf16>
    %5 = vector.shape_cast %4 : vector<1x32x128xbf16> to vector<32x128xbf16>
    %c0_5 = arith.constant 0 : index
    %c0_6 = arith.constant 0 : index
    %c0_7 = arith.constant 0 : index
    %6 = vector.load %arg5[%c0_5, %c0_6, %c0_7] : memref<1x128x256xbf16, #tpu.memory_space<vmem>>, vector<1x128x256xbf16>
    %7 = vector.shape_cast %6 : vector<1x128x256xbf16> to vector<128x256xbf16>
    %cst = arith.constant dense<0.000000e+00> : vector<32x256xf32>
    %8 = tpu.matmul %5, %7, %cst {dimension_numbers = #tpu.dot_dimension_numbers<[1], [0], [0], [1], [0, 0, 1, 1], [], []>} : vector<32x128xbf16>, vector<128x256xbf16>, vector<32x256xf32> -> vector<32x256xf32>
    %9 = arith.addf %3, %8 : vector<32x256xf32>
    %c0_8 = arith.constant 0 : index
    %c0_9 = arith.constant 0 : index
    %10 = vector.load %arg8[%c0_8, %c0_9] : memref<32x256xf32, #tpu.memory_space<vmem>>, vector<32x256xf32>
    tpu.vector_store %arg8[%c0_8, %c0_9], %9 {strides = array<i32>} : memref<32x256xf32, #tpu.memory_space<vmem>>, vector<32x256xf32>,
    %c0_i32_10 = arith.constant 0 : i32
    %11 = arith.cmpi eq, %arg3, %c0_i32_10 : i32
    %12 = arith.extui %11 : i1 to i32
    %c0_i32_11 = arith.constant 0 : i32
    %13 = arith.cmpi ne, %12, %c0_i32_11 : i32
    scf.if %13 {
      %c0_12 = arith.constant 0 : index
      %c0_13 = arith.constant 0 : index
      %14 = vector.load %arg8[%c0_12, %c0_13] : memref<32x256xf32, #tpu.memory_space<vmem>>, vector<32x256xf32>
      %cst_14 = arith.constant dense<0.000000e+00> : vector<256xf32>
      %15 = vector.multi_reduction <add>, %14, %cst_14 [0] : vector<32x256xf32> to vector<256xf32>
      %16 = vector.shape_cast %15 : vector<256xf32> to vector<1x256xf32>
      %c0_15 = arith.constant 0 : index
      %c0_16 = arith.constant 0 : index
      %c0_17 = arith.constant 0 : index
      %17 = vector.load %arg7[%c0_15, %c0_16, %c0_17] : memref<1x8x256xf32, #tpu.memory_space<vmem>>, vector<1x1x256xf32>
      %18 = vector.shape_cast %17 : vector<1x1x256xf32> to vector<1x256xf32>
      %19 = vector.shape_cast %16 : vector<1x256xf32> to vector<1x1x256xf32>
      tpu.vector_store %arg7[%c0_15, %c0_16, %c0_17], %19 {strides = array<i32>} : memref<1x8x256xf32, #tpu.memory_space<vmem>>, vector<1x1x256xf32>,
      %20 = arith.mulf %14, %14 : vector<32x256xf32>
      %cst_18 = arith.constant dense<0.000000e+00> : vector<256xf32>
      %21 = vector.multi_reduction <add>, %20, %cst_18 [0] : vector<32x256xf32> to vector<256xf32>
      %22 = vector.shape_cast %21 : vector<256xf32> to vector<1x256xf32>
      %c0_19 = arith.constant 0 : index
      %c1 = arith.constant 1 : index
      %c0_20 = arith.constant 0 : index
      %23 = vector.load %arg7[%c0_19, %c1, %c0_20] : memref<1x8x256xf32, #tpu.memory_space<vmem>>, vector<1x1x256xf32>
      %24 = vector.shape_cast %23 : vector<1x1x256xf32> to vector<1x256xf32>
      %25 = vector.shape_cast %22 : vector<1x256xf32> to vector<1x1x256xf32>
      tpu.vector_store %arg7[%c0_19, %c1, %c0_20], %25 {strides = array<i32>} : memref<1x8x256xf32, #tpu.memory_space<vmem>>, vector<1x1x256xf32>,
      %26 = arith.truncf %14 : vector<32x256xf32> to vector<32x256xbf16>
      %c0_21 = arith.constant 0 : index
      %c0_22 = arith.constant 0 : index
      %c0_23 = arith.constant 0 : index
      %27 = vector.load %arg6[%c0_21, %c0_22, %c0_23] : memref<1x32x256xbf16, #tpu.memory_space<vmem>>, vector<1x32x256xbf16>
      %28 = vector.shape_cast %27 : vector<1x32x256xbf16> to vector<32x256xbf16>
      %29 = vector.shape_cast %26 : vector<32x256xbf16> to vector<1x32x256xbf16>
      tpu.vector_store %arg6[%c0_21, %c0_22, %c0_23], %29 {strides = array<i32>} : memref<1x32x256xbf16, #tpu.memory_space<vmem>>, vector<1x32x256xbf16>,
    } else {
    }
    return
  }
  func.func @transform_0(%arg0: i32, %arg1: i32, %arg2: i32, %arg3: i32) -> (i32, i32, i32) {
    %c0_i32 = arith.constant 0 : i32
    return %arg0, %arg1, %arg3 : i32, i32, i32
  }
  func.func @transform_1(%arg0: i32, %arg1: i32, %arg2: i32, %arg3: i32) -> (i32, i32, i32) {
    %c0_i32 = arith.constant 0 : i32
    return %arg0, %arg3, %arg2 : i32, i32, i32
  }
  func.func @transform_2(%arg0: i32, %arg1: i32, %arg2: i32, %arg3: i32) -> (i32, i32, i32) {
    %c0_i32 = arith.constant 0 : i32
    return %arg0, %arg1, %arg2 : i32, i32, i32
  }
  func.func @transform_3(%arg0: i32, %arg1: i32, %arg2: i32, %arg3: i32) -> (i32, i32, i32) {
    %c0_i32 = arith.constant 0 : i32
    return %arg0, %arg1, %arg2 : i32, i32, i32
  }
}

module attributes {stable_mosaic.version = 11 : i64} {
  func.func @_affine_act_kernel(%arg0: i32, %arg1: memref<32x512xbf16, #tpu.memory_space<vmem>>, %arg2: memref<1x512xf32, #tpu.memory_space<vmem>>, %arg3: memref<1x512xf32, #tpu.memory_space<vmem>>, %arg4: memref<32x512xbf16, #tpu.memory_space<vmem>>) attributes {dimension_semantics = [#tpu.dimension_semantics<parallel>], iteration_bounds = array<i64: 1>, scalar_prefetch = 0 : i64, scratch_operands = 0 : i64, tpu.core_type = #tpu.core_type<tc>, window_params = [{transform_indices = @transform_0, window_bounds = array<i64: 32, 512>}, {pipeline_mode = #tpu.pipeline_mode<synchronous>, transform_indices = @transform_1, window_bounds = array<i64: 1, 512>}, {pipeline_mode = #tpu.pipeline_mode<synchronous>, transform_indices = @transform_2, window_bounds = array<i64: 1, 512>}, {transform_indices = @transform_3, window_bounds = array<i64: 32, 512>}]} {
    %c0 = arith.constant 0 : index
    %c0_0 = arith.constant 0 : index
    %0 = vector.load %arg1[%c0, %c0_0] : memref<32x512xbf16, #tpu.memory_space<vmem>>, vector<32x512xbf16>
    %1 = arith.extf %0 : vector<32x512xbf16> to vector<32x512xf32>
    %c0_1 = arith.constant 0 : index
    %c0_2 = arith.constant 0 : index
    %2 = vector.load %arg2[%c0_1, %c0_2] : memref<1x512xf32, #tpu.memory_space<vmem>>, vector<1x512xf32>
    %3 = vector.broadcast %2 : vector<1x512xf32> to vector<32x512xf32>
    %4 = arith.mulf %1, %3 : vector<32x512xf32>
    %c0_3 = arith.constant 0 : index
    %c0_4 = arith.constant 0 : index
    %5 = vector.load %arg3[%c0_3, %c0_4] : memref<1x512xf32, #tpu.memory_space<vmem>>, vector<1x512xf32>
    %6 = vector.broadcast %5 : vector<1x512xf32> to vector<32x512xf32>
    %7 = arith.addf %4, %6 : vector<32x512xf32>
    %cst = arith.constant 0.000000e+00 : f32
    %8 = vector.broadcast %cst : f32 to vector<32x512xf32>
    %9 = arith.maximumf %7, %8 : vector<32x512xf32>
    %10 = arith.truncf %9 : vector<32x512xf32> to vector<32x512xbf16>
    %c0_5 = arith.constant 0 : index
    %c0_6 = arith.constant 0 : index
    %11 = vector.load %arg4[%c0_5, %c0_6] : memref<32x512xbf16, #tpu.memory_space<vmem>>, vector<32x512xbf16>
    tpu.vector_store %arg4[%c0_5, %c0_6], %10 {strides = array<i32>} : memref<32x512xbf16, #tpu.memory_space<vmem>>, vector<32x512xbf16>,
    return
  }
  func.func @transform_0(%arg0: i32) -> (i32, i32) {
    %c0_i32 = arith.constant 0 : i32
    %c0_i32_0 = arith.constant 0 : i32
    return %arg0, %c0_i32 : i32, i32
  }
  func.func @transform_1(%arg0: i32) -> (i32, i32) {
    %c0_i32 = arith.constant 0 : i32
    %c0_i32_0 = arith.constant 0 : i32
    %c0_i32_1 = arith.constant 0 : i32
    return %c0_i32, %c0_i32_0 : i32, i32
  }
  func.func @transform_2(%arg0: i32) -> (i32, i32) {
    %c0_i32 = arith.constant 0 : i32
    %c0_i32_0 = arith.constant 0 : i32
    %c0_i32_1 = arith.constant 0 : i32
    return %c0_i32, %c0_i32_0 : i32, i32
  }
  func.func @transform_3(%arg0: i32) -> (i32, i32) {
    %c0_i32 = arith.constant 0 : i32
    %c0_i32_0 = arith.constant 0 : i32
    return %arg0, %c0_i32 : i32, i32
  }
}

module attributes {stable_mosaic.version = 11 : i64} {
  func.func @_matmul_kernel(%arg0: i32, %arg1: i32, %arg2: i32, %arg3: i32, %arg4: memref<1x32x2048xbf16, #tpu.memory_space<vmem>>, %arg5: memref<1x2048x256xbf16, #tpu.memory_space<vmem>>, %arg6: memref<1x32x256xbf16, #tpu.memory_space<vmem>>, %arg7: memref<1x8x256xf32, #tpu.memory_space<vmem>>, %arg8: memref<32x256xf32, #tpu.memory_space<vmem>>) attributes {dimension_semantics = [#tpu.dimension_semantics<parallel>, #tpu.dimension_semantics<parallel>, #tpu.dimension_semantics<parallel>, #tpu.dimension_semantics<arbitrary>], iteration_bounds = array<i64: 4, 1, 1, 1>, scalar_prefetch = 0 : i64, scratch_operands = 1 : i64, tpu.core_type = #tpu.core_type<tc>, window_params = [{transform_indices = @transform_0, window_bounds = array<i64: 1, 32, 2048>}, {transform_indices = @transform_1, window_bounds = array<i64: 1, 2048, 256>}, {transform_indices = @transform_2, window_bounds = array<i64: 1, 32, 256>}, {transform_indices = @transform_3, window_bounds = array<i64: 1, 8, 256>}]} {
    %c0_i32 = arith.constant 0 : i32
    %0 = arith.cmpi eq, %arg3, %c0_i32 : i32
    %1 = arith.extui %0 : i1 to i32
    %c0_i32_0 = arith.constant 0 : i32
    %2 = arith.cmpi ne, %1, %c0_i32_0 : i32
    scf.if %2 {
      %cst_12 = arith.constant 0.000000e+00 : f32
      %14 = vector.broadcast %cst_12 : f32 to vector<32x256xf32>
      %c0_13 = arith.constant 0 : index
      %c0_14 = arith.constant 0 : index
      %15 = vector.load %arg8[%c0_13, %c0_14] : memref<32x256xf32, #tpu.memory_space<vmem>>, vector<32x256xf32>
      tpu.vector_store %arg8[%c0_13, %c0_14], %14 {strides = array<i32>} : memref<32x256xf32, #tpu.memory_space<vmem>>, vector<32x256xf32>,
    } else {
    }
    %c0 = arith.constant 0 : index
    %c0_1 = arith.constant 0 : index
    %3 = vector.load %arg8[%c0, %c0_1] : memref<32x256xf32, #tpu.memory_space<vmem>>, vector<32x256xf32>
    %c0_2 = arith.constant 0 : index
    %c0_3 = arith.constant 0 : index
    %c0_4 = arith.constant 0 : index
    %4 = vector.load %arg4[%c0_2, %c0_3, %c0_4] : memref<1x32x2048xbf16, #tpu.memory_space<vmem>>, vector<1x32x2048xbf16>
    %5 = vector.shape_cast %4 : vector<1x32x2048xbf16> to vector<32x2048xbf16>
    %c0_5 = arith.constant 0 : index
    %c0_6 = arith.constant 0 : index
    %c0_7 = arith.constant 0 : index
    %6 = vector.load %arg5[%c0_5, %c0_6, %c0_7] : memref<1x2048x256xbf16, #tpu.memory_space<vmem>>, vector<1x2048x256xbf16>
    %7 = vector.shape_cast %6 : vector<1x2048x256xbf16> to vector<2048x256xbf16>
    %cst = arith.constant dense<0.000000e+00> : vector<32x256xf32>
    %8 = tpu.matmul %5, %7, %cst {dimension_numbers = #tpu.dot_dimension_numbers<[1], [0], [0], [1], [0, 0, 1, 1], [], []>} : vector<32x2048xbf16>, vector<2048x256xbf16>, vector<32x256xf32> -> vector<32x256xf32>
    %9 = arith.addf %3, %8 : vector<32x256xf32>
    %c0_8 = arith.constant 0 : index
    %c0_9 = arith.constant 0 : index
    %10 = vector.load %arg8[%c0_8, %c0_9] : memref<32x256xf32, #tpu.memory_space<vmem>>, vector<32x256xf32>
    tpu.vector_store %arg8[%c0_8, %c0_9], %9 {strides = array<i32>} : memref<32x256xf32, #tpu.memory_space<vmem>>, vector<32x256xf32>,
    %c0_i32_10 = arith.constant 0 : i32
    %11 = arith.cmpi eq, %arg3, %c0_i32_10 : i32
    %12 = arith.extui %11 : i1 to i32
    %c0_i32_11 = arith.constant 0 : i32
    %13 = arith.cmpi ne, %12, %c0_i32_11 : i32
    scf.if %13 {
      %c0_12 = arith.constant 0 : index
      %c0_13 = arith.constant 0 : index
      %14 = vector.load %arg8[%c0_12, %c0_13] : memref<32x256xf32, #tpu.memory_space<vmem>>, vector<32x256xf32>
      %cst_14 = arith.constant dense<0.000000e+00> : vector<256xf32>
      %15 = vector.multi_reduction <add>, %14, %cst_14 [0] : vector<32x256xf32> to vector<256xf32>
      %16 = vector.shape_cast %15 : vector<256xf32> to vector<1x256xf32>
      %c0_15 = arith.constant 0 : index
      %c0_16 = arith.constant 0 : index
      %c0_17 = arith.constant 0 : index
      %17 = vector.load %arg7[%c0_15, %c0_16, %c0_17] : memref<1x8x256xf32, #tpu.memory_space<vmem>>, vector<1x1x256xf32>
      %18 = vector.shape_cast %17 : vector<1x1x256xf32> to vector<1x256xf32>
      %19 = vector.shape_cast %16 : vector<1x256xf32> to vector<1x1x256xf32>
      tpu.vector_store %arg7[%c0_15, %c0_16, %c0_17], %19 {strides = array<i32>} : memref<1x8x256xf32, #tpu.memory_space<vmem>>, vector<1x1x256xf32>,
      %20 = arith.mulf %14, %14 : vector<32x256xf32>
      %cst_18 = arith.constant dense<0.000000e+00> : vector<256xf32>
      %21 = vector.multi_reduction <add>, %20, %cst_18 [0] : vector<32x256xf32> to vector<256xf32>
      %22 = vector.shape_cast %21 : vector<256xf32> to vector<1x256xf32>
      %c0_19 = arith.constant 0 : index
      %c1 = arith.constant 1 : index
      %c0_20 = arith.constant 0 : index
      %23 = vector.load %arg7[%c0_19, %c1, %c0_20] : memref<1x8x256xf32, #tpu.memory_space<vmem>>, vector<1x1x256xf32>
      %24 = vector.shape_cast %23 : vector<1x1x256xf32> to vector<1x256xf32>
      %25 = vector.shape_cast %22 : vector<1x256xf32> to vector<1x1x256xf32>
      tpu.vector_store %arg7[%c0_19, %c1, %c0_20], %25 {strides = array<i32>} : memref<1x8x256xf32, #tpu.memory_space<vmem>>, vector<1x1x256xf32>,
      %26 = arith.truncf %14 : vector<32x256xf32> to vector<32x256xbf16>
      %c0_21 = arith.constant 0 : index
      %c0_22 = arith.constant 0 : index
      %c0_23 = arith.constant 0 : index
      %27 = vector.load %arg6[%c0_21, %c0_22, %c0_23] : memref<1x32x256xbf16, #tpu.memory_space<vmem>>, vector<1x32x256xbf16>
      %28 = vector.shape_cast %27 : vector<1x32x256xbf16> to vector<32x256xbf16>
      %29 = vector.shape_cast %26 : vector<32x256xbf16> to vector<1x32x256xbf16>
      tpu.vector_store %arg6[%c0_21, %c0_22, %c0_23], %29 {strides = array<i32>} : memref<1x32x256xbf16, #tpu.memory_space<vmem>>, vector<1x32x256xbf16>,
    } else {
    }
    return
  }
  func.func @transform_0(%arg0: i32, %arg1: i32, %arg2: i32, %arg3: i32) -> (i32, i32, i32) {
    %c0_i32 = arith.constant 0 : i32
    return %arg0, %arg1, %arg3 : i32, i32, i32
  }
  func.func @transform_1(%arg0: i32, %arg1: i32, %arg2: i32, %arg3: i32) -> (i32, i32, i32) {
    %c0_i32 = arith.constant 0 : i32
    return %arg0, %arg3, %arg2 : i32, i32, i32
  }
  func.func @transform_2(%arg0: i32, %arg1: i32, %arg2: i32, %arg3: i32) -> (i32, i32, i32) {
    %c0_i32 = arith.constant 0 : i32
    return %arg0, %arg1, %arg2 : i32, i32, i32
  }
  func.func @transform_3(%arg0: i32, %arg1: i32, %arg2: i32, %arg3: i32) -> (i32, i32, i32) {
    %c0_i32 = arith.constant 0 : i32
    return %arg0, %arg1, %arg2 : i32, i32, i32
  }
}

module attributes {stable_mosaic.version = 11 : i64} {
  func.func @_affine_act_kernel(%arg0: i32, %arg1: memref<128x256xbf16, #tpu.memory_space<vmem>>, %arg2: memref<1x256xf32, #tpu.memory_space<vmem>>, %arg3: memref<1x256xf32, #tpu.memory_space<vmem>>, %arg4: memref<128x256xbf16, #tpu.memory_space<vmem>>) attributes {dimension_semantics = [#tpu.dimension_semantics<parallel>], iteration_bounds = array<i64: 1>, scalar_prefetch = 0 : i64, scratch_operands = 0 : i64, tpu.core_type = #tpu.core_type<tc>, window_params = [{transform_indices = @transform_0, window_bounds = array<i64: 128, 256>}, {pipeline_mode = #tpu.pipeline_mode<synchronous>, transform_indices = @transform_1, window_bounds = array<i64: 1, 256>}, {pipeline_mode = #tpu.pipeline_mode<synchronous>, transform_indices = @transform_2, window_bounds = array<i64: 1, 256>}, {transform_indices = @transform_3, window_bounds = array<i64: 128, 256>}]} {
    %c0 = arith.constant 0 : index
    %c0_0 = arith.constant 0 : index
    %0 = vector.load %arg1[%c0, %c0_0] : memref<128x256xbf16, #tpu.memory_space<vmem>>, vector<128x256xbf16>
    %1 = arith.extf %0 : vector<128x256xbf16> to vector<128x256xf32>
    %c0_1 = arith.constant 0 : index
    %c0_2 = arith.constant 0 : index
    %2 = vector.load %arg2[%c0_1, %c0_2] : memref<1x256xf32, #tpu.memory_space<vmem>>, vector<1x256xf32>
    %3 = vector.broadcast %2 : vector<1x256xf32> to vector<128x256xf32>
    %4 = arith.mulf %1, %3 : vector<128x256xf32>
    %c0_3 = arith.constant 0 : index
    %c0_4 = arith.constant 0 : index
    %5 = vector.load %arg3[%c0_3, %c0_4] : memref<1x256xf32, #tpu.memory_space<vmem>>, vector<1x256xf32>
    %6 = vector.broadcast %5 : vector<1x256xf32> to vector<128x256xf32>
    %7 = arith.addf %4, %6 : vector<128x256xf32>
    %cst = arith.constant 0.000000e+00 : f32
    %8 = vector.broadcast %cst : f32 to vector<128x256xf32>
    %9 = arith.maximumf %7, %8 : vector<128x256xf32>
    %10 = arith.truncf %9 : vector<128x256xf32> to vector<128x256xbf16>
    %c0_5 = arith.constant 0 : index
    %c0_6 = arith.constant 0 : index
    %11 = vector.load %arg4[%c0_5, %c0_6] : memref<128x256xbf16, #tpu.memory_space<vmem>>, vector<128x256xbf16>
    tpu.vector_store %arg4[%c0_5, %c0_6], %10 {strides = array<i32>} : memref<128x256xbf16, #tpu.memory_space<vmem>>, vector<128x256xbf16>,
    return
  }
  func.func @transform_0(%arg0: i32) -> (i32, i32) {
    %c0_i32 = arith.constant 0 : i32
    %c0_i32_0 = arith.constant 0 : i32
    return %arg0, %c0_i32 : i32, i32
  }
  func.func @transform_1(%arg0: i32) -> (i32, i32) {
    %c0_i32 = arith.constant 0 : i32
    %c0_i32_0 = arith.constant 0 : i32
    %c0_i32_1 = arith.constant 0 : i32
    return %c0_i32, %c0_i32_0 : i32, i32
  }
  func.func @transform_2(%arg0: i32) -> (i32, i32) {
    %c0_i32 = arith.constant 0 : i32
    %c0_i32_0 = arith.constant 0 : i32
    %c0_i32_1 = arith.constant 0 : i32
    return %c0_i32, %c0_i32_0 : i32, i32
  }
  func.func @transform_3(%arg0: i32) -> (i32, i32) {
    %c0_i32 = arith.constant 0 : i32
    %c0_i32_0 = arith.constant 0 : i32
    return %arg0, %c0_i32 : i32, i32
  }
}

module attributes {stable_mosaic.version = 11 : i64} {
  func.func @_matmul_kernel(%arg0: i32, %arg1: i32, %arg2: i32, %arg3: i32, %arg4: memref<1x128x1024xbf16, #tpu.memory_space<vmem>>, %arg5: memref<1x1024x128xbf16, #tpu.memory_space<vmem>>, %arg6: memref<1x128x128xbf16, #tpu.memory_space<vmem>>, %arg7: memref<1x8x128xf32, #tpu.memory_space<vmem>>, %arg8: memref<128x128xf32, #tpu.memory_space<vmem>>) attributes {dimension_semantics = [#tpu.dimension_semantics<parallel>, #tpu.dimension_semantics<parallel>, #tpu.dimension_semantics<parallel>, #tpu.dimension_semantics<arbitrary>], iteration_bounds = array<i64: 4, 1, 1, 1>, scalar_prefetch = 0 : i64, scratch_operands = 1 : i64, tpu.core_type = #tpu.core_type<tc>, window_params = [{transform_indices = @transform_0, window_bounds = array<i64: 1, 128, 1024>}, {transform_indices = @transform_1, window_bounds = array<i64: 1, 1024, 128>}, {transform_indices = @transform_2, window_bounds = array<i64: 1, 128, 128>}, {transform_indices = @transform_3, window_bounds = array<i64: 1, 8, 128>}]} {
    %c0_i32 = arith.constant 0 : i32
    %0 = arith.cmpi eq, %arg3, %c0_i32 : i32
    %1 = arith.extui %0 : i1 to i32
    %c0_i32_0 = arith.constant 0 : i32
    %2 = arith.cmpi ne, %1, %c0_i32_0 : i32
    scf.if %2 {
      %cst_12 = arith.constant 0.000000e+00 : f32
      %14 = vector.broadcast %cst_12 : f32 to vector<128x128xf32>
      %c0_13 = arith.constant 0 : index
      %c0_14 = arith.constant 0 : index
      %15 = vector.load %arg8[%c0_13, %c0_14] : memref<128x128xf32, #tpu.memory_space<vmem>>, vector<128x128xf32>
      tpu.vector_store %arg8[%c0_13, %c0_14], %14 {strides = array<i32>} : memref<128x128xf32, #tpu.memory_space<vmem>>, vector<128x128xf32>,
    } else {
    }
    %c0 = arith.constant 0 : index
    %c0_1 = arith.constant 0 : index
    %3 = vector.load %arg8[%c0, %c0_1] : memref<128x128xf32, #tpu.memory_space<vmem>>, vector<128x128xf32>
    %c0_2 = arith.constant 0 : index
    %c0_3 = arith.constant 0 : index
    %c0_4 = arith.constant 0 : index
    %4 = vector.load %arg4[%c0_2, %c0_3, %c0_4] : memref<1x128x1024xbf16, #tpu.memory_space<vmem>>, vector<1x128x1024xbf16>
    %5 = vector.shape_cast %4 : vector<1x128x1024xbf16> to vector<128x1024xbf16>
    %c0_5 = arith.constant 0 : index
    %c0_6 = arith.constant 0 : index
    %c0_7 = arith.constant 0 : index
    %6 = vector.load %arg5[%c0_5, %c0_6, %c0_7] : memref<1x1024x128xbf16, #tpu.memory_space<vmem>>, vector<1x1024x128xbf16>
    %7 = vector.shape_cast %6 : vector<1x1024x128xbf16> to vector<1024x128xbf16>
    %cst = arith.constant dense<0.000000e+00> : vector<128x128xf32>
    %8 = tpu.matmul %5, %7, %cst {dimension_numbers = #tpu.dot_dimension_numbers<[1], [0], [0], [1], [0, 0, 1, 1], [], []>} : vector<128x1024xbf16>, vector<1024x128xbf16>, vector<128x128xf32> -> vector<128x128xf32>
    %9 = arith.addf %3, %8 : vector<128x128xf32>
    %c0_8 = arith.constant 0 : index
    %c0_9 = arith.constant 0 : index
    %10 = vector.load %arg8[%c0_8, %c0_9] : memref<128x128xf32, #tpu.memory_space<vmem>>, vector<128x128xf32>
    tpu.vector_store %arg8[%c0_8, %c0_9], %9 {strides = array<i32>} : memref<128x128xf32, #tpu.memory_space<vmem>>, vector<128x128xf32>,
    %c0_i32_10 = arith.constant 0 : i32
    %11 = arith.cmpi eq, %arg3, %c0_i32_10 : i32
    %12 = arith.extui %11 : i1 to i32
    %c0_i32_11 = arith.constant 0 : i32
    %13 = arith.cmpi ne, %12, %c0_i32_11 : i32
    scf.if %13 {
      %c0_12 = arith.constant 0 : index
      %c0_13 = arith.constant 0 : index
      %14 = vector.load %arg8[%c0_12, %c0_13] : memref<128x128xf32, #tpu.memory_space<vmem>>, vector<128x128xf32>
      %cst_14 = arith.constant dense<0.000000e+00> : vector<128xf32>
      %15 = vector.multi_reduction <add>, %14, %cst_14 [0] : vector<128x128xf32> to vector<128xf32>
      %16 = vector.shape_cast %15 : vector<128xf32> to vector<1x128xf32>
      %c0_15 = arith.constant 0 : index
      %c0_16 = arith.constant 0 : index
      %c0_17 = arith.constant 0 : index
      %17 = vector.load %arg7[%c0_15, %c0_16, %c0_17] : memref<1x8x128xf32, #tpu.memory_space<vmem>>, vector<1x1x128xf32>
      %18 = vector.shape_cast %17 : vector<1x1x128xf32> to vector<1x128xf32>
      %19 = vector.shape_cast %16 : vector<1x128xf32> to vector<1x1x128xf32>
      tpu.vector_store %arg7[%c0_15, %c0_16, %c0_17], %19 {strides = array<i32>} : memref<1x8x128xf32, #tpu.memory_space<vmem>>, vector<1x1x128xf32>,
      %20 = arith.mulf %14, %14 : vector<128x128xf32>
      %cst_18 = arith.constant dense<0.000000e+00> : vector<128xf32>
      %21 = vector.multi_reduction <add>, %20, %cst_18 [0] : vector<128x128xf32> to vector<128xf32>
      %22 = vector.shape_cast %21 : vector<128xf32> to vector<1x128xf32>
      %c0_19 = arith.constant 0 : index
      %c1 = arith.constant 1 : index
      %c0_20 = arith.constant 0 : index
      %23 = vector.load %arg7[%c0_19, %c1, %c0_20] : memref<1x8x128xf32, #tpu.memory_space<vmem>>, vector<1x1x128xf32>
      %24 = vector.shape_cast %23 : vector<1x1x128xf32> to vector<1x128xf32>
      %25 = vector.shape_cast %22 : vector<1x128xf32> to vector<1x1x128xf32>
      tpu.vector_store %arg7[%c0_19, %c1, %c0_20], %25 {strides = array<i32>} : memref<1x8x128xf32, #tpu.memory_space<vmem>>, vector<1x1x128xf32>,
      %26 = arith.truncf %14 : vector<128x128xf32> to vector<128x128xbf16>
      %c0_21 = arith.constant 0 : index
      %c0_22 = arith.constant 0 : index
      %c0_23 = arith.constant 0 : index
      %27 = vector.load %arg6[%c0_21, %c0_22, %c0_23] : memref<1x128x128xbf16, #tpu.memory_space<vmem>>, vector<1x128x128xbf16>
      %28 = vector.shape_cast %27 : vector<1x128x128xbf16> to vector<128x128xbf16>
      %29 = vector.shape_cast %26 : vector<128x128xbf16> to vector<1x128x128xbf16>
      tpu.vector_store %arg6[%c0_21, %c0_22, %c0_23], %29 {strides = array<i32>} : memref<1x128x128xbf16, #tpu.memory_space<vmem>>, vector<1x128x128xbf16>,
    } else {
    }
    return
  }
  func.func @transform_0(%arg0: i32, %arg1: i32, %arg2: i32, %arg3: i32) -> (i32, i32, i32) {
    %c0_i32 = arith.constant 0 : i32
    return %arg0, %arg1, %arg3 : i32, i32, i32
  }
  func.func @transform_1(%arg0: i32, %arg1: i32, %arg2: i32, %arg3: i32) -> (i32, i32, i32) {
    %c0_i32 = arith.constant 0 : i32
    return %arg0, %arg3, %arg2 : i32, i32, i32
  }
  func.func @transform_2(%arg0: i32, %arg1: i32, %arg2: i32, %arg3: i32) -> (i32, i32, i32) {
    %c0_i32 = arith.constant 0 : i32
    return %arg0, %arg1, %arg2 : i32, i32, i32
  }
  func.func @transform_3(%arg0: i32, %arg1: i32, %arg2: i32, %arg3: i32) -> (i32, i32, i32) {
    %c0_i32 = arith.constant 0 : i32
    return %arg0, %arg1, %arg2 : i32, i32, i32
  }
}

module attributes {stable_mosaic.version = 11 : i64} {
  func.func @_affine_act_kernel(%arg0: i32, %arg1: memref<512x128xbf16, #tpu.memory_space<vmem>>, %arg2: memref<1x128xf32, #tpu.memory_space<vmem>>, %arg3: memref<1x128xf32, #tpu.memory_space<vmem>>, %arg4: memref<512x128xbf16, #tpu.memory_space<vmem>>) attributes {dimension_semantics = [#tpu.dimension_semantics<parallel>], iteration_bounds = array<i64: 1>, scalar_prefetch = 0 : i64, scratch_operands = 0 : i64, tpu.core_type = #tpu.core_type<tc>, window_params = [{transform_indices = @transform_0, window_bounds = array<i64: 512, 128>}, {pipeline_mode = #tpu.pipeline_mode<synchronous>, transform_indices = @transform_1, window_bounds = array<i64: 1, 128>}, {pipeline_mode = #tpu.pipeline_mode<synchronous>, transform_indices = @transform_2, window_bounds = array<i64: 1, 128>}, {transform_indices = @transform_3, window_bounds = array<i64: 512, 128>}]} {
    %c0 = arith.constant 0 : index
    %c0_0 = arith.constant 0 : index
    %0 = vector.load %arg1[%c0, %c0_0] : memref<512x128xbf16, #tpu.memory_space<vmem>>, vector<512x128xbf16>
    %1 = arith.extf %0 : vector<512x128xbf16> to vector<512x128xf32>
    %c0_1 = arith.constant 0 : index
    %c0_2 = arith.constant 0 : index
    %2 = vector.load %arg2[%c0_1, %c0_2] : memref<1x128xf32, #tpu.memory_space<vmem>>, vector<1x128xf32>
    %3 = vector.broadcast %2 : vector<1x128xf32> to vector<512x128xf32>
    %4 = arith.mulf %1, %3 : vector<512x128xf32>
    %c0_3 = arith.constant 0 : index
    %c0_4 = arith.constant 0 : index
    %5 = vector.load %arg3[%c0_3, %c0_4] : memref<1x128xf32, #tpu.memory_space<vmem>>, vector<1x128xf32>
    %6 = vector.broadcast %5 : vector<1x128xf32> to vector<512x128xf32>
    %7 = arith.addf %4, %6 : vector<512x128xf32>
    %cst = arith.constant 0.000000e+00 : f32
    %8 = vector.broadcast %cst : f32 to vector<512x128xf32>
    %9 = arith.maximumf %7, %8 : vector<512x128xf32>
    %10 = arith.truncf %9 : vector<512x128xf32> to vector<512x128xbf16>
    %c0_5 = arith.constant 0 : index
    %c0_6 = arith.constant 0 : index
    %11 = vector.load %arg4[%c0_5, %c0_6] : memref<512x128xbf16, #tpu.memory_space<vmem>>, vector<512x128xbf16>
    tpu.vector_store %arg4[%c0_5, %c0_6], %10 {strides = array<i32>} : memref<512x128xbf16, #tpu.memory_space<vmem>>, vector<512x128xbf16>,
    return
  }
  func.func @transform_0(%arg0: i32) -> (i32, i32) {
    %c0_i32 = arith.constant 0 : i32
    %c0_i32_0 = arith.constant 0 : i32
    return %arg0, %c0_i32 : i32, i32
  }
  func.func @transform_1(%arg0: i32) -> (i32, i32) {
    %c0_i32 = arith.constant 0 : i32
    %c0_i32_0 = arith.constant 0 : i32
    %c0_i32_1 = arith.constant 0 : i32
    return %c0_i32, %c0_i32_0 : i32, i32
  }
  func.func @transform_2(%arg0: i32) -> (i32, i32) {
    %c0_i32 = arith.constant 0 : i32
    %c0_i32_0 = arith.constant 0 : i32
    %c0_i32_1 = arith.constant 0 : i32
    return %c0_i32, %c0_i32_0 : i32, i32
  }
  func.func @transform_3(%arg0: i32) -> (i32, i32) {
    %c0_i32 = arith.constant 0 : i32
    %c0_i32_0 = arith.constant 0 : i32
    return %arg0, %c0_i32 : i32, i32
  }
}

module attributes {stable_mosaic.version = 11 : i64} {
  func.func @_matmul_kernel(%arg0: i32, %arg1: i32, %arg2: i32, %arg3: i32, %arg4: memref<1x512x512xbf16, #tpu.memory_space<vmem>>, %arg5: memref<1x512x128xbf16, #tpu.memory_space<vmem>>, %arg6: memref<1x512x128xbf16, #tpu.memory_space<vmem>>, %arg7: memref<1x8x128xf32, #tpu.memory_space<vmem>>, %arg8: memref<512x128xf32, #tpu.memory_space<vmem>>) attributes {dimension_semantics = [#tpu.dimension_semantics<parallel>, #tpu.dimension_semantics<parallel>, #tpu.dimension_semantics<parallel>, #tpu.dimension_semantics<arbitrary>], iteration_bounds = array<i64: 4, 1, 1, 1>, scalar_prefetch = 0 : i64, scratch_operands = 1 : i64, tpu.core_type = #tpu.core_type<tc>, window_params = [{transform_indices = @transform_0, window_bounds = array<i64: 1, 512, 512>}, {transform_indices = @transform_1, window_bounds = array<i64: 1, 512, 128>}, {transform_indices = @transform_2, window_bounds = array<i64: 1, 512, 128>}, {transform_indices = @transform_3, window_bounds = array<i64: 1, 8, 128>}]} {
    %c0_i32 = arith.constant 0 : i32
    %0 = arith.cmpi eq, %arg3, %c0_i32 : i32
    %1 = arith.extui %0 : i1 to i32
    %c0_i32_0 = arith.constant 0 : i32
    %2 = arith.cmpi ne, %1, %c0_i32_0 : i32
    scf.if %2 {
      %cst_12 = arith.constant 0.000000e+00 : f32
      %14 = vector.broadcast %cst_12 : f32 to vector<512x128xf32>
      %c0_13 = arith.constant 0 : index
      %c0_14 = arith.constant 0 : index
      %15 = vector.load %arg8[%c0_13, %c0_14] : memref<512x128xf32, #tpu.memory_space<vmem>>, vector<512x128xf32>
      tpu.vector_store %arg8[%c0_13, %c0_14], %14 {strides = array<i32>} : memref<512x128xf32, #tpu.memory_space<vmem>>, vector<512x128xf32>,
    } else {
    }
    %c0 = arith.constant 0 : index
    %c0_1 = arith.constant 0 : index
    %3 = vector.load %arg8[%c0, %c0_1] : memref<512x128xf32, #tpu.memory_space<vmem>>, vector<512x128xf32>
    %c0_2 = arith.constant 0 : index
    %c0_3 = arith.constant 0 : index
    %c0_4 = arith.constant 0 : index
    %4 = vector.load %arg4[%c0_2, %c0_3, %c0_4] : memref<1x512x512xbf16, #tpu.memory_space<vmem>>, vector<1x512x512xbf16>
    %5 = vector.shape_cast %4 : vector<1x512x512xbf16> to vector<512x512xbf16>
    %c0_5 = arith.constant 0 : index
    %c0_6 = arith.constant 0 : index
    %c0_7 = arith.constant 0 : index
    %6 = vector.load %arg5[%c0_5, %c0_6, %c0_7] : memref<1x512x128xbf16, #tpu.memory_space<vmem>>, vector<1x512x128xbf16>
    %7 = vector.shape_cast %6 : vector<1x512x128xbf16> to vector<512x128xbf16>
    %cst = arith.constant dense<0.000000e+00> : vector<512x128xf32>
    %8 = tpu.matmul %5, %7, %cst {dimension_numbers = #tpu.dot_dimension_numbers<[1], [0], [0], [1], [0, 0, 1, 1], [], []>} : vector<512x512xbf16>, vector<512x128xbf16>, vector<512x128xf32> -> vector<512x128xf32>
    %9 = arith.addf %3, %8 : vector<512x128xf32>
    %c0_8 = arith.constant 0 : index
    %c0_9 = arith.constant 0 : index
    %10 = vector.load %arg8[%c0_8, %c0_9] : memref<512x128xf32, #tpu.memory_space<vmem>>, vector<512x128xf32>
    tpu.vector_store %arg8[%c0_8, %c0_9], %9 {strides = array<i32>} : memref<512x128xf32, #tpu.memory_space<vmem>>, vector<512x128xf32>,
    %c0_i32_10 = arith.constant 0 : i32
    %11 = arith.cmpi eq, %arg3, %c0_i32_10 : i32
    %12 = arith.extui %11 : i1 to i32
    %c0_i32_11 = arith.constant 0 : i32
    %13 = arith.cmpi ne, %12, %c0_i32_11 : i32
    scf.if %13 {
      %c0_12 = arith.constant 0 : index
      %c0_13 = arith.constant 0 : index
      %14 = vector.load %arg8[%c0_12, %c0_13] : memref<512x128xf32, #tpu.memory_space<vmem>>, vector<512x128xf32>
      %cst_14 = arith.constant dense<0.000000e+00> : vector<128xf32>
      %15 = vector.multi_reduction <add>, %14, %cst_14 [0] : vector<512x128xf32> to vector<128xf32>
      %16 = vector.shape_cast %15 : vector<128xf32> to vector<1x128xf32>
      %c0_15 = arith.constant 0 : index
      %c0_16 = arith.constant 0 : index
      %c0_17 = arith.constant 0 : index
      %17 = vector.load %arg7[%c0_15, %c0_16, %c0_17] : memref<1x8x128xf32, #tpu.memory_space<vmem>>, vector<1x1x128xf32>
      %18 = vector.shape_cast %17 : vector<1x1x128xf32> to vector<1x128xf32>
      %19 = vector.shape_cast %16 : vector<1x128xf32> to vector<1x1x128xf32>
      tpu.vector_store %arg7[%c0_15, %c0_16, %c0_17], %19 {strides = array<i32>} : memref<1x8x128xf32, #tpu.memory_space<vmem>>, vector<1x1x128xf32>,
      %20 = arith.mulf %14, %14 : vector<512x128xf32>
      %cst_18 = arith.constant dense<0.000000e+00> : vector<128xf32>
      %21 = vector.multi_reduction <add>, %20, %cst_18 [0] : vector<512x128xf32> to vector<128xf32>
      %22 = vector.shape_cast %21 : vector<128xf32> to vector<1x128xf32>
      %c0_19 = arith.constant 0 : index
      %c1 = arith.constant 1 : index
      %c0_20 = arith.constant 0 : index
      %23 = vector.load %arg7[%c0_19, %c1, %c0_20] : memref<1x8x128xf32, #tpu.memory_space<vmem>>, vector<1x1x128xf32>
      %24 = vector.shape_cast %23 : vector<1x1x128xf32> to vector<1x128xf32>
      %25 = vector.shape_cast %22 : vector<1x128xf32> to vector<1x1x128xf32>
      tpu.vector_store %arg7[%c0_19, %c1, %c0_20], %25 {strides = array<i32>} : memref<1x8x128xf32, #tpu.memory_space<vmem>>, vector<1x1x128xf32>,
      %26 = arith.truncf %14 : vector<512x128xf32> to vector<512x128xbf16>
      %c0_21 = arith.constant 0 : index
      %c0_22 = arith.constant 0 : index
      %c0_23 = arith.constant 0 : index
      %27 = vector.load %arg6[%c0_21, %c0_22, %c0_23] : memref<1x512x128xbf16, #tpu.memory_space<vmem>>, vector<1x512x128xbf16>
      %28 = vector.shape_cast %27 : vector<1x512x128xbf16> to vector<512x128xbf16>
      %29 = vector.shape_cast %26 : vector<512x128xbf16> to vector<1x512x128xbf16>
      tpu.vector_store %arg6[%c0_21, %c0_22, %c0_23], %29 {strides = array<i32>} : memref<1x512x128xbf16, #tpu.memory_space<vmem>>, vector<1x512x128xbf16>,
    } else {
    }
    return
  }
  func.func @transform_0(%arg0: i32, %arg1: i32, %arg2: i32, %arg3: i32) -> (i32, i32, i32) {
    %c0_i32 = arith.constant 0 : i32
    return %arg0, %arg1, %arg3 : i32, i32, i32
  }
  func.func @transform_1(%arg0: i32, %arg1: i32, %arg2: i32, %arg3: i32) -> (i32, i32, i32) {
    %c0_i32 = arith.constant 0 : i32
    return %arg0, %arg3, %arg2 : i32, i32, i32
  }
  func.func @transform_2(%arg0: i32, %arg1: i32, %arg2: i32, %arg3: i32) -> (i32, i32, i32) {
    %c0_i32 = arith.constant 0 : i32
    return %arg0, %arg1, %arg2 : i32, i32, i32
  }
  func.func @transform_3(%arg0: i32, %arg1: i32, %arg2: i32, %arg3: i32) -> (i32, i32, i32) {
    %c0_i32 = arith.constant 0 : i32
    return %arg0, %arg1, %arg2 : i32, i32, i32
  }
}

module attributes {stable_mosaic.version = 11 : i64} {
  func.func @_affine_act_kernel(%arg0: i32, %arg1: memref<2048x128xbf16, #tpu.memory_space<vmem>>, %arg2: memref<1x128xf32, #tpu.memory_space<vmem>>, %arg3: memref<1x128xf32, #tpu.memory_space<vmem>>, %arg4: memref<2048x128xbf16, #tpu.memory_space<vmem>>) attributes {dimension_semantics = [#tpu.dimension_semantics<parallel>], iteration_bounds = array<i64: 1>, scalar_prefetch = 0 : i64, scratch_operands = 0 : i64, tpu.core_type = #tpu.core_type<tc>, window_params = [{transform_indices = @transform_0, window_bounds = array<i64: 2048, 128>}, {pipeline_mode = #tpu.pipeline_mode<synchronous>, transform_indices = @transform_1, window_bounds = array<i64: 1, 128>}, {pipeline_mode = #tpu.pipeline_mode<synchronous>, transform_indices = @transform_2, window_bounds = array<i64: 1, 128>}, {transform_indices = @transform_3, window_bounds = array<i64: 2048, 128>}]} {
    %c0 = arith.constant 0 : index
    %c0_0 = arith.constant 0 : index
    %0 = vector.load %arg1[%c0, %c0_0] : memref<2048x128xbf16, #tpu.memory_space<vmem>>, vector<2048x128xbf16>
    %1 = arith.extf %0 : vector<2048x128xbf16> to vector<2048x128xf32>
    %c0_1 = arith.constant 0 : index
    %c0_2 = arith.constant 0 : index
    %2 = vector.load %arg2[%c0_1, %c0_2] : memref<1x128xf32, #tpu.memory_space<vmem>>, vector<1x128xf32>
    %3 = vector.broadcast %2 : vector<1x128xf32> to vector<2048x128xf32>
    %4 = arith.mulf %1, %3 : vector<2048x128xf32>
    %c0_3 = arith.constant 0 : index
    %c0_4 = arith.constant 0 : index
    %5 = vector.load %arg3[%c0_3, %c0_4] : memref<1x128xf32, #tpu.memory_space<vmem>>, vector<1x128xf32>
    %6 = vector.broadcast %5 : vector<1x128xf32> to vector<2048x128xf32>
    %7 = arith.addf %4, %6 : vector<2048x128xf32>
    %cst = arith.constant 0.000000e+00 : f32
    %8 = vector.broadcast %cst : f32 to vector<2048x128xf32>
    %9 = arith.maximumf %7, %8 : vector<2048x128xf32>
    %10 = arith.truncf %9 : vector<2048x128xf32> to vector<2048x128xbf16>
    %c0_5 = arith.constant 0 : index
    %c0_6 = arith.constant 0 : index
    %11 = vector.load %arg4[%c0_5, %c0_6] : memref<2048x128xbf16, #tpu.memory_space<vmem>>, vector<2048x128xbf16>
    tpu.vector_store %arg4[%c0_5, %c0_6], %10 {strides = array<i32>} : memref<2048x128xbf16, #tpu.memory_space<vmem>>, vector<2048x128xbf16>,
    return
  }
  func.func @transform_0(%arg0: i32) -> (i32, i32) {
    %c0_i32 = arith.constant 0 : i32
    %c0_i32_0 = arith.constant 0 : i32
    return %arg0, %c0_i32 : i32, i32
  }
  func.func @transform_1(%arg0: i32) -> (i32, i32) {
    %c0_i32 = arith.constant 0 : i32
    %c0_i32_0 = arith.constant 0 : i32
    %c0_i32_1 = arith.constant 0 : i32
    return %c0_i32, %c0_i32_0 : i32, i32
  }
  func.func @transform_2(%arg0: i32) -> (i32, i32) {
    %c0_i32 = arith.constant 0 : i32
    %c0_i32_0 = arith.constant 0 : i32
    %c0_i32_1 = arith.constant 0 : i32
    return %c0_i32, %c0_i32_0 : i32, i32
  }
  func.func @transform_3(%arg0: i32) -> (i32, i32) {
    %c0_i32 = arith.constant 0 : i32
    %c0_i32_0 = arith.constant 0 : i32
    return %arg0, %c0_i32 : i32, i32
  }
}

module attributes {stable_mosaic.version = 11 : i64} {
  func.func @_matmul_kernel(%arg0: i32, %arg1: i32, %arg2: i32, %arg3: i32, %arg4: memref<1x512x256xbf16, #tpu.memory_space<vmem>>, %arg5: memref<1x256x128xbf16, #tpu.memory_space<vmem>>, %arg6: memref<1x512x128xbf16, #tpu.memory_space<vmem>>, %arg7: memref<512x128xf32, #tpu.memory_space<vmem>>) attributes {dimension_semantics = [#tpu.dimension_semantics<parallel>, #tpu.dimension_semantics<parallel>, #tpu.dimension_semantics<parallel>, #tpu.dimension_semantics<arbitrary>], iteration_bounds = array<i64: 4, 4, 1, 1>, scalar_prefetch = 0 : i64, scratch_operands = 1 : i64, tpu.core_type = #tpu.core_type<tc>, window_params = [{transform_indices = @transform_0, window_bounds = array<i64: 1, 512, 256>}, {transform_indices = @transform_1, window_bounds = array<i64: 1, 256, 128>}, {transform_indices = @transform_2, window_bounds = array<i64: 1, 512, 128>}]} {
    %c0_i32 = arith.constant 0 : i32
    %0 = arith.cmpi eq, %arg3, %c0_i32 : i32
    %1 = arith.extui %0 : i1 to i32
    %c0_i32_0 = arith.constant 0 : i32
    %2 = arith.cmpi ne, %1, %c0_i32_0 : i32
    scf.if %2 {
      %cst_12 = arith.constant 0.000000e+00 : f32
      %14 = vector.broadcast %cst_12 : f32 to vector<512x128xf32>
      %c0_13 = arith.constant 0 : index
      %c0_14 = arith.constant 0 : index
      %15 = vector.load %arg7[%c0_13, %c0_14] : memref<512x128xf32, #tpu.memory_space<vmem>>, vector<512x128xf32>
      tpu.vector_store %arg7[%c0_13, %c0_14], %14 {strides = array<i32>} : memref<512x128xf32, #tpu.memory_space<vmem>>, vector<512x128xf32>,
    } else {
    }
    %c0 = arith.constant 0 : index
    %c0_1 = arith.constant 0 : index
    %3 = vector.load %arg7[%c0, %c0_1] : memref<512x128xf32, #tpu.memory_space<vmem>>, vector<512x128xf32>
    %c0_2 = arith.constant 0 : index
    %c0_3 = arith.constant 0 : index
    %c0_4 = arith.constant 0 : index
    %4 = vector.load %arg4[%c0_2, %c0_3, %c0_4] : memref<1x512x256xbf16, #tpu.memory_space<vmem>>, vector<1x512x256xbf16>
    %5 = vector.shape_cast %4 : vector<1x512x256xbf16> to vector<512x256xbf16>
    %c0_5 = arith.constant 0 : index
    %c0_6 = arith.constant 0 : index
    %c0_7 = arith.constant 0 : index
    %6 = vector.load %arg5[%c0_5, %c0_6, %c0_7] : memref<1x256x128xbf16, #tpu.memory_space<vmem>>, vector<1x256x128xbf16>
    %7 = vector.shape_cast %6 : vector<1x256x128xbf16> to vector<256x128xbf16>
    %cst = arith.constant dense<0.000000e+00> : vector<512x128xf32>
    %8 = tpu.matmul %5, %7, %cst {dimension_numbers = #tpu.dot_dimension_numbers<[1], [0], [0], [1], [0, 0, 1, 1], [], []>} : vector<512x256xbf16>, vector<256x128xbf16>, vector<512x128xf32> -> vector<512x128xf32>
    %9 = arith.addf %3, %8 : vector<512x128xf32>
    %c0_8 = arith.constant 0 : index
    %c0_9 = arith.constant 0 : index
    %10 = vector.load %arg7[%c0_8, %c0_9] : memref<512x128xf32, #tpu.memory_space<vmem>>, vector<512x128xf32>
    tpu.vector_store %arg7[%c0_8, %c0_9], %9 {strides = array<i32>} : memref<512x128xf32, #tpu.memory_space<vmem>>, vector<512x128xf32>,
    %c0_i32_10 = arith.constant 0 : i32
    %11 = arith.cmpi eq, %arg3, %c0_i32_10 : i32
    %12 = arith.extui %11 : i1 to i32
    %c0_i32_11 = arith.constant 0 : i32
    %13 = arith.cmpi ne, %12, %c0_i32_11 : i32
    scf.if %13 {
      %c0_12 = arith.constant 0 : index
      %c0_13 = arith.constant 0 : index
      %14 = vector.load %arg7[%c0_12, %c0_13] : memref<512x128xf32, #tpu.memory_space<vmem>>, vector<512x128xf32>
      %15 = math.tanh %14 : vector<512x128xf32>
      %16 = arith.truncf %15 : vector<512x128xf32> to vector<512x128xbf16>
      %c0_14 = arith.constant 0 : index
      %c0_15 = arith.constant 0 : index
      %c0_16 = arith.constant 0 : index
      %17 = vector.load %arg6[%c0_14, %c0_15, %c0_16] : memref<1x512x128xbf16, #tpu.memory_space<vmem>>, vector<1x512x128xbf16>
      %18 = vector.shape_cast %17 : vector<1x512x128xbf16> to vector<512x128xbf16>
      %19 = vector.shape_cast %16 : vector<512x128xbf16> to vector<1x512x128xbf16>
      tpu.vector_store %arg6[%c0_14, %c0_15, %c0_16], %19 {strides = array<i32>} : memref<1x512x128xbf16, #tpu.memory_space<vmem>>, vector<1x512x128xbf16>,
    } else {
    }
    return
  }
  func.func @transform_0(%arg0: i32, %arg1: i32, %arg2: i32, %arg3: i32) -> (i32, i32, i32) {
    %c0_i32 = arith.constant 0 : i32
    return %arg0, %arg1, %arg3 : i32, i32, i32
  }
  func.func @transform_1(%arg0: i32, %arg1: i32, %arg2: i32, %arg3: i32) -> (i32, i32, i32) {
    %c0_i32 = arith.constant 0 : i32
    return %arg0, %arg3, %arg2 : i32, i32, i32
  }
  func.func @transform_2(%arg0: i32, %arg1: i32, %arg2: i32, %arg3: i32) -> (i32, i32, i32) {
    %c0_i32 = arith.constant 0 : i32
    return %arg0, %arg1, %arg2 : i32, i32, i32
  }
}

</mosaic_0001>

<bundles_post_ra>
// kernel: generator_forward.10
= control target key start
LH: loop header
LB: loop body
LE: loop exit
PB: predicated region body
PF: predicated region fallthrough
CT: control target
= control target key end

     0   :  { %v40_v0 = vlaneseq  ;;  %s304_s0 = inlined_call_operand.vmem [shape: bf16[32,512], index: 0, kind: input, shape index: {}]   ;;  %s305_s1 = inlined_call_operand.vmem [shape: f32[1,512], index: 1, kind: input, shape index: {}]   ;;  %s306_s2 = inlined_call_operand.vmem [shape: f32[1,512], index: 2, kind: input, shape index: {}]   ;;  %s307_s3 = inlined_call_operand.vmem [shape: bf16[32,512], index: 3, kind: output, shape index: {}]  }
   0x1   :  { %v14_v1 = vld [vmem:[%s304_s0] sm:$0xff]  ;;  %v15_v5 = vld [vmem:[%s304_s0 + $0x8] sm:$0xff]  ;;  %v16_v6 = vld [vmem:[%s304_s0 + $0x10] sm:$0xff] }
   0x2   :  { %v22_v2 = vunpack.c.l.bf16 %v14_v1  ;;  %v23_v3 = vunpack.c.h.bf16 %v14_v1  ;;  %v41_v4 = vshrl.u32 %v40_v0, 7  ;;  %v17_v7 = vld [vmem:[%s304_s0 + $0x18] sm:$0xff]  ;;  %v38_v8 = vld [vmem:[%s305_s1] sm:$0xf]  ;;  %v24_v10 = vunpack.c.l.bf16 %v15_v5  ;;  %v19_v51 = vld [vmem:[%s304_s0 + $0x28] sm:$0xff] }
   0x3   :  { %v76_v9 = vld [vmem:[%s306_s2] sm:$0xf]  ;;  %v25_v11 = vunpack.c.h.bf16 %v15_v5  ;;  %v26_v12 = vunpack.c.l.bf16 %v16_v6  ;;  %v27_v13 = vunpack.c.h.bf16 %v16_v6  ;;  %v28_v19 = vunpack.c.l.bf16 %v17_v7  ;;  %v20_v56 = vld [vmem:[%s304_s0 + $0x30] sm:$0xff]  ;;  %v21_v61 = vld [vmem:[%s304_s0 + $0x38] sm:$0xff] }
   0x4   :  { %v18_v14 = vld [vmem:[%s304_s0 + $0x20] sm:$0xff]  ;;  %v42_v15 = vsub.s32 0, %v41_v4  ;;  %v46_v16 = vsub.s32 1, %v41_v4  ;;  %v50_v17 = vsub.s32 2, %v41_v4  ;;  %v54_v18 = vsub.s32 3, %v41_v4 }
   0x5   :  { %v29_v20 = vunpack.c.h.bf16 %v17_v7  ;;  %v30_v21 = vunpack.c.l.bf16 %v18_v14  ;;  %v31_v22 = vunpack.c.h.bf16 %v18_v14  ;;  %v32_v0 = vunpack.c.l.bf16 %v19_v51 }
   0x6   :  { %v43_v23 = vrot.slane %v38_v8, %v42_v15  ;;  %v47_v24 = vrot.slane %v38_v8, %v46_v16  ;;  %v247_v25 = vrot.slane %v76_v9, %v42_v15  ;;  %v249_v26 = vrot.slane %v76_v9, %v46_v16 }
   0x7   :  { %v51_v27 = vrot.slane %v38_v8, %v50_v17  ;;  %v55_v28 = vrot.slane %v38_v8, %v54_v18  ;;  %v251_v29 = vrot.slane %v76_v9, %v50_v17  ;;  %v253_v30 = vrot.slane %v76_v9, %v54_v18 }
   0x8   :  { %v60_v31 = vmul.f32 %v43_v23, %v22_v2  ;;  %v61_v32 = vmul.f32 %v47_v24, %v23_v3  ;;  %v64_v33 = vmul.f32 %v43_v23, %v26_v12  ;;  %v65_v34 = vmul.f32 %v47_v24, %v27_v13 }
   0x9   :  { %v62_v35 = vmul.f32 %v51_v27, %v24_v10  ;;  %v63_v36 = vmul.f32 %v55_v28, %v25_v11  ;;  %v66_v37 = vmul.f32 %v51_v27, %v28_v19  ;;  %v67_v38 = vmul.f32 %v55_v28, %v29_v20 }
   0xa   :  { %v98_v39 = vadd.f32 %v247_v25, %v60_v31  ;;  %v99_v40 = vadd.f32 %v249_v26, %v61_v32  ;;  %v102_v41 = vadd.f32 %v247_v25, %v64_v33  ;;  %v103_v42 = vadd.f32 %v249_v26, %v65_v34 }
   0xb   :  { %v100_v43 = vadd.f32 %v251_v29, %v62_v35  ;;  %v101_v44 = vadd.f32 %v253_v30, %v63_v36  ;;  %v104_v45 = vadd.f32 %v251_v29, %v66_v37  ;;  %v105_v46 = vadd.f32 %v253_v30, %v67_v38 }
   0xc   :  { %v114_v47 = vmax.f32 %v98_v39, 0.0  ;;  %v115_v48 = vmax.f32 %v99_v40, 0.0  ;;  %v118_v49 = vmax.f32 %v102_v41, 0.0  ;;  %v119_v50 = vmax.f32 %v103_v42, 0.0 }
   0xd   :  { %v116_v52 = vmax.f32 %v100_v43, 0.0  ;;  %v117_v53 = vmax.f32 %v101_v44, 0.0  ;;  %v120_v54 = vmax.f32 %v104_v45, 0.0  ;;  %v121_v55 = vmax.f32 %v105_v46, 0.0 }
   0xe   :  { %v198_v57 = vpack.c.bf16 %v115_v48, %v114_v47  ;;  %v200_v58 = vpack.c.bf16 %v119_v50, %v118_v49  ;;  %v68_v59 = vmul.f32 %v43_v23, %v30_v21  ;;  %v69_v60 = vmul.f32 %v47_v24, %v31_v22 }
   0xf   :  { %v199_v62 = vpack.c.bf16 %v117_v53, %v116_v52  ;;  %v201_v63 = vpack.c.bf16 %v121_v55, %v120_v54  ;;  %v33_v1 = vunpack.c.h.bf16 %v19_v51  ;;  %v34_v4 = vunpack.c.l.bf16 %v20_v56 }
  0x10   :  { %178 = vst [vmem:[%s307_s3] sm:$0xff] %v198_v57  ;;  %180 = vst [vmem:[%s307_s3 + $0x10] sm:$0xff] %v200_v58  ;;  %v106_v2 = vadd.f32 %v247_v25, %v68_v59  ;;  %v107_v3 = vadd.f32 %v249_v26, %v69_v60  ;;  %v35_v5 = vunpack.c.h.bf16 %v20_v56  ;;  %v70_v6 = vmul.f32 %v51_v27, %v32_v0 }
  0x11   :  { %179 = vst [vmem:[%s307_s3 + $0x8] sm:$0xff] %v199_v62  ;;  %181 = vst [vmem:[%s307_s3 + $0x18] sm:$0xff] %v201_v63  ;;  %v71_v7 = vmul.f32 %v55_v28, %v33_v1  ;;  %v36_v8 = vunpack.c.l.bf16 %v21_v61  ;;  %v37_v9 = vunpack.c.h.bf16 %v21_v61  ;;  %v72_v12 = vmul.f32 %v43_v23, %v34_v4 }
  0x12   :  { %v122_v10 = vmax.f32 %v106_v2, 0.0  ;;  %v123_v11 = vmax.f32 %v107_v3, 0.0  ;;  %v73_v13 = vmul.f32 %v47_v24, %v35_v5  ;;  %v108_v14 = vadd.f32 %v251_v29, %v70_v6 }
  0x13   :  { %v109_v15 = vadd.f32 %v253_v30, %v71_v7  ;;  %v74_v16 = vmul.f32 %v51_v27, %v36_v8  ;;  %v75_v17 = vmul.f32 %v55_v28, %v37_v9  ;;  %v110_v19 = vadd.f32 %v247_v25, %v72_v12 }
  0x14   :  { %v202_v18 = vpack.c.bf16 %v123_v11, %v122_v10  ;;  %v111_v20 = vadd.f32 %v249_v26, %v73_v13  ;;  %v124_v21 = vmax.f32 %v108_v14, 0.0 }
  0x15   :  { %v125_v22 = vmax.f32 %v109_v15, 0.0  ;;  %v112_v31 = vadd.f32 %v251_v29, %v74_v16  ;;  %v113_v32 = vadd.f32 %v253_v30, %v75_v17  ;;  %v126_v23 = vmax.f32 %v110_v19, 0.0 }
  0x16   :  { %182 = vst [vmem:[%s307_s3 + $0x20] sm:$0xff] %v202_v18  ;;  %v127_v24 = vmax.f32 %v111_v20, 0.0 }
  0x17   :  { %v203_v33 = vpack.c.bf16 %v125_v22, %v124_v21  ;;  %v128_v27 = vmax.f32 %v112_v31, 0.0  ;;  %v129_v28 = vmax.f32 %v113_v32, 0.0 }
  0x18   :  { %v204_v34 = vpack.c.bf16 %v127_v24, %v126_v23 }
  0x19   :  { %183 = vst [vmem:[%s307_s3 + $0x28] sm:$0xff] %v203_v33  ;;  %v205_v25 = vpack.c.bf16 %v129_v28, %v128_v27 }
  0x1a   :  { %184 = vst [vmem:[%s307_s3 + $0x30] sm:$0xff] %v204_v34 }
  0x1b   :  { %185 = vst [vmem:[%s307_s3 + $0x38] sm:$0xff] %v205_v25 }

// kernel: generator_forward.9
= control target key start
LH: loop header
LB: loop body
LE: loop exit
PB: predicated region body
PF: predicated region fallthrough
CT: control target
= control target key end

     0   :  { %s1137_s12 = smov 0   ;;  %s1139_s13 = smov 0   ;;  %s1269_s0 = inlined_call_operand.vmem [shape: bf16[1,32,128], index: 0, kind: input, shape index: {}]   ;;  %s1270_s1 = inlined_call_operand.vmem [shape: bf16[1,128,512], index: 1, kind: input, shape index: {}]   ;;  %s1271_s2 = inlined_call_operand.vmem [shape: bf16[1,32,512], index: 2, kind: output, shape index: {0}]   ;;  %s1272_s3 = inlined_call_operand.vmem [shape: f32[1,8,512], index: 3, kind: output, shape index: {1}]  }
   0x1   :  { %s1141_s14 = smov 0   ;;  %s1143_s15 = smov 0  }
   0x2   :  { %s1145_s16 = smov 0  }
   0x3 LB: > { %s32_s17 = sadd.s32 1, %s1109_s15  ;;  %s944_s18 = sadd.s32 4294967295, %s1113_s16   ;;  %s1113_s16 = sphi %s1145_s16, %s14_s16   ;;  %s1109_s15 = sphi %s1143_s15, %s1277_s15   ;;  %s1105_s14 = sphi %s1141_s14, %s1276_s14   ;;  %s1101_s13 = sphi %s1139_s13, %s1275_s13   ;;  %s1097_s12 = sphi %s1137_s12, %s1274_s12  }
   0x4   : > { %p34_p0 = scmp.ge.s32.totalorder %s32_s17, 2  ;;  %p88_p1 = scmp.ne.s32.totalorder %s1101_s13, %s1097_s12 }
   0x5   : > { %p89_p2 = scmp.eq.s32.totalorder %s1113_s16, 0  ;;  %p122_p4 = scmp.eq.s32.totalorder %s944_s18, 1 }
   0x6   : > { %s1279_s17 = smov (%p34_p0, %s32_s17), 0  ;;  %s81_s20 = sadd.s32 1, %s1101_s13 }
   0x7   : > { %p90_p3 = por %p89_p2, %p88_p1  ;;  %s77_s19 = ssub.s32 %s1109_s15, %s1279_s17 }
   0x8   : > { %p79_p5 = scmp.eq.s32.totalorder %s77_s19, 0  ;;  %p1172_p6 = por %p122_p4, %p88_p1 }
   0x9   : > { %p948_p7 = scmp.ge.s32.totalorder %s1113_s16, 2 }
   0xa   : > { %s1177_s22 = scalar_select %p79_p5, %s1101_s13, %s81_s20  }
   0xb   : > { %190 = sbr.rel (%p948_p7) target bundleno = 30 (0x1e), region = 20 }
  0x12   : > { %193 = sbr.rel (!%p90_p3) target bundleno = 30 (0x1e), region = 24  ;;  %s195_s23 = sand.u32 (%p90_p3), 1, %s1101_s13  }
  0x13   : > { %s985_s24 = sshll.u32 (%p90_p3), %s1109_s15, 3  ;;  %s949_s25 = sshll.u32 (%p90_p3), %s195_s23, 7 }
  0x14   : > { %s1185_s28 = scalar_lea.vmem (%p90_p3), %s1270_s1, %s985_s24  ;;  %s197_s29 = scalar_lea.vmem (%p90_p3), [#allocation3], %s949_s25 }
  0x15   : > { %v263_v0 = vld [vmem:[%s1185_s28] sm:$0xff] (%p90_p3)  ;;  %v265_v1 = vld [vmem:[%s1185_s28 + $0x10] sm:$0xff] (%p90_p3) }
  0x16   : > { %v267_v2 = vld [vmem:[%s1185_s28 + $0x20] sm:$0xff] (%p90_p3)  ;;  %264 = vst [vmem:[%s197_s29] sm:$0xff] (%p90_p3), %v263_v0  ;;  %266 = vst [vmem:[%s197_s29 + $0x8] sm:$0xff] (%p90_p3), %v265_v1  ;;  %v269_v3 = vld [vmem:[%s1185_s28 + $0x30] sm:$0xff] (%p90_p3) }
  0x17   : > { %268 = vst [vmem:[%s197_s29 + $0x10] sm:$0xff] (%p90_p3), %v267_v2  ;;  %v271_v4 = vld [vmem:[%s1185_s28 + $0x40] sm:$0xff] (%p90_p3)  ;;  %v273_v5 = vld [vmem:[%s1185_s28 + $0x50] sm:$0xff] (%p90_p3)  ;;  %270 = vst [vmem:[%s197_s29 + $0x18] sm:$0xff] (%p90_p3), %v269_v3 }
  0x18   : > { %272 = vst [vmem:[%s197_s29 + $0x20] sm:$0xff] (%p90_p3), %v271_v4  ;;  %274 = vst [vmem:[%s197_s29 + $0x28] sm:$0xff] (%p90_p3), %v273_v5  ;;  %v275_v6 = vld [vmem:[%s1185_s28 + $0x60] sm:$0xff] (%p90_p3)  ;;  %v277_v7 = vld [vmem:[%s1185_s28 + $0x70] sm:$0xff] (%p90_p3) }
  0x19   : > { %v279_v8 = vld [vmem:[%s1185_s28 + $0x80] sm:$0xff]  ;;  %276 = vst [vmem:[%s197_s29 + $0x30] sm:$0xff] %v275_v6  ;;  %278 = vst [vmem:[%s197_s29 + $0x38] sm:$0xff] %v277_v7  ;;  %v281_v9 = vld [vmem:[%s1185_s28 + $0x90] sm:$0xff] }
  0x1a   : > { %280 = vst [vmem:[%s197_s29 + $0x40] sm:$0xff] %v279_v8  ;;  %v283_v10 = vld [vmem:[%s1185_s28 + $0xa0] sm:$0xff]  ;;  %v285_v11 = vld [vmem:[%s1185_s28 + $0xb0] sm:$0xff]  ;;  %282 = vst [vmem:[%s197_s29 + $0x48] sm:$0xff] %v281_v9 }
  0x1b   : > { %284 = vst [vmem:[%s197_s29 + $0x50] sm:$0xff] %v283_v10  ;;  %286 = vst [vmem:[%s197_s29 + $0x58] sm:$0xff] %v285_v11  ;;  %v287_v12 = vld [vmem:[%s1185_s28 + $0xc0] sm:$0xff]  ;;  %v289_v13 = vld [vmem:[%s1185_s28 + $0xd0] sm:$0xff] }
  0x1c   : > { %v291_v14 = vld [vmem:[%s1185_s28 + $0xe0] sm:$0xff]  ;;  %288 = vst [vmem:[%s197_s29 + $0x60] sm:$0xff] %v287_v12  ;;  %290 = vst [vmem:[%s197_s29 + $0x68] sm:$0xff] %v289_v13  ;;  %v293_v15 = vld [vmem:[%s1185_s28 + $0xf0] sm:$0xff] }
  0x1d   : > { %292 = vst [vmem:[%s197_s29 + $0x70] sm:$0xff] %v291_v14  ;;  %294 = vst [vmem:[%s197_s29 + $0x78] sm:$0xff] %v293_v15 }
  0x1e PF: > { %p952_p8 = scmp.ge.s32.totalorder %s1113_s16, 1  ;;  %p299_p9 = scmp.lt.s32.totalorder %s1113_s16, 3 }
  0x20   : > { %p300_p10 = pnand %p952_p8, %p299_p9 }
  0x21   : > { %s306_s30 = sand.u32 (!%p300_p10), 1, %s1097_s12   ;;  %v1115_v16 = vmov (!%p300_p10), 0   ;;  %v1073_v33 = vld [vmem:[%s1269_s0] sm:$0xff] (!%p300_p10)   ;;  %v1074_v34 = vld [vmem:[%s1269_s0 + $0x8] sm:$0xff] (!%p300_p10)   ;;  %s955_s12 = sshll.u32 (!%p300_p10), %s1105_s14, 1  ;;  %v621_v10 = vlaneseq (!%p300_p10) }
  0x22   : > { %303 = sbr.rel (%p300_p10) target bundleno = 311 (0x137), region = 62  ;;  %s953_s4 = sshll.u32 (!%p300_p10), %s306_s30, 7  ;;  %549 = vmatprep.mubr.bf16.mxu0 (!%p300_p10), %v1115_v16  ;;  %559 = vmatprep.mubr.bf16.mxu1 (!%p300_p10), %v1115_v16  ;;  %v1116_v8 = vmov (!%p300_p10), 1966171168  }
  0x23   : > { %s1208_s5 = scalar_lea.vmem (!%p300_p10), [#allocation3], %s953_s4  ;;  %s954_s10 = sshll.u32 (!%p300_p10), %s306_s30, 5  ;;  %v619_v9 = vunpack.c.l.s4 (!%p300_p10), %v1116_v8  ;;  %vm635_vm0 = vcmp.lt.s32.totalorder (!%p300_p10), %v621_v10, 256 }
  0x24   : > { %v1049_v17 = vld [vmem:[%s1208_s5 + $0x4] ss:$8 sps:$4 sm:$0xff] (!%p300_p10)   ;;  %v1051_v18 = vld [vmem:[%s1208_s5] ss:$8 sps:$4 sm:$0xff] (!%p300_p10)   ;;  %v1052_v19 = vld [vmem:[%s1208_s5 + $0x14] ss:$8 sps:$4 sm:$0xff] (!%p300_p10)  }
  0x25   : > { %517 = vmatprep.subr.bf16.mxu0 (!%p300_p10), %v1049_v17  ;;  %991 = vmatprep.subr.bf16.mxu1 (!%p300_p10), %v1049_v17  ;;  %v1054_v20 = vld [vmem:[%s1208_s5 + $0x10] ss:$8 sps:$4 sm:$0xff] (!%p300_p10)   ;;  %v1055_v21 = vld [vmem:[%s1208_s5 + $0x24] ss:$8 sps:$4 sm:$0xff] (!%p300_p10)   ;;  %v1057_v22 = vld [vmem:[%s1208_s5 + $0x20] ss:$8 sps:$4 sm:$0xff] (!%p300_p10)  }
  0x26   : > { %518 = vmatpush1.bf16.msra.mxu0 (!%p300_p10), %v1051_v18  ;;  %999 = vmatpush1.bf16.msra.mxu1 (!%p300_p10), %v1051_v18  ;;  %v1058_v23 = vld [vmem:[%s1208_s5 + $0x34] ss:$8 sps:$4 sm:$0xff] (!%p300_p10)   ;;  %v1060_v24 = vld [vmem:[%s1208_s5 + $0x30] ss:$8 sps:$4 sm:$0xff] (!%p300_p10)   ;;  %v1061_v25 = vld [vmem:[%s1208_s5 + $0x44] ss:$8 sps:$4 sm:$0xff] (!%p300_p10)  }
  0x27   : > { %519 = vmatprep.subr.bf16.mxu0 (!%p300_p10), %v1052_v19  ;;  %992 = vmatprep.subr.bf16.mxu1 (!%p300_p10), %v1052_v19  ;;  %v1063_v26 = vld [vmem:[%s1208_s5 + $0x40] ss:$8 sps:$4 sm:$0xff] (!%p300_p10)   ;;  %v1064_v27 = vld [vmem:[%s1208_s5 + $0x54] ss:$8 sps:$4 sm:$0xff] (!%p300_p10)   ;;  %v1066_v28 = vld [vmem:[%s1208_s5 + $0x50] ss:$8 sps:$4 sm:$0xff] (!%p300_p10)   ;;  %v620_v19 = vunpack.c.0.s8 (!%p300_p10), %v619_v9 }
  0x28   : > { %v1067_v29 = vld [vmem:[%s1208_s5 + $0x64] ss:$8 sps:$4 sm:$0xff] (!%p300_p10)   ;;  %v1069_v30 = vld [vmem:[%s1208_s5 + $0x60] ss:$8 sps:$4 sm:$0xff] (!%p300_p10)   ;;  %v1070_v31 = vld [vmem:[%s1208_s5 + $0x74] ss:$8 sps:$4 sm:$0xff] (!%p300_p10)  }
  0x29   : > { %v1072_v32 = vld [vmem:[%s1208_s5 + $0x70] ss:$8 sps:$4 sm:$0xff]   ;;  %s1234_s11 = scalar_lea.vmem [#allocation4], %s954_s10  ;;  %p375_p11 = scmp.lt.s32.totalorder %s955_s12, 3 }
  0x2a   : > { %520 = vmatpush1.bf16.msra.mxu0 %v1054_v20  ;;  %1000 = vmatpush1.bf16.msra.mxu1 %v1054_v20  ;;  %v622_v20 = vshrl.u32 %v621_v10, 7  ;;  %s990_s24 = sshll.u32 (%p1172_p6), %s1105_s14, 3 }
  0x2b   : > { %521 = vmatprep.subr.bf16.mxu0 %v1055_v21  ;;  %993 = vmatprep.subr.bf16.mxu1 %v1055_v21  ;;  %s1281_s12 = smov (!%p375_p11, %s955_s12), 3  ;;  %s741_s27 = scalar_lea.vmem (%p1172_p6), %s1271_s2, %s990_s24 }
  0x2c   : > { %s956_s18 = sshll.u32 %s1281_s12, 3 }
  0x2d   : > { %s382_s23 = scalar_lea.vmem %s1272_s3, %s956_s18 }
  0x2e   : > { %522 = vmatpush1.bf16.msra.mxu0 %v1057_v22  ;;  %1001 = vmatpush1.bf16.msra.mxu1 %v1057_v22 }
  0x2f   : > { %523 = vmatprep.subr.bf16.mxu0 %v1058_v23  ;;  %994 = vmatprep.subr.bf16.mxu1 %v1058_v23 }
  0x32   : > { %524 = vmatpush1.bf16.msra.mxu0 %v1060_v24  ;;  %1002 = vmatpush1.bf16.msra.mxu1 %v1060_v24 }
  0x33   : > { %525 = vmatprep.subr.bf16.mxu0 %v1061_v25  ;;  %995 = vmatprep.subr.bf16.mxu1 %v1061_v25 }
  0x36   : > { %526 = vmatpush1.bf16.msra.mxu0 %v1063_v26  ;;  %1003 = vmatpush1.bf16.msra.mxu1 %v1063_v26 }
  0x37   : > { %527 = vmatprep.subr.bf16.mxu0 %v1064_v27  ;;  %996 = vmatprep.subr.bf16.mxu1 %v1064_v27 }
  0x3a   : > { %528 = vmatpush1.bf16.msra.mxu0 %v1066_v28  ;;  %1004 = vmatpush1.bf16.msra.mxu1 %v1066_v28 }
  0x3b   : > { %529 = vmatprep.subr.bf16.mxu0 %v1067_v29  ;;  %997 = vmatprep.subr.bf16.mxu1 %v1067_v29  ;;  %v623_v29 = vsub.s32 %v620_v19, %v622_v20 }
  0x3e   : > { %530 = vmatpush1.bf16.msra.mxu0 %v1069_v30  ;;  %1005 = vmatpush1.bf16.msra.mxu1 %v1069_v30 }
  0x3f   : > { %531 = vmatprep.subr.bf16.mxu0 %v1070_v31  ;;  %998 = vmatprep.subr.bf16.mxu1 %v1070_v31 }
  0x42   : > { %532 = vmatpush1.bf16.msra.mxu0 %v1072_v32  ;;  %1006 = vmatpush1.bf16.msra.mxu1 %v1072_v32 }
  0x45   : > { %550 = vmatmul.mubr.bf16.vlgmr.msra.gmra.mrb[0].mxu0 %v1073_v33  ;;  %560 = vmatmul.mubr.bf16.vlgmr.msra.gmra.mrb[0].mxu1 %v1074_v34 }
 0x118   : > { %v551_v35 = vpop.f32.mrb[0].mxu0  ;;  %v561_v36 = vpop.f32.mrb[0].mxu1 }
 0x119   : > { %v553_v37 = vpop.f32.mrb[1].mxu0  ;;  %v563_v38 = vpop.f32.mrb[1].mxu1  ;;  %v639_v39 = vmul.f32 %v551_v35, %v551_v35  ;;  %v643_v45 = vmul.f32 %v561_v36, %v561_v36 }
 0x11a   : > { %v986_v40 = vpack.c.bf16 %v553_v37, %v551_v35  ;;  %v555_v41 = vpop.f32.mrb[2].mxu0  ;;  %v988_v42 = vpack.c.bf16 %v563_v38, %v561_v36  ;;  %v565_v43 = vpop.f32.mrb[2].mxu1  ;;  %v640_v44 = vmul.f32 %v553_v37, %v553_v37  ;;  %v644_v50 = vmul.f32 %v563_v38, %v563_v38 }
 0x11b   : > { %v597_v46 = vadd.f32 %v555_v41, %v551_v35  ;;  %v641_v47 = vmul.f32 %v555_v41, %v555_v41  ;;  %v557_v48 = vpop.f32.mrb[3].mxu0  ;;  %v567_v49 = vpop.f32.mrb[3].mxu1  ;;  %v645_v60 = vmul.f32 %v565_v43, %v565_v43 }
 0x11c   : > { %710 = vst [vmem:[%s1234_s11] sm:$0xff] %v986_v40  ;;  %712 = vst [vmem:[%s1234_s11 + $0x10] sm:$0xff] %v988_v42  ;;  %v606_v51 = vadd.f32 %v557_v48, %v553_v37  ;;  %v642_v52 = vmul.f32 %v557_v48, %v557_v48  ;;  %v987_v53 = vpack.c.bf16 %v557_v48, %v555_v41 }
 0x11d   : > { %v647_v54 = vadd.f32 %v641_v47, %v639_v39  ;;  %v598_v55 = vadd.f32 %v597_v46, %v561_v36  ;;  %v989_v56 = vpack.c.bf16 %v567_v49, %v565_v43  ;;  %v646_v63 = vmul.f32 %v567_v49, %v567_v49 }
 0x11e   : > { %v656_v57 = vadd.f32 %v642_v52, %v640_v44  ;;  %711 = vst [vmem:[%s1234_s11 + $0x8] sm:$0xff] %v987_v53  ;;  %v607_v58 = vadd.f32 %v606_v51, %v563_v38 }
 0x11f   : > { %v599_v59 = vadd.f32 %v598_v55, %v565_v43  ;;  %v648_v61 = vadd.f32 %v647_v54, %v643_v45  ;;  %713 = vst [vmem:[%s1234_s11 + $0x18] sm:$0xff] %v989_v56 }
 0x120   : > { %v608_v62 = vadd.f32 %v607_v58, %v567_v49  ;;  %v657_v0 = vadd.f32 %v656_v57, %v644_v50 }
 0x121   : > { %v600_v1 = vrot.slane %v599_v59, 4  ;;  %v649_v2 = vadd.f32 %v648_v61, %v645_v60 }
 0x122   : > { %v609_v3 = vrot.slane %v608_v62, 4  ;;  %v658_v4 = vadd.f32 %v657_v0, %v646_v63 }
 0x123   : > { %v601_v5 = vadd.f32 %v600_v1, %v599_v59  ;;  %v650_v6 = vrot.slane %v649_v2, 4  ;;  %v775_v39 = vld [vmem:[%s1234_s11] sm:$0xff] (%p1172_p6)  ;;  %v779_v41 = vld [vmem:[%s1234_s11 + $0x10] sm:$0xff] (%p1172_p6) }
 0x124   : > { %v610_v7 = vadd.f32 %v609_v3, %v608_v62  ;;  %v659_v11 = vrot.slane %v658_v4, 4  ;;  %776 = vst [vmem:[%s741_s27] sm:$0xff] (%p1172_p6), %v775_v39  ;;  %780 = vst [vmem:[%s741_s27 + $0x20] sm:$0xff] (%p1172_p6), %v779_v41 }
 0x125   : > { %v602_v12 = vrot.slane %v601_v5, 2  ;;  %v651_v13 = vadd.f32 %v650_v6, %v649_v2  ;;  %v777_v40 = vld [vmem:[%s1234_s11 + $0x8] sm:$0xff] (%p1172_p6) }
 0x126   : > { %v611_v14 = vrot.slane %v610_v7, 2  ;;  %v660_v15 = vadd.f32 %v659_v11, %v658_v4  ;;  %v781_v42 = vld [vmem:[%s1234_s11 + $0x18] sm:$0xff] (%p1172_p6)  ;;  %778 = vst [vmem:[%s741_s27 + $0x10] sm:$0xff] (%p1172_p6), %v777_v40 }
 0x127   : > { %v603_v16 = vadd.f32 %v602_v12, %v601_v5  ;;  %v652_v17 = vrot.slane %v651_v13, 2  ;;  %782 = vst [vmem:[%s741_s27 + $0x30] sm:$0xff] (%p1172_p6), %v781_v42 }
 0x128   : > { %v612_v18 = vadd.f32 %v611_v14, %v610_v7  ;;  %v661_v21 = vrot.slane %v660_v15, 2 }
 0x129   : > { %v604_v22 = vrot.slane %v603_v16, 1  ;;  %v653_v23 = vadd.f32 %v652_v17, %v651_v13 }
 0x12a   : > { %v613_v24 = vrot.slane %v612_v18, 1  ;;  %v662_v25 = vadd.f32 %v661_v21, %v660_v15 }
 0x12b   : > { %v605_v26 = vadd.f32 %v604_v22, %v603_v16  ;;  %v654_v27 = vrot.slane %v653_v23, 1 }
 0x12c   : > { %v614_v28 = vadd.f32 %v613_v24, %v612_v18  ;;  %v663_v30 = vrot.slane %v662_v25, 1 }
 0x12d   : > { %v655_v31 = vadd.f32 %v654_v27, %v653_v23 }
 0x12e   : > { %v617_v32 = vcombine.low %v605_v26, %v614_v28  ;;  %v664_v33 = vadd.f32 %v663_v30, %v662_v25 }
 0x130   : > { %v624_v34 = vrot.slane %v617_v32, %v623_v29  ;;  %v667_v35 = vcombine.low %v655_v31, %v664_v33  ;;  %733 = sbr.rel (!%p1172_p6) target bundleno = 311 (0x137), region = 78 }
 0x132   : > { %v631_v36 = vrot.slane %v624_v34, %v623_v29  ;;  %v674_v37 = vrot.slane %v667_v35, %v623_v29 }
 0x134   : > { %637 = vst.msk [vmem:[%s382_s23] ss:$8 sm:$0x3] %vm635_vm0, %v631_v36  ;;  %v681_v38 = vrot.slane %v674_v37, %v623_v29 }
 0x136   : > { %975 = vst.msk [vmem:[%s382_s23 + $0x1] ss:$8 sm:$0x3] %vm635_vm0, %v681_v38 }
 0x137 PF: > { %s14_s16 = sadd.s32 1, %s1113_s16   ;;  %s1274_s12 = smov %s1101_s13 }
 0x138   : > { %p11_p12 = scmp.ge.s32.totalorder %s14_s16, 4   ;;  %s1275_s13 = smov %s1177_s22 }
 0x139   : > { %s1276_s14 = smov %s1109_s15  ;;  %s1277_s15 = smov %s1279_s17 }
 0x13a   :  { %13 = sbr.rel (!%p11_p12) target bundleno = 3 (0x3), region = 163 }

// kernel: generator_forward.12
= control target key start
LH: loop header
LB: loop body
LE: loop exit
PB: predicated region body
PF: predicated region fallthrough
CT: control target
= control target key end

     0   :  { %v64_v0 = vlaneseq  ;;  %s524_s0 = inlined_call_operand.vmem [shape: bf16[128,256], index: 0, kind: input, shape index: {}]   ;;  %s525_s1 = inlined_call_operand.vmem [shape: f32[1,256], index: 1, kind: input, shape index: {}]   ;;  %s526_s2 = inlined_call_operand.vmem [shape: f32[1,256], index: 2, kind: input, shape index: {}]   ;;  %s527_s3 = inlined_call_operand.vmem [shape: bf16[128,256], index: 3, kind: output, shape index: {}]  }
   0x1   :  { %v14_v1 = vld [vmem:[%s524_s0] sm:$0xff]  ;;  %v15_v6 = vld [vmem:[%s524_s0 + $0x8] sm:$0xff]  ;;  %v16_v7 = vld [vmem:[%s524_s0 + $0x10] sm:$0xff] }
   0x2   :  { %v62_v2 = vld [vmem:[%s525_s1] sm:$0x3]  ;;  %v30_v3 = vunpack.c.l.bf16 %v14_v1  ;;  %v31_v4 = vunpack.c.h.bf16 %v14_v1  ;;  %v65_v5 = vshrl.u32 %v64_v0, 7  ;;  %v17_v8 = vld [vmem:[%s524_s0 + $0x18] sm:$0xff]  ;;  %v32_v10 = vunpack.c.l.bf16 %v15_v6  ;;  %v19_v15 = vld [vmem:[%s524_s0 + $0x28] sm:$0xff] }
   0x3   :  { %v106_v9 = vld [vmem:[%s526_s2] sm:$0x3]  ;;  %v33_v11 = vunpack.c.h.bf16 %v15_v6  ;;  %v34_v12 = vunpack.c.l.bf16 %v16_v7  ;;  %v35_v13 = vunpack.c.h.bf16 %v16_v7  ;;  %v36_v18 = vunpack.c.l.bf16 %v17_v8  ;;  %v20_v20 = vld [vmem:[%s524_s0 + $0x30] sm:$0xff]  ;;  %v21_v21 = vld [vmem:[%s524_s0 + $0x38] sm:$0xff] }
   0x4   :  { %v18_v14 = vld [vmem:[%s524_s0 + $0x20] sm:$0xff]  ;;  %v66_v16 = vsub.s32 0, %v65_v5  ;;  %v70_v17 = vsub.s32 1, %v65_v5  ;;  %v37_v19 = vunpack.c.h.bf16 %v17_v8  ;;  %v40_v24 = vunpack.c.l.bf16 %v19_v15 }
   0x5   :  { %v38_v22 = vunpack.c.l.bf16 %v18_v14  ;;  %v39_v23 = vunpack.c.h.bf16 %v18_v14  ;;  %v41_v25 = vunpack.c.h.bf16 %v19_v15  ;;  %v42_v30 = vunpack.c.l.bf16 %v20_v20 }
   0x6   :  { %v380_v26 = vrot.slane %v62_v2, %v66_v16  ;;  %v382_v27 = vrot.slane %v62_v2, %v70_v17  ;;  %v384_v28 = vrot.slane %v106_v9, %v66_v16  ;;  %v386_v29 = vrot.slane %v106_v9, %v70_v17 }
   0x7   :  { %v43_v31 = vunpack.c.h.bf16 %v20_v20  ;;  %v44_v32 = vunpack.c.l.bf16 %v21_v21  ;;  %v45_v33 = vunpack.c.h.bf16 %v21_v21 }
   0x8   :  { %v74_v34 = vmul.f32 %v380_v26, %v30_v3  ;;  %v75_v35 = vmul.f32 %v382_v27, %v31_v4  ;;  %v76_v36 = vmul.f32 %v380_v26, %v32_v10  ;;  %v77_v37 = vmul.f32 %v382_v27, %v33_v11  ;;  %v22_v10 = vld [vmem:[%s524_s0 + $0x40] sm:$0xff] }
   0x9   :  { %v78_v38 = vmul.f32 %v380_v26, %v34_v12  ;;  %v79_v39 = vmul.f32 %v382_v27, %v35_v13  ;;  %v80_v40 = vmul.f32 %v380_v26, %v36_v18  ;;  %v81_v41 = vmul.f32 %v382_v27, %v37_v19  ;;  %v23_v19 = vld [vmem:[%s524_s0 + $0x48] sm:$0xff] }
   0xa   :  { %v118_v42 = vadd.f32 %v384_v28, %v74_v34  ;;  %v119_v43 = vadd.f32 %v386_v29, %v75_v35  ;;  %v120_v44 = vadd.f32 %v384_v28, %v76_v36  ;;  %v121_v45 = vadd.f32 %v386_v29, %v77_v37 }
   0xb   :  { %v122_v46 = vadd.f32 %v384_v28, %v78_v38  ;;  %v123_v47 = vadd.f32 %v386_v29, %v79_v39  ;;  %v124_v48 = vadd.f32 %v384_v28, %v80_v40  ;;  %v125_v49 = vadd.f32 %v386_v29, %v81_v41 }
   0xc   :  { %v150_v50 = vmax.f32 %v118_v42, 0.0  ;;  %v151_v51 = vmax.f32 %v119_v43, 0.0  ;;  %v152_v52 = vmax.f32 %v120_v44, 0.0  ;;  %v153_v53 = vmax.f32 %v121_v45, 0.0 }
   0xd   :  { %v154_v54 = vmax.f32 %v122_v46, 0.0  ;;  %v155_v55 = vmax.f32 %v123_v47, 0.0  ;;  %v156_v56 = vmax.f32 %v124_v48, 0.0  ;;  %v157_v57 = vmax.f32 %v125_v49, 0.0 }
   0xe   :  { %v314_v58 = vpack.c.bf16 %v151_v51, %v150_v50  ;;  %v315_v59 = vpack.c.bf16 %v153_v53, %v152_v52  ;;  %v82_v60 = vmul.f32 %v380_v26, %v38_v22  ;;  %v83_v61 = vmul.f32 %v382_v27, %v39_v23  ;;  %v26_v50 = vld [vmem:[%s524_s0 + $0x60] sm:$0xff] }
   0xf   :  { %v316_v62 = vpack.c.bf16 %v155_v55, %v154_v54  ;;  %v317_v63 = vpack.c.bf16 %v157_v57, %v156_v56  ;;  %v84_v0 = vmul.f32 %v380_v26, %v40_v24  ;;  %v85_v1 = vmul.f32 %v382_v27, %v41_v25  ;;  %v24_v24 = vld [vmem:[%s524_s0 + $0x50] sm:$0xff] }
  0x10   :  { %278 = vst [vmem:[%s527_s3] sm:$0xff] %v314_v58  ;;  %279 = vst [vmem:[%s527_s3 + $0x8] sm:$0xff] %v315_v59  ;;  %v126_v2 = vadd.f32 %v384_v28, %v82_v60  ;;  %v127_v3 = vadd.f32 %v386_v29, %v83_v61  ;;  %v86_v4 = vmul.f32 %v380_v26, %v42_v30  ;;  %v46_v23 = vunpack.c.l.bf16 %v22_v10 }
  0x11   :  { %v87_v5 = vmul.f32 %v382_v27, %v43_v31  ;;  %280 = vst [vmem:[%s527_s3 + $0x10] sm:$0xff] %v316_v62  ;;  %281 = vst [vmem:[%s527_s3 + $0x18] sm:$0xff] %v317_v63  ;;  %v128_v6 = vadd.f32 %v384_v28, %v84_v0  ;;  %v129_v7 = vadd.f32 %v386_v29, %v85_v1  ;;  %v48_v36 = vunpack.c.l.bf16 %v23_v19  ;;  %v27_v63 = vld [vmem:[%s524_s0 + $0x68] sm:$0xff] }
  0x12   :  { %v88_v8 = vmul.f32 %v380_v26, %v44_v32  ;;  %v89_v9 = vmul.f32 %v382_v27, %v45_v33  ;;  %v158_v11 = vmax.f32 %v126_v2, 0.0  ;;  %v159_v12 = vmax.f32 %v127_v3, 0.0  ;;  %v25_v33 = vld [vmem:[%s524_s0 + $0x58] sm:$0xff] }
  0x13   :  { %v130_v13 = vadd.f32 %v384_v28, %v86_v4  ;;  %v131_v14 = vadd.f32 %v386_v29, %v87_v5  ;;  %v160_v15 = vmax.f32 %v128_v6, 0.0  ;;  %v161_v16 = vmax.f32 %v129_v7, 0.0  ;;  %v28_v4 = vld [vmem:[%s524_s0 + $0x70] sm:$0xff] }
  0x14   :  { %v132_v17 = vadd.f32 %v384_v28, %v88_v8  ;;  %v133_v18 = vadd.f32 %v386_v29, %v89_v9  ;;  %v318_v20 = vpack.c.bf16 %v159_v12, %v158_v11  ;;  %v47_v32 = vunpack.c.h.bf16 %v22_v10  ;;  %v29_v9 = vld [vmem:[%s524_s0 + $0x78] sm:$0xff] }
  0x15   :  { %v162_v21 = vmax.f32 %v130_v13, 0.0  ;;  %v163_v22 = vmax.f32 %v131_v14, 0.0  ;;  %v319_v25 = vpack.c.bf16 %v161_v16, %v160_v15  ;;  %v90_v35 = vmul.f32 %v380_v26, %v46_v23 }
  0x16   :  { %v164_v30 = vmax.f32 %v132_v17, 0.0  ;;  %v165_v31 = vmax.f32 %v133_v18, 0.0  ;;  %282 = vst [vmem:[%s527_s3 + $0x20] sm:$0xff] %v318_v20  ;;  %v49_v37 = vunpack.c.h.bf16 %v23_v19  ;;  %v91_v39 = vmul.f32 %v382_v27, %v47_v32 }
  0x17   :  { %v320_v34 = vpack.c.bf16 %v163_v22, %v162_v21  ;;  %283 = vst [vmem:[%s527_s3 + $0x28] sm:$0xff] %v319_v25  ;;  %v50_v40 = vunpack.c.l.bf16 %v24_v24  ;;  %v51_v41 = vunpack.c.h.bf16 %v24_v24  ;;  %v134_v42 = vadd.f32 %v384_v28, %v90_v35 }
  0x18   :  { %v321_v38 = vpack.c.bf16 %v165_v31, %v164_v30  ;;  %v92_v43 = vmul.f32 %v380_v26, %v48_v36  ;;  %v93_v44 = vmul.f32 %v382_v27, %v49_v37  ;;  %v52_v45 = vunpack.c.l.bf16 %v25_v33 }
  0x19   :  { %284 = vst [vmem:[%s527_s3 + $0x30] sm:$0xff] %v320_v34  ;;  %v135_v46 = vadd.f32 %v386_v29, %v91_v39  ;;  %v94_v47 = vmul.f32 %v380_v26, %v50_v40  ;;  %v95_v48 = vmul.f32 %v382_v27, %v51_v41  ;;  %v53_v49 = vunpack.c.h.bf16 %v25_v33 }
  0x1a   :  { %285 = vst [vmem:[%s527_s3 + $0x38] sm:$0xff] %v321_v38  ;;  %v166_v51 = vmax.f32 %v134_v42, 0.0  ;;  %v136_v52 = vadd.f32 %v384_v28, %v92_v43  ;;  %v137_v53 = vadd.f32 %v386_v29, %v93_v44  ;;  %v96_v54 = vmul.f32 %v380_v26, %v52_v45 }
  0x1b   :  { %v167_v55 = vmax.f32 %v135_v46, 0.0  ;;  %v138_v56 = vadd.f32 %v384_v28, %v94_v47  ;;  %v139_v57 = vadd.f32 %v386_v29, %v95_v48  ;;  %v97_v58 = vmul.f32 %v382_v27, %v53_v49 }
  0x1c   :  { %v168_v59 = vmax.f32 %v136_v52, 0.0  ;;  %v169_v60 = vmax.f32 %v137_v53, 0.0  ;;  %v140_v61 = vadd.f32 %v384_v28, %v96_v54  ;;  %v54_v62 = vunpack.c.l.bf16 %v26_v50 }
  0x1d   :  { %v322_v0 = vpack.c.bf16 %v167_v55, %v166_v51  ;;  %v170_v1 = vmax.f32 %v138_v56, 0.0  ;;  %v171_v2 = vmax.f32 %v139_v57, 0.0  ;;  %v141_v3 = vadd.f32 %v386_v29, %v97_v58 }
  0x1e   :  { %v323_v5 = vpack.c.bf16 %v169_v60, %v168_v59  ;;  %v172_v6 = vmax.f32 %v140_v61, 0.0  ;;  %v55_v7 = vunpack.c.h.bf16 %v26_v50  ;;  %v98_v8 = vmul.f32 %v380_v26, %v54_v62 }
  0x1f   :  { %286 = vst [vmem:[%s527_s3 + $0x40] sm:$0xff] %v322_v0  ;;  %v324_v10 = vpack.c.bf16 %v171_v2, %v170_v1  ;;  %v173_v11 = vmax.f32 %v141_v3, 0.0  ;;  %v56_v12 = vunpack.c.l.bf16 %v27_v63  ;;  %v57_v13 = vunpack.c.h.bf16 %v27_v63 }
  0x20   :  { %287 = vst [vmem:[%s527_s3 + $0x48] sm:$0xff] %v323_v5  ;;  %v99_v14 = vmul.f32 %v382_v27, %v55_v7  ;;  %v142_v15 = vadd.f32 %v384_v28, %v98_v8  ;;  %v58_v16 = vunpack.c.l.bf16 %v28_v4  ;;  %v59_v17 = vunpack.c.h.bf16 %v28_v4 }
  0x21   :  { %288 = vst [vmem:[%s527_s3 + $0x50] sm:$0xff] %v324_v10  ;;  %v325_v18 = vpack.c.bf16 %v173_v11, %v172_v6  ;;  %v100_v19 = vmul.f32 %v380_v26, %v56_v12  ;;  %v101_v20 = vmul.f32 %v382_v27, %v57_v13  ;;  %v60_v21 = vunpack.c.l.bf16 %v29_v9 }
  0x22   :  { %v143_v22 = vadd.f32 %v386_v29, %v99_v14  ;;  %v174_v23 = vmax.f32 %v142_v15, 0.0  ;;  %v102_v24 = vmul.f32 %v380_v26, %v58_v16  ;;  %v103_v25 = vmul.f32 %v382_v27, %v59_v17 }
  0x23   :  { %289 = vst [vmem:[%s527_s3 + $0x58] sm:$0xff] %v325_v18  ;;  %v144_v30 = vadd.f32 %v384_v28, %v100_v19  ;;  %v145_v31 = vadd.f32 %v386_v29, %v101_v20  ;;  %v61_v32 = vunpack.c.h.bf16 %v29_v9  ;;  %v104_v33 = vmul.f32 %v380_v26, %v60_v21 }
  0x24   :  { %v175_v34 = vmax.f32 %v143_v22, 0.0  ;;  %v146_v35 = vadd.f32 %v384_v28, %v102_v24  ;;  %v147_v36 = vadd.f32 %v386_v29, %v103_v25 }
  0x25   :  { %v176_v37 = vmax.f32 %v144_v30, 0.0  ;;  %v177_v38 = vmax.f32 %v145_v31, 0.0  ;;  %v105_v39 = vmul.f32 %v382_v27, %v61_v32  ;;  %v148_v40 = vadd.f32 %v384_v28, %v104_v33 }
  0x26   :  { %v326_v41 = vpack.c.bf16 %v175_v34, %v174_v23  ;;  %v178_v42 = vmax.f32 %v146_v35, 0.0  ;;  %v179_v43 = vmax.f32 %v147_v36, 0.0 }
  0x27   :  { %v327_v44 = vpack.c.bf16 %v177_v38, %v176_v37  ;;  %v149_v45 = vadd.f32 %v386_v29, %v105_v39  ;;  %v180_v46 = vmax.f32 %v148_v40, 0.0 }
  0x28   :  { %290 = vst [vmem:[%s527_s3 + $0x60] sm:$0xff] %v326_v41  ;;  %v328_v26 = vpack.c.bf16 %v179_v43, %v178_v42 }
  0x29   :  { %291 = vst [vmem:[%s527_s3 + $0x68] sm:$0xff] %v327_v44  ;;  %v181_v47 = vmax.f32 %v149_v45, 0.0 }
  0x2a   :  { %292 = vst [vmem:[%s527_s3 + $0x70] sm:$0xff] %v328_v26 }
  0x2b   :  { %v329_v27 = vpack.c.bf16 %v181_v47, %v180_v46 }
  0x2d   :  { %293 = vst [vmem:[%s527_s3 + $0x78] sm:$0xff] %v329_v27 }

// kernel: generator_forward.11
= control target key start
LH: loop header
LB: loop body
LE: loop exit
PB: predicated region body
PF: predicated region fallthrough
CT: control target
= control target key end

     0   :  { %s3695_s12 = smov 0   ;;  %s3697_s13 = smov 0   ;;  %s4086_s0 = inlined_call_operand.vmem [shape: bf16[4,32,2048], index: 0, kind: input, shape index: {}]   ;;  %s4087_s1 = inlined_call_operand.vmem [shape: bf16[4,2048,256], index: 1, kind: input, shape index: {}]   ;;  %s4088_s2 = inlined_call_operand.vmem [shape: bf16[4,32,256], index: 2, kind: output, shape index: {0}]   ;;  %s4089_s3 = inlined_call_operand.vmem [shape: f32[4,8,256], index: 3, kind: output, shape index: {1}]  }
   0x1   :  { %s3699_s14 = smov 0  }
   0x2 LB: > { %s40_s15 = sadd.s32 1, %s3668_s13  ;;  %p2873_p0 = scmp.ge.s32.totalorder %s3672_s14, 1  ;;  %s3672_s14 = sphi %s3699_s14, %s14_s14   ;;  %s3668_s13 = sphi %s3697_s13, %s4091_s13   ;;  %s3664_s12 = sphi %s3695_s12, %s4090_s12  }
   0x3   : > { %p42_p1 = scmp.ge.s32.totalorder %s40_s15, 4  ;;  %p214_p2 = scmp.lt.s32.totalorder %s3672_s14, 5 }
   0x5   : > { %s4093_s15 = smov (%p42_p1, %s40_s15), 0  ;;  %p215_p3 = pnand %p2873_p0, %p214_p2 }
   0x6   : > { %p285_p4 = scmp.lt.s32.totalorder (!%p215_p3), %s3664_s12, 3 }
   0x7   : > { %218 = sbr.rel (%p215_p3) target bundleno = 523 (0x20b), region = 28 }
   0xe   : > { %s4095_s12 = smov (!%p285_p4, %s3664_s12), 3 }
   0xf   : > { %s3178_s16 = sshll.u32 %s4095_s12, 11  ;;  %s3177_s20 = sshll.u32 %s4095_s12, 8 }
  0x10   : > { %s3719_s19 = scalar_lea.vmem %s4087_s1, %s3178_s16  ;;  %s3769_s23 = scalar_lea.vmem %s4086_s0, %s3177_s20 }
  0x11   : > { %v3266_v0 = vld [vmem:[%s3719_s19 + $0x4] ss:$8 sps:$4 sm:$0xff]   ;;  %v3270_v2 = vld [vmem:[%s3719_s19] ss:$8 sps:$4 sm:$0xff]   ;;  %v3272_v4 = vld [vmem:[%s3719_s19 + $0x14] ss:$8 sps:$4 sm:$0xff]  }
  0x12   : > { %v3268_v1 = vld [vmem:[%s3719_s19 + $0x404] ss:$8 sps:$4 sm:$0xff]   ;;  %2093 = vmatprep.subr.bf16.mxu1 %v3266_v0  ;;  %v3271_v3 = vld [vmem:[%s3719_s19 + $0x400] ss:$8 sps:$4 sm:$0xff]   ;;  %v3274_v5 = vld [vmem:[%s3719_s19 + $0x414] ss:$8 sps:$4 sm:$0xff]  }
  0x13   : > { %2305 = vmatprep.subr.bf16.mxu0 %v3268_v1  ;;  %2094 = vmatpush1.bf16.msra.mxu1 %v3270_v2  ;;  %v3276_v6 = vld [vmem:[%s3719_s19 + $0x10] ss:$8 sps:$4 sm:$0xff]   ;;  %v3278_v8 = vld [vmem:[%s3719_s19 + $0x24] ss:$8 sps:$4 sm:$0xff]   ;;  %v3282_v10 = vld [vmem:[%s3719_s19 + $0x20] ss:$8 sps:$4 sm:$0xff]  }
  0x14   : > { %2306 = vmatpush1.bf16.msra.mxu0 %v3271_v3  ;;  %2095 = vmatprep.subr.bf16.mxu1 %v3272_v4  ;;  %v3277_v7 = vld [vmem:[%s3719_s19 + $0x410] ss:$8 sps:$4 sm:$0xff]   ;;  %v3280_v9 = vld [vmem:[%s3719_s19 + $0x424] ss:$8 sps:$4 sm:$0xff]   ;;  %v3283_v11 = vld [vmem:[%s3719_s19 + $0x420] ss:$8 sps:$4 sm:$0xff]  }
  0x15   : > { %2307 = vmatprep.subr.bf16.mxu0 %v3274_v5  ;;  %v3284_v12 = vld [vmem:[%s3719_s19 + $0x34] ss:$8 sps:$4 sm:$0xff]   ;;  %v3288_v14 = vld [vmem:[%s3719_s19 + $0x30] ss:$8 sps:$4 sm:$0xff]   ;;  %v3290_v16 = vld [vmem:[%s3719_s19 + $0x44] ss:$8 sps:$4 sm:$0xff]  }
  0x16   : > { %v3286_v13 = vld [vmem:[%s3719_s19 + $0x434] ss:$8 sps:$4 sm:$0xff]   ;;  %v3289_v15 = vld [vmem:[%s3719_s19 + $0x430] ss:$8 sps:$4 sm:$0xff]   ;;  %v3292_v17 = vld [vmem:[%s3719_s19 + $0x444] ss:$8 sps:$4 sm:$0xff]  }
  0x17   : > { %2096 = vmatpush1.bf16.msra.mxu1 %v3276_v6  ;;  %v3294_v18 = vld [vmem:[%s3719_s19 + $0x40] ss:$8 sps:$4 sm:$0xff]   ;;  %v3296_v20 = vld [vmem:[%s3719_s19 + $0x54] ss:$8 sps:$4 sm:$0xff]   ;;  %v3300_v22 = vld [vmem:[%s3719_s19 + $0x50] ss:$8 sps:$4 sm:$0xff]  }
  0x18   : > { %2308 = vmatpush1.bf16.msra.mxu0 %v3277_v7  ;;  %2097 = vmatprep.subr.bf16.mxu1 %v3278_v8  ;;  %v3295_v19 = vld [vmem:[%s3719_s19 + $0x440] ss:$8 sps:$4 sm:$0xff]   ;;  %v3298_v21 = vld [vmem:[%s3719_s19 + $0x454] ss:$8 sps:$4 sm:$0xff]   ;;  %v3301_v23 = vld [vmem:[%s3719_s19 + $0x450] ss:$8 sps:$4 sm:$0xff]  }
  0x19   : > { %2309 = vmatprep.subr.bf16.mxu0 %v3280_v9  ;;  %v3302_v24 = vld [vmem:[%s3719_s19 + $0x64] ss:$8 sps:$4 sm:$0xff]   ;;  %v3306_v26 = vld [vmem:[%s3719_s19 + $0x60] ss:$8 sps:$4 sm:$0xff]   ;;  %v3308_v28 = vld [vmem:[%s3719_s19 + $0x74] ss:$8 sps:$4 sm:$0xff]  }
  0x1a   : > { %v3304_v25 = vld [vmem:[%s3719_s19 + $0x464] ss:$8 sps:$4 sm:$0xff]   ;;  %v3307_v27 = vld [vmem:[%s3719_s19 + $0x460] ss:$8 sps:$4 sm:$0xff]   ;;  %v3310_v29 = vld [vmem:[%s3719_s19 + $0x474] ss:$8 sps:$4 sm:$0xff]  }
  0x1b   : > { %2098 = vmatpush1.bf16.msra.mxu1 %v3282_v10  ;;  %v3312_v30 = vld [vmem:[%s3719_s19 + $0x70] ss:$8 sps:$4 sm:$0xff]   ;;  %v3314_v32 = vld [vmem:[%s3719_s19 + $0x84] ss:$8 sps:$4 sm:$0xff]   ;;  %v3318_v34 = vld [vmem:[%s3719_s19 + $0x80] ss:$8 sps:$4 sm:$0xff]  }
  0x1c   : > { %2310 = vmatpush1.bf16.msra.mxu0 %v3283_v11  ;;  %2099 = vmatprep.subr.bf16.mxu1 %v3284_v12  ;;  %v3313_v31 = vld [vmem:[%s3719_s19 + $0x470] ss:$8 sps:$4 sm:$0xff]   ;;  %v3316_v33 = vld [vmem:[%s3719_s19 + $0x484] ss:$8 sps:$4 sm:$0xff]   ;;  %v3319_v35 = vld [vmem:[%s3719_s19 + $0x480] ss:$8 sps:$4 sm:$0xff]  }
  0x1d   : > { %2311 = vmatprep.subr.bf16.mxu0 %v3286_v13  ;;  %v3320_v36 = vld [vmem:[%s3719_s19 + $0x94] ss:$8 sps:$4 sm:$0xff]   ;;  %v3324_v38 = vld [vmem:[%s3719_s19 + $0x90] ss:$8 sps:$4 sm:$0xff]   ;;  %v3326_v40 = vld [vmem:[%s3719_s19 + $0xa4] ss:$8 sps:$4 sm:$0xff]  }
  0x1e   : > { %v3322_v37 = vld [vmem:[%s3719_s19 + $0x494] ss:$8 sps:$4 sm:$0xff]   ;;  %v3325_v39 = vld [vmem:[%s3719_s19 + $0x490] ss:$8 sps:$4 sm:$0xff]   ;;  %v3328_v41 = vld [vmem:[%s3719_s19 + $0x4a4] ss:$8 sps:$4 sm:$0xff]  }
  0x1f   : > { %2100 = vmatpush1.bf16.msra.mxu1 %v3288_v14  ;;  %v3330_v42 = vld [vmem:[%s3719_s19 + $0xa0] ss:$8 sps:$4 sm:$0xff]   ;;  %v3332_v44 = vld [vmem:[%s3719_s19 + $0xb4] ss:$8 sps:$4 sm:$0xff]   ;;  %v3336_v46 = vld [vmem:[%s3719_s19 + $0xb0] ss:$8 sps:$4 sm:$0xff]  }
  0x20   : > { %2312 = vmatpush1.bf16.msra.mxu0 %v3289_v15  ;;  %2101 = vmatprep.subr.bf16.mxu1 %v3290_v16  ;;  %v3331_v43 = vld [vmem:[%s3719_s19 + $0x4a0] ss:$8 sps:$4 sm:$0xff]   ;;  %v3334_v45 = vld [vmem:[%s3719_s19 + $0x4b4] ss:$8 sps:$4 sm:$0xff]   ;;  %v3337_v47 = vld [vmem:[%s3719_s19 + $0x4b0] ss:$8 sps:$4 sm:$0xff]  }
  0x21   : > { %2313 = vmatprep.subr.bf16.mxu0 %v3292_v17  ;;  %v365_v48 = vld [vmem:[%s3769_s23] sm:$0xff]  ;;  %v3344_v58 = vld [vmem:[%s3719_s19 + $0xd4] ss:$8 sps:$4 sm:$0xff]   ;;  %v3348_v60 = vld [vmem:[%s3719_s19 + $0xd0] ss:$8 sps:$4 sm:$0xff]   ;;  %s3179_s24 = sshll.u32 %s4095_s12, 5 }
  0x22   : > { %v373_v49 = vld [vmem:[%s3769_s23 + $0x40] sm:$0xff]  ;;  %v3346_v59 = vld [vmem:[%s3719_s19 + $0x4d4] ss:$8 sps:$4 sm:$0xff]   ;;  %v3349_v61 = vld [vmem:[%s3719_s19 + $0x4d0] ss:$8 sps:$4 sm:$0xff]   ;;  %s4067_s27 = scalar_lea.vmem %s4088_s2, %s3179_s24  ;;  %s3180_s28 = sshll.u32 %s4095_s12, 4 }
  0x23   : > { %2102 = vmatpush1.bf16.msra.mxu1 %v3294_v18  ;;  %v3338_v50 = vld [vmem:[%s3719_s19 + $0xc4] ss:$8 sps:$4 sm:$0xff]   ;;  %v2883_v52 = vcombine.high %v365_v48, %v373_v49  ;;  %v3342_v56 = vld [vmem:[%s3719_s19 + $0xc0] ss:$8 sps:$4 sm:$0xff]   ;;  %v3356_v2 = vld [vmem:[%s3719_s19 + $0xf4] ss:$8 sps:$4 sm:$0xff]   ;;  %v2882_v8 = vcombine.low %v365_v48, %v373_v49  ;;  %s343_s4 = scalar_lea.vmem %s4089_s3, %s3180_s28 }
  0x24   : > { %2314 = vmatpush1.bf16.msra.mxu0 %v3295_v19  ;;  %2103 = vmatprep.subr.bf16.mxu1 %v3296_v20  ;;  %v3340_v51 = vld [vmem:[%s3719_s19 + $0x4c4] ss:$8 sps:$4 sm:$0xff]   ;;  %v3343_v57 = vld [vmem:[%s3719_s19 + $0x4c0] ss:$8 sps:$4 sm:$0xff]   ;;  %v3358_v3 = vld [vmem:[%s3719_s19 + $0x4f4] ss:$8 sps:$4 sm:$0xff]  }
  0x25   : > { %2315 = vmatprep.subr.bf16.mxu0 %v3298_v21  ;;  %v369_v53 = vld [vmem:[%s3769_s23 + $0x20] sm:$0xff]  ;;  %2125 = vmatprep.mubr.bf16.mxu1 %v2883_v52  ;;  %v3360_v4 = vld [vmem:[%s3719_s19 + $0xf0] ss:$8 sps:$4 sm:$0xff]   ;;  %v3370_v12 = vld [vmem:[%s3719_s19 + $0x114] ss:$8 sps:$4 sm:$0xff]  }
  0x26   : > { %v377_v54 = vld [vmem:[%s3769_s23 + $0x60] sm:$0xff]  ;;  %v3361_v5 = vld [vmem:[%s3719_s19 + $0x4f0] ss:$8 sps:$4 sm:$0xff]   ;;  %v3373_v13 = vld [vmem:[%s3719_s19 + $0x514] ss:$8 sps:$4 sm:$0xff]  }
  0x27   : > { %2104 = vmatpush1.bf16.msra.mxu1 %v3300_v22  ;;  %v2891_v55 = vcombine.high %v369_v53, %v377_v54  ;;  %v3350_v62 = vld [vmem:[%s3719_s19 + $0xe4] ss:$8 sps:$4 sm:$0xff]   ;;  %v3354_v0 = vld [vmem:[%s3719_s19 + $0xe0] ss:$8 sps:$4 sm:$0xff]   ;;  %v2890_v10 = vcombine.low %v369_v53, %v377_v54  ;;  %v3368_v14 = vld [vmem:[%s3719_s19 + $0x110] ss:$8 sps:$4 sm:$0xff]  }
  0x28   : > { %2316 = vmatpush1.bf16.msra.mxu0 %v3301_v23  ;;  %2105 = vmatprep.subr.bf16.mxu1 %v3302_v24  ;;  %v3352_v63 = vld [vmem:[%s3719_s19 + $0x4e4] ss:$8 sps:$4 sm:$0xff]   ;;  %v3355_v1 = vld [vmem:[%s3719_s19 + $0x4e0] ss:$8 sps:$4 sm:$0xff]   ;;  %v3371_v15 = vld [vmem:[%s3719_s19 + $0x510] ss:$8 sps:$4 sm:$0xff]  }
  0x29   : > { %2317 = vmatprep.subr.bf16.mxu0 %v3304_v25  ;;  %2337 = vmatprep.mubr.bf16.mxu0 %v2891_v55  ;;  %v3364_v6 = vld [vmem:[%s3719_s19 + $0x104] ss:$8 sps:$4 sm:$0xff]   ;;  %v3362_v9 = vld [vmem:[%s3719_s19 + $0x100] ss:$8 sps:$4 sm:$0xff]   ;;  %v3382_v20 = vld [vmem:[%s3719_s19 + $0x134] ss:$8 sps:$4 sm:$0xff]  }
  0x2a   : > { %v3367_v7 = vld [vmem:[%s3719_s19 + $0x504] ss:$8 sps:$4 sm:$0xff]   ;;  %v3365_v11 = vld [vmem:[%s3719_s19 + $0x500] ss:$8 sps:$4 sm:$0xff]   ;;  %v3385_v21 = vld [vmem:[%s3719_s19 + $0x534] ss:$8 sps:$4 sm:$0xff]  }
  0x2b   : > { %2106 = vmatpush1.bf16.msra.mxu1 %v3306_v26  ;;  %v3376_v16 = vld [vmem:[%s3719_s19 + $0x124] ss:$8 sps:$4 sm:$0xff]   ;;  %v3374_v18 = vld [vmem:[%s3719_s19 + $0x120] ss:$8 sps:$4 sm:$0xff]   ;;  %v3380_v22 = vld [vmem:[%s3719_s19 + $0x130] ss:$8 sps:$4 sm:$0xff]  }
  0x2c   : > { %2318 = vmatpush1.bf16.msra.mxu0 %v3307_v27  ;;  %2107 = vmatprep.subr.bf16.mxu1 %v3308_v28  ;;  %v3379_v17 = vld [vmem:[%s3719_s19 + $0x524] ss:$8 sps:$4 sm:$0xff]   ;;  %v3377_v19 = vld [vmem:[%s3719_s19 + $0x520] ss:$8 sps:$4 sm:$0xff]   ;;  %v3383_v23 = vld [vmem:[%s3719_s19 + $0x530] ss:$8 sps:$4 sm:$0xff]  }
  0x2d   : > { %2319 = vmatprep.subr.bf16.mxu0 %v3310_v29  ;;  %v3388_v24 = vld [vmem:[%s3719_s19 + $0x144] ss:$8 sps:$4 sm:$0xff]   ;;  %v3386_v26 = vld [vmem:[%s3719_s19 + $0x140] ss:$8 sps:$4 sm:$0xff]   ;;  %v3394_v28 = vld [vmem:[%s3719_s19 + $0x154] ss:$8 sps:$4 sm:$0xff]  }
  0x2e   : > { %v3391_v25 = vld [vmem:[%s3719_s19 + $0x544] ss:$8 sps:$4 sm:$0xff]   ;;  %v3389_v27 = vld [vmem:[%s3719_s19 + $0x540] ss:$8 sps:$4 sm:$0xff]   ;;  %v3397_v29 = vld [vmem:[%s3719_s19 + $0x554] ss:$8 sps:$4 sm:$0xff]  }
  0x2f   : > { %2108 = vmatpush1.bf16.msra.mxu1 %v3312_v30  ;;  %v381_v30 = vld [vmem:[%s3769_s23 + $0x80] sm:$0xff]  ;;  %v3838_v49 = vld [vmem:[%s3769_s23 + $0x28] sm:$0xff]  ;;  %v3407_v52 = vld [vmem:[%s3719_s19 + $0x570] ss:$8 sps:$4 sm:$0xff]  }
  0x30   : > { %2320 = vmatpush1.bf16.msra.mxu0 %v3313_v31  ;;  %2109 = vmatprep.subr.bf16.mxu1 %v3314_v32  ;;  %v389_v31 = vld [vmem:[%s3769_s23 + $0xc0] sm:$0xff]  ;;  %v3392_v32 = vld [vmem:[%s3719_s19 + $0x150] ss:$8 sps:$4 sm:$0xff]  }
  0x31   : > { %2321 = vmatprep.subr.bf16.mxu0 %v3316_v33  ;;  %v2899_v33 = vcombine.high %v381_v30, %v389_v31  ;;  %v3412_v54 = vld [vmem:[%s3719_s19 + $0x184] ss:$8 sps:$4 sm:$0xff]  }
  0x32   : > { %v3415_v55 = vld [vmem:[%s3719_s19 + $0x584] ss:$8 sps:$4 sm:$0xff]  }
  0x33   : > { %2110 = vmatpush1.bf16.msra.mxu1 %v3318_v34  ;;  %v3395_v34 = vld [vmem:[%s3719_s19 + $0x550] ss:$8 sps:$4 sm:$0xff]  }
  0x34   : > { %2322 = vmatpush1.bf16.msra.mxu0 %v3319_v35  ;;  %2111 = vmatprep.subr.bf16.mxu1 %v3320_v36  ;;  %v385_v35 = vld [vmem:[%s3769_s23 + $0xa0] sm:$0xff] }
  0x35   : > { %2323 = vmatprep.subr.bf16.mxu0 %v3322_v37  ;;  %v393_v36 = vld [vmem:[%s3769_s23 + $0xe0] sm:$0xff]  ;;  %v2898_v37 = vcombine.low %v381_v30, %v389_v31  ;;  %v3466_v30 = vld [vmem:[%s3719_s19 + $0x214] ss:$8 sps:$4 sm:$0xff]  }
  0x36   : > { %v3469_v31 = vld [vmem:[%s3719_s19 + $0x614] ss:$8 sps:$4 sm:$0xff]  }
  0x37   : > { %2112 = vmatpush1.bf16.msra.mxu1 %v3324_v38  ;;  %v3400_v38 = vld [vmem:[%s3719_s19 + $0x164] ss:$8 sps:$4 sm:$0xff]  }
  0x38   : > { %2324 = vmatpush1.bf16.msra.mxu0 %v3325_v39  ;;  %2113 = vmatprep.subr.bf16.mxu1 %v3326_v40  ;;  %v2907_v39 = vcombine.high %v385_v35, %v393_v36  ;;  %v2906_v40 = vcombine.low %v385_v35, %v393_v36  ;;  %v3464_v36 = vld [vmem:[%s3719_s19 + $0x210] ss:$8 sps:$4 sm:$0xff]  }
  0x39   : > { %2325 = vmatprep.subr.bf16.mxu0 %v3328_v41  ;;  %v3403_v41 = vld [vmem:[%s3719_s19 + $0x564] ss:$8 sps:$4 sm:$0xff]  }
  0x3b   : > { %2114 = vmatpush1.bf16.msra.mxu1 %v3330_v42  ;;  %v3398_v42 = vld [vmem:[%s3719_s19 + $0x160] ss:$8 sps:$4 sm:$0xff]  }
  0x3c   : > { %2326 = vmatpush1.bf16.msra.mxu0 %v3331_v43  ;;  %2115 = vmatprep.subr.bf16.mxu1 %v3332_v44  ;;  %v3401_v43 = vld [vmem:[%s3719_s19 + $0x560] ss:$8 sps:$4 sm:$0xff]  }
  0x3d   : > { %2327 = vmatprep.subr.bf16.mxu0 %v3334_v45  ;;  %v3828_v44 = vld [vmem:[%s3769_s23 + $0x8] sm:$0xff] }
  0x3e   : > { %v3831_v45 = vld [vmem:[%s3769_s23 + $0x48] sm:$0xff] }
  0x3f   : > { %2116 = vmatpush1.bf16.msra.mxu1 %v3336_v46  ;;  %v3406_v46 = vld [vmem:[%s3719_s19 + $0x174] ss:$8 sps:$4 sm:$0xff]   ;;  %v2885_v48 = vcombine.high %v3828_v44, %v3831_v45 }
  0x40   : > { %2328 = vmatpush1.bf16.msra.mxu0 %v3337_v47  ;;  %2117 = vmatprep.subr.bf16.mxu1 %v3338_v50  ;;  %v3409_v47 = vld [vmem:[%s3719_s19 + $0x574] ss:$8 sps:$4 sm:$0xff]   ;;  %v3841_v50 = vld [vmem:[%s3769_s23 + $0x68] sm:$0xff] }
  0x41   : > { %2329 = vmatprep.subr.bf16.mxu0 %v3340_v51  ;;  %v3404_v51 = vld [vmem:[%s3719_s19 + $0x170] ss:$8 sps:$4 sm:$0xff]   ;;  %v2893_v53 = vcombine.high %v3838_v49, %v3841_v50 }
  0x43   : > { %2118 = vmatpush1.bf16.msra.mxu1 %v3342_v56  ;;  %v3410_v56 = vld [vmem:[%s3719_s19 + $0x180] ss:$8 sps:$4 sm:$0xff]  }
  0x44   : > { %2330 = vmatpush1.bf16.msra.mxu0 %v3343_v57  ;;  %2119 = vmatprep.subr.bf16.mxu1 %v3344_v58  ;;  %v3413_v57 = vld [vmem:[%s3719_s19 + $0x580] ss:$8 sps:$4 sm:$0xff]   ;;  %v3418_v58 = vld [vmem:[%s3719_s19 + $0x194] ss:$8 sps:$4 sm:$0xff]  }
  0x45   : > { %2331 = vmatprep.subr.bf16.mxu0 %v3346_v59  ;;  %v3421_v59 = vld [vmem:[%s3719_s19 + $0x594] ss:$8 sps:$4 sm:$0xff]  }
  0x47   : > { %2120 = vmatpush1.bf16.msra.mxu1 %v3348_v60  ;;  %v3416_v60 = vld [vmem:[%s3719_s19 + $0x190] ss:$8 sps:$4 sm:$0xff]  }
  0x48   : > { %2332 = vmatpush1.bf16.msra.mxu0 %v3349_v61  ;;  %2121 = vmatprep.subr.bf16.mxu1 %v3350_v62  ;;  %v3419_v61 = vld [vmem:[%s3719_s19 + $0x590] ss:$8 sps:$4 sm:$0xff]   ;;  %v3424_v62 = vld [vmem:[%s3719_s19 + $0x1a4] ss:$8 sps:$4 sm:$0xff]  }
  0x49   : > { %2333 = vmatprep.subr.bf16.mxu0 %v3352_v63  ;;  %v3427_v63 = vld [vmem:[%s3719_s19 + $0x5a4] ss:$8 sps:$4 sm:$0xff]  }
  0x4b   : > { %2122 = vmatpush1.bf16.msra.mxu1 %v3354_v0  ;;  %v3422_v0 = vld [vmem:[%s3719_s19 + $0x1a0] ss:$8 sps:$4 sm:$0xff]  }
  0x4c   : > { %2334 = vmatpush1.bf16.msra.mxu0 %v3355_v1  ;;  %2123 = vmatprep.subr.bf16.mxu1 %v3356_v2  ;;  %v3425_v1 = vld [vmem:[%s3719_s19 + $0x5a0] ss:$8 sps:$4 sm:$0xff]   ;;  %v3430_v2 = vld [vmem:[%s3719_s19 + $0x1b4] ss:$8 sps:$4 sm:$0xff]  }
  0x4d   : > { %2335 = vmatprep.subr.bf16.mxu0 %v3358_v3  ;;  %v3433_v3 = vld [vmem:[%s3719_s19 + $0x5b4] ss:$8 sps:$4 sm:$0xff]  }
  0x4f   : > { %2124 = vmatpush1.bf16.msra.mxu1 %v3360_v4  ;;  %v3428_v4 = vld [vmem:[%s3719_s19 + $0x1b0] ss:$8 sps:$4 sm:$0xff]  }
  0x50   : > { %2336 = vmatpush1.bf16.msra.mxu0 %v3361_v5  ;;  %2146 = vmatprep.subr.bf16.mxu1 %v3364_v6  ;;  %v3431_v5 = vld [vmem:[%s3719_s19 + $0x5b0] ss:$8 sps:$4 sm:$0xff]   ;;  %v3436_v6 = vld [vmem:[%s3719_s19 + $0x1c4] ss:$8 sps:$4 sm:$0xff]  }
  0x51   : > { %2358 = vmatprep.subr.bf16.mxu0 %v3367_v7  ;;  %v3439_v7 = vld [vmem:[%s3719_s19 + $0x5c4] ss:$8 sps:$4 sm:$0xff]  }
  0x52   : > { %2126 = vmatmul.mubr.bf16.vlgmr.msra.gmra.mrb[0].mxu1 %v2882_v8  ;;  %v3434_v8 = vld [vmem:[%s3719_s19 + $0x1c0] ss:$8 sps:$4 sm:$0xff]  }
  0x53   : > { %2338 = vmatmul.mubr.bf16.vlgmr.msra.gmra.mrb[0].mxu0 %v2890_v10  ;;  %2147 = vmatpush1.bf16.msra.mxu1 %v3362_v9  ;;  %v3437_v9 = vld [vmem:[%s3719_s19 + $0x5c0] ss:$8 sps:$4 sm:$0xff]   ;;  %v3442_v10 = vld [vmem:[%s3719_s19 + $0x1d4] ss:$8 sps:$4 sm:$0xff]  }
  0x54   : > { %2359 = vmatpush1.bf16.msra.mxu0 %v3365_v11  ;;  %2148 = vmatprep.subr.bf16.mxu1 %v3370_v12  ;;  %v3445_v11 = vld [vmem:[%s3719_s19 + $0x5d4] ss:$8 sps:$4 sm:$0xff]   ;;  %v3440_v12 = vld [vmem:[%s3719_s19 + $0x1d0] ss:$8 sps:$4 sm:$0xff]  }
  0x55   : > { %2360 = vmatprep.subr.bf16.mxu0 %v3373_v13  ;;  %2135 = vmatprep.mubr.bf16.mxu1 %v2899_v33  ;;  %v3443_v13 = vld [vmem:[%s3719_s19 + $0x5d0] ss:$8 sps:$4 sm:$0xff]   ;;  %v394_v33 = vld [vmem:[%s3769_s23 + $0xe8] sm:$0xff] }
  0x56   : > { %2347 = vmatprep.mubr.bf16.mxu0 %v2907_v39  ;;  %v3475_v39 = vld [vmem:[%s3719_s19 + $0x624] ss:$8 sps:$4 sm:$0xff]  }
  0x57   : > { %2149 = vmatpush1.bf16.msra.mxu1 %v3368_v14  ;;  %v3448_v14 = vld [vmem:[%s3719_s19 + $0x1e4] ss:$8 sps:$4 sm:$0xff]  }
  0x58   : > { %2361 = vmatpush1.bf16.msra.mxu0 %v3371_v15  ;;  %2150 = vmatprep.subr.bf16.mxu1 %v3376_v16  ;;  %v3451_v15 = vld [vmem:[%s3719_s19 + $0x5e4] ss:$8 sps:$4 sm:$0xff]   ;;  %v3446_v16 = vld [vmem:[%s3719_s19 + $0x1e0] ss:$8 sps:$4 sm:$0xff]  }
  0x59   : > { %2362 = vmatprep.subr.bf16.mxu0 %v3379_v17  ;;  %v3449_v17 = vld [vmem:[%s3719_s19 + $0x5e0] ss:$8 sps:$4 sm:$0xff]  }
  0x5a   : > { %2136 = vmatmul.mubr.bf16.gmra.mrb[4].mxu1 %v2898_v37  ;;  %v3467_v37 = vld [vmem:[%s3719_s19 + $0x610] ss:$8 sps:$4 sm:$0xff]  }
  0x5b   : > { %2151 = vmatpush1.bf16.msra.mxu1 %v3374_v18  ;;  %2348 = vmatmul.mubr.bf16.gmra.mrb[4].mxu0 %v2906_v40  ;;  %v3454_v18 = vld [vmem:[%s3719_s19 + $0x1f4] ss:$8 sps:$4 sm:$0xff]   ;;  %v3470_v40 = vld [vmem:[%s3719_s19 + $0x220] ss:$8 sps:$4 sm:$0xff]  }
  0x5c   : > { %2363 = vmatpush1.bf16.msra.mxu0 %v3377_v19  ;;  %2152 = vmatprep.subr.bf16.mxu1 %v3382_v20  ;;  %v3457_v19 = vld [vmem:[%s3719_s19 + $0x5f4] ss:$8 sps:$4 sm:$0xff]   ;;  %v3452_v20 = vld [vmem:[%s3719_s19 + $0x1f0] ss:$8 sps:$4 sm:$0xff]  }
  0x5d   : > { %2364 = vmatprep.subr.bf16.mxu0 %v3385_v21  ;;  %2178 = vmatprep.mubr.bf16.mxu1 %v2885_v48  ;;  %v3455_v21 = vld [vmem:[%s3719_s19 + $0x5f0] ss:$8 sps:$4 sm:$0xff]   ;;  %v3478_v48 = vld [vmem:[%s3719_s19 + $0x234] ss:$8 sps:$4 sm:$0xff]  }
  0x5e   : > { %2390 = vmatprep.mubr.bf16.mxu0 %v2893_v53  ;;  %v3479_v53 = vld [vmem:[%s3719_s19 + $0x630] ss:$8 sps:$4 sm:$0xff]  }
  0x5f   : > { %2153 = vmatpush1.bf16.msra.mxu1 %v3380_v22  ;;  %v3460_v22 = vld [vmem:[%s3719_s19 + $0x204] ss:$8 sps:$4 sm:$0xff]  }
  0x60   : > { %2365 = vmatpush1.bf16.msra.mxu0 %v3383_v23  ;;  %2154 = vmatprep.subr.bf16.mxu1 %v3388_v24  ;;  %v3463_v23 = vld [vmem:[%s3719_s19 + $0x604] ss:$8 sps:$4 sm:$0xff]   ;;  %v3458_v24 = vld [vmem:[%s3719_s19 + $0x200] ss:$8 sps:$4 sm:$0xff]  }
  0x61   : > { %2366 = vmatprep.subr.bf16.mxu0 %v3391_v25  ;;  %v3461_v25 = vld [vmem:[%s3719_s19 + $0x600] ss:$8 sps:$4 sm:$0xff]  }
  0x63   : > { %2155 = vmatpush1.bf16.msra.mxu1 %v3386_v26  ;;  %v382_v26 = vld [vmem:[%s3769_s23 + $0x88] sm:$0xff] }
  0x64   : > { %2367 = vmatpush1.bf16.msra.mxu0 %v3389_v27  ;;  %2156 = vmatprep.subr.bf16.mxu1 %v3394_v28  ;;  %v2884_v27 = vcombine.low %v3828_v44, %v3831_v45  ;;  %v2892_v28 = vcombine.low %v3838_v49, %v3841_v50  ;;  %v3903_v45 = vld [vmem:[%s3769_s23 + $0x50] sm:$0xff] }
  0x65   : > { %2368 = vmatprep.subr.bf16.mxu0 %v3397_v29  ;;  %v390_v29 = vld [vmem:[%s3769_s23 + $0xc8] sm:$0xff]  ;;  %v3481_v49 = vld [vmem:[%s3719_s19 + $0x634] ss:$8 sps:$4 sm:$0xff]  }
  0x67   : > { %2157 = vmatpush1.bf16.msra.mxu1 %v3392_v32  ;;  %v386_v32 = vld [vmem:[%s3769_s23 + $0xa8] sm:$0xff] }
  0x68   : > { %2369 = vmatpush1.bf16.msra.mxu0 %v3395_v34  ;;  %2158 = vmatprep.subr.bf16.mxu1 %v3400_v38  ;;  %v2901_v34 = vcombine.high %v382_v26, %v390_v29  ;;  %v2909_v35 = vcombine.high %v386_v32, %v394_v33  ;;  %v3472_v38 = vld [vmem:[%s3719_s19 + $0x224] ss:$8 sps:$4 sm:$0xff]   ;;  %v2908_v44 = vcombine.low %v386_v32, %v394_v33  ;;  %v3542_v32 = vld [vmem:[%s3719_s19 + $0x2e0] ss:$8 sps:$4 sm:$0xff]  }
  0x69   : > { %2370 = vmatprep.subr.bf16.mxu0 %v3403_v41  ;;  %v3473_v41 = vld [vmem:[%s3719_s19 + $0x620] ss:$8 sps:$4 sm:$0xff]  }
  0x6a   : > { %v3545_v33 = vld [vmem:[%s3719_s19 + $0x6e0] ss:$8 sps:$4 sm:$0xff]  }
  0x6b   : > { %2159 = vmatpush1.bf16.msra.mxu1 %v3398_v42  ;;  %v3900_v42 = vld [vmem:[%s3769_s23 + $0x10] sm:$0xff] }
  0x6c   : > { %2371 = vmatpush1.bf16.msra.mxu0 %v3401_v43  ;;  %2160 = vmatprep.subr.bf16.mxu1 %v3406_v46  ;;  %v2900_v43 = vcombine.low %v382_v26, %v390_v29  ;;  %v3906_v46 = vld [vmem:[%s3769_s23 + $0x30] sm:$0xff]  ;;  %v2887_v50 = vcombine.high %v3900_v42, %v3903_v45 }
  0x6d   : > { %2372 = vmatprep.subr.bf16.mxu0 %v3409_v47  ;;  %v3909_v47 = vld [vmem:[%s3769_s23 + $0x70] sm:$0xff] }
  0x6e   : > { %v3538_v26 = vld [vmem:[%s3719_s19 + $0x2d4] ss:$8 sps:$4 sm:$0xff]   ;;  %v3539_v29 = vld [vmem:[%s3719_s19 + $0x6d0] ss:$8 sps:$4 sm:$0xff]  }
  0x6f   : > { %2161 = vmatpush1.bf16.msra.mxu1 %v3404_v51  ;;  %v2895_v51 = vcombine.high %v3906_v46, %v3909_v47 }
  0x70   : > { %2373 = vmatpush1.bf16.msra.mxu0 %v3407_v52  ;;  %2162 = vmatprep.subr.bf16.mxu1 %v3412_v54  ;;  %v3476_v52 = vld [vmem:[%s3719_s19 + $0x230] ss:$8 sps:$4 sm:$0xff]   ;;  %v3484_v54 = vld [vmem:[%s3719_s19 + $0x244] ss:$8 sps:$4 sm:$0xff]  }
  0x71   : > { %2374 = vmatprep.subr.bf16.mxu0 %v3415_v55  ;;  %v3487_v55 = vld [vmem:[%s3719_s19 + $0x644] ss:$8 sps:$4 sm:$0xff]  }
  0x73   : > { %2163 = vmatpush1.bf16.msra.mxu1 %v3410_v56  ;;  %v3482_v56 = vld [vmem:[%s3719_s19 + $0x240] ss:$8 sps:$4 sm:$0xff]  }
  0x74   : > { %2375 = vmatpush1.bf16.msra.mxu0 %v3413_v57  ;;  %2164 = vmatprep.subr.bf16.mxu1 %v3418_v58  ;;  %v3485_v57 = vld [vmem:[%s3719_s19 + $0x640] ss:$8 sps:$4 sm:$0xff]   ;;  %v3490_v58 = vld [vmem:[%s3719_s19 + $0x254] ss:$8 sps:$4 sm:$0xff]  }
  0x75   : > { %2376 = vmatprep.subr.bf16.mxu0 %v3421_v59  ;;  %v3493_v59 = vld [vmem:[%s3719_s19 + $0x654] ss:$8 sps:$4 sm:$0xff]  }
  0x77   : > { %2165 = vmatpush1.bf16.msra.mxu1 %v3416_v60  ;;  %v3488_v60 = vld [vmem:[%s3719_s19 + $0x250] ss:$8 sps:$4 sm:$0xff]  }
  0x78   : > { %2377 = vmatpush1.bf16.msra.mxu0 %v3419_v61  ;;  %2166 = vmatprep.subr.bf16.mxu1 %v3424_v62  ;;  %v3491_v61 = vld [vmem:[%s3719_s19 + $0x650] ss:$8 sps:$4 sm:$0xff]   ;;  %v3496_v62 = vld [vmem:[%s3719_s19 + $0x264] ss:$8 sps:$4 sm:$0xff]  }
  0x79   : > { %2378 = vmatprep.subr.bf16.mxu0 %v3427_v63  ;;  %v3499_v63 = vld [vmem:[%s3719_s19 + $0x664] ss:$8 sps:$4 sm:$0xff]  }
  0x7b   : > { %2167 = vmatpush1.bf16.msra.mxu1 %v3422_v0  ;;  %v3494_v0 = vld [vmem:[%s3719_s19 + $0x260] ss:$8 sps:$4 sm:$0xff]  }
  0x7c   : > { %2379 = vmatpush1.bf16.msra.mxu0 %v3425_v1  ;;  %2168 = vmatprep.subr.bf16.mxu1 %v3430_v2  ;;  %v3497_v1 = vld [vmem:[%s3719_s19 + $0x660] ss:$8 sps:$4 sm:$0xff]   ;;  %v3502_v2 = vld [vmem:[%s3719_s19 + $0x274] ss:$8 sps:$4 sm:$0xff]  }
  0x7d   : > { %2380 = vmatprep.subr.bf16.mxu0 %v3433_v3  ;;  %v3505_v3 = vld [vmem:[%s3719_s19 + $0x674] ss:$8 sps:$4 sm:$0xff]  }
  0x7f   : > { %2169 = vmatpush1.bf16.msra.mxu1 %v3428_v4  ;;  %v3500_v4 = vld [vmem:[%s3719_s19 + $0x270] ss:$8 sps:$4 sm:$0xff]  }
  0x80   : > { %2381 = vmatpush1.bf16.msra.mxu0 %v3431_v5  ;;  %2170 = vmatprep.subr.bf16.mxu1 %v3436_v6  ;;  %v3503_v5 = vld [vmem:[%s3719_s19 + $0x670] ss:$8 sps:$4 sm:$0xff]   ;;  %v3508_v6 = vld [vmem:[%s3719_s19 + $0x284] ss:$8 sps:$4 sm:$0xff]  }
  0x81   : > { %2382 = vmatprep.subr.bf16.mxu0 %v3439_v7  ;;  %v3511_v7 = vld [vmem:[%s3719_s19 + $0x684] ss:$8 sps:$4 sm:$0xff]  }
  0x83   : > { %2171 = vmatpush1.bf16.msra.mxu1 %v3434_v8  ;;  %v3506_v8 = vld [vmem:[%s3719_s19 + $0x280] ss:$8 sps:$4 sm:$0xff]  }
  0x84   : > { %2383 = vmatpush1.bf16.msra.mxu0 %v3437_v9  ;;  %2172 = vmatprep.subr.bf16.mxu1 %v3442_v10  ;;  %v3509_v9 = vld [vmem:[%s3719_s19 + $0x680] ss:$8 sps:$4 sm:$0xff]   ;;  %v3514_v10 = vld [vmem:[%s3719_s19 + $0x294] ss:$8 sps:$4 sm:$0xff]  }
  0x85   : > { %2384 = vmatprep.subr.bf16.mxu0 %v3445_v11  ;;  %v3517_v11 = vld [vmem:[%s3719_s19 + $0x694] ss:$8 sps:$4 sm:$0xff]  }
  0x87   : > { %2173 = vmatpush1.bf16.msra.mxu1 %v3440_v12  ;;  %v3512_v12 = vld [vmem:[%s3719_s19 + $0x290] ss:$8 sps:$4 sm:$0xff]  }
  0x88   : > { %2385 = vmatpush1.bf16.msra.mxu0 %v3443_v13  ;;  %2174 = vmatprep.subr.bf16.mxu1 %v3448_v14  ;;  %v3515_v13 = vld [vmem:[%s3719_s19 + $0x690] ss:$8 sps:$4 sm:$0xff]   ;;  %v3520_v14 = vld [vmem:[%s3719_s19 + $0x2a4] ss:$8 sps:$4 sm:$0xff]  }
  0x89   : > { %2386 = vmatprep.subr.bf16.mxu0 %v3451_v15  ;;  %v3523_v15 = vld [vmem:[%s3719_s19 + $0x6a4] ss:$8 sps:$4 sm:$0xff]  }
  0x8b   : > { %2175 = vmatpush1.bf16.msra.mxu1 %v3446_v16  ;;  %v3518_v16 = vld [vmem:[%s3719_s19 + $0x2a0] ss:$8 sps:$4 sm:$0xff]  }
  0x8c   : > { %2387 = vmatpush1.bf16.msra.mxu0 %v3449_v17  ;;  %2176 = vmatprep.subr.bf16.mxu1 %v3454_v18  ;;  %v3521_v17 = vld [vmem:[%s3719_s19 + $0x6a0] ss:$8 sps:$4 sm:$0xff]   ;;  %v3526_v18 = vld [vmem:[%s3719_s19 + $0x2b4] ss:$8 sps:$4 sm:$0xff]  }
  0x8d   : > { %2388 = vmatprep.subr.bf16.mxu0 %v3457_v19  ;;  %v3529_v19 = vld [vmem:[%s3719_s19 + $0x6b4] ss:$8 sps:$4 sm:$0xff]  }
  0x8f   : > { %2177 = vmatpush1.bf16.msra.mxu1 %v3452_v20  ;;  %v3524_v20 = vld [vmem:[%s3719_s19 + $0x2b0] ss:$8 sps:$4 sm:$0xff]  }
  0x90   : > { %2389 = vmatpush1.bf16.msra.mxu0 %v3455_v21  ;;  %2199 = vmatprep.subr.bf16.mxu1 %v3460_v22  ;;  %v3527_v21 = vld [vmem:[%s3719_s19 + $0x6b0] ss:$8 sps:$4 sm:$0xff]   ;;  %v3532_v22 = vld [vmem:[%s3719_s19 + $0x2c4] ss:$8 sps:$4 sm:$0xff]  }
  0x91   : > { %2411 = vmatprep.subr.bf16.mxu0 %v3463_v23  ;;  %v3535_v23 = vld [vmem:[%s3719_s19 + $0x6c4] ss:$8 sps:$4 sm:$0xff]  }
  0x92   : > { %2179 = vmatmul.mubr.bf16.vlgmr.msra.gmra.mrb[0].mxu1 %v2884_v27  ;;  %v3541_v27 = vld [vmem:[%s3719_s19 + $0x6d4] ss:$8 sps:$4 sm:$0xff]  }
  0x93   : > { %2391 = vmatmul.mubr.bf16.vlgmr.msra.gmra.mrb[0].mxu0 %v2892_v28  ;;  %2200 = vmatpush1.bf16.msra.mxu1 %v3458_v24  ;;  %v3530_v24 = vld [vmem:[%s3719_s19 + $0x2c0] ss:$8 sps:$4 sm:$0xff]   ;;  %v3536_v28 = vld [vmem:[%s3719_s19 + $0x2d0] ss:$8 sps:$4 sm:$0xff]  }
  0x94   : > { %2412 = vmatpush1.bf16.msra.mxu0 %v3461_v25  ;;  %2201 = vmatprep.subr.bf16.mxu1 %v3466_v30  ;;  %v3533_v25 = vld [vmem:[%s3719_s19 + $0x6c0] ss:$8 sps:$4 sm:$0xff]   ;;  %v3544_v30 = vld [vmem:[%s3719_s19 + $0x2e4] ss:$8 sps:$4 sm:$0xff]  }
  0x95   : > { %2413 = vmatprep.subr.bf16.mxu0 %v3469_v31  ;;  %2188 = vmatprep.mubr.bf16.mxu1 %v2901_v34  ;;  %v3547_v31 = vld [vmem:[%s3719_s19 + $0x6e4] ss:$8 sps:$4 sm:$0xff]   ;;  %v3550_v34 = vld [vmem:[%s3719_s19 + $0x2f4] ss:$8 sps:$4 sm:$0xff]  }
  0x96   : > { %2400 = vmatprep.mubr.bf16.mxu0 %v2909_v35  ;;  %v3553_v35 = vld [vmem:[%s3719_s19 + $0x6f4] ss:$8 sps:$4 sm:$0xff]  }
  0x97   : > { %2202 = vmatpush1.bf16.msra.mxu1 %v3464_v36  ;;  %v3548_v36 = vld [vmem:[%s3719_s19 + $0x2f0] ss:$8 sps:$4 sm:$0xff]  }
  0x98   : > { %2414 = vmatpush1.bf16.msra.mxu0 %v3467_v37  ;;  %2203 = vmatprep.subr.bf16.mxu1 %v3472_v38  ;;  %v3551_v37 = vld [vmem:[%s3719_s19 + $0x6f0] ss:$8 sps:$4 sm:$0xff]   ;;  %v3556_v38 = vld [vmem:[%s3719_s19 + $0x304] ss:$8 sps:$4 sm:$0xff]  }
  0x99   : > { %2415 = vmatprep.subr.bf16.mxu0 %v3475_v39  ;;  %v3559_v39 = vld [vmem:[%s3719_s19 + $0x704] ss:$8 sps:$4 sm:$0xff]  }
  0x9a   : > { %2189 = vmatmul.mubr.bf16.gmra.mrb[4].mxu1 %v2900_v43  ;;  %v2894_v43 = vcombine.low %v3906_v46, %v3909_v47  ;;  %v3560_v46 = vld [vmem:[%s3719_s19 + $0x310] ss:$8 sps:$4 sm:$0xff]  }
  0x9b   : > { %2401 = vmatmul.mubr.bf16.gmra.mrb[4].mxu0 %v2908_v44  ;;  %2204 = vmatpush1.bf16.msra.mxu1 %v3470_v40  ;;  %v383_v40 = vld [vmem:[%s3769_s23 + $0x90] sm:$0xff] }
  0x9c   : > { %2416 = vmatpush1.bf16.msra.mxu0 %v3473_v41  ;;  %2205 = vmatprep.subr.bf16.mxu1 %v3478_v48  ;;  %v2886_v41 = vcombine.low %v3900_v42, %v3903_v45  ;;  %v391_v44 = vld [vmem:[%s3769_s23 + $0xd0] sm:$0xff] }
  0x9d   : > { %2417 = vmatprep.subr.bf16.mxu0 %v3481_v49  ;;  %2231 = vmatprep.mubr.bf16.mxu1 %v2887_v50  ;;  %v387_v48 = vld [vmem:[%s3769_s23 + $0xb0] sm:$0xff]  ;;  %v3554_v50 = vld [vmem:[%s3719_s19 + $0x300] ss:$8 sps:$4 sm:$0xff]   ;;  %v2903_v42 = vcombine.high %v383_v40, %v391_v44 }
  0x9e   : > { %2443 = vmatprep.mubr.bf16.mxu0 %v2895_v51  ;;  %v395_v49 = vld [vmem:[%s3769_s23 + $0xf0] sm:$0xff]  ;;  %v3557_v51 = vld [vmem:[%s3719_s19 + $0x700] ss:$8 sps:$4 sm:$0xff]  }
  0x9f   : > { %2206 = vmatpush1.bf16.msra.mxu1 %v3476_v52  ;;  %v3562_v52 = vld [vmem:[%s3719_s19 + $0x314] ss:$8 sps:$4 sm:$0xff]   ;;  %v2911_v45 = vcombine.high %v387_v48, %v395_v49  ;;  %v3563_v47 = vld [vmem:[%s3719_s19 + $0x710] ss:$8 sps:$4 sm:$0xff]  }
  0xa0   : > { %2418 = vmatpush1.bf16.msra.mxu0 %v3479_v53  ;;  %2207 = vmatprep.subr.bf16.mxu1 %v3484_v54  ;;  %v3565_v53 = vld [vmem:[%s3719_s19 + $0x714] ss:$8 sps:$4 sm:$0xff]   ;;  %v3568_v54 = vld [vmem:[%s3719_s19 + $0x324] ss:$8 sps:$4 sm:$0xff]  }
  0xa1   : > { %2419 = vmatprep.subr.bf16.mxu0 %v3487_v55  ;;  %v3571_v55 = vld [vmem:[%s3719_s19 + $0x724] ss:$8 sps:$4 sm:$0xff]  }
  0xa3   : > { %2208 = vmatpush1.bf16.msra.mxu1 %v3482_v56  ;;  %v3986_v56 = vld [vmem:[%s3769_s23 + $0x18] sm:$0xff] }
  0xa4   : > { %2420 = vmatpush1.bf16.msra.mxu0 %v3485_v57  ;;  %2209 = vmatprep.subr.bf16.mxu1 %v3490_v58  ;;  %v2902_v57 = vcombine.low %v383_v40, %v391_v44  ;;  %v2910_v58 = vcombine.low %v387_v48, %v395_v49  ;;  %v3626_v40 = vld [vmem:[%s3719_s19 + $0x3c0] ss:$8 sps:$4 sm:$0xff]   ;;  %v3637_v44 = vld [vmem:[%s3719_s19 + $0x7d4] ss:$8 sps:$4 sm:$0xff]   ;;  %v3632_v48 = vld [vmem:[%s3719_s19 + $0x3d0] ss:$8 sps:$4 sm:$0xff]  }
  0xa5   : > { %2421 = vmatprep.subr.bf16.mxu0 %v3493_v59  ;;  %v3989_v59 = vld [vmem:[%s3769_s23 + $0x58] sm:$0xff] }
  0xa6   : > { %v3635_v49 = vld [vmem:[%s3719_s19 + $0x7d0] ss:$8 sps:$4 sm:$0xff]  }
  0xa7   : > { %2210 = vmatpush1.bf16.msra.mxu1 %v3488_v60  ;;  %v3992_v60 = vld [vmem:[%s3769_s23 + $0x38] sm:$0xff] }
  0xa8   : > { %2422 = vmatpush1.bf16.msra.mxu0 %v3491_v61  ;;  %2211 = vmatprep.subr.bf16.mxu1 %v3496_v62  ;;  %v3995_v61 = vld [vmem:[%s3769_s23 + $0x78] sm:$0xff]  ;;  %v3566_v62 = vld [vmem:[%s3719_s19 + $0x320] ss:$8 sps:$4 sm:$0xff]  }
  0xa9   : > { %2423 = vmatprep.subr.bf16.mxu0 %v3499_v63  ;;  %v3569_v63 = vld [vmem:[%s3719_s19 + $0x720] ss:$8 sps:$4 sm:$0xff]  }
  0xab   : > { %2212 = vmatpush1.bf16.msra.mxu1 %v3494_v0  ;;  %v3574_v0 = vld [vmem:[%s3719_s19 + $0x334] ss:$8 sps:$4 sm:$0xff]  }
  0xac   : > { %2424 = vmatpush1.bf16.msra.mxu0 %v3497_v1  ;;  %2213 = vmatprep.subr.bf16.mxu1 %v3502_v2  ;;  %v3577_v1 = vld [vmem:[%s3719_s19 + $0x734] ss:$8 sps:$4 sm:$0xff]   ;;  %v2889_v2 = vcombine.high %v3986_v56, %v3989_v59 }
  0xad   : > { %2425 = vmatprep.subr.bf16.mxu0 %v3505_v3  ;;  %v2897_v3 = vcombine.high %v3992_v60, %v3995_v61 }
  0xaf   : > { %2214 = vmatpush1.bf16.msra.mxu1 %v3500_v4  ;;  %v3572_v4 = vld [vmem:[%s3719_s19 + $0x330] ss:$8 sps:$4 sm:$0xff]  }
  0xb0   : > { %2426 = vmatpush1.bf16.msra.mxu0 %v3503_v5  ;;  %2215 = vmatprep.subr.bf16.mxu1 %v3508_v6  ;;  %v3575_v5 = vld [vmem:[%s3719_s19 + $0x730] ss:$8 sps:$4 sm:$0xff]   ;;  %v3580_v6 = vld [vmem:[%s3719_s19 + $0x344] ss:$8 sps:$4 sm:$0xff]  }
  0xb1   : > { %2427 = vmatprep.subr.bf16.mxu0 %v3511_v7  ;;  %v3583_v7 = vld [vmem:[%s3719_s19 + $0x744] ss:$8 sps:$4 sm:$0xff]  }
  0xb3   : > { %2216 = vmatpush1.bf16.msra.mxu1 %v3506_v8  ;;  %v3578_v8 = vld [vmem:[%s3719_s19 + $0x340] ss:$8 sps:$4 sm:$0xff]  }
  0xb4   : > { %2428 = vmatpush1.bf16.msra.mxu0 %v3509_v9  ;;  %2217 = vmatprep.subr.bf16.mxu1 %v3514_v10  ;;  %v3581_v9 = vld [vmem:[%s3719_s19 + $0x740] ss:$8 sps:$4 sm:$0xff]   ;;  %v3586_v10 = vld [vmem:[%s3719_s19 + $0x354] ss:$8 sps:$4 sm:$0xff]  }
  0xb5   : > { %2429 = vmatprep.subr.bf16.mxu0 %v3517_v11  ;;  %v3589_v11 = vld [vmem:[%s3719_s19 + $0x754] ss:$8 sps:$4 sm:$0xff]  }
  0xb7   : > { %2218 = vmatpush1.bf16.msra.mxu1 %v3512_v12  ;;  %v3584_v12 = vld [vmem:[%s3719_s19 + $0x350] ss:$8 sps:$4 sm:$0xff]  }
  0xb8   : > { %2430 = vmatpush1.bf16.msra.mxu0 %v3515_v13  ;;  %2219 = vmatprep.subr.bf16.mxu1 %v3520_v14  ;;  %v3587_v13 = vld [vmem:[%s3719_s19 + $0x750] ss:$8 sps:$4 sm:$0xff]   ;;  %v3592_v14 = vld [vmem:[%s3719_s19 + $0x364] ss:$8 sps:$4 sm:$0xff]  }
  0xb9   : > { %2431 = vmatprep.subr.bf16.mxu0 %v3523_v15  ;;  %v3595_v15 = vld [vmem:[%s3719_s19 + $0x764] ss:$8 sps:$4 sm:$0xff]  }
  0xbb   : > { %2220 = vmatpush1.bf16.msra.mxu1 %v3518_v16  ;;  %v3590_v16 = vld [vmem:[%s3719_s19 + $0x360] ss:$8 sps:$4 sm:$0xff]  }
  0xbc   : > { %2432 = vmatpush1.bf16.msra.mxu0 %v3521_v17  ;;  %2221 = vmatprep.subr.bf16.mxu1 %v3526_v18  ;;  %v3593_v17 = vld [vmem:[%s3719_s19 + $0x760] ss:$8 sps:$4 sm:$0xff]   ;;  %v3598_v18 = vld [vmem:[%s3719_s19 + $0x374] ss:$8 sps:$4 sm:$0xff]  }
  0xbd   : > { %2433 = vmatprep.subr.bf16.mxu0 %v3529_v19  ;;  %v3601_v19 = vld [vmem:[%s3719_s19 + $0x774] ss:$8 sps:$4 sm:$0xff]  }
  0xbf   : > { %2222 = vmatpush1.bf16.msra.mxu1 %v3524_v20  ;;  %v3596_v20 = vld [vmem:[%s3719_s19 + $0x370] ss:$8 sps:$4 sm:$0xff]  }
  0xc0   : > { %2434 = vmatpush1.bf16.msra.mxu0 %v3527_v21  ;;  %2223 = vmatprep.subr.bf16.mxu1 %v3532_v22  ;;  %v3599_v21 = vld [vmem:[%s3719_s19 + $0x770] ss:$8 sps:$4 sm:$0xff]   ;;  %v3604_v22 = vld [vmem:[%s3719_s19 + $0x384] ss:$8 sps:$4 sm:$0xff]  }
  0xc1   : > { %2435 = vmatprep.subr.bf16.mxu0 %v3535_v23  ;;  %v3607_v23 = vld [vmem:[%s3719_s19 + $0x784] ss:$8 sps:$4 sm:$0xff]  }
  0xc3   : > { %2224 = vmatpush1.bf16.msra.mxu1 %v3530_v24  ;;  %v3602_v24 = vld [vmem:[%s3719_s19 + $0x380] ss:$8 sps:$4 sm:$0xff]  }
  0xc4   : > { %2436 = vmatpush1.bf16.msra.mxu0 %v3533_v25  ;;  %2225 = vmatprep.subr.bf16.mxu1 %v3538_v26  ;;  %v3605_v25 = vld [vmem:[%s3719_s19 + $0x780] ss:$8 sps:$4 sm:$0xff]   ;;  %v3610_v26 = vld [vmem:[%s3719_s19 + $0x394] ss:$8 sps:$4 sm:$0xff]  }
  0xc5   : > { %2437 = vmatprep.subr.bf16.mxu0 %v3541_v27  ;;  %v3613_v27 = vld [vmem:[%s3719_s19 + $0x794] ss:$8 sps:$4 sm:$0xff]  }
  0xc7   : > { %2226 = vmatpush1.bf16.msra.mxu1 %v3536_v28  ;;  %v3608_v28 = vld [vmem:[%s3719_s19 + $0x390] ss:$8 sps:$4 sm:$0xff]  }
  0xc8   : > { %2438 = vmatpush1.bf16.msra.mxu0 %v3539_v29  ;;  %2227 = vmatprep.subr.bf16.mxu1 %v3544_v30  ;;  %v3611_v29 = vld [vmem:[%s3719_s19 + $0x790] ss:$8 sps:$4 sm:$0xff]   ;;  %v3616_v30 = vld [vmem:[%s3719_s19 + $0x3a4] ss:$8 sps:$4 sm:$0xff]  }
  0xc9   : > { %2439 = vmatprep.subr.bf16.mxu0 %v3547_v31  ;;  %v3619_v31 = vld [vmem:[%s3719_s19 + $0x7a4] ss:$8 sps:$4 sm:$0xff]  }
  0xcb   : > { %2228 = vmatpush1.bf16.msra.mxu1 %v3542_v32  ;;  %v3614_v32 = vld [vmem:[%s3719_s19 + $0x3a0] ss:$8 sps:$4 sm:$0xff]  }
  0xcc   : > { %2440 = vmatpush1.bf16.msra.mxu0 %v3545_v33  ;;  %2229 = vmatprep.subr.bf16.mxu1 %v3550_v34  ;;  %v3617_v33 = vld [vmem:[%s3719_s19 + $0x7a0] ss:$8 sps:$4 sm:$0xff]   ;;  %v3622_v34 = vld [vmem:[%s3719_s19 + $0x3b4] ss:$8 sps:$4 sm:$0xff]  }
  0xcd   : > { %2441 = vmatprep.subr.bf16.mxu0 %v3553_v35  ;;  %v3625_v35 = vld [vmem:[%s3719_s19 + $0x7b4] ss:$8 sps:$4 sm:$0xff]  }
  0xcf   : > { %2230 = vmatpush1.bf16.msra.mxu1 %v3548_v36  ;;  %v3620_v36 = vld [vmem:[%s3719_s19 + $0x3b0] ss:$8 sps:$4 sm:$0xff]  }
  0xd0   : > { %2442 = vmatpush1.bf16.msra.mxu0 %v3551_v37  ;;  %2252 = vmatprep.subr.bf16.mxu1 %v3556_v38  ;;  %v3623_v37 = vld [vmem:[%s3719_s19 + $0x7b0] ss:$8 sps:$4 sm:$0xff]   ;;  %v3628_v38 = vld [vmem:[%s3719_s19 + $0x3c4] ss:$8 sps:$4 sm:$0xff]  }
  0xd1   : > { %2464 = vmatprep.subr.bf16.mxu0 %v3559_v39  ;;  %v3631_v39 = vld [vmem:[%s3719_s19 + $0x7c4] ss:$8 sps:$4 sm:$0xff]  }
  0xd2   : > { %2232 = vmatmul.mubr.bf16.vlgmr.msra.gmra.mrb[0].mxu1 %v2886_v41  ;;  %v3629_v41 = vld [vmem:[%s3719_s19 + $0x7c0] ss:$8 sps:$4 sm:$0xff]  }
  0xd3   : > { %2444 = vmatmul.mubr.bf16.vlgmr.msra.gmra.mrb[0].mxu0 %v2894_v43  ;;  %2253 = vmatpush1.bf16.msra.mxu1 %v3554_v50  ;;  %v3634_v43 = vld [vmem:[%s3719_s19 + $0x3d4] ss:$8 sps:$4 sm:$0xff]   ;;  %v3640_v50 = vld [vmem:[%s3719_s19 + $0x3e4] ss:$8 sps:$4 sm:$0xff]  }
  0xd4   : > { %2465 = vmatpush1.bf16.msra.mxu0 %v3557_v51  ;;  %2254 = vmatprep.subr.bf16.mxu1 %v3562_v52  ;;  %v3643_v51 = vld [vmem:[%s3719_s19 + $0x7e4] ss:$8 sps:$4 sm:$0xff]   ;;  %v3638_v52 = vld [vmem:[%s3719_s19 + $0x3e0] ss:$8 sps:$4 sm:$0xff]  }
  0xd5   : > { %2466 = vmatprep.subr.bf16.mxu0 %v3565_v53  ;;  %2241 = vmatprep.mubr.bf16.mxu1 %v2903_v42  ;;  %v3641_v53 = vld [vmem:[%s3719_s19 + $0x7e0] ss:$8 sps:$4 sm:$0xff]   ;;  %v3646_v42 = vld [vmem:[%s3719_s19 + $0x3f4] ss:$8 sps:$4 sm:$0xff]  }
  0xd6   : > { %2453 = vmatprep.mubr.bf16.mxu0 %v2911_v45  ;;  %v3649_v45 = vld [vmem:[%s3719_s19 + $0x7f4] ss:$8 sps:$4 sm:$0xff]  }
  0xd7   : > { %2255 = vmatpush1.bf16.msra.mxu1 %v3560_v46  ;;  %v3644_v46 = vld [vmem:[%s3719_s19 + $0x3f0] ss:$8 sps:$4 sm:$0xff]  }
  0xd8   : > { %2467 = vmatpush1.bf16.msra.mxu0 %v3563_v47  ;;  %2256 = vmatprep.subr.bf16.mxu1 %v3568_v54  ;;  %v3647_v47 = vld [vmem:[%s3719_s19 + $0x7f0] ss:$8 sps:$4 sm:$0xff]  }
  0xd9   : > { %2468 = vmatprep.subr.bf16.mxu0 %v3571_v55  ;;  %v384_v54 = vld [vmem:[%s3769_s23 + $0x98] sm:$0xff] }
  0xda   : > { %2242 = vmatmul.mubr.bf16.gmra.mrb[4].mxu1 %v2902_v57  ;;  %v392_v55 = vld [vmem:[%s3769_s23 + $0xd8] sm:$0xff] }
  0xdb   : > { %2454 = vmatmul.mubr.bf16.gmra.mrb[4].mxu0 %v2910_v58  ;;  %2257 = vmatpush1.bf16.msra.mxu1 %v3566_v62  ;;  %v388_v57 = vld [vmem:[%s3769_s23 + $0xb8] sm:$0xff]  ;;  %v2888_v62 = vcombine.low %v3986_v56, %v3989_v59 }
  0xdc   : > { %2469 = vmatpush1.bf16.msra.mxu0 %v3569_v63  ;;  %2258 = vmatprep.subr.bf16.mxu1 %v3574_v0  ;;  %v396_v58 = vld [vmem:[%s3769_s23 + $0xf8] sm:$0xff]  ;;  %v2896_v63 = vcombine.low %v3992_v60, %v3995_v61  ;;  %v2905_v0 = vcombine.high %v384_v54, %v392_v55 }
  0xdd   : > { %2470 = vmatprep.subr.bf16.mxu0 %v3577_v1  ;;  %2284 = vmatprep.mubr.bf16.mxu1 %v2889_v2  ;;  %v2913_v1 = vcombine.high %v388_v57, %v396_v58  ;;  %v2904_v2 = vcombine.low %v384_v54, %v392_v55  ;;  %v2568_v55 = vlaneseq }
  0xde   : > { %2496 = vmatprep.mubr.bf16.mxu0 %v2897_v3  ;;  %v2912_v3 = vcombine.low %v388_v57, %v396_v58 }
  0xdf   : > { %2259 = vmatpush1.bf16.msra.mxu1 %v3572_v4  ;;  %vm2582_vm0 = vcmp.lt.s32.totalorder %v2568_v55, 256 }
  0xe0   : > { %2471 = vmatpush1.bf16.msra.mxu0 %v3575_v5  ;;  %2260 = vmatprep.subr.bf16.mxu1 %v3580_v6 }
  0xe1   : > { %2472 = vmatprep.subr.bf16.mxu0 %v3583_v7 }
  0xe3   : > { %2261 = vmatpush1.bf16.msra.mxu1 %v3578_v8 }
  0xe4   : > { %2473 = vmatpush1.bf16.msra.mxu0 %v3581_v9  ;;  %2262 = vmatprep.subr.bf16.mxu1 %v3586_v10 }
  0xe5   : > { %2474 = vmatprep.subr.bf16.mxu0 %v3589_v11 }
  0xe7   : > { %2263 = vmatpush1.bf16.msra.mxu1 %v3584_v12 }
  0xe8   : > { %2475 = vmatpush1.bf16.msra.mxu0 %v3587_v13  ;;  %2264 = vmatprep.subr.bf16.mxu1 %v3592_v14 }
  0xe9   : > { %2476 = vmatprep.subr.bf16.mxu0 %v3595_v15 }
  0xeb   : > { %2265 = vmatpush1.bf16.msra.mxu1 %v3590_v16 }
  0xec   : > { %2477 = vmatpush1.bf16.msra.mxu0 %v3593_v17  ;;  %2266 = vmatprep.subr.bf16.mxu1 %v3598_v18 }
  0xed   : > { %2478 = vmatprep.subr.bf16.mxu0 %v3601_v19 }
  0xef   : > { %2267 = vmatpush1.bf16.msra.mxu1 %v3596_v20 }
  0xf0   : > { %2479 = vmatpush1.bf16.msra.mxu0 %v3599_v21  ;;  %2268 = vmatprep.subr.bf16.mxu1 %v3604_v22 }
  0xf1   : > { %2480 = vmatprep.subr.bf16.mxu0 %v3607_v23 }
  0xf3   : > { %2269 = vmatpush1.bf16.msra.mxu1 %v3602_v24 }
  0xf4   : > { %2481 = vmatpush1.bf16.msra.mxu0 %v3605_v25  ;;  %2270 = vmatprep.subr.bf16.mxu1 %v3610_v26 }
  0xf5   : > { %2482 = vmatprep.subr.bf16.mxu0 %v3613_v27 }
  0xf7   : > { %2271 = vmatpush1.bf16.msra.mxu1 %v3608_v28 }
  0xf8   : > { %2483 = vmatpush1.bf16.msra.mxu0 %v3611_v29  ;;  %2272 = vmatprep.subr.bf16.mxu1 %v3616_v30 }
  0xf9   : > { %2484 = vmatprep.subr.bf16.mxu0 %v3619_v31 }
  0xfb   : > { %2273 = vmatpush1.bf16.msra.mxu1 %v3614_v32 }
  0xfc   : > { %2485 = vmatpush1.bf16.msra.mxu0 %v3617_v33  ;;  %2274 = vmatprep.subr.bf16.mxu1 %v3622_v34 }
  0xfd   : > { %2486 = vmatprep.subr.bf16.mxu0 %v3625_v35 }
  0xff   : > { %2275 = vmatpush1.bf16.msra.mxu1 %v3620_v36 }
 0x100   : > { %2487 = vmatpush1.bf16.msra.mxu0 %v3623_v37  ;;  %2276 = vmatprep.subr.bf16.mxu1 %v3628_v38 }
 0x101   : > { %2488 = vmatprep.subr.bf16.mxu0 %v3631_v39 }
 0x103   : > { %2277 = vmatpush1.bf16.msra.mxu1 %v3626_v40 }
 0x104   : > { %2489 = vmatpush1.bf16.msra.mxu0 %v3629_v41  ;;  %2278 = vmatprep.subr.bf16.mxu1 %v3634_v43 }
 0x105   : > { %2490 = vmatprep.subr.bf16.mxu0 %v3637_v44 }
 0x107   : > { %2279 = vmatpush1.bf16.msra.mxu1 %v3632_v48 }
 0x108   : > { %2491 = vmatpush1.bf16.msra.mxu0 %v3635_v49  ;;  %2280 = vmatprep.subr.bf16.mxu1 %v3640_v50 }
 0x109   : > { %2492 = vmatprep.subr.bf16.mxu0 %v3643_v51 }
 0x10b   : > { %2281 = vmatpush1.bf16.msra.mxu1 %v3638_v52 }
 0x10c   : > { %2493 = vmatpush1.bf16.msra.mxu0 %v3641_v53  ;;  %2282 = vmatprep.subr.bf16.mxu1 %v3646_v42 }
 0x10d   : > { %2494 = vmatprep.subr.bf16.mxu0 %v3649_v45 }
 0x10f   : > { %2283 = vmatpush1.bf16.msra.mxu1 %v3644_v46 }
 0x110   : > { %2495 = vmatpush1.bf16.msra.mxu0 %v3647_v47  ;;  %v3674_v47 = vmov 1966171168  }
 0x111   : > { %v2566_v54 = vunpack.c.l.s4 %v3674_v47 }
 0x112   : > { %2285 = vmatmul.mubr.bf16.vlgmr.msra.gmra.mrb[0].mxu1 %v2888_v62 }
 0x113   : > { %2497 = vmatmul.mubr.bf16.vlgmr.msra.gmra.mrb[0].mxu0 %v2896_v63  ;;  %2294 = vmatprep.mubr.bf16.mxu1 %v2905_v0 }
 0x114   : > { %2506 = vmatprep.mubr.bf16.mxu0 %v2913_v1 }
 0x11a   : > { %2295 = vmatmul.mubr.bf16.gmra.mrb[4].mxu1 %v2904_v2 }
 0x11b   : > { %2507 = vmatmul.mubr.bf16.gmra.mrb[4].mxu0 %v2912_v3 }
 0x1e5   : > { %v2286_v4 = vpop.f32.mrb[0].mxu1 }
 0x1e6   : > { %v2498_v5 = vpop.f32.mrb[0].mxu0  ;;  %v2288_v59 = vpop.f32.mrb[1].mxu1 }
 0x1e7   : > { %v3185_v56 = vadd.f32 %v2498_v5, %v2286_v4  ;;  %v2500_v6 = vpop.f32.mrb[1].mxu0  ;;  %v2290_v60 = vpop.f32.mrb[2].mxu1  ;;  %v2567_v4 = vunpack.c.0.s8 %v2566_v54  ;;  %v2569_v5 = vshrl.u32 %v2568_v55, 7 }
 0x1e8   : > { %v3186_v7 = vadd.f32 %v2500_v6, %v2288_v59  ;;  %v2502_v61 = vpop.f32.mrb[2].mxu0  ;;  %v2292_v9 = vpop.f32.mrb[3].mxu1 }
 0x1e9   : > { %v3187_v8 = vadd.f32 %v2502_v61, %v2290_v60  ;;  %v2504_v10 = vpop.f32.mrb[3].mxu0  ;;  %v2586_v13 = vmul.f32 %v3185_v56, %v3185_v56 }
 0x1ea   : > { %v3181_v11 = vpack.c.bf16 %v3186_v7, %v3185_v56  ;;  %v3188_v12 = vadd.f32 %v2504_v10, %v2292_v9  ;;  %v2587_v16 = vmul.f32 %v3186_v7, %v3186_v7  ;;  %v2570_v10 = vsub.s32 %v2567_v4, %v2569_v5 }
 0x1eb   : > { %v2544_v14 = vadd.f32 %v3187_v8, %v3185_v56  ;;  %v2588_v15 = vmul.f32 %v3187_v8, %v3187_v8 }
 0x1ec   : > { %2657 = vst [vmem:[%s4067_s27] sm:$0xff] %v3181_v11  ;;  %v2553_v17 = vadd.f32 %v3188_v12, %v3186_v7  ;;  %v2589_v18 = vmul.f32 %v3188_v12, %v3188_v12  ;;  %v3182_v19 = vpack.c.bf16 %v3188_v12, %v3187_v8 }
 0x1ed   : > { %v2594_v20 = vadd.f32 %v2588_v15, %v2586_v13  ;;  %v2296_v22 = vpop.f32.mrb[4].mxu1 }
 0x1ee   : > { %v2603_v21 = vadd.f32 %v2589_v18, %v2587_v16  ;;  %2658 = vst [vmem:[%s4067_s27 + $0x8] sm:$0xff] %v3182_v19  ;;  %v2508_v23 = vpop.f32.mrb[4].mxu0  ;;  %v2298_v25 = vpop.f32.mrb[5].mxu1 }
 0x1ef   : > { %v3189_v24 = vadd.f32 %v2508_v23, %v2296_v22  ;;  %v2510_v26 = vpop.f32.mrb[5].mxu0  ;;  %v2300_v28 = vpop.f32.mrb[6].mxu1 }
 0x1f0   : > { %v3190_v27 = vadd.f32 %v2510_v26, %v2298_v25  ;;  %v2512_v29 = vpop.f32.mrb[6].mxu0  ;;  %v2302_v33 = vpop.f32.mrb[7].mxu1 }
 0x1f1   : > { %v2545_v30 = vadd.f32 %v3189_v24, %v2544_v14  ;;  %v2590_v31 = vmul.f32 %v3189_v24, %v3189_v24  ;;  %v3191_v32 = vadd.f32 %v2512_v29, %v2300_v28  ;;  %v2514_v34 = vpop.f32.mrb[7].mxu0 }
 0x1f2   : > { %v2554_v35 = vadd.f32 %v3190_v27, %v2553_v17  ;;  %v2591_v36 = vmul.f32 %v3190_v27, %v3190_v27  ;;  %v3183_v37 = vpack.c.bf16 %v3190_v27, %v3189_v24  ;;  %v3192_v38 = vadd.f32 %v2514_v34, %v2302_v33 }
 0x1f3   : > { %v2595_v39 = vadd.f32 %v2594_v20, %v2590_v31  ;;  %v2546_v40 = vadd.f32 %v3191_v32, %v2545_v30  ;;  %v2592_v41 = vmul.f32 %v3191_v32, %v3191_v32 }
 0x1f4   : > { %v2604_v43 = vadd.f32 %v2603_v21, %v2591_v36  ;;  %2659 = vst [vmem:[%s4067_s27 + $0x10] sm:$0xff] %v3183_v37  ;;  %v2555_v44 = vadd.f32 %v3192_v38, %v2554_v35  ;;  %v2593_v48 = vmul.f32 %v3192_v38, %v3192_v38  ;;  %v3184_v49 = vpack.c.bf16 %v3192_v38, %v3191_v32 }
 0x1f5   : > { %v2547_v50 = vrot.slane %v2546_v40, 4  ;;  %v2596_v51 = vadd.f32 %v2595_v39, %v2592_v41 }
 0x1f6   : > { %v2556_v52 = vrot.slane %v2555_v44, 4  ;;  %v2605_v53 = vadd.f32 %v2604_v43, %v2593_v48  ;;  %2660 = vst [vmem:[%s4067_s27 + $0x18] sm:$0xff] %v3184_v49 }
 0x1f7   : > { %v2548_v42 = vadd.f32 %v2547_v50, %v2546_v40  ;;  %v2597_v45 = vrot.slane %v2596_v51, 4 }
 0x1f8   : > { %v2557_v46 = vadd.f32 %v2556_v52, %v2555_v44  ;;  %v2606_v57 = vrot.slane %v2605_v53, 4 }
 0x1f9   : > { %v2549_v58 = vrot.slane %v2548_v42, 2  ;;  %v2598_v62 = vadd.f32 %v2597_v45, %v2596_v51 }
 0x1fa   : > { %v2558_v63 = vrot.slane %v2557_v46, 2  ;;  %v2607_v0 = vadd.f32 %v2606_v57, %v2605_v53 }
 0x1fb   : > { %v2550_v1 = vadd.f32 %v2549_v58, %v2548_v42  ;;  %v2599_v2 = vrot.slane %v2598_v62, 2 }
 0x1fc   : > { %v2559_v3 = vadd.f32 %v2558_v63, %v2557_v46  ;;  %v2608_v56 = vrot.slane %v2607_v0, 2 }
 0x1fd   : > { %v2551_v59 = vrot.slane %v2550_v1, 1  ;;  %v2600_v6 = vadd.f32 %v2599_v2, %v2598_v62 }
 0x1fe   : > { %v2560_v7 = vrot.slane %v2559_v3, 1  ;;  %v2609_v60 = vadd.f32 %v2608_v56, %v2607_v0 }
 0x1ff   : > { %v2552_v61 = vadd.f32 %v2551_v59, %v2550_v1  ;;  %v2601_v8 = vrot.slane %v2600_v6, 1 }
 0x200   : > { %v2561_v9 = vadd.f32 %v2560_v7, %v2559_v3  ;;  %v2610_v11 = vrot.slane %v2609_v60, 1 }
 0x201   : > { %v2602_v12 = vadd.f32 %v2601_v8, %v2600_v6 }
 0x202   : > { %v2564_v13 = vcombine.low %v2552_v61, %v2561_v9  ;;  %v2611_v14 = vadd.f32 %v2610_v11, %v2609_v60 }
 0x204   : > { %v2571_v15 = vrot.slane %v2564_v13, %v2570_v10  ;;  %v2614_v16 = vcombine.low %v2602_v12, %v2611_v14 }
 0x206   : > { %v2578_v17 = vrot.slane %v2571_v15, %v2570_v10  ;;  %v2621_v18 = vrot.slane %v2614_v16, %v2570_v10 }
 0x208   : > { %2584 = vst.msk [vmem:[%s343_s4] ss:$8 sm:$0x3] %vm2582_vm0, %v2578_v17  ;;  %v2628_v19 = vrot.slane %v2621_v18, %v2570_v10 }
 0x20a   : > { %3170 = vst.msk [vmem:[%s343_s4 + $0x1] ss:$8 sm:$0x3] %vm2582_vm0, %v2628_v19 }
 0x20b PF: > { %s14_s14 = sadd.s32 1, %s3672_s14   ;;  %s4090_s12 = smov %s3668_s13 }
 0x20c   : > { %p11_p5 = scmp.ge.s32.totalorder %s14_s14, 6   ;;  %s4091_s13 = smov %s4093_s15 }
 0x20e   :  { %13 = sbr.rel (!%p11_p5) target bundleno = 2 (0x2), region = 82 }

// kernel: generator_forward.14
= control target key start
LH: loop header
LB: loop body
LE: loop exit
PB: predicated region body
PF: predicated region fallthrough
CT: control target
= control target key end

     0   :  { %s1502_s0 = inlined_call_operand.vmem [shape: bf16[512,128], index: 0, kind: input, shape index: {}]   ;;  %s1503_s1 = inlined_call_operand.vmem [shape: f32[1,128], index: 1, kind: input, shape index: {}]   ;;  %s1504_s2 = inlined_call_operand.vmem [shape: f32[1,128], index: 2, kind: input, shape index: {}]   ;;  %s1505_s3 = inlined_call_operand.vmem [shape: bf16[512,128], index: 3, kind: output, shape index: {}]  }
   0x1   :  { %v803_v0 = vld [vmem:[%s1502_s0] sm:$0xff]   ;;  %v1090_v4 = vld [vmem:[%s1502_s0 + $0x8] sm:$0xff]   ;;  %v1091_v5 = vld [vmem:[%s1502_s0 + $0x10] sm:$0xff]  }
   0x2   :  { %v1178_v1 = vld [vmem:[%s1503_s1] ss:$0 sm:$0xff]  ;;  %v804_v2 = vunpack.c.l.bf16 %v803_v0  ;;  %v805_v3 = vunpack.c.h.bf16 %v803_v0  ;;  %v1092_v6 = vld [vmem:[%s1502_s0 + $0x18] sm:$0xff]   ;;  %v808_v8 = vunpack.c.l.bf16 %v1090_v4  ;;  %v809_v9 = vunpack.c.h.bf16 %v1090_v4  ;;  %v1094_v33 = vld [vmem:[%s1502_s0 + $0x28] sm:$0xff]  }
   0x3   :  { %v1192_v7 = vld [vmem:[%s1504_s2] ss:$0 sm:$0xff]  ;;  %v812_v10 = vunpack.c.l.bf16 %v1091_v5  ;;  %v813_v11 = vunpack.c.h.bf16 %v1091_v5  ;;  %v816_v14 = vunpack.c.l.bf16 %v1092_v6  ;;  %v817_v15 = vunpack.c.h.bf16 %v1092_v6  ;;  %v1095_v38 = vld [vmem:[%s1502_s0 + $0x30] sm:$0xff]   ;;  %v1096_v43 = vld [vmem:[%s1502_s0 + $0x38] sm:$0xff]  }
   0x4   :  { %v149_v12 = vmul.f32 %v804_v2, %v1178_v1  ;;  %v150_v13 = vmul.f32 %v805_v3, %v1178_v1  ;;  %v151_v16 = vmul.f32 %v808_v8, %v1178_v1  ;;  %v152_v17 = vmul.f32 %v809_v9, %v1178_v1  ;;  %v1093_v28 = vld [vmem:[%s1502_s0 + $0x20] sm:$0xff]  }
   0x5   :  { %v153_v18 = vmul.f32 %v812_v10, %v1178_v1  ;;  %v154_v19 = vmul.f32 %v813_v11, %v1178_v1  ;;  %v155_v22 = vmul.f32 %v816_v14, %v1178_v1  ;;  %v156_v23 = vmul.f32 %v817_v15, %v1178_v1  ;;  %v1097_v0 = vld [vmem:[%s1502_s0 + $0x40] sm:$0xff]   ;;  %v1098_v11 = vld [vmem:[%s1502_s0 + $0x48] sm:$0xff]  }
   0x6   :  { %v220_v20 = vadd.f32 %v1192_v7, %v149_v12  ;;  %v221_v21 = vadd.f32 %v1192_v7, %v150_v13  ;;  %v222_v24 = vadd.f32 %v1192_v7, %v151_v16  ;;  %v223_v25 = vadd.f32 %v1192_v7, %v152_v17  ;;  %v1099_v16 = vld [vmem:[%s1502_s0 + $0x50] sm:$0xff]  }
   0x7   :  { %v224_v26 = vadd.f32 %v1192_v7, %v153_v18  ;;  %v225_v27 = vadd.f32 %v1192_v7, %v154_v19  ;;  %v226_v31 = vadd.f32 %v1192_v7, %v155_v22  ;;  %v227_v32 = vadd.f32 %v1192_v7, %v156_v23 }
   0x8   :  { %v284_v29 = vmax.f32 %v220_v20, 0.0  ;;  %v285_v30 = vmax.f32 %v221_v21, 0.0  ;;  %v286_v34 = vmax.f32 %v222_v24, 0.0  ;;  %v287_v35 = vmax.f32 %v223_v25, 0.0  ;;  %v1100_v25 = vld [vmem:[%s1502_s0 + $0x58] sm:$0xff]  }
   0x9   :  { %v288_v36 = vmax.f32 %v224_v26, 0.0  ;;  %v289_v37 = vmax.f32 %v225_v27, 0.0  ;;  %v290_v40 = vmax.f32 %v226_v31, 0.0  ;;  %v291_v41 = vmax.f32 %v227_v32, 0.0 }
   0xa   :  { %v933_v39 = vpack.c.bf16 %v285_v30, %v284_v29  ;;  %v820_v42 = vunpack.c.l.bf16 %v1093_v28  ;;  %v938_v44 = vpack.c.bf16 %v287_v35, %v286_v34  ;;  %v821_v46 = vunpack.c.h.bf16 %v1093_v28 }
   0xb   :  { %v943_v45 = vpack.c.bf16 %v289_v37, %v288_v36  ;;  %v824_v47 = vunpack.c.l.bf16 %v1094_v33  ;;  %v948_v48 = vpack.c.bf16 %v291_v41, %v290_v40  ;;  %v825_v50 = vunpack.c.h.bf16 %v1094_v33 }
   0xc   :  { %934 = vst [vmem:[%s1505_s3] sm:$0xff] %v933_v39   ;;  %v157_v49 = vmul.f32 %v820_v42, %v1178_v1  ;;  %v828_v51 = vunpack.c.l.bf16 %v1095_v38  ;;  %1121 = vst [vmem:[%s1505_s3 + $0x8] sm:$0xff] %v938_v44   ;;  %v158_v52 = vmul.f32 %v821_v46, %v1178_v1  ;;  %v829_v54 = vunpack.c.h.bf16 %v1095_v38  ;;  %v1101_v38 = vld [vmem:[%s1502_s0 + $0x60] sm:$0xff]  }
   0xd   :  { %1122 = vst [vmem:[%s1505_s3 + $0x10] sm:$0xff] %v943_v45   ;;  %v159_v53 = vmul.f32 %v824_v47, %v1178_v1  ;;  %v832_v55 = vunpack.c.l.bf16 %v1096_v43  ;;  %1123 = vst [vmem:[%s1505_s3 + $0x18] sm:$0xff] %v948_v48   ;;  %v160_v57 = vmul.f32 %v825_v50, %v1178_v1  ;;  %v833_v59 = vunpack.c.h.bf16 %v1096_v43 }
   0xe   :  { %v228_v56 = vadd.f32 %v1192_v7, %v157_v49  ;;  %v161_v58 = vmul.f32 %v828_v51, %v1178_v1  ;;  %v229_v60 = vadd.f32 %v1192_v7, %v158_v52  ;;  %v162_v62 = vmul.f32 %v829_v54, %v1178_v1  ;;  %v1102_v51 = vld [vmem:[%s1502_s0 + $0x68] sm:$0xff]  }
   0xf   :  { %v230_v61 = vadd.f32 %v1192_v7, %v159_v53  ;;  %v163_v63 = vmul.f32 %v832_v55, %v1178_v1  ;;  %v231_v3 = vadd.f32 %v1192_v7, %v160_v57  ;;  %v164_v5 = vmul.f32 %v833_v59, %v1178_v1 }
  0x10   :  { %v292_v2 = vmax.f32 %v228_v56, 0.0  ;;  %v232_v4 = vadd.f32 %v1192_v7, %v161_v58  ;;  %v293_v6 = vmax.f32 %v229_v60, 0.0  ;;  %v233_v9 = vadd.f32 %v1192_v7, %v162_v62  ;;  %v1103_v60 = vld [vmem:[%s1502_s0 + $0x70] sm:$0xff]  }
  0x11   :  { %v294_v8 = vmax.f32 %v230_v61, 0.0  ;;  %v234_v10 = vadd.f32 %v1192_v7, %v163_v63  ;;  %v295_v12 = vmax.f32 %v231_v3, 0.0  ;;  %v235_v14 = vadd.f32 %v1192_v7, %v164_v5 }
  0x12   :  { %v296_v13 = vmax.f32 %v232_v4, 0.0  ;;  %v836_v15 = vunpack.c.l.bf16 %v1097_v0  ;;  %v953_v17 = vpack.c.bf16 %v293_v6, %v292_v2  ;;  %v297_v18 = vmax.f32 %v233_v9, 0.0  ;;  %v1104_v2 = vld [vmem:[%s1502_s0 + $0x78] sm:$0xff]  }
  0x13   :  { %v298_v19 = vmax.f32 %v234_v10, 0.0  ;;  %v837_v20 = vunpack.c.h.bf16 %v1097_v0  ;;  %v958_v21 = vpack.c.bf16 %v295_v12, %v294_v8  ;;  %v299_v22 = vmax.f32 %v235_v14, 0.0  ;;  %v1105_v12 = vld [vmem:[%s1502_s0 + $0x80] sm:$0xff]  }
  0x14   :  { %v165_v23 = vmul.f32 %v836_v15, %v1178_v1  ;;  %v840_v24 = vunpack.c.l.bf16 %v1098_v11  ;;  %1124 = vst [vmem:[%s1505_s3 + $0x20] sm:$0xff] %v953_v17   ;;  %v963_v26 = vpack.c.bf16 %v297_v18, %v296_v13  ;;  %v841_v28 = vunpack.c.h.bf16 %v1098_v11 }
  0x15   :  { %v166_v27 = vmul.f32 %v837_v20, %v1178_v1  ;;  %v844_v29 = vunpack.c.l.bf16 %v1099_v16  ;;  %1125 = vst [vmem:[%s1505_s3 + $0x28] sm:$0xff] %v958_v21   ;;  %v968_v30 = vpack.c.bf16 %v299_v22, %v298_v19  ;;  %v845_v33 = vunpack.c.h.bf16 %v1099_v16 }
  0x16   :  { %v236_v31 = vadd.f32 %v1192_v7, %v165_v23  ;;  %v167_v32 = vmul.f32 %v840_v24, %v1178_v1  ;;  %1126 = vst [vmem:[%s1505_s3 + $0x30] sm:$0xff] %v963_v26   ;;  %v168_v35 = vmul.f32 %v841_v28, %v1178_v1  ;;  %v848_v37 = vunpack.c.l.bf16 %v1100_v25 }
  0x17   :  { %v237_v34 = vadd.f32 %v1192_v7, %v166_v27  ;;  %v169_v36 = vmul.f32 %v844_v29, %v1178_v1  ;;  %1127 = vst [vmem:[%s1505_s3 + $0x38] sm:$0xff] %v968_v30   ;;  %v170_v41 = vmul.f32 %v845_v33, %v1178_v1  ;;  %v849_v42 = vunpack.c.h.bf16 %v1100_v25  ;;  %v1106_v29 = vld [vmem:[%s1502_s0 + $0x88] sm:$0xff]  }
  0x18   :  { %v300_v39 = vmax.f32 %v236_v31, 0.0  ;;  %v238_v40 = vadd.f32 %v1192_v7, %v167_v32  ;;  %v239_v44 = vadd.f32 %v1192_v7, %v168_v35  ;;  %v171_v46 = vmul.f32 %v848_v37, %v1178_v1 }
  0x19   :  { %v301_v43 = vmax.f32 %v237_v34, 0.0  ;;  %v240_v45 = vadd.f32 %v1192_v7, %v169_v36  ;;  %v241_v48 = vadd.f32 %v1192_v7, %v170_v41  ;;  %v172_v49 = vmul.f32 %v849_v42, %v1178_v1  ;;  %v1107_v34 = vld [vmem:[%s1502_s0 + $0x90] sm:$0xff]  }
  0x1a   :  { %v302_v47 = vmax.f32 %v238_v40, 0.0  ;;  %v852_v50 = vunpack.c.l.bf16 %v1101_v38  ;;  %v303_v53 = vmax.f32 %v239_v44, 0.0  ;;  %v242_v55 = vadd.f32 %v1192_v7, %v171_v46 }
  0x1b   :  { %v973_v52 = vpack.c.bf16 %v301_v43, %v300_v39  ;;  %v304_v54 = vmax.f32 %v240_v45, 0.0  ;;  %v305_v56 = vmax.f32 %v241_v48, 0.0  ;;  %v243_v57 = vadd.f32 %v1192_v7, %v172_v49  ;;  %v1108_v43 = vld [vmem:[%s1502_s0 + $0x98] sm:$0xff]  }
  0x1c   :  { %v853_v58 = vunpack.c.h.bf16 %v1101_v38  ;;  %v173_v59 = vmul.f32 %v852_v50, %v1178_v1  ;;  %v978_v61 = vpack.c.bf16 %v303_v53, %v302_v47  ;;  %v306_v62 = vmax.f32 %v242_v55, 0.0 }
  0x1d   :  { %1128 = vst [vmem:[%s1505_s3 + $0x40] sm:$0xff] %v973_v52   ;;  %v856_v63 = vunpack.c.l.bf16 %v1102_v51  ;;  %v857_v0 = vunpack.c.h.bf16 %v1102_v51  ;;  %v983_v3 = vpack.c.bf16 %v305_v56, %v304_v54  ;;  %v307_v4 = vmax.f32 %v243_v57, 0.0  ;;  %v1109_v56 = vld [vmem:[%s1502_s0 + $0xa0] sm:$0xff]  }
  0x1e   :  { %v174_v5 = vmul.f32 %v853_v58, %v1178_v1  ;;  %v244_v6 = vadd.f32 %v1192_v7, %v173_v59  ;;  %1129 = vst [vmem:[%s1505_s3 + $0x48] sm:$0xff] %v978_v61   ;;  %v860_v10 = vunpack.c.l.bf16 %v1103_v60  ;;  %v861_v11 = vunpack.c.h.bf16 %v1103_v60 }
  0x1f   :  { %v175_v8 = vmul.f32 %v856_v63, %v1178_v1  ;;  %v176_v9 = vmul.f32 %v857_v0, %v1178_v1  ;;  %1130 = vst [vmem:[%s1505_s3 + $0x50] sm:$0xff] %v983_v3   ;;  %v988_v13 = vpack.c.bf16 %v307_v4, %v306_v62  ;;  %v864_v16 = vunpack.c.l.bf16 %v1104_v2 }
  0x20   :  { %v245_v14 = vadd.f32 %v1192_v7, %v174_v5  ;;  %v308_v15 = vmax.f32 %v244_v6, 0.0  ;;  %v177_v19 = vmul.f32 %v860_v10, %v1178_v1  ;;  %v178_v20 = vmul.f32 %v861_v11, %v1178_v1 }
  0x21   :  { %v246_v17 = vadd.f32 %v1192_v7, %v175_v8  ;;  %v247_v18 = vadd.f32 %v1192_v7, %v176_v9  ;;  %1131 = vst [vmem:[%s1505_s3 + $0x58] sm:$0xff] %v988_v13   ;;  %v865_v22 = vunpack.c.h.bf16 %v1104_v2  ;;  %v179_v23 = vmul.f32 %v864_v16, %v1178_v1  ;;  %v1110_v2 = vld [vmem:[%s1502_s0 + $0xa8] sm:$0xff]   ;;  %v1111_v16 = vld [vmem:[%s1502_s0 + $0xb0] sm:$0xff]  }
  0x22   :  { %v309_v21 = vmax.f32 %v245_v14, 0.0  ;;  %v868_v24 = vunpack.c.l.bf16 %v1105_v12  ;;  %v248_v27 = vadd.f32 %v1192_v7, %v177_v19  ;;  %v249_v28 = vadd.f32 %v1192_v7, %v178_v20 }
  0x23   :  { %v310_v25 = vmax.f32 %v246_v17, 0.0  ;;  %v311_v26 = vmax.f32 %v247_v18, 0.0  ;;  %v180_v31 = vmul.f32 %v865_v22, %v1178_v1  ;;  %v250_v32 = vadd.f32 %v1192_v7, %v179_v23 }
  0x24   :  { %v993_v30 = vpack.c.bf16 %v309_v21, %v308_v15  ;;  %v869_v33 = vunpack.c.h.bf16 %v1105_v12  ;;  %v312_v36 = vmax.f32 %v248_v27, 0.0  ;;  %v313_v37 = vmax.f32 %v249_v28, 0.0  ;;  %v1112_v21 = vld [vmem:[%s1502_s0 + $0xb8] sm:$0xff]  }
  0x25   :  { %v998_v35 = vpack.c.bf16 %v311_v26, %v310_v25  ;;  %v181_v38 = vmul.f32 %v868_v24, %v1178_v1  ;;  %v251_v39 = vadd.f32 %v1192_v7, %v180_v31  ;;  %v314_v40 = vmax.f32 %v250_v32, 0.0 }
  0x26   :  { %1132 = vst [vmem:[%s1505_s3 + $0x60] sm:$0xff] %v993_v30   ;;  %v182_v41 = vmul.f32 %v869_v33, %v1178_v1  ;;  %v872_v42 = vunpack.c.l.bf16 %v1106_v29  ;;  %v1003_v44 = vpack.c.bf16 %v313_v37, %v312_v36  ;;  %v873_v46 = vunpack.c.h.bf16 %v1106_v29 }
  0x27   :  { %1133 = vst [vmem:[%s1505_s3 + $0x68] sm:$0xff] %v998_v35   ;;  %v252_v45 = vadd.f32 %v1192_v7, %v181_v38  ;;  %v876_v47 = vunpack.c.l.bf16 %v1107_v34  ;;  %v315_v48 = vmax.f32 %v251_v39, 0.0  ;;  %v877_v51 = vunpack.c.h.bf16 %v1107_v34  ;;  %v1113_v34 = vld [vmem:[%s1502_s0 + $0xc0] sm:$0xff]  }
  0x28   :  { %v253_v49 = vadd.f32 %v1192_v7, %v182_v41  ;;  %v183_v50 = vmul.f32 %v872_v42, %v1178_v1  ;;  %1134 = vst [vmem:[%s1505_s3 + $0x70] sm:$0xff] %v1003_v44   ;;  %v184_v53 = vmul.f32 %v873_v46, %v1178_v1  ;;  %v880_v55 = vunpack.c.l.bf16 %v1108_v43 }
  0x29   :  { %v316_v52 = vmax.f32 %v252_v45, 0.0  ;;  %v185_v54 = vmul.f32 %v876_v47, %v1178_v1  ;;  %v1008_v57 = vpack.c.bf16 %v315_v48, %v314_v40  ;;  %v186_v60 = vmul.f32 %v877_v51, %v1178_v1  ;;  %v1114_v47 = vld [vmem:[%s1502_s0 + $0xc8] sm:$0xff]  }
  0x2a   :  { %v317_v58 = vmax.f32 %v253_v49, 0.0  ;;  %v254_v59 = vadd.f32 %v1192_v7, %v183_v50  ;;  %v255_v61 = vadd.f32 %v1192_v7, %v184_v53  ;;  %v881_v63 = vunpack.c.h.bf16 %v1108_v43 }
  0x2b   :  { %v256_v62 = vadd.f32 %v1192_v7, %v185_v54  ;;  %v187_v0 = vmul.f32 %v880_v55, %v1178_v1  ;;  %1135 = vst [vmem:[%s1505_s3 + $0x78] sm:$0xff] %v1008_v57   ;;  %v257_v5 = vadd.f32 %v1192_v7, %v186_v60  ;;  %v884_v6 = vunpack.c.l.bf16 %v1109_v56 }
  0x2c   :  { %v1013_v3 = vpack.c.bf16 %v317_v58, %v316_v52  ;;  %v318_v4 = vmax.f32 %v254_v59, 0.0  ;;  %v319_v8 = vmax.f32 %v255_v61, 0.0  ;;  %v188_v10 = vmul.f32 %v881_v63, %v1178_v1  ;;  %v1115_v52 = vld [vmem:[%s1502_s0 + $0xd0] sm:$0xff]   ;;  %v1116_v61 = vld [vmem:[%s1502_s0 + $0xd8] sm:$0xff]  }
  0x2d   :  { %v320_v9 = vmax.f32 %v256_v62, 0.0  ;;  %v258_v11 = vadd.f32 %v1192_v7, %v187_v0  ;;  %v321_v12 = vmax.f32 %v257_v5, 0.0  ;;  %v885_v13 = vunpack.c.h.bf16 %v1109_v56 }
  0x2e   :  { %1136 = vst [vmem:[%s1505_s3 + $0x80] sm:$0xff] %v1013_v3   ;;  %v189_v14 = vmul.f32 %v884_v6, %v1178_v1  ;;  %v888_v15 = vunpack.c.l.bf16 %v1110_v2  ;;  %v1018_v17 = vpack.c.bf16 %v319_v8, %v318_v4  ;;  %v259_v18 = vadd.f32 %v1192_v7, %v188_v10 }
  0x2f   :  { %v322_v19 = vmax.f32 %v258_v11, 0.0  ;;  %v889_v20 = vunpack.c.h.bf16 %v1110_v2  ;;  %v1023_v22 = vpack.c.bf16 %v321_v12, %v320_v9  ;;  %v190_v23 = vmul.f32 %v885_v13, %v1178_v1  ;;  %v1117_v12 = vld [vmem:[%s1502_s0 + $0xe0] sm:$0xff]  }
  0x30   :  { %v260_v24 = vadd.f32 %v1192_v7, %v189_v14  ;;  %v191_v25 = vmul.f32 %v888_v15, %v1178_v1  ;;  %1137 = vst [vmem:[%s1505_s3 + $0x88] sm:$0xff] %v1018_v17   ;;  %v323_v26 = vmax.f32 %v259_v18, 0.0  ;;  %v892_v28 = vunpack.c.l.bf16 %v1111_v16 }
  0x31   :  { %v192_v27 = vmul.f32 %v889_v20, %v1178_v1  ;;  %v893_v29 = vunpack.c.h.bf16 %v1111_v16  ;;  %1138 = vst [vmem:[%s1505_s3 + $0x90] sm:$0xff] %v1023_v22   ;;  %v261_v30 = vadd.f32 %v1192_v7, %v190_v23  ;;  %v896_v33 = vunpack.c.l.bf16 %v1112_v21 }
  0x32   :  { %v324_v31 = vmax.f32 %v260_v24, 0.0  ;;  %v262_v32 = vadd.f32 %v1192_v7, %v191_v25  ;;  %v1028_v35 = vpack.c.bf16 %v323_v26, %v322_v19  ;;  %v193_v37 = vmul.f32 %v892_v28, %v1178_v1 }
  0x33   :  { %v263_v36 = vadd.f32 %v1192_v7, %v192_v27  ;;  %v194_v38 = vmul.f32 %v893_v29, %v1178_v1  ;;  %v325_v39 = vmax.f32 %v261_v30, 0.0  ;;  %v897_v41 = vunpack.c.h.bf16 %v1112_v21  ;;  %v1118_v21 = vld [vmem:[%s1502_s0 + $0xe8] sm:$0xff]  }
  0x34   :  { %v326_v40 = vmax.f32 %v262_v32, 0.0  ;;  %v195_v42 = vmul.f32 %v896_v33, %v1178_v1  ;;  %1139 = vst [vmem:[%s1505_s3 + $0x98] sm:$0xff] %v1028_v35   ;;  %v264_v44 = vadd.f32 %v1192_v7, %v193_v37  ;;  %v900_v46 = vunpack.c.l.bf16 %v1113_v34 }
  0x35   :  { %v327_v43 = vmax.f32 %v263_v36, 0.0  ;;  %v265_v45 = vadd.f32 %v1192_v7, %v194_v38  ;;  %v1033_v48 = vpack.c.bf16 %v325_v39, %v324_v31  ;;  %v196_v49 = vmul.f32 %v897_v41, %v1178_v1  ;;  %v1120_v39 = vld [vmem:[%s1502_s0 + $0xf8] sm:$0xff]  }
  0x36   :  { %v266_v50 = vadd.f32 %v1192_v7, %v195_v42  ;;  %v901_v51 = vunpack.c.h.bf16 %v1113_v34  ;;  %v328_v54 = vmax.f32 %v264_v44, 0.0  ;;  %v197_v56 = vmul.f32 %v900_v46, %v1178_v1  ;;  %v1119_v34 = vld [vmem:[%s1502_s0 + $0xf0] sm:$0xff]  }
  0x37   :  { %v1038_v53 = vpack.c.bf16 %v327_v43, %v326_v40  ;;  %v329_v55 = vmax.f32 %v265_v45, 0.0  ;;  %1140 = vst [vmem:[%s1505_s3 + $0xa0] sm:$0xff] %v1033_v48   ;;  %v267_v57 = vadd.f32 %v1192_v7, %v196_v49  ;;  %v904_v60 = vunpack.c.l.bf16 %v1114_v47 }
  0x38   :  { %v330_v58 = vmax.f32 %v266_v50, 0.0  ;;  %v198_v59 = vmul.f32 %v901_v51, %v1178_v1  ;;  %v268_v63 = vadd.f32 %v1192_v7, %v197_v56  ;;  %v905_v0 = vunpack.c.h.bf16 %v1114_v47 }
  0x39   :  { %1141 = vst [vmem:[%s1505_s3 + $0xa8] sm:$0xff] %v1038_v53   ;;  %v1043_v62 = vpack.c.bf16 %v329_v55, %v328_v54  ;;  %v908_v2 = vunpack.c.l.bf16 %v1115_v52  ;;  %v331_v3 = vmax.f32 %v267_v57, 0.0  ;;  %v199_v5 = vmul.f32 %v904_v60, %v1178_v1 }
  0x3a   :  { %v269_v4 = vadd.f32 %v1192_v7, %v198_v59  ;;  %v909_v6 = vunpack.c.h.bf16 %v1115_v52  ;;  %v332_v8 = vmax.f32 %v268_v63, 0.0  ;;  %v200_v9 = vmul.f32 %v905_v0, %v1178_v1 }
  0x3b   :  { %1142 = vst [vmem:[%s1505_s3 + $0xb0] sm:$0xff] %v1043_v62   ;;  %v201_v10 = vmul.f32 %v908_v2, %v1178_v1  ;;  %v912_v11 = vunpack.c.l.bf16 %v1116_v61  ;;  %v1048_v13 = vpack.c.bf16 %v331_v3, %v330_v58  ;;  %v270_v15 = vadd.f32 %v1192_v7, %v199_v5 }
  0x3c   :  { %v333_v14 = vmax.f32 %v269_v4, 0.0  ;;  %v202_v16 = vmul.f32 %v909_v6, %v1178_v1  ;;  %v271_v17 = vadd.f32 %v1192_v7, %v200_v9  ;;  %v913_v19 = vunpack.c.h.bf16 %v1116_v61 }
  0x3d   :  { %v272_v18 = vadd.f32 %v1192_v7, %v201_v10  ;;  %v203_v20 = vmul.f32 %v912_v11, %v1178_v1  ;;  %1143 = vst [vmem:[%s1505_s3 + $0xb8] sm:$0xff] %v1048_v13   ;;  %v334_v23 = vmax.f32 %v270_v15, 0.0  ;;  %v916_v25 = vunpack.c.l.bf16 %v1117_v12 }
  0x3e   :  { %v1053_v22 = vpack.c.bf16 %v333_v14, %v332_v8  ;;  %v273_v24 = vadd.f32 %v1192_v7, %v202_v16  ;;  %v335_v26 = vmax.f32 %v271_v17, 0.0  ;;  %v204_v28 = vmul.f32 %v913_v19, %v1178_v1 }
  0x3f   :  { %v336_v27 = vmax.f32 %v272_v18, 0.0  ;;  %v274_v29 = vadd.f32 %v1192_v7, %v203_v20  ;;  %v917_v31 = vunpack.c.h.bf16 %v1117_v12  ;;  %v205_v32 = vmul.f32 %v916_v25, %v1178_v1 }
  0x40   :  { %1144 = vst [vmem:[%s1505_s3 + $0xc0] sm:$0xff] %v1053_v22   ;;  %v337_v30 = vmax.f32 %v273_v24, 0.0  ;;  %v920_v33 = vunpack.c.l.bf16 %v1118_v21  ;;  %v1058_v35 = vpack.c.bf16 %v335_v26, %v334_v23  ;;  %v275_v36 = vadd.f32 %v1192_v7, %v204_v28 }
  0x41   :  { %v338_v37 = vmax.f32 %v274_v29, 0.0  ;;  %v921_v38 = vunpack.c.h.bf16 %v1118_v21  ;;  %v206_v41 = vmul.f32 %v917_v31, %v1178_v1  ;;  %v276_v42 = vadd.f32 %v1192_v7, %v205_v32 }
  0x42   :  { %v1063_v40 = vpack.c.bf16 %v337_v30, %v336_v27  ;;  %v207_v43 = vmul.f32 %v920_v33, %v1178_v1  ;;  %1145 = vst [vmem:[%s1505_s3 + $0xc8] sm:$0xff] %v1058_v35   ;;  %v339_v44 = vmax.f32 %v275_v36, 0.0  ;;  %v924_v46 = vunpack.c.l.bf16 %v1119_v34 }
  0x43   :  { %v208_v45 = vmul.f32 %v921_v38, %v1178_v1  ;;  %v925_v47 = vunpack.c.h.bf16 %v1119_v34  ;;  %v277_v48 = vadd.f32 %v1192_v7, %v206_v41  ;;  %v340_v49 = vmax.f32 %v276_v42, 0.0 }
  0x44   :  { %1146 = vst [vmem:[%s1505_s3 + $0xd0] sm:$0xff] %v1063_v40   ;;  %v278_v50 = vadd.f32 %v1192_v7, %v207_v43  ;;  %v928_v51 = vunpack.c.l.bf16 %v1120_v39  ;;  %v1068_v52 = vpack.c.bf16 %v339_v44, %v338_v37  ;;  %v209_v54 = vmul.f32 %v924_v46, %v1178_v1 }
  0x45   :  { %v279_v53 = vadd.f32 %v1192_v7, %v208_v45  ;;  %v210_v55 = vmul.f32 %v925_v47, %v1178_v1  ;;  %v341_v56 = vmax.f32 %v277_v48, 0.0  ;;  %v929_v58 = vunpack.c.h.bf16 %v1120_v39 }
  0x46   :  { %v342_v57 = vmax.f32 %v278_v50, 0.0  ;;  %v211_v59 = vmul.f32 %v928_v51, %v1178_v1  ;;  %1147 = vst [vmem:[%s1505_s3 + $0xd8] sm:$0xff] %v1068_v52   ;;  %v280_v61 = vadd.f32 %v1192_v7, %v209_v54 }
  0x47   :  { %v343_v60 = vmax.f32 %v279_v53, 0.0  ;;  %v281_v62 = vadd.f32 %v1192_v7, %v210_v55  ;;  %v1073_v63 = vpack.c.bf16 %v341_v56, %v340_v49  ;;  %v212_v0 = vmul.f32 %v929_v58, %v1178_v1 }
  0x48   :  { %v282_v2 = vadd.f32 %v1192_v7, %v211_v59  ;;  %v344_v4 = vmax.f32 %v280_v61, 0.0 }
  0x49   :  { %v1078_v3 = vpack.c.bf16 %v343_v60, %v342_v57  ;;  %v345_v5 = vmax.f32 %v281_v62, 0.0  ;;  %1148 = vst [vmem:[%s1505_s3 + $0xe0] sm:$0xff] %v1073_v63   ;;  %v283_v6 = vadd.f32 %v1192_v7, %v212_v0 }
  0x4a   :  { %v346_v8 = vmax.f32 %v282_v2, 0.0 }
  0x4b   :  { %1149 = vst [vmem:[%s1505_s3 + $0xe8] sm:$0xff] %v1078_v3   ;;  %v1083_v9 = vpack.c.bf16 %v345_v5, %v344_v4  ;;  %v347_v10 = vmax.f32 %v283_v6, 0.0 }
  0x4d   :  { %1150 = vst [vmem:[%s1505_s3 + $0xf0] sm:$0xff] %v1083_v9   ;;  %v1088_v1 = vpack.c.bf16 %v347_v10, %v346_v8 }
  0x4f   :  { %1151 = vst [vmem:[%s1505_s3 + $0xf8] sm:$0xff] %v1088_v1  }

// kernel: generator_forward.13
= control target key start
LH: loop header
LB: loop body
LE: loop exit
PB: predicated region body
PF: predicated region fallthrough
CT: control target
= control target key end

     0   :  { %s2630_s12 = smov 0   ;;  %s2632_s13 = smov 0   ;;  %s2868_s0 = inlined_call_operand.vmem [shape: bf16[4,128,1024], index: 0, kind: input, shape index: {}]   ;;  %s2869_s1 = inlined_call_operand.vmem [shape: bf16[4,1024,128], index: 1, kind: input, shape index: {}]   ;;  %s2870_s2 = inlined_call_operand.vmem [shape: bf16[4,128,128], index: 2, kind: output, shape index: {0}]   ;;  %s2871_s3 = inlined_call_operand.vmem [shape: f32[4,8,128], index: 3, kind: output, shape index: {1}]  }
   0x1   :  { %s2634_s14 = smov 0  }
   0x2 LB: > { %s40_s15 = sadd.s32 1, %s2604_s13  ;;  %p2022_p0 = scmp.ge.s32.totalorder %s2608_s14, 1  ;;  %s2608_s14 = sphi %s2634_s14, %s14_s14   ;;  %s2604_s13 = sphi %s2632_s13, %s2873_s13   ;;  %s2600_s12 = sphi %s2630_s12, %s2872_s12  }
   0x3   : > { %p42_p1 = scmp.ge.s32.totalorder %s40_s15, 4  ;;  %p211_p2 = scmp.lt.s32.totalorder %s2608_s14, 5 }
   0x5   : > { %s2875_s15 = smov (%p42_p1, %s40_s15), 0  ;;  %p212_p3 = pnand %p2022_p0, %p211_p2 }
   0x6   : > { %p275_p4 = scmp.lt.s32.totalorder (!%p212_p3), %s2600_s12, 3 }
   0x7   : > { %215 = sbr.rel (%p212_p3) target bundleno = 409 (0x199), region = 28 }
   0xe   : > { %s2877_s12 = smov (!%p275_p4, %s2600_s12), 3 }
   0xf   : > { %s2176_s16 = sshll.u32 %s2877_s12, 9  ;;  %s2178_s23 = sshll.u32 %s2877_s12, 6 }
  0x10   : > { %s2656_s19 = scalar_lea.vmem %s2869_s1, %s2176_s16  ;;  %s2693_s22 = scalar_lea.vmem %s2868_s0, %s2176_s16 }
  0x11   : > { %v2522_v0 = vld [vmem:[%s2656_s19 + $0x40] sm:$0xff]   ;;  %v2526_v4 = vld [vmem:[%s2656_s19 + $0x48] sm:$0xff]   ;;  %v2530_v8 = vld [vmem:[%s2656_s19 + $0x50] sm:$0xff]   ;;  %s2831_s26 = scalar_lea.vmem %s2870_s2, %s2178_s23  ;;  %s2029_s27 = sshll.u32 %s2877_s12, 3 }
  0x12   : > { %v2523_v1 = vld [vmem:[%s2656_s19 + $0xc0] sm:$0xff]   ;;  %2242 = vmatprep.subr.bf16.mxu0 %v2522_v0  ;;  %v2527_v5 = vld [vmem:[%s2656_s19 + $0xc8] sm:$0xff]   ;;  %v2531_v9 = vld [vmem:[%s2656_s19 + $0xd0] sm:$0xff]   ;;  %s324_s30 = scalar_lea.vmem %s2871_s3, %s2029_s27 }
  0x13   : > { %v2524_v2 = vld [vmem:[%s2656_s19] sm:$0xff]   ;;  %2306 = vmatprep.subr.bf16.mxu1 %v2523_v1  ;;  %v2528_v6 = vld [vmem:[%s2656_s19 + $0x8] sm:$0xff]   ;;  %v2532_v10 = vld [vmem:[%s2656_s19 + $0x10] sm:$0xff]  }
  0x14   : > { %v2525_v3 = vld [vmem:[%s2656_s19 + $0x80] sm:$0xff]   ;;  %2243 = vmatpush3.bf16.msra.mxu0 %v2524_v2  ;;  %v2529_v7 = vld [vmem:[%s2656_s19 + $0x88] sm:$0xff]   ;;  %v2533_v11 = vld [vmem:[%s2656_s19 + $0x90] sm:$0xff]  }
  0x15   : > { %2307 = vmatpush3.bf16.msra.mxu1 %v2525_v3  ;;  %2244 = vmatprep.subr.bf16.mxu0 %v2526_v4  ;;  %v2534_v12 = vld [vmem:[%s2656_s19 + $0x58] sm:$0xff]   ;;  %v2538_v16 = vld [vmem:[%s2656_s19 + $0x60] sm:$0xff]   ;;  %v2542_v20 = vld [vmem:[%s2656_s19 + $0x68] sm:$0xff]  }
  0x16   : > { %2308 = vmatprep.subr.bf16.mxu1 %v2527_v5  ;;  %v2535_v13 = vld [vmem:[%s2656_s19 + $0xd8] sm:$0xff]   ;;  %v2539_v17 = vld [vmem:[%s2656_s19 + $0xe0] sm:$0xff]   ;;  %v2543_v21 = vld [vmem:[%s2656_s19 + $0xe8] sm:$0xff]  }
  0x17   : > { %v2536_v14 = vld [vmem:[%s2656_s19 + $0x18] sm:$0xff]   ;;  %v2540_v18 = vld [vmem:[%s2656_s19 + $0x20] sm:$0xff]   ;;  %v2544_v22 = vld [vmem:[%s2656_s19 + $0x28] sm:$0xff]  }
  0x18   : > { %2245 = vmatpush3.bf16.msra.mxu0 %v2528_v6  ;;  %v2537_v15 = vld [vmem:[%s2656_s19 + $0x98] sm:$0xff]   ;;  %v2541_v19 = vld [vmem:[%s2656_s19 + $0xa0] sm:$0xff]   ;;  %v2545_v23 = vld [vmem:[%s2656_s19 + $0xa8] sm:$0xff]  }
  0x19   : > { %2309 = vmatpush3.bf16.msra.mxu1 %v2529_v7  ;;  %2246 = vmatprep.subr.bf16.mxu0 %v2530_v8  ;;  %v2546_v24 = vld [vmem:[%s2656_s19 + $0x70] sm:$0xff]   ;;  %v2550_v28 = vld [vmem:[%s2656_s19 + $0x78] sm:$0xff]   ;;  %v362_v32 = vld [vmem:[%s2693_s22] sm:$0xff] }
  0x1a   : > { %2310 = vmatprep.subr.bf16.mxu1 %v2531_v9  ;;  %v2547_v25 = vld [vmem:[%s2656_s19 + $0xf0] sm:$0xff]   ;;  %v2551_v29 = vld [vmem:[%s2656_s19 + $0xf8] sm:$0xff]   ;;  %v366_v33 = vld [vmem:[%s2693_s22 + $0x20] sm:$0xff] }
  0x1b   : > { %v2548_v26 = vld [vmem:[%s2656_s19 + $0x30] sm:$0xff]   ;;  %v2552_v30 = vld [vmem:[%s2656_s19 + $0x38] sm:$0xff]   ;;  %v363_v34 = vld [vmem:[%s2693_s22 + $0x8] sm:$0xff]  ;;  %v2030_v35 = vcombine.low %v362_v32, %v366_v33  ;;  %v2031_v36 = vcombine.high %v362_v32, %v366_v33 }
  0x1c   : > { %2247 = vmatpush3.bf16.msra.mxu0 %v2532_v10  ;;  %v2549_v27 = vld [vmem:[%s2656_s19 + $0xb0] sm:$0xff]   ;;  %v2553_v31 = vld [vmem:[%s2656_s19 + $0xb8] sm:$0xff]   ;;  %v367_v37 = vld [vmem:[%s2693_s22 + $0x28] sm:$0xff] }
  0x1d   : > { %2311 = vmatpush3.bf16.msra.mxu1 %v2533_v11  ;;  %2248 = vmatprep.subr.bf16.mxu0 %v2534_v12  ;;  %v2032_v38 = vcombine.low %v363_v34, %v367_v37  ;;  %v2033_v39 = vcombine.high %v363_v34, %v367_v37  ;;  %v2554_v40 = vld [vmem:[%s2656_s19 + $0x140] sm:$0xff]   ;;  %v371_v47 = vld [vmem:[%s2693_s22 + $0x48] sm:$0xff]  ;;  %v2562_v62 = vld [vmem:[%s2656_s19 + $0x150] sm:$0xff]  }
  0x1e   : > { %2312 = vmatprep.subr.bf16.mxu1 %v2535_v13  ;;  %1290 = vmatprep.mubr.bf16.mxu0 %v2031_v36  ;;  %v2555_v41 = vld [vmem:[%s2656_s19 + $0x100] sm:$0xff]   ;;  %v375_v48 = vld [vmem:[%s2693_s22 + $0x68] sm:$0xff]  ;;  %v2563_v63 = vld [vmem:[%s2656_s19 + $0x110] sm:$0xff]  }
  0x1f   : > { %1387 = vmatprep.mubr.bf16.mxu1 %v2033_v39  ;;  %v2556_v42 = vld [vmem:[%s2656_s19 + $0x1c0] sm:$0xff]   ;;  %v2041_v49 = vcombine.high %v371_v47, %v375_v48  ;;  %v2558_v50 = vld [vmem:[%s2656_s19 + $0x148] sm:$0xff]   ;;  %v2040_v53 = vcombine.low %v371_v47, %v375_v48  ;;  %v2564_v0 = vld [vmem:[%s2656_s19 + $0x1d0] sm:$0xff]  }
  0x20   : > { %2249 = vmatpush3.bf16.msra.mxu0 %v2536_v14  ;;  %v2557_v43 = vld [vmem:[%s2656_s19 + $0x180] sm:$0xff]   ;;  %v2559_v52 = vld [vmem:[%s2656_s19 + $0x108] sm:$0xff]   ;;  %v2565_v1 = vld [vmem:[%s2656_s19 + $0x190] sm:$0xff]  }
  0x21   : > { %2313 = vmatpush3.bf16.msra.mxu1 %v2537_v15  ;;  %2250 = vmatprep.subr.bf16.mxu0 %v2538_v16  ;;  %v370_v44 = vld [vmem:[%s2693_s22 + $0x40] sm:$0xff]  ;;  %v2560_v54 = vld [vmem:[%s2656_s19 + $0x1c8] sm:$0xff]   ;;  %v2566_v10 = vld [vmem:[%s2656_s19 + $0x158] sm:$0xff]  }
  0x22   : > { %2314 = vmatprep.subr.bf16.mxu1 %v2539_v17  ;;  %v374_v45 = vld [vmem:[%s2693_s22 + $0x60] sm:$0xff]  ;;  %v2561_v55 = vld [vmem:[%s2656_s19 + $0x188] sm:$0xff]   ;;  %v2567_v11 = vld [vmem:[%s2656_s19 + $0x118] sm:$0xff]  }
  0x23   : > { %v2039_v46 = vcombine.high %v370_v44, %v374_v45  ;;  %v2038_v51 = vcombine.low %v370_v44, %v374_v45  ;;  %v378_v56 = vld [vmem:[%s2693_s22 + $0x80] sm:$0xff]  ;;  %v379_v58 = vld [vmem:[%s2693_s22 + $0x88] sm:$0xff]  ;;  %v2568_v12 = vld [vmem:[%s2656_s19 + $0x1d8] sm:$0xff]  }
  0x24   : > { %2251 = vmatpush3.bf16.msra.mxu0 %v2540_v18  ;;  %v382_v57 = vld [vmem:[%s2693_s22 + $0xa0] sm:$0xff]  ;;  %v383_v59 = vld [vmem:[%s2693_s22 + $0xa8] sm:$0xff]  ;;  %v2569_v13 = vld [vmem:[%s2656_s19 + $0x198] sm:$0xff]  }
  0x25   : > { %2315 = vmatpush3.bf16.msra.mxu1 %v2541_v19  ;;  %2252 = vmatprep.subr.bf16.mxu0 %v2542_v20  ;;  %v2047_v60 = vcombine.high %v378_v56, %v382_v57  ;;  %v2049_v61 = vcombine.high %v379_v58, %v383_v59  ;;  %v2046_v2 = vcombine.low %v378_v56, %v382_v57  ;;  %v386_v3 = vld [vmem:[%s2693_s22 + $0xc0] sm:$0xff]  ;;  %v387_v5 = vld [vmem:[%s2693_s22 + $0xc8] sm:$0xff]  ;;  %v2579_v39 = vld [vmem:[%s2656_s19 + $0x130] sm:$0xff]  }
  0x26   : > { %2316 = vmatprep.subr.bf16.mxu1 %v2543_v21  ;;  %v390_v4 = vld [vmem:[%s2693_s22 + $0xe0] sm:$0xff]  ;;  %v2048_v6 = vcombine.low %v379_v58, %v383_v59  ;;  %v391_v8 = vld [vmem:[%s2693_s22 + $0xe8] sm:$0xff]  ;;  %v2583_v48 = vld [vmem:[%s2656_s19 + $0x138] sm:$0xff]  }
  0x27   : > { %v2055_v7 = vcombine.high %v386_v3, %v390_v4  ;;  %v2057_v9 = vcombine.high %v387_v5, %v391_v8  ;;  %v394_v14 = vld [vmem:[%s2693_s22 + $0x100] sm:$0xff]  ;;  %v395_v16 = vld [vmem:[%s2693_s22 + $0x108] sm:$0xff]  ;;  %v2054_v19 = vcombine.low %v386_v3, %v390_v4  ;;  %v2056_v21 = vcombine.low %v387_v5, %v391_v8  ;;  %v373_v8 = vld [vmem:[%s2693_s22 + $0x58] sm:$0xff] }
  0x28   : > { %2253 = vmatpush3.bf16.msra.mxu0 %v2544_v22  ;;  %v398_v15 = vld [vmem:[%s2693_s22 + $0x120] sm:$0xff]  ;;  %v399_v17 = vld [vmem:[%s2693_s22 + $0x128] sm:$0xff] }
  0x29   : > { %2317 = vmatpush3.bf16.msra.mxu1 %v2545_v23  ;;  %2254 = vmatprep.subr.bf16.mxu0 %v2546_v24  ;;  %v2570_v18 = vld [vmem:[%s2656_s19 + $0x160] sm:$0xff]   ;;  %v2063_v22 = vcombine.high %v394_v14, %v398_v15  ;;  %v2065_v24 = vcombine.high %v395_v16, %v399_v17  ;;  %v2576_v32 = vld [vmem:[%s2656_s19 + $0x1e8] sm:$0xff]   ;;  %v2062_v34 = vcombine.low %v394_v14, %v398_v15  ;;  %v380_v14 = vld [vmem:[%s2693_s22 + $0x90] sm:$0xff] }
  0x2a   : > { %2318 = vmatprep.subr.bf16.mxu1 %v2547_v25  ;;  %v2571_v20 = vld [vmem:[%s2656_s19 + $0x120] sm:$0xff]   ;;  %v2577_v33 = vld [vmem:[%s2656_s19 + $0x1a8] sm:$0xff]   ;;  %v384_v15 = vld [vmem:[%s2693_s22 + $0xb0] sm:$0xff] }
  0x2b   : > { %v2572_v23 = vld [vmem:[%s2656_s19 + $0x1e0] sm:$0xff]   ;;  %v411_v44 = vld [vmem:[%s2693_s22 + $0x188] sm:$0xff] }
  0x2c   : > { %2255 = vmatpush3.bf16.msra.mxu0 %v2548_v26  ;;  %v2573_v25 = vld [vmem:[%s2656_s19 + $0x1a0] sm:$0xff]   ;;  %v415_v45 = vld [vmem:[%s2693_s22 + $0x1a8] sm:$0xff] }
  0x2d   : > { %2319 = vmatpush3.bf16.msra.mxu1 %v2549_v27  ;;  %2256 = vmatprep.subr.bf16.mxu0 %v2550_v28  ;;  %v402_v26 = vld [vmem:[%s2693_s22 + $0x140] sm:$0xff]  ;;  %v2574_v28 = vld [vmem:[%s2656_s19 + $0x168] sm:$0xff]   ;;  %v2080_v59 = vcombine.low %v411_v44, %v415_v45 }
  0x2e   : > { %2320 = vmatprep.subr.bf16.mxu1 %v2551_v29  ;;  %v406_v27 = vld [vmem:[%s2693_s22 + $0x160] sm:$0xff]  ;;  %v403_v29 = vld [vmem:[%s2693_s22 + $0x148] sm:$0xff] }
  0x2f   : > { %v2071_v36 = vcombine.high %v402_v26, %v406_v27  ;;  %v2070_v47 = vcombine.low %v402_v26, %v406_v27  ;;  %v419_v56 = vld [vmem:[%s2693_s22 + $0x1c8] sm:$0xff]  ;;  %v2050_v26 = vcombine.low %v380_v14, %v384_v15 }
  0x30   : > { %2257 = vmatpush3.bf16.msra.mxu0 %v2552_v30  ;;  %v407_v30 = vld [vmem:[%s2693_s22 + $0x168] sm:$0xff] }
  0x31   : > { %2321 = vmatpush3.bf16.msra.mxu1 %v2553_v31  ;;  %2370 = vmatprep.subr.bf16.mxu0 %v2554_v40  ;;  %v2575_v31 = vld [vmem:[%s2656_s19 + $0x128] sm:$0xff]   ;;  %v2073_v37 = vcombine.high %v403_v29, %v407_v30  ;;  %v2580_v40 = vld [vmem:[%s2656_s19 + $0x1f0] sm:$0xff]  }
  0x32   : > { %2434 = vmatprep.subr.bf16.mxu1 %v2556_v42  ;;  %v414_v42 = vld [vmem:[%s2693_s22 + $0x1a0] sm:$0xff]  ;;  %v423_v57 = vld [vmem:[%s2693_s22 + $0x1e8] sm:$0xff] }
  0x33   : > { %1291 = vmatmul.mubr.bf16.vlgmr.msra.gmra.mrb[0].mxu0 %v2030_v35  ;;  %v2064_v35 = vcombine.low %v395_v16, %v399_v17  ;;  %v2088_v3 = vcombine.low %v419_v56, %v423_v57  ;;  %v381_v16 = vld [vmem:[%s2693_s22 + $0x98] sm:$0xff] }
  0x34   : > { %1388 = vmatmul.mubr.bf16.vlgmr.msra.gmra.mrb[0].mxu1 %v2032_v38  ;;  %2371 = vmatpush3.bf16.msra.mxu0 %v2555_v41  ;;  %v2578_v38 = vld [vmem:[%s2656_s19 + $0x170] sm:$0xff]   ;;  %v410_v41 = vld [vmem:[%s2693_s22 + $0x180] sm:$0xff]  ;;  %v385_v17 = vld [vmem:[%s2693_s22 + $0xb8] sm:$0xff] }
  0x35   : > { %2435 = vmatpush3.bf16.msra.mxu1 %v2557_v43  ;;  %1298 = vmatprep.mubr.bf16.mxu0 %v2039_v46  ;;  %v2581_v43 = vld [vmem:[%s2656_s19 + $0x1b0] sm:$0xff]   ;;  %v2582_v46 = vld [vmem:[%s2656_s19 + $0x178] sm:$0xff]   ;;  %v2078_v58 = vcombine.low %v410_v41, %v414_v42  ;;  %v2052_v27 = vcombine.low %v381_v16, %v385_v17 }
  0x36   : > { %1395 = vmatprep.mubr.bf16.mxu1 %v2041_v49  ;;  %2372 = vmatprep.subr.bf16.mxu0 %v2558_v50  ;;  %v2072_v49 = vcombine.low %v403_v29, %v407_v30  ;;  %v2079_v50 = vcombine.high %v410_v41, %v414_v42  ;;  %v396_v30 = vld [vmem:[%s2693_s22 + $0x110] sm:$0xff]  ;;  %v409_v41 = vld [vmem:[%s2693_s22 + $0x178] sm:$0xff] }
  0x37   : > { %2436 = vmatprep.subr.bf16.mxu1 %v2560_v54  ;;  %v418_v54 = vld [vmem:[%s2693_s22 + $0x1c0] sm:$0xff] }
  0x38   : > { %2373 = vmatpush3.bf16.msra.mxu0 %v2559_v52  ;;  %v2081_v52 = vcombine.high %v411_v44, %v415_v45 }
  0x39   : > { %2437 = vmatpush3.bf16.msra.mxu1 %v2561_v55  ;;  %2374 = vmatprep.subr.bf16.mxu0 %v2562_v62  ;;  %v422_v55 = vld [vmem:[%s2693_s22 + $0x1e0] sm:$0xff]  ;;  %v364_v62 = vld [vmem:[%s2693_s22 + $0x10] sm:$0xff] }
  0x3a   : > { %2438 = vmatprep.subr.bf16.mxu1 %v2564_v0  ;;  %v365_v0 = vld [vmem:[%s2693_s22 + $0x18] sm:$0xff] }
  0x3b   : > { %1299 = vmatmul.mubr.bf16.gmra.mrb[4].mxu0 %v2038_v51  ;;  %v2584_v51 = vld [vmem:[%s2656_s19 + $0x1f8] sm:$0xff]  }
  0x3c   : > { %1396 = vmatmul.mubr.bf16.gmra.mrb[4].mxu1 %v2040_v53  ;;  %1306 = vmatprep.mubr.bf16.mxu0 %v2047_v60  ;;  %v2585_v53 = vld [vmem:[%s2656_s19 + $0x1b8] sm:$0xff]   ;;  %v2087_v60 = vcombine.high %v418_v54, %v422_v55 }
  0x3d   : > { %1403 = vmatprep.mubr.bf16.mxu1 %v2049_v61  ;;  %2375 = vmatpush3.bf16.msra.mxu0 %v2563_v63  ;;  %v2089_v61 = vcombine.high %v419_v56, %v423_v57  ;;  %v368_v63 = vld [vmem:[%s2693_s22 + $0x30] sm:$0xff]  ;;  %v421_v56 = vld [vmem:[%s2693_s22 + $0x1d8] sm:$0xff] }
  0x3e   : > { %2439 = vmatpush3.bf16.msra.mxu1 %v2565_v1  ;;  %2376 = vmatprep.subr.bf16.mxu0 %v2566_v10  ;;  %v369_v1 = vld [vmem:[%s2693_s22 + $0x38] sm:$0xff]  ;;  %v2035_v4 = vcombine.high %v364_v62, %v368_v63  ;;  %v2034_v10 = vcombine.low %v364_v62, %v368_v63 }
  0x3f   : > { %2440 = vmatprep.subr.bf16.mxu1 %v2568_v12  ;;  %v2037_v5 = vcombine.high %v365_v0, %v369_v1  ;;  %v425_v57 = vld [vmem:[%s2693_s22 + $0x1f8] sm:$0xff] }
  0x40   : > { %v2092_v63 = vcombine.low %v421_v56, %v425_v57 }
  0x41   : > { %2377 = vmatpush3.bf16.msra.mxu0 %v2567_v11  ;;  %v2036_v11 = vcombine.low %v365_v0, %v369_v1 }
  0x42   : > { %2441 = vmatpush3.bf16.msra.mxu1 %v2569_v13  ;;  %2378 = vmatprep.subr.bf16.mxu0 %v2570_v18 }
  0x43   : > { %1307 = vmatmul.mubr.bf16.gmra.mrb[8].mxu0 %v2046_v2  ;;  %2442 = vmatprep.subr.bf16.mxu1 %v2572_v23  ;;  %v2086_v2 = vcombine.low %v418_v54, %v422_v55  ;;  %v392_v23 = vld [vmem:[%s2693_s22 + $0xf0] sm:$0xff] }
  0x44   : > { %1404 = vmatmul.mubr.bf16.gmra.mrb[8].mxu1 %v2048_v6  ;;  %1314 = vmatprep.mubr.bf16.mxu0 %v2055_v7  ;;  %v372_v6 = vld [vmem:[%s2693_s22 + $0x50] sm:$0xff] }
  0x45   : > { %1411 = vmatprep.mubr.bf16.mxu1 %v2057_v9  ;;  %2379 = vmatpush3.bf16.msra.mxu0 %v2571_v20  ;;  %v376_v7 = vld [vmem:[%s2693_s22 + $0x70] sm:$0xff]  ;;  %v377_v9 = vld [vmem:[%s2693_s22 + $0x78] sm:$0xff]  ;;  %v2051_v20 = vcombine.high %v380_v14, %v384_v15 }
  0x46   : > { %2443 = vmatpush3.bf16.msra.mxu1 %v2573_v25  ;;  %2380 = vmatprep.subr.bf16.mxu0 %v2574_v28  ;;  %v2043_v12 = vcombine.high %v372_v6, %v376_v7  ;;  %v2045_v13 = vcombine.high %v373_v8, %v377_v9  ;;  %v2042_v18 = vcombine.low %v372_v6, %v376_v7  ;;  %v393_v25 = vld [vmem:[%s2693_s22 + $0xf8] sm:$0xff]  ;;  %v420_v54 = vld [vmem:[%s2693_s22 + $0x1d0] sm:$0xff] }
  0x47   : > { %2444 = vmatprep.subr.bf16.mxu1 %v2576_v32  ;;  %v397_v32 = vld [vmem:[%s2693_s22 + $0x118] sm:$0xff]  ;;  %v424_v55 = vld [vmem:[%s2693_s22 + $0x1f0] sm:$0xff] }
  0x48   : > { %v2090_v62 = vcombine.low %v420_v54, %v424_v55 }
  0x49   : > { %2381 = vmatpush3.bf16.msra.mxu0 %v2575_v31  ;;  %v400_v31 = vld [vmem:[%s2693_s22 + $0x130] sm:$0xff] }
  0x4a   : > { %2445 = vmatpush3.bf16.msra.mxu1 %v2577_v33  ;;  %2382 = vmatprep.subr.bf16.mxu0 %v2578_v38  ;;  %v401_v33 = vld [vmem:[%s2693_s22 + $0x138] sm:$0xff]  ;;  %v404_v38 = vld [vmem:[%s2693_s22 + $0x150] sm:$0xff]  ;;  %v2066_v42 = vcombine.low %v396_v30, %v400_v31 }
  0x4b   : > { %1315 = vmatmul.mubr.bf16.gmra.mrb[12].mxu0 %v2054_v19  ;;  %2446 = vmatprep.subr.bf16.mxu1 %v2580_v40  ;;  %v2044_v19 = vcombine.low %v373_v8, %v377_v9  ;;  %v405_v40 = vld [vmem:[%s2693_s22 + $0x158] sm:$0xff] }
  0x4c   : > { %1412 = vmatmul.mubr.bf16.gmra.mrb[12].mxu1 %v2056_v21  ;;  %1322 = vmatprep.mubr.bf16.mxu0 %v2063_v22  ;;  %v2053_v21 = vcombine.high %v381_v16, %v385_v17  ;;  %v388_v22 = vld [vmem:[%s2693_s22 + $0xd0] sm:$0xff]  ;;  %v2077_v45 = vcombine.high %v405_v40, %v409_v41 }
  0x4d   : > { %1419 = vmatprep.mubr.bf16.mxu1 %v2065_v24  ;;  %2383 = vmatpush3.bf16.msra.mxu0 %v2579_v39  ;;  %v389_v24 = vld [vmem:[%s2693_s22 + $0xd8] sm:$0xff]  ;;  %v2059_v28 = vcombine.high %v388_v22, %v392_v23  ;;  %v408_v39 = vld [vmem:[%s2693_s22 + $0x170] sm:$0xff] }
  0x4e   : > { %2447 = vmatpush3.bf16.msra.mxu1 %v2581_v43  ;;  %2384 = vmatprep.subr.bf16.mxu0 %v2582_v46  ;;  %v2061_v29 = vcombine.high %v389_v24, %v393_v25  ;;  %v2068_v43 = vcombine.low %v397_v32, %v401_v33  ;;  %v2075_v44 = vcombine.high %v404_v38, %v408_v39  ;;  %v412_v46 = vld [vmem:[%s2693_s22 + $0x190] sm:$0xff] }
  0x4f   : > { %2448 = vmatprep.subr.bf16.mxu1 %v2584_v51  ;;  %v2076_v51 = vcombine.low %v405_v40, %v409_v41 }
  0x51   : > { %2385 = vmatpush3.bf16.msra.mxu0 %v2583_v48  ;;  %v413_v48 = vld [vmem:[%s2693_s22 + $0x198] sm:$0xff] }
  0x52   : > { %2449 = vmatpush3.bf16.msra.mxu1 %v2585_v53 }
  0x53   : > { %1323 = vmatmul.mubr.bf16.gmra.mrb[16].mxu0 %v2062_v34  ;;  %v2058_v34 = vcombine.low %v388_v22, %v392_v23 }
  0x54   : > { %1420 = vmatmul.mubr.bf16.gmra.mrb[16].mxu1 %v2064_v35  ;;  %1330 = vmatprep.mubr.bf16.mxu0 %v2071_v36  ;;  %v2060_v35 = vcombine.low %v389_v24, %v393_v25  ;;  %v2067_v36 = vcombine.high %v396_v30, %v400_v31 }
  0x55   : > { %1427 = vmatprep.mubr.bf16.mxu1 %v2073_v37  ;;  %v2069_v37 = vcombine.high %v397_v32, %v401_v33 }
  0x5b   : > { %1331 = vmatmul.mubr.bf16.gmra.mrb[20].mxu0 %v2070_v47  ;;  %v416_v47 = vld [vmem:[%s2693_s22 + $0x1b0] sm:$0xff] }
  0x5c   : > { %1428 = vmatmul.mubr.bf16.gmra.mrb[20].mxu1 %v2072_v49  ;;  %1338 = vmatprep.mubr.bf16.mxu0 %v2079_v50  ;;  %v417_v49 = vld [vmem:[%s2693_s22 + $0x1b8] sm:$0xff]  ;;  %v2074_v50 = vcombine.low %v404_v38, %v408_v39 }
  0x5d   : > { %1435 = vmatprep.mubr.bf16.mxu1 %v2081_v52  ;;  %v2083_v52 = vcombine.high %v412_v46, %v416_v47  ;;  %v2085_v53 = vcombine.high %v413_v48, %v417_v49 }
  0x63   : > { %1339 = vmatmul.mubr.bf16.gmra.mrb[24].mxu0 %v2078_v58  ;;  %v2082_v58 = vcombine.low %v412_v46, %v416_v47 }
  0x64   : > { %1436 = vmatmul.mubr.bf16.gmra.mrb[24].mxu1 %v2080_v59  ;;  %1346 = vmatprep.mubr.bf16.mxu0 %v2087_v60  ;;  %v2084_v59 = vcombine.low %v413_v48, %v417_v49  ;;  %v2091_v60 = vcombine.high %v420_v54, %v424_v55 }
  0x65   : > { %1443 = vmatprep.mubr.bf16.mxu1 %v2089_v61  ;;  %v2093_v61 = vcombine.high %v421_v56, %v425_v57 }
  0x6b   : > { %1347 = vmatmul.mubr.bf16.gmra.mrb[28].mxu0 %v2086_v2 }
  0x6c   : > { %1444 = vmatmul.mubr.bf16.gmra.mrb[28].mxu1 %v2088_v3  ;;  %1484 = vmatprep.mubr.bf16.mxu0 %v2035_v4 }
  0x6d   : > { %1581 = vmatprep.mubr.bf16.mxu1 %v2037_v5 }
  0x73   : > { %1485 = vmatmul.mubr.bf16.vlgmr.msra.gmra.mrb[32].mxu0 %v2034_v10 }
  0x74   : > { %1582 = vmatmul.mubr.bf16.vlgmr.msra.gmra.mrb[32].mxu1 %v2036_v11  ;;  %1492 = vmatprep.mubr.bf16.mxu0 %v2043_v12 }
  0x75   : > { %1589 = vmatprep.mubr.bf16.mxu1 %v2045_v13 }
  0x7b   : > { %1493 = vmatmul.mubr.bf16.gmra.mrb[36].mxu0 %v2042_v18 }
  0x7c   : > { %1590 = vmatmul.mubr.bf16.gmra.mrb[36].mxu1 %v2044_v19  ;;  %1500 = vmatprep.mubr.bf16.mxu0 %v2051_v20 }
  0x7d   : > { %1597 = vmatprep.mubr.bf16.mxu1 %v2053_v21 }
  0x83   : > { %1501 = vmatmul.mubr.bf16.gmra.mrb[40].mxu0 %v2050_v26 }
  0x84   : > { %1598 = vmatmul.mubr.bf16.gmra.mrb[40].mxu1 %v2052_v27  ;;  %1508 = vmatprep.mubr.bf16.mxu0 %v2059_v28 }
  0x85   : > { %1605 = vmatprep.mubr.bf16.mxu1 %v2061_v29 }
  0x8b   : > { %1509 = vmatmul.mubr.bf16.gmra.mrb[44].mxu0 %v2058_v34 }
  0x8c   : > { %1606 = vmatmul.mubr.bf16.gmra.mrb[44].mxu1 %v2060_v35  ;;  %1516 = vmatprep.mubr.bf16.mxu0 %v2067_v36 }
  0x8d   : > { %1613 = vmatprep.mubr.bf16.mxu1 %v2069_v37 }
  0x93   : > { %1517 = vmatmul.mubr.bf16.gmra.mrb[48].mxu0 %v2066_v42 }
  0x94   : > { %1614 = vmatmul.mubr.bf16.gmra.mrb[48].mxu1 %v2068_v43  ;;  %1524 = vmatprep.mubr.bf16.mxu0 %v2075_v44 }
  0x95   : > { %1621 = vmatprep.mubr.bf16.mxu1 %v2077_v45 }
  0x9b   : > { %1525 = vmatmul.mubr.bf16.gmra.mrb[52].mxu0 %v2074_v50 }
  0x9c   : > { %1622 = vmatmul.mubr.bf16.gmra.mrb[52].mxu1 %v2076_v51  ;;  %1532 = vmatprep.mubr.bf16.mxu0 %v2083_v52 }
  0x9d   : > { %1629 = vmatprep.mubr.bf16.mxu1 %v2085_v53 }
  0xa3   : > { %1533 = vmatmul.mubr.bf16.gmra.mrb[56].mxu0 %v2082_v58 }
  0xa4   : > { %1630 = vmatmul.mubr.bf16.gmra.mrb[56].mxu1 %v2084_v59  ;;  %1540 = vmatprep.mubr.bf16.mxu0 %v2091_v60 }
  0xa5   : > { %1637 = vmatprep.mubr.bf16.mxu1 %v2093_v61 }
  0xab   : > { %1541 = vmatmul.mubr.bf16.gmra.mrb[60].mxu0 %v2090_v62 }
  0xac   : > { %1638 = vmatmul.mubr.bf16.gmra.mrb[60].mxu1 %v2092_v63 }
 0x106   : > { %v2258_v0 = vpop.f32.mrb[0].mxu0 }
 0x107   : > { %v2322_v1 = vpop.f32.mrb[0].mxu1  ;;  %v2259_v2 = vpop.f32.mrb[1].mxu0 }
 0x108   : > { %v2260_v3 = vadd.f32 %v2259_v2, %v2258_v0  ;;  %v2323_v4 = vpop.f32.mrb[1].mxu1  ;;  %v2261_v5 = vpop.f32.mrb[2].mxu0 }
 0x109   : > { %v2324_v6 = vadd.f32 %v2323_v4, %v2322_v1  ;;  %v2325_v7 = vpop.f32.mrb[2].mxu1  ;;  %v2262_v8 = vpop.f32.mrb[3].mxu0 }
 0x10a   : > { %v2263_v9 = vadd.f32 %v2262_v8, %v2261_v5  ;;  %v2326_v10 = vpop.f32.mrb[3].mxu1 }
 0x10b   : > { %v2793_v11 = vadd.f32 %v2324_v6, %v2260_v3  ;;  %v2327_v12 = vadd.f32 %v2326_v10, %v2325_v7 }
 0x10d   : > { %v2795_v13 = vadd.f32 %v2327_v12, %v2263_v9 }
 0x10e   : > { %v2264_v14 = vpop.f32.mrb[4].mxu0 }
 0x10f   : > { %v2328_v15 = vpop.f32.mrb[4].mxu1  ;;  %v2265_v16 = vpop.f32.mrb[5].mxu0 }
 0x110   : > { %v2266_v17 = vadd.f32 %v2265_v16, %v2264_v14  ;;  %v2329_v18 = vpop.f32.mrb[5].mxu1  ;;  %v2267_v19 = vpop.f32.mrb[6].mxu0 }
 0x111   : > { %v2330_v20 = vadd.f32 %v2329_v18, %v2328_v15  ;;  %v2331_v21 = vpop.f32.mrb[6].mxu1  ;;  %v2268_v22 = vpop.f32.mrb[7].mxu0 }
 0x112   : > { %v2269_v23 = vadd.f32 %v2268_v22, %v2267_v19  ;;  %v2332_v24 = vpop.f32.mrb[7].mxu1 }
 0x113   : > { %v2797_v25 = vadd.f32 %v2330_v20, %v2266_v17  ;;  %v2333_v26 = vadd.f32 %v2332_v24, %v2331_v21 }
 0x115   : > { %v2799_v27 = vadd.f32 %v2333_v26, %v2269_v23 }
 0x116   : > { %v2270_v28 = vpop.f32.mrb[8].mxu0 }
 0x117   : > { %v2334_v29 = vpop.f32.mrb[8].mxu1  ;;  %v2271_v30 = vpop.f32.mrb[9].mxu0 }
 0x118   : > { %v2272_v31 = vadd.f32 %v2271_v30, %v2270_v28  ;;  %v2335_v32 = vpop.f32.mrb[9].mxu1  ;;  %v2273_v33 = vpop.f32.mrb[10].mxu0 }
 0x119   : > { %v2336_v34 = vadd.f32 %v2335_v32, %v2334_v29  ;;  %v2337_v35 = vpop.f32.mrb[10].mxu1  ;;  %v2274_v36 = vpop.f32.mrb[11].mxu0 }
 0x11a   : > { %v2275_v37 = vadd.f32 %v2274_v36, %v2273_v33  ;;  %v2338_v38 = vpop.f32.mrb[11].mxu1 }
 0x11b   : > { %v2801_v39 = vadd.f32 %v2336_v34, %v2272_v31  ;;  %v2339_v40 = vadd.f32 %v2338_v38, %v2337_v35 }
 0x11d   : > { %v2803_v41 = vadd.f32 %v2339_v40, %v2275_v37 }
 0x11e   : > { %v2276_v42 = vpop.f32.mrb[12].mxu0 }
 0x11f   : > { %v2340_v43 = vpop.f32.mrb[12].mxu1  ;;  %v2277_v44 = vpop.f32.mrb[13].mxu0 }
 0x120   : > { %v2278_v45 = vadd.f32 %v2277_v44, %v2276_v42  ;;  %v2341_v46 = vpop.f32.mrb[13].mxu1  ;;  %v2279_v47 = vpop.f32.mrb[14].mxu0 }
 0x121   : > { %v2342_v48 = vadd.f32 %v2341_v46, %v2340_v43  ;;  %v2343_v49 = vpop.f32.mrb[14].mxu1  ;;  %v2280_v50 = vpop.f32.mrb[15].mxu0 }
 0x122   : > { %v2281_v51 = vadd.f32 %v2280_v50, %v2279_v47  ;;  %v2344_v52 = vpop.f32.mrb[15].mxu1 }
 0x123   : > { %v2805_v53 = vadd.f32 %v2342_v48, %v2278_v45  ;;  %v2345_v54 = vadd.f32 %v2344_v52, %v2343_v49 }
 0x125   : > { %v2807_v55 = vadd.f32 %v2345_v54, %v2281_v51 }
 0x126   : > { %v2282_v56 = vpop.f32.mrb[16].mxu0 }
 0x127   : > { %v2346_v57 = vpop.f32.mrb[16].mxu1  ;;  %v2283_v58 = vpop.f32.mrb[17].mxu0 }
 0x128   : > { %v2284_v59 = vadd.f32 %v2283_v58, %v2282_v56  ;;  %v2347_v60 = vpop.f32.mrb[17].mxu1  ;;  %v2285_v61 = vpop.f32.mrb[18].mxu0 }
 0x129   : > { %v2348_v62 = vadd.f32 %v2347_v60, %v2346_v57  ;;  %v2349_v63 = vpop.f32.mrb[18].mxu1  ;;  %v2286_v0 = vpop.f32.mrb[19].mxu0 }
 0x12a   : > { %v2287_v1 = vadd.f32 %v2286_v0, %v2285_v61  ;;  %v2350_v2 = vpop.f32.mrb[19].mxu1 }
 0x12b   : > { %v2809_v3 = vadd.f32 %v2348_v62, %v2284_v59  ;;  %v2351_v4 = vadd.f32 %v2350_v2, %v2349_v63 }
 0x12d   : > { %v2811_v5 = vadd.f32 %v2351_v4, %v2287_v1 }
 0x12e   : > { %v2288_v6 = vpop.f32.mrb[20].mxu0 }
 0x12f   : > { %v2352_v7 = vpop.f32.mrb[20].mxu1  ;;  %v2289_v8 = vpop.f32.mrb[21].mxu0 }
 0x130   : > { %v2290_v9 = vadd.f32 %v2289_v8, %v2288_v6  ;;  %v2353_v10 = vpop.f32.mrb[21].mxu1  ;;  %v2291_v12 = vpop.f32.mrb[22].mxu0 }
 0x131   : > { %v2354_v14 = vadd.f32 %v2353_v10, %v2352_v7  ;;  %v2355_v15 = vpop.f32.mrb[22].mxu1  ;;  %v2292_v16 = vpop.f32.mrb[23].mxu0 }
 0x132   : > { %v2293_v17 = vadd.f32 %v2292_v16, %v2291_v12  ;;  %v2356_v18 = vpop.f32.mrb[23].mxu1 }
 0x133   : > { %v2813_v19 = vadd.f32 %v2354_v14, %v2290_v9  ;;  %v2357_v20 = vadd.f32 %v2356_v18, %v2355_v15 }
 0x135   : > { %v2815_v21 = vadd.f32 %v2357_v20, %v2293_v17 }
 0x136   : > { %v2294_v22 = vpop.f32.mrb[24].mxu0 }
 0x137   : > { %v2358_v23 = vpop.f32.mrb[24].mxu1  ;;  %v2295_v24 = vpop.f32.mrb[25].mxu0 }
 0x138   : > { %v2296_v26 = vadd.f32 %v2295_v24, %v2294_v22  ;;  %v2359_v28 = vpop.f32.mrb[25].mxu1  ;;  %v2297_v29 = vpop.f32.mrb[26].mxu0 }
 0x139   : > { %v2360_v30 = vadd.f32 %v2359_v28, %v2358_v23  ;;  %v2361_v31 = vpop.f32.mrb[26].mxu1  ;;  %v2298_v32 = vpop.f32.mrb[27].mxu0 }
 0x13a   : > { %v2299_v33 = vadd.f32 %v2298_v32, %v2297_v29  ;;  %v2362_v34 = vpop.f32.mrb[27].mxu1 }
 0x13b   : > { %v2817_v35 = vadd.f32 %v2360_v30, %v2296_v26  ;;  %v2363_v36 = vadd.f32 %v2362_v34, %v2361_v31 }
 0x13d   : > { %v2819_v37 = vadd.f32 %v2363_v36, %v2299_v33 }
 0x13e   : > { %v2300_v38 = vpop.f32.mrb[28].mxu0 }
 0x13f   : > { %v2364_v40 = vpop.f32.mrb[28].mxu1  ;;  %v2301_v42 = vpop.f32.mrb[29].mxu0 }
 0x140   : > { %v2302_v43 = vadd.f32 %v2301_v42, %v2300_v38  ;;  %v2365_v44 = vpop.f32.mrb[29].mxu1  ;;  %v2303_v45 = vpop.f32.mrb[30].mxu0 }
 0x141   : > { %v2366_v46 = vadd.f32 %v2365_v44, %v2364_v40  ;;  %v2367_v47 = vpop.f32.mrb[30].mxu1  ;;  %v2304_v48 = vpop.f32.mrb[31].mxu0 }
 0x142   : > { %v2305_v49 = vadd.f32 %v2304_v48, %v2303_v45  ;;  %v2368_v50 = vpop.f32.mrb[31].mxu1 }
 0x143   : > { %v2821_v51 = vadd.f32 %v2366_v46, %v2302_v43  ;;  %v2369_v52 = vadd.f32 %v2368_v50, %v2367_v47 }
 0x145   : > { %v2823_v54 = vadd.f32 %v2369_v52, %v2305_v49 }
 0x146   : > { %v2386_v56 = vpop.f32.mrb[32].mxu0 }
 0x147   : > { %v2450_v57 = vpop.f32.mrb[32].mxu1  ;;  %v2387_v58 = vpop.f32.mrb[33].mxu0 }
 0x148   : > { %v2388_v59 = vadd.f32 %v2387_v58, %v2386_v56  ;;  %v2451_v60 = vpop.f32.mrb[33].mxu1  ;;  %v2389_v61 = vpop.f32.mrb[34].mxu0 }
 0x149   : > { %v2452_v62 = vadd.f32 %v2451_v60, %v2450_v57  ;;  %v2453_v63 = vpop.f32.mrb[34].mxu1  ;;  %v2390_v0 = vpop.f32.mrb[35].mxu0 }
 0x14a   : > { %v1487_v1 = vadd.f32 %v2388_v59, %v2793_v11  ;;  %v2391_v2 = vadd.f32 %v2390_v0, %v2389_v61  ;;  %v2454_v4 = vpop.f32.mrb[35].mxu1 }
 0x14b   : > { %v2455_v6 = vadd.f32 %v2454_v4, %v2453_v63 }
 0x14c   : > { %v1584_v7 = vadd.f32 %v2452_v62, %v1487_v1  ;;  %v1490_v8 = vadd.f32 %v2391_v2, %v2795_v13 }
 0x14e   : > { %v1587_v9 = vadd.f32 %v2455_v6, %v1490_v8  ;;  %v2392_v10 = vpop.f32.mrb[36].mxu0  ;;  %v1719_v12 = vmul.f32 %v1584_v7, %v1584_v7 }
 0x14f   : > { %v2456_v14 = vpop.f32.mrb[36].mxu1  ;;  %v2393_v15 = vpop.f32.mrb[37].mxu0 }
 0x150   : > { %v1697_v16 = vadd.f32 %v1587_v9, %v1584_v7  ;;  %v1720_v11 = vmul.f32 %v1587_v9, %v1587_v9  ;;  %v2198_v17 = vpack.c.bf16 %v1587_v9, %v1584_v7  ;;  %v2394_v18 = vadd.f32 %v2393_v15, %v2392_v10  ;;  %v2457_v20 = vpop.f32.mrb[37].mxu1  ;;  %v2395_v22 = vpop.f32.mrb[38].mxu0 }
 0x151   : > { %v2458_v23 = vadd.f32 %v2457_v20, %v2456_v14  ;;  %v2459_v13 = vpop.f32.mrb[38].mxu1  ;;  %v2396_v24 = vpop.f32.mrb[39].mxu0 }
 0x152   : > { %v1735_v26 = vadd.f32 %v1720_v11, %v1719_v12  ;;  %2199 = vst [vmem:[%s2831_s26] sm:$0xff] %v2198_v17   ;;  %v1495_v28 = vadd.f32 %v2394_v18, %v2797_v25  ;;  %v2397_v29 = vadd.f32 %v2396_v24, %v2395_v22  ;;  %v2460_v30 = vpop.f32.mrb[39].mxu1 }
 0x153   : > { %v2461_v31 = vadd.f32 %v2460_v30, %v2459_v13 }
 0x154   : > { %v1592_v32 = vadd.f32 %v2458_v23, %v1495_v28  ;;  %v1498_v33 = vadd.f32 %v2397_v29, %v2799_v27 }
 0x156   : > { %v1698_v34 = vadd.f32 %v1697_v16, %v1592_v32  ;;  %v1721_v36 = vmul.f32 %v1592_v32, %v1592_v32  ;;  %v1595_v38 = vadd.f32 %v2461_v31, %v1498_v33  ;;  %v2398_v40 = vpop.f32.mrb[40].mxu0 }
 0x157   : > { %v2462_v42 = vpop.f32.mrb[40].mxu1  ;;  %v2399_v43 = vpop.f32.mrb[41].mxu0 }
 0x158   : > { %v1736_v44 = vadd.f32 %v1735_v26, %v1721_v36  ;;  %v1699_v45 = vadd.f32 %v1698_v34, %v1595_v38  ;;  %v1722_v46 = vmul.f32 %v1595_v38, %v1595_v38  ;;  %v2203_v47 = vpack.c.bf16 %v1595_v38, %v1592_v32  ;;  %v2463_v48 = vpop.f32.mrb[41].mxu1  ;;  %v2401_v49 = vpop.f32.mrb[42].mxu0 }
 0x159   : > { %v2400_v25 = vadd.f32 %v2399_v43, %v2398_v40  ;;  %v2464_v50 = vadd.f32 %v2463_v48, %v2462_v42  ;;  %v2465_v52 = vpop.f32.mrb[42].mxu1  ;;  %v2402_v56 = vpop.f32.mrb[43].mxu0 }
 0x15a   : > { %v1737_v57 = vadd.f32 %v1736_v44, %v1722_v46  ;;  %2235 = vst [vmem:[%s2831_s26 + $0x8] sm:$0xff] %v2203_v47   ;;  %v2403_v27 = vadd.f32 %v2402_v56, %v2401_v49  ;;  %v2466_v58 = vpop.f32.mrb[43].mxu1 }
 0x15b   : > { %v1503_v59 = vadd.f32 %v2400_v25, %v2801_v39  ;;  %v2467_v60 = vadd.f32 %v2466_v58, %v2465_v52 }
 0x15c   : > { %v1506_v61 = vadd.f32 %v2403_v27, %v2803_v41 }
 0x15d   : > { %v1600_v62 = vadd.f32 %v2464_v50, %v1503_v59 }
 0x15e   : > { %v1603_v63 = vadd.f32 %v2467_v60, %v1506_v61  ;;  %v2404_v0 = vpop.f32.mrb[44].mxu0 }
 0x15f   : > { %v1700_v1 = vadd.f32 %v1699_v45, %v1600_v62  ;;  %v1723_v2 = vmul.f32 %v1600_v62, %v1600_v62  ;;  %v2468_v4 = vpop.f32.mrb[44].mxu1  ;;  %v2405_v6 = vpop.f32.mrb[45].mxu0 }
 0x160   : > { %v1724_v7 = vmul.f32 %v1603_v63, %v1603_v63  ;;  %v2208_v8 = vpack.c.bf16 %v1603_v63, %v1600_v62  ;;  %v2406_v9 = vadd.f32 %v2405_v6, %v2404_v0  ;;  %v2469_v10 = vpop.f32.mrb[45].mxu1  ;;  %v2407_v12 = vpop.f32.mrb[46].mxu0 }
 0x161   : > { %v1738_v14 = vadd.f32 %v1737_v57, %v1723_v2  ;;  %v1701_v15 = vadd.f32 %v1700_v1, %v1603_v63  ;;  %v2470_v16 = vadd.f32 %v2469_v10, %v2468_v4  ;;  %v2471_v39 = vpop.f32.mrb[46].mxu1  ;;  %v2408_v11 = vpop.f32.mrb[47].mxu0 }
 0x162   : > { %2236 = vst [vmem:[%s2831_s26 + $0x10] sm:$0xff] %v2208_v8   ;;  %v1511_v41 = vadd.f32 %v2406_v9, %v2805_v53  ;;  %v2409_v17 = vadd.f32 %v2408_v11, %v2407_v12  ;;  %v2472_v18 = vpop.f32.mrb[47].mxu1 }
 0x163   : > { %v1739_v20 = vadd.f32 %v1738_v14, %v1724_v7  ;;  %v2473_v22 = vadd.f32 %v2472_v18, %v2471_v39 }
 0x164   : > { %v1608_v23 = vadd.f32 %v2470_v16, %v1511_v41  ;;  %v1514_v13 = vadd.f32 %v2409_v17, %v2807_v55 }
 0x166   : > { %v1702_v24 = vadd.f32 %v1701_v15, %v1608_v23  ;;  %v1725_v26 = vmul.f32 %v1608_v23, %v1608_v23  ;;  %v1611_v28 = vadd.f32 %v2473_v22, %v1514_v13  ;;  %v2410_v29 = vpop.f32.mrb[48].mxu0 }
 0x167   : > { %v2474_v30 = vpop.f32.mrb[48].mxu1  ;;  %v2411_v31 = vpop.f32.mrb[49].mxu0 }
 0x168   : > { %v1740_v32 = vadd.f32 %v1739_v20, %v1725_v26  ;;  %v1703_v33 = vadd.f32 %v1702_v24, %v1611_v28  ;;  %v1726_v34 = vmul.f32 %v1611_v28, %v1611_v28  ;;  %v2213_v36 = vpack.c.bf16 %v1611_v28, %v1608_v23  ;;  %v2475_v38 = vpop.f32.mrb[49].mxu1  ;;  %v2413_v53 = vpop.f32.mrb[50].mxu0 }
 0x169   : > { %v2412_v40 = vadd.f32 %v2411_v31, %v2410_v29  ;;  %v2476_v42 = vadd.f32 %v2475_v38, %v2474_v30  ;;  %v2477_v43 = vpop.f32.mrb[50].mxu1  ;;  %v2414_v44 = vpop.f32.mrb[51].mxu0 }
 0x16a   : > { %v1741_v45 = vadd.f32 %v1740_v32, %v1726_v34  ;;  %2237 = vst [vmem:[%s2831_s26 + $0x18] sm:$0xff] %v2213_v36   ;;  %v2415_v55 = vadd.f32 %v2414_v44, %v2413_v53  ;;  %v2478_v46 = vpop.f32.mrb[51].mxu1 }
 0x16b   : > { %v1519_v47 = vadd.f32 %v2412_v40, %v2809_v3  ;;  %v2479_v48 = vadd.f32 %v2478_v46, %v2477_v43 }
 0x16c   : > { %v1522_v49 = vadd.f32 %v2415_v55, %v2811_v5 }
 0x16d   : > { %v1616_v25 = vadd.f32 %v2476_v42, %v1519_v47 }
 0x16e   : > { %v1619_v50 = vadd.f32 %v2479_v48, %v1522_v49  ;;  %v2416_v52 = vpop.f32.mrb[52].mxu0 }
 0x16f   : > { %v1704_v56 = vadd.f32 %v1703_v33, %v1616_v25  ;;  %v1727_v57 = vmul.f32 %v1616_v25, %v1616_v25  ;;  %v2480_v27 = vpop.f32.mrb[52].mxu1  ;;  %v2417_v58 = vpop.f32.mrb[53].mxu0 }
 0x170   : > { %v1728_v59 = vmul.f32 %v1619_v50, %v1619_v50  ;;  %v2218_v60 = vpack.c.bf16 %v1619_v50, %v1616_v25  ;;  %v2418_v61 = vadd.f32 %v2417_v58, %v2416_v52  ;;  %v2481_v62 = vpop.f32.mrb[53].mxu1  ;;  %v2419_v63 = vpop.f32.mrb[54].mxu0 }
 0x171   : > { %v1742_v0 = vadd.f32 %v1741_v45, %v1727_v57  ;;  %v1705_v1 = vadd.f32 %v1704_v56, %v1619_v50  ;;  %v2482_v2 = vadd.f32 %v2481_v62, %v2480_v27  ;;  %v2483_v3 = vpop.f32.mrb[54].mxu1  ;;  %v2420_v4 = vpop.f32.mrb[55].mxu0 }
 0x172   : > { %2238 = vst [vmem:[%s2831_s26 + $0x20] sm:$0xff] %v2218_v60   ;;  %v1527_v5 = vadd.f32 %v2418_v61, %v2813_v19  ;;  %v2421_v6 = vadd.f32 %v2420_v4, %v2419_v63  ;;  %v2484_v7 = vpop.f32.mrb[55].mxu1 }
 0x173   : > { %v1743_v8 = vadd.f32 %v1742_v0, %v1728_v59  ;;  %v2485_v9 = vadd.f32 %v2484_v7, %v2483_v3 }
 0x174   : > { %v1624_v10 = vadd.f32 %v2482_v2, %v1527_v5  ;;  %v1530_v12 = vadd.f32 %v2421_v6, %v2815_v21 }
 0x176   : > { %v1706_v14 = vadd.f32 %v1705_v1, %v1624_v10  ;;  %v1729_v15 = vmul.f32 %v1624_v10, %v1624_v10  ;;  %v1627_v16 = vadd.f32 %v2485_v9, %v1530_v12  ;;  %v2422_v39 = vpop.f32.mrb[56].mxu0 }
 0x177   : > { %v2486_v11 = vpop.f32.mrb[56].mxu1  ;;  %v2423_v41 = vpop.f32.mrb[57].mxu0 }
 0x178   : > { %v1744_v17 = vadd.f32 %v1743_v8, %v1729_v15  ;;  %v1707_v18 = vadd.f32 %v1706_v14, %v1627_v16  ;;  %v1730_v20 = vmul.f32 %v1627_v16, %v1627_v16  ;;  %v2223_v22 = vpack.c.bf16 %v1627_v16, %v1624_v10  ;;  %v2487_v23 = vpop.f32.mrb[57].mxu1  ;;  %v2425_v19 = vpop.f32.mrb[58].mxu0 }
 0x179   : > { %v2424_v13 = vadd.f32 %v2423_v41, %v2422_v39  ;;  %v2488_v24 = vadd.f32 %v2487_v23, %v2486_v11  ;;  %v2489_v26 = vpop.f32.mrb[58].mxu1  ;;  %v2426_v28 = vpop.f32.mrb[59].mxu0 }
 0x17a   : > { %v1745_v29 = vadd.f32 %v1744_v17, %v1730_v20  ;;  %2239 = vst [vmem:[%s2831_s26 + $0x28] sm:$0xff] %v2223_v22   ;;  %v2427_v21 = vadd.f32 %v2426_v28, %v2425_v19  ;;  %v2490_v30 = vpop.f32.mrb[59].mxu1 }
 0x17b   : > { %v1535_v31 = vadd.f32 %v2424_v13, %v2817_v35  ;;  %v2491_v32 = vadd.f32 %v2490_v30, %v2489_v26 }
 0x17c   : > { %v1538_v33 = vadd.f32 %v2427_v21, %v2819_v37 }
 0x17d   : > { %v1632_v34 = vadd.f32 %v2488_v24, %v1535_v31 }
 0x17e   : > { %v1635_v36 = vadd.f32 %v2491_v32, %v1538_v33  ;;  %v2428_v38 = vpop.f32.mrb[60].mxu0 }
 0x17f   : > { %v1708_v53 = vadd.f32 %v1707_v18, %v1632_v34  ;;  %v1731_v40 = vmul.f32 %v1632_v34, %v1632_v34  ;;  %v2492_v42 = vpop.f32.mrb[60].mxu1  ;;  %v2429_v43 = vpop.f32.mrb[61].mxu0 }
 0x180   : > { %v1732_v44 = vmul.f32 %v1635_v36, %v1635_v36  ;;  %v2228_v45 = vpack.c.bf16 %v1635_v36, %v1632_v34  ;;  %v2430_v55 = vadd.f32 %v2429_v43, %v2428_v38  ;;  %v2493_v46 = vpop.f32.mrb[61].mxu1  ;;  %v2431_v47 = vpop.f32.mrb[62].mxu0 }
 0x181   : > { %v1746_v48 = vadd.f32 %v1745_v29, %v1731_v40  ;;  %v1709_v49 = vadd.f32 %v1708_v53, %v1635_v36  ;;  %v2494_v25 = vadd.f32 %v2493_v46, %v2492_v42  ;;  %v2495_v35 = vpop.f32.mrb[62].mxu1  ;;  %v2432_v50 = vpop.f32.mrb[63].mxu0 }
 0x182   : > { %2240 = vst [vmem:[%s2831_s26 + $0x30] sm:$0xff] %v2228_v45   ;;  %v1543_v37 = vadd.f32 %v2430_v55, %v2821_v51  ;;  %v2433_v52 = vadd.f32 %v2432_v50, %v2431_v47  ;;  %v2496_v56 = vpop.f32.mrb[63].mxu1 }
 0x183   : > { %v1747_v57 = vadd.f32 %v1746_v48, %v1732_v44  ;;  %v2497_v27 = vadd.f32 %v2496_v56, %v2495_v35 }
 0x184   : > { %v1640_v58 = vadd.f32 %v2494_v25, %v1543_v37  ;;  %v1546_v59 = vadd.f32 %v2433_v52, %v2823_v54 }
 0x186   : > { %v1710_v60 = vadd.f32 %v1709_v49, %v1640_v58  ;;  %v1733_v61 = vmul.f32 %v1640_v58, %v1640_v58  ;;  %v1643_v62 = vadd.f32 %v2497_v27, %v1546_v59 }
 0x188   : > { %v1748_v63 = vadd.f32 %v1747_v57, %v1733_v61  ;;  %v1711_v0 = vadd.f32 %v1710_v60, %v1643_v62  ;;  %v1734_v1 = vmul.f32 %v1643_v62, %v1643_v62  ;;  %v2233_v2 = vpack.c.bf16 %v1643_v62, %v1640_v58 }
 0x18a   : > { %v1712_v3 = vrot.slane %v1711_v0, 4  ;;  %v1749_v4 = vadd.f32 %v1748_v63, %v1734_v1  ;;  %2241 = vst [vmem:[%s2831_s26 + $0x38] sm:$0xff] %v2233_v2  }
 0x18c   : > { %v1713_v51 = vadd.f32 %v1712_v3, %v1711_v0  ;;  %v1750_v5 = vrot.slane %v1749_v4, 4 }
 0x18e   : > { %v1714_v6 = vrot.slane %v1713_v51, 2  ;;  %v1751_v7 = vadd.f32 %v1750_v5, %v1749_v4 }
 0x190   : > { %v1715_v8 = vadd.f32 %v1714_v6, %v1713_v51  ;;  %v1752_v9 = vrot.slane %v1751_v7, 2 }
 0x192   : > { %v1716_v10 = vrot.slane %v1715_v8, 1  ;;  %v1753_v12 = vadd.f32 %v1752_v9, %v1751_v7 }
 0x194   : > { %v1717_v54 = vadd.f32 %v1716_v10, %v1715_v8  ;;  %v1754_v14 = vrot.slane %v1753_v12, 1 }
 0x196   : > { %1718 = vst [vmem:[%s324_s30] sm:$0x1] %v1717_v54  ;;  %v1755_v15 = vadd.f32 %v1754_v14, %v1753_v12 }
 0x198   : > { %1756 = vst [vmem:[%s324_s30 + $0x1] sm:$0x1] %v1755_v15 }
 0x199 PF: > { %s14_s14 = sadd.s32 1, %s2608_s14   ;;  %s2872_s12 = smov %s2604_s13 }
 0x19a   : > { %p11_p5 = scmp.ge.s32.totalorder %s14_s14, 6   ;;  %s2873_s13 = smov %s2875_s15 }
 0x19c   :  { %13 = sbr.rel (!%p11_p5) target bundleno = 2 (0x2), region = 81 }

// kernel: generator_forward.15
= control target key start
LH: loop header
LB: loop body
LE: loop exit
PB: predicated region body
PF: predicated region fallthrough
CT: control target
= control target key end

     0   :  { %s3814_s12 = smov 0   ;;  %s3816_s13 = smov 0   ;;  %s4092_s0 = inlined_call_operand.vmem [shape: bf16[4,512,512], index: 0, kind: input, shape index: {}]   ;;  %s4093_s1 = inlined_call_operand.vmem [shape: bf16[4,512,128], index: 1, kind: input, shape index: {}]   ;;  %s4094_s2 = inlined_call_operand.vmem [shape: bf16[4,512,128], index: 2, kind: output, shape index: {0}]   ;;  %s4095_s3 = inlined_call_operand.vmem [shape: f32[4,8,128], index: 3, kind: output, shape index: {1}]  }
   0x1   :  { %s3818_s14 = smov 0  }
   0x2 LB: > { %s40_s15 = sadd.s32 1, %s3787_s13  ;;  %p2964_p0 = scmp.ge.s32.totalorder %s3791_s14, 1  ;;  %s3791_s14 = sphi %s3818_s14, %s14_s14   ;;  %s3787_s13 = sphi %s3816_s13, %s4097_s13   ;;  %s3783_s12 = sphi %s3814_s12, %s4096_s12  }
   0x3   : > { %p42_p1 = scmp.ge.s32.totalorder %s40_s15, 4  ;;  %p211_p2 = scmp.lt.s32.totalorder %s3791_s14, 5 }
   0x5   : > { %s4099_s15 = smov (%p42_p1, %s40_s15), 0  ;;  %p212_p3 = pnand %p2964_p0, %p211_p2 }
   0x6   : > { %p275_p4 = scmp.lt.s32.totalorder (!%p212_p3), %s3783_s12, 3  ;;  %v3793_v0 = vmov (!%p212_p3), 0  }
   0x7   : > { %215 = sbr.rel (%p212_p3) target bundleno = 563 (0x233), region = 28  ;;  %1482 = vmatprep.subr.bf16.mxu1 (!%p212_p3), %v3793_v0  ;;  %1771 = vmatprep.subr.bf16.mxu0 (!%p212_p3), %v3793_v0 }
   0xe   : > { %s4101_s12 = smov (!%p275_p4, %s3783_s12), 3 }
   0xf   : > { %s3199_s16 = sshll.u32 %s4101_s12, 8  ;;  %s3198_s20 = sshll.u32 %s4101_s12, 10 }
  0x10   : > { %s3842_s19 = scalar_lea.vmem %s4093_s1, %s3199_s16  ;;  %s3878_s23 = scalar_lea.vmem %s4092_s0, %s3198_s20 }
  0x11   : > { %v3545_v1 = vld [vmem:[%s3842_s19] sm:$0xff]   ;;  %v3547_v3 = vld [vmem:[%s3842_s19 + $0x8] sm:$0xff]   ;;  %v3549_v5 = vld [vmem:[%s3842_s19 + $0x10] sm:$0xff]   ;;  %s4031_s26 = scalar_lea.vmem %s4094_s2, %s3199_s16  ;;  %s2971_s27 = sshll.u32 %s4101_s12, 3 }
  0x12   : > { %v3546_v2 = vld [vmem:[%s3842_s19 + $0x80] sm:$0xff]   ;;  %1483 = vmatpush1.bf16.msra.mxu1 %v3545_v1  ;;  %v3548_v4 = vld [vmem:[%s3842_s19 + $0x88] sm:$0xff]   ;;  %v3550_v6 = vld [vmem:[%s3842_s19 + $0x90] sm:$0xff]   ;;  %s324_s30 = scalar_lea.vmem %s4095_s3, %s2971_s27 }
  0x13   : > { %1772 = vmatpush1.bf16.msra.mxu0 %v3546_v2  ;;  %1484 = vmatprep.subr.bf16.mxu1 %v3793_v0  ;;  %v3551_v7 = vld [vmem:[%s3842_s19 + $0x18] sm:$0xff]   ;;  %v3553_v9 = vld [vmem:[%s3842_s19 + $0x20] sm:$0xff]   ;;  %v3555_v11 = vld [vmem:[%s3842_s19 + $0x28] sm:$0xff]  }
  0x14   : > { %1773 = vmatprep.subr.bf16.mxu0 %v3793_v0  ;;  %v3552_v8 = vld [vmem:[%s3842_s19 + $0x98] sm:$0xff]   ;;  %v3554_v10 = vld [vmem:[%s3842_s19 + $0xa0] sm:$0xff]   ;;  %v3556_v12 = vld [vmem:[%s3842_s19 + $0xa8] sm:$0xff]  }
  0x15   : > { %v3557_v13 = vld [vmem:[%s3842_s19 + $0x30] sm:$0xff]   ;;  %v3559_v15 = vld [vmem:[%s3842_s19 + $0x38] sm:$0xff]   ;;  %v3561_v17 = vld [vmem:[%s3842_s19 + $0x40] sm:$0xff]  }
  0x16   : > { %1485 = vmatpush1.bf16.msra.mxu1 %v3547_v3  ;;  %v3558_v14 = vld [vmem:[%s3842_s19 + $0xb0] sm:$0xff]   ;;  %v3560_v16 = vld [vmem:[%s3842_s19 + $0xb8] sm:$0xff]   ;;  %v3562_v18 = vld [vmem:[%s3842_s19 + $0xc0] sm:$0xff]  }
  0x17   : > { %1774 = vmatpush1.bf16.msra.mxu0 %v3548_v4  ;;  %1486 = vmatprep.subr.bf16.mxu1 %v3793_v0  ;;  %v3579_v19 = vld [vmem:[%s3878_s23 + $0x4] ss:$16 sps:$4 sm:$0xff]   ;;  %v3563_v20 = vld [vmem:[%s3842_s19 + $0x48] sm:$0xff]   ;;  %v3567_v25 = vld [vmem:[%s3842_s19 + $0x58] sm:$0xff]  }
  0x18   : > { %1775 = vmatprep.subr.bf16.mxu0 %v3793_v0  ;;  %v3582_v21 = vld [vmem:[%s3878_s23 + $0xc] ss:$16 sps:$4 sm:$0xff]   ;;  %1514 = vmatprep.mubr.bf16.mxu1 %v3579_v19  ;;  %v3565_v23 = vld [vmem:[%s3842_s19 + $0x50] sm:$0xff]   ;;  %v3569_v27 = vld [vmem:[%s3842_s19 + $0x60] sm:$0xff]  }
  0x19   : > { %v3564_v22 = vld [vmem:[%s3842_s19 + $0xc8] sm:$0xff]   ;;  %1803 = vmatprep.mubr.bf16.mxu0 %v3582_v21  ;;  %v3566_v24 = vld [vmem:[%s3842_s19 + $0xd0] sm:$0xff]   ;;  %v3568_v26 = vld [vmem:[%s3842_s19 + $0xd8] sm:$0xff]  }
  0x1a   : > { %1487 = vmatpush1.bf16.msra.mxu1 %v3549_v5  ;;  %v3570_v28 = vld [vmem:[%s3842_s19 + $0xe0] sm:$0xff]   ;;  %v3571_v29 = vld [vmem:[%s3842_s19 + $0x68] sm:$0xff]   ;;  %v3573_v31 = vld [vmem:[%s3842_s19 + $0x70] sm:$0xff]  }
  0x1b   : > { %1776 = vmatpush1.bf16.msra.mxu0 %v3550_v6  ;;  %1488 = vmatprep.subr.bf16.mxu1 %v3793_v0  ;;  %v3572_v30 = vld [vmem:[%s3842_s19 + $0xe8] sm:$0xff]   ;;  %v3574_v32 = vld [vmem:[%s3842_s19 + $0xf0] sm:$0xff]   ;;  %v3575_v33 = vld [vmem:[%s3842_s19 + $0x78] sm:$0xff]  }
  0x1c   : > { %1777 = vmatprep.subr.bf16.mxu0 %v3793_v0  ;;  %v3576_v34 = vld [vmem:[%s3842_s19 + $0xf8] sm:$0xff]   ;;  %v3577_v35 = vld [vmem:[%s3878_s23] ss:$16 sps:$4 sm:$0xff]   ;;  %v3583_v37 = vld [vmem:[%s3878_s23 + $0x24] ss:$16 sps:$4 sm:$0xff]  }
  0x1d   : > { %v3580_v36 = vld [vmem:[%s3878_s23 + $0x8] ss:$16 sps:$4 sm:$0xff]   ;;  %v3585_v38 = vld [vmem:[%s3878_s23 + $0x2c] ss:$16 sps:$4 sm:$0xff]   ;;  %v3587_v39 = vld [vmem:[%s3878_s23 + $0x20] ss:$16 sps:$4 sm:$0xff]  }
  0x1e   : > { %1489 = vmatpush1.bf16.msra.mxu1 %v3551_v7  ;;  %v3588_v40 = vld [vmem:[%s3878_s23 + $0x28] ss:$16 sps:$4 sm:$0xff]   ;;  %v3589_v41 = vld [vmem:[%s3878_s23 + $0x44] ss:$16 sps:$4 sm:$0xff]   ;;  %v3591_v42 = vld [vmem:[%s3878_s23 + $0x4c] ss:$16 sps:$4 sm:$0xff]  }
  0x1f   : > { %1778 = vmatpush1.bf16.msra.mxu0 %v3552_v8  ;;  %1490 = vmatprep.subr.bf16.mxu1 %v3793_v0  ;;  %v3593_v43 = vld [vmem:[%s3878_s23 + $0x40] ss:$16 sps:$4 sm:$0xff]   ;;  %v3594_v44 = vld [vmem:[%s3878_s23 + $0x48] ss:$16 sps:$4 sm:$0xff]   ;;  %v3595_v45 = vld [vmem:[%s3878_s23 + $0x64] ss:$16 sps:$4 sm:$0xff]  }
  0x20   : > { %1779 = vmatprep.subr.bf16.mxu0 %v3793_v0  ;;  %v3597_v46 = vld [vmem:[%s3878_s23 + $0x6c] ss:$16 sps:$4 sm:$0xff]   ;;  %v3599_v47 = vld [vmem:[%s3878_s23 + $0x60] ss:$16 sps:$4 sm:$0xff]   ;;  %v3600_v48 = vld [vmem:[%s3878_s23 + $0x68] ss:$16 sps:$4 sm:$0xff]  }
  0x21   : > { %v3601_v49 = vld [vmem:[%s3878_s23 + $0x84] ss:$16 sps:$4 sm:$0xff]   ;;  %v3603_v50 = vld [vmem:[%s3878_s23 + $0x8c] ss:$16 sps:$4 sm:$0xff]   ;;  %v3605_v51 = vld [vmem:[%s3878_s23 + $0x80] ss:$16 sps:$4 sm:$0xff]  }
  0x22   : > { %1491 = vmatpush1.bf16.msra.mxu1 %v3553_v9  ;;  %v3606_v52 = vld [vmem:[%s3878_s23 + $0x88] ss:$16 sps:$4 sm:$0xff]   ;;  %v3607_v53 = vld [vmem:[%s3878_s23 + $0xa4] ss:$16 sps:$4 sm:$0xff]   ;;  %v3609_v54 = vld [vmem:[%s3878_s23 + $0xac] ss:$16 sps:$4 sm:$0xff]  }
  0x23   : > { %1780 = vmatpush1.bf16.msra.mxu0 %v3554_v10  ;;  %1492 = vmatprep.subr.bf16.mxu1 %v3793_v0  ;;  %v3611_v55 = vld [vmem:[%s3878_s23 + $0xa0] ss:$16 sps:$4 sm:$0xff]   ;;  %v3612_v56 = vld [vmem:[%s3878_s23 + $0xa8] ss:$16 sps:$4 sm:$0xff]   ;;  %v3613_v57 = vld [vmem:[%s3878_s23 + $0xc4] ss:$16 sps:$4 sm:$0xff]  }
  0x24   : > { %1781 = vmatprep.subr.bf16.mxu0 %v3793_v0  ;;  %v3615_v58 = vld [vmem:[%s3878_s23 + $0xcc] ss:$16 sps:$4 sm:$0xff]   ;;  %v3617_v59 = vld [vmem:[%s3878_s23 + $0xc0] ss:$16 sps:$4 sm:$0xff]   ;;  %v3618_v60 = vld [vmem:[%s3878_s23 + $0xc8] ss:$16 sps:$4 sm:$0xff]  }
  0x25   : > { %v3619_v61 = vld [vmem:[%s3878_s23 + $0xe4] ss:$16 sps:$4 sm:$0xff]   ;;  %v3621_v62 = vld [vmem:[%s3878_s23 + $0xec] ss:$16 sps:$4 sm:$0xff]   ;;  %v3623_v63 = vld [vmem:[%s3878_s23 + $0xe0] ss:$16 sps:$4 sm:$0xff]  }
  0x26   : > { %1493 = vmatpush1.bf16.msra.mxu1 %v3555_v11  ;;  %v3625_v1 = vld [vmem:[%s3878_s23 + $0x104] ss:$16 sps:$4 sm:$0xff]   ;;  %v3627_v2 = vld [vmem:[%s3878_s23 + $0x10c] ss:$16 sps:$4 sm:$0xff]   ;;  %v3629_v3 = vld [vmem:[%s3878_s23 + $0x100] ss:$16 sps:$4 sm:$0xff]  }
  0x27   : > { %1782 = vmatpush1.bf16.msra.mxu0 %v3556_v12  ;;  %1494 = vmatprep.subr.bf16.mxu1 %v3793_v0  ;;  %v3630_v4 = vld [vmem:[%s3878_s23 + $0x108] ss:$16 sps:$4 sm:$0xff]   ;;  %v3631_v5 = vld [vmem:[%s3878_s23 + $0x124] ss:$16 sps:$4 sm:$0xff]   ;;  %v3633_v6 = vld [vmem:[%s3878_s23 + $0x12c] ss:$16 sps:$4 sm:$0xff]  }
  0x28   : > { %1783 = vmatprep.subr.bf16.mxu0 %v3793_v0  ;;  %v3635_v7 = vld [vmem:[%s3878_s23 + $0x120] ss:$16 sps:$4 sm:$0xff]   ;;  %v3636_v8 = vld [vmem:[%s3878_s23 + $0x128] ss:$16 sps:$4 sm:$0xff]   ;;  %v3637_v9 = vld [vmem:[%s3878_s23 + $0x144] ss:$16 sps:$4 sm:$0xff]  }
  0x29   : > { %v3639_v10 = vld [vmem:[%s3878_s23 + $0x14c] ss:$16 sps:$4 sm:$0xff]   ;;  %v3641_v11 = vld [vmem:[%s3878_s23 + $0x140] ss:$16 sps:$4 sm:$0xff]   ;;  %v3642_v12 = vld [vmem:[%s3878_s23 + $0x148] ss:$16 sps:$4 sm:$0xff]  }
  0x2a   : > { %1495 = vmatpush1.bf16.msra.mxu1 %v3557_v13  ;;  %v3643_v13 = vld [vmem:[%s3878_s23 + $0x164] ss:$16 sps:$4 sm:$0xff]   ;;  %v3653_v19 = vld [vmem:[%s3878_s23 + $0x180] ss:$16 sps:$4 sm:$0xff]  }
  0x2b   : > { %1784 = vmatpush1.bf16.msra.mxu0 %v3558_v14  ;;  %1496 = vmatprep.subr.bf16.mxu1 %v3793_v0  ;;  %v3645_v14 = vld [vmem:[%s3878_s23 + $0x16c] ss:$16 sps:$4 sm:$0xff]   ;;  %v3655_v21 = vld [vmem:[%s3878_s23 + $0x1a4] ss:$16 sps:$4 sm:$0xff]  }
  0x2c   : > { %1785 = vmatprep.subr.bf16.mxu0 %v3793_v0 }
  0x2e   : > { %1497 = vmatpush1.bf16.msra.mxu1 %v3559_v15  ;;  %v3647_v15 = vld [vmem:[%s3878_s23 + $0x160] ss:$16 sps:$4 sm:$0xff]  }
  0x2f   : > { %1786 = vmatpush1.bf16.msra.mxu0 %v3560_v16  ;;  %1498 = vmatprep.subr.bf16.mxu1 %v3793_v0  ;;  %v3648_v16 = vld [vmem:[%s3878_s23 + $0x168] ss:$16 sps:$4 sm:$0xff]  }
  0x30   : > { %1787 = vmatprep.subr.bf16.mxu0 %v3793_v0 }
  0x32   : > { %1499 = vmatpush1.bf16.msra.mxu1 %v3561_v17  ;;  %v3649_v17 = vld [vmem:[%s3878_s23 + $0x184] ss:$16 sps:$4 sm:$0xff]  }
  0x33   : > { %1788 = vmatpush1.bf16.msra.mxu0 %v3562_v18  ;;  %1500 = vmatprep.subr.bf16.mxu1 %v3793_v0  ;;  %v3651_v18 = vld [vmem:[%s3878_s23 + $0x18c] ss:$16 sps:$4 sm:$0xff]  }
  0x34   : > { %1789 = vmatprep.subr.bf16.mxu0 %v3793_v0 }
  0x36   : > { %1501 = vmatpush1.bf16.msra.mxu1 %v3563_v20  ;;  %v3654_v20 = vld [vmem:[%s3878_s23 + $0x188] ss:$16 sps:$4 sm:$0xff]  }
  0x37   : > { %1790 = vmatpush1.bf16.msra.mxu0 %v3564_v22  ;;  %1502 = vmatprep.subr.bf16.mxu1 %v3793_v0  ;;  %v3657_v22 = vld [vmem:[%s3878_s23 + $0x1ac] ss:$16 sps:$4 sm:$0xff]  }
  0x38   : > { %1791 = vmatprep.subr.bf16.mxu0 %v3793_v0 }
  0x3a   : > { %1503 = vmatpush1.bf16.msra.mxu1 %v3565_v23  ;;  %v3659_v23 = vld [vmem:[%s3878_s23 + $0x1a0] ss:$16 sps:$4 sm:$0xff]  }
  0x3b   : > { %1792 = vmatpush1.bf16.msra.mxu0 %v3566_v24  ;;  %1504 = vmatprep.subr.bf16.mxu1 %v3793_v0  ;;  %v3660_v24 = vld [vmem:[%s3878_s23 + $0x1a8] ss:$16 sps:$4 sm:$0xff]  }
  0x3c   : > { %1793 = vmatprep.subr.bf16.mxu0 %v3793_v0 }
  0x3e   : > { %1505 = vmatpush1.bf16.msra.mxu1 %v3567_v25  ;;  %v3661_v25 = vld [vmem:[%s3878_s23 + $0x1c4] ss:$16 sps:$4 sm:$0xff]  }
  0x3f   : > { %1794 = vmatpush1.bf16.msra.mxu0 %v3568_v26  ;;  %1506 = vmatprep.subr.bf16.mxu1 %v3793_v0  ;;  %v3663_v26 = vld [vmem:[%s3878_s23 + $0x1cc] ss:$16 sps:$4 sm:$0xff]  }
  0x40   : > { %1795 = vmatprep.subr.bf16.mxu0 %v3793_v0 }
  0x42   : > { %1507 = vmatpush1.bf16.msra.mxu1 %v3569_v27  ;;  %v3665_v27 = vld [vmem:[%s3878_s23 + $0x1c0] ss:$16 sps:$4 sm:$0xff]  }
  0x43   : > { %1796 = vmatpush1.bf16.msra.mxu0 %v3570_v28  ;;  %1508 = vmatprep.subr.bf16.mxu1 %v3793_v0  ;;  %v3666_v28 = vld [vmem:[%s3878_s23 + $0x1c8] ss:$16 sps:$4 sm:$0xff]  }
  0x44   : > { %1797 = vmatprep.subr.bf16.mxu0 %v3793_v0 }
  0x46   : > { %1509 = vmatpush1.bf16.msra.mxu1 %v3571_v29  ;;  %v3667_v29 = vld [vmem:[%s3878_s23 + $0x1e4] ss:$16 sps:$4 sm:$0xff]  }
  0x47   : > { %1798 = vmatpush1.bf16.msra.mxu0 %v3572_v30  ;;  %1510 = vmatprep.subr.bf16.mxu1 %v3793_v0  ;;  %v3669_v30 = vld [vmem:[%s3878_s23 + $0x1ec] ss:$16 sps:$4 sm:$0xff]  }
  0x48   : > { %1799 = vmatprep.subr.bf16.mxu0 %v3793_v0 }
  0x4a   : > { %1511 = vmatpush1.bf16.msra.mxu1 %v3573_v31  ;;  %v3671_v31 = vld [vmem:[%s3878_s23 + $0x1e0] ss:$16 sps:$4 sm:$0xff]  }
  0x4b   : > { %1800 = vmatpush1.bf16.msra.mxu0 %v3574_v32  ;;  %1512 = vmatprep.subr.bf16.mxu1 %v3793_v0  ;;  %v3672_v32 = vld [vmem:[%s3878_s23 + $0x1e8] ss:$16 sps:$4 sm:$0xff]  }
  0x4c   : > { %1801 = vmatprep.subr.bf16.mxu0 %v3793_v0  ;;  %v3624_v0 = vld [vmem:[%s3878_s23 + $0xe8] ss:$16 sps:$4 sm:$0xff]  }
  0x4e   : > { %1513 = vmatpush1.bf16.msra.mxu1 %v3575_v33  ;;  %v3673_v33 = vld [vmem:[%s3878_s23 + $0x204] ss:$16 sps:$4 sm:$0xff]  }
  0x4f   : > { %1802 = vmatpush1.bf16.msra.mxu0 %v3576_v34  ;;  %v3675_v34 = vld [vmem:[%s3878_s23 + $0x20c] ss:$16 sps:$4 sm:$0xff]  }
  0x51   : > { %1515 = vmatmul.mubr.bf16.vlgmr.msra.gmra.mrb[0].mxu1 %v3577_v35  ;;  %v3677_v35 = vld [vmem:[%s3878_s23 + $0x200] ss:$16 sps:$4 sm:$0xff]  }
  0x52   : > { %1804 = vmatmul.mubr.bf16.vlgmr.msra.gmra.mrb[0].mxu0 %v3580_v36  ;;  %1522 = vmatprep.mubr.bf16.mxu1 %v3583_v37  ;;  %v3678_v36 = vld [vmem:[%s3878_s23 + $0x208] ss:$16 sps:$4 sm:$0xff]   ;;  %v3679_v37 = vld [vmem:[%s3878_s23 + $0x224] ss:$16 sps:$4 sm:$0xff]  }
  0x53   : > { %1811 = vmatprep.mubr.bf16.mxu0 %v3585_v38  ;;  %v3681_v38 = vld [vmem:[%s3878_s23 + $0x22c] ss:$16 sps:$4 sm:$0xff]  }
  0x59   : > { %1523 = vmatmul.mubr.bf16.gmra.mrb[4].mxu1 %v3587_v39  ;;  %v3683_v39 = vld [vmem:[%s3878_s23 + $0x220] ss:$16 sps:$4 sm:$0xff]  }
  0x5a   : > { %1812 = vmatmul.mubr.bf16.gmra.mrb[4].mxu0 %v3588_v40  ;;  %1530 = vmatprep.mubr.bf16.mxu1 %v3589_v41  ;;  %v3684_v40 = vld [vmem:[%s3878_s23 + $0x228] ss:$16 sps:$4 sm:$0xff]   ;;  %v3685_v41 = vld [vmem:[%s3878_s23 + $0x244] ss:$16 sps:$4 sm:$0xff]  }
  0x5b   : > { %1819 = vmatprep.mubr.bf16.mxu0 %v3591_v42  ;;  %v3687_v42 = vld [vmem:[%s3878_s23 + $0x24c] ss:$16 sps:$4 sm:$0xff]  }
  0x61   : > { %1531 = vmatmul.mubr.bf16.gmra.mrb[8].mxu1 %v3593_v43  ;;  %v3689_v43 = vld [vmem:[%s3878_s23 + $0x240] ss:$16 sps:$4 sm:$0xff]  }
  0x62   : > { %1820 = vmatmul.mubr.bf16.gmra.mrb[8].mxu0 %v3594_v44  ;;  %1538 = vmatprep.mubr.bf16.mxu1 %v3595_v45  ;;  %v3690_v44 = vld [vmem:[%s3878_s23 + $0x248] ss:$16 sps:$4 sm:$0xff]   ;;  %v3691_v45 = vld [vmem:[%s3878_s23 + $0x264] ss:$16 sps:$4 sm:$0xff]  }
  0x63   : > { %1827 = vmatprep.mubr.bf16.mxu0 %v3597_v46  ;;  %v3693_v46 = vld [vmem:[%s3878_s23 + $0x26c] ss:$16 sps:$4 sm:$0xff]  }
  0x69   : > { %1539 = vmatmul.mubr.bf16.gmra.mrb[12].mxu1 %v3599_v47  ;;  %v3695_v47 = vld [vmem:[%s3878_s23 + $0x260] ss:$16 sps:$4 sm:$0xff]  }
  0x6a   : > { %1828 = vmatmul.mubr.bf16.gmra.mrb[12].mxu0 %v3600_v48  ;;  %1546 = vmatprep.mubr.bf16.mxu1 %v3601_v49  ;;  %v3696_v48 = vld [vmem:[%s3878_s23 + $0x268] ss:$16 sps:$4 sm:$0xff]   ;;  %v3697_v49 = vld [vmem:[%s3878_s23 + $0x284] ss:$16 sps:$4 sm:$0xff]  }
  0x6b   : > { %1835 = vmatprep.mubr.bf16.mxu0 %v3603_v50  ;;  %v3699_v50 = vld [vmem:[%s3878_s23 + $0x28c] ss:$16 sps:$4 sm:$0xff]  }
  0x71   : > { %1547 = vmatmul.mubr.bf16.gmra.mrb[16].mxu1 %v3605_v51  ;;  %v3701_v51 = vld [vmem:[%s3878_s23 + $0x280] ss:$16 sps:$4 sm:$0xff]  }
  0x72   : > { %1836 = vmatmul.mubr.bf16.gmra.mrb[16].mxu0 %v3606_v52  ;;  %1554 = vmatprep.mubr.bf16.mxu1 %v3607_v53  ;;  %v3702_v52 = vld [vmem:[%s3878_s23 + $0x288] ss:$16 sps:$4 sm:$0xff]   ;;  %v3703_v53 = vld [vmem:[%s3878_s23 + $0x2a4] ss:$16 sps:$4 sm:$0xff]  }
  0x73   : > { %1843 = vmatprep.mubr.bf16.mxu0 %v3609_v54  ;;  %v3705_v54 = vld [vmem:[%s3878_s23 + $0x2ac] ss:$16 sps:$4 sm:$0xff]  }
  0x79   : > { %1555 = vmatmul.mubr.bf16.gmra.mrb[20].mxu1 %v3611_v55  ;;  %v3707_v55 = vld [vmem:[%s3878_s23 + $0x2a0] ss:$16 sps:$4 sm:$0xff]  }
  0x7a   : > { %1844 = vmatmul.mubr.bf16.gmra.mrb[20].mxu0 %v3612_v56  ;;  %1562 = vmatprep.mubr.bf16.mxu1 %v3613_v57  ;;  %v3708_v56 = vld [vmem:[%s3878_s23 + $0x2a8] ss:$16 sps:$4 sm:$0xff]   ;;  %v3709_v57 = vld [vmem:[%s3878_s23 + $0x2c4] ss:$16 sps:$4 sm:$0xff]  }
  0x7b   : > { %1851 = vmatprep.mubr.bf16.mxu0 %v3615_v58  ;;  %v3711_v58 = vld [vmem:[%s3878_s23 + $0x2cc] ss:$16 sps:$4 sm:$0xff]  }
  0x81   : > { %1563 = vmatmul.mubr.bf16.gmra.mrb[24].mxu1 %v3617_v59  ;;  %v3713_v59 = vld [vmem:[%s3878_s23 + $0x2c0] ss:$16 sps:$4 sm:$0xff]  }
  0x82   : > { %1852 = vmatmul.mubr.bf16.gmra.mrb[24].mxu0 %v3618_v60  ;;  %1570 = vmatprep.mubr.bf16.mxu1 %v3619_v61  ;;  %v3714_v60 = vld [vmem:[%s3878_s23 + $0x2c8] ss:$16 sps:$4 sm:$0xff]   ;;  %v3715_v61 = vld [vmem:[%s3878_s23 + $0x2e4] ss:$16 sps:$4 sm:$0xff]  }
  0x83   : > { %1859 = vmatprep.mubr.bf16.mxu0 %v3621_v62  ;;  %v3717_v62 = vld [vmem:[%s3878_s23 + $0x2ec] ss:$16 sps:$4 sm:$0xff]  }
  0x89   : > { %1571 = vmatmul.mubr.bf16.gmra.mrb[28].mxu1 %v3623_v63  ;;  %v3719_v63 = vld [vmem:[%s3878_s23 + $0x2e0] ss:$16 sps:$4 sm:$0xff]  }
  0x8a   : > { %1860 = vmatmul.mubr.bf16.gmra.mrb[28].mxu0 %v3624_v0  ;;  %1578 = vmatprep.mubr.bf16.mxu1 %v3625_v1  ;;  %v3720_v0 = vld [vmem:[%s3878_s23 + $0x2e8] ss:$16 sps:$4 sm:$0xff]   ;;  %v3721_v1 = vld [vmem:[%s3878_s23 + $0x304] ss:$16 sps:$4 sm:$0xff]  }
  0x8b   : > { %1867 = vmatprep.mubr.bf16.mxu0 %v3627_v2  ;;  %v3723_v2 = vld [vmem:[%s3878_s23 + $0x30c] ss:$16 sps:$4 sm:$0xff]  }
  0x91   : > { %1579 = vmatmul.mubr.bf16.gmra.mrb[32].mxu1 %v3629_v3  ;;  %v3725_v3 = vld [vmem:[%s3878_s23 + $0x300] ss:$16 sps:$4 sm:$0xff]  }
  0x92   : > { %1868 = vmatmul.mubr.bf16.gmra.mrb[32].mxu0 %v3630_v4  ;;  %1586 = vmatprep.mubr.bf16.mxu1 %v3631_v5  ;;  %v3726_v4 = vld [vmem:[%s3878_s23 + $0x308] ss:$16 sps:$4 sm:$0xff]   ;;  %v3727_v5 = vld [vmem:[%s3878_s23 + $0x324] ss:$16 sps:$4 sm:$0xff]  }
  0x93   : > { %1875 = vmatprep.mubr.bf16.mxu0 %v3633_v6  ;;  %v3729_v6 = vld [vmem:[%s3878_s23 + $0x32c] ss:$16 sps:$4 sm:$0xff]  }
  0x99   : > { %1587 = vmatmul.mubr.bf16.gmra.mrb[36].mxu1 %v3635_v7  ;;  %v3731_v7 = vld [vmem:[%s3878_s23 + $0x320] ss:$16 sps:$4 sm:$0xff]  }
  0x9a   : > { %1876 = vmatmul.mubr.bf16.gmra.mrb[36].mxu0 %v3636_v8  ;;  %1594 = vmatprep.mubr.bf16.mxu1 %v3637_v9  ;;  %v3732_v8 = vld [vmem:[%s3878_s23 + $0x328] ss:$16 sps:$4 sm:$0xff]   ;;  %v3733_v9 = vld [vmem:[%s3878_s23 + $0x344] ss:$16 sps:$4 sm:$0xff]  }
  0x9b   : > { %1883 = vmatprep.mubr.bf16.mxu0 %v3639_v10  ;;  %v3735_v10 = vld [vmem:[%s3878_s23 + $0x34c] ss:$16 sps:$4 sm:$0xff]  }
  0xa1   : > { %1595 = vmatmul.mubr.bf16.gmra.mrb[40].mxu1 %v3641_v11  ;;  %v3737_v11 = vld [vmem:[%s3878_s23 + $0x340] ss:$16 sps:$4 sm:$0xff]  }
  0xa2   : > { %1884 = vmatmul.mubr.bf16.gmra.mrb[40].mxu0 %v3642_v12  ;;  %1602 = vmatprep.mubr.bf16.mxu1 %v3643_v13  ;;  %v3738_v12 = vld [vmem:[%s3878_s23 + $0x348] ss:$16 sps:$4 sm:$0xff]   ;;  %v3739_v13 = vld [vmem:[%s3878_s23 + $0x364] ss:$16 sps:$4 sm:$0xff]  }
  0xa3   : > { %1891 = vmatprep.mubr.bf16.mxu0 %v3645_v14  ;;  %v3741_v14 = vld [vmem:[%s3878_s23 + $0x36c] ss:$16 sps:$4 sm:$0xff]  }
  0xa9   : > { %1603 = vmatmul.mubr.bf16.gmra.mrb[44].mxu1 %v3647_v15 }
  0xaa   : > { %1892 = vmatmul.mubr.bf16.gmra.mrb[44].mxu0 %v3648_v16  ;;  %1610 = vmatprep.mubr.bf16.mxu1 %v3649_v17 }
  0xab   : > { %1899 = vmatprep.mubr.bf16.mxu0 %v3651_v18  ;;  %v3743_v18 = vld [vmem:[%s3878_s23 + $0x360] ss:$16 sps:$4 sm:$0xff]  }
  0xb1   : > { %1611 = vmatmul.mubr.bf16.gmra.mrb[48].mxu1 %v3653_v19 }
  0xb2   : > { %1900 = vmatmul.mubr.bf16.gmra.mrb[48].mxu0 %v3654_v20  ;;  %1618 = vmatprep.mubr.bf16.mxu1 %v3655_v21 }
  0xb3   : > { %1907 = vmatprep.mubr.bf16.mxu0 %v3657_v22  ;;  %v3744_v22 = vld [vmem:[%s3878_s23 + $0x368] ss:$16 sps:$4 sm:$0xff]  }
  0xb9   : > { %1619 = vmatmul.mubr.bf16.gmra.mrb[52].mxu1 %v3659_v23  ;;  %v3745_v23 = vld [vmem:[%s3878_s23 + $0x384] ss:$16 sps:$4 sm:$0xff]  }
  0xba   : > { %1908 = vmatmul.mubr.bf16.gmra.mrb[52].mxu0 %v3660_v24  ;;  %1626 = vmatprep.mubr.bf16.mxu1 %v3661_v25 }
  0xbb   : > { %1915 = vmatprep.mubr.bf16.mxu0 %v3663_v26  ;;  %v3747_v26 = vld [vmem:[%s3878_s23 + $0x38c] ss:$16 sps:$4 sm:$0xff]  }
  0xc1   : > { %1627 = vmatmul.mubr.bf16.gmra.mrb[56].mxu1 %v3665_v27 }
  0xc2   : > { %1916 = vmatmul.mubr.bf16.gmra.mrb[56].mxu0 %v3666_v28  ;;  %1634 = vmatprep.mubr.bf16.mxu1 %v3667_v29 }
  0xc3   : > { %1923 = vmatprep.mubr.bf16.mxu0 %v3669_v30 }
  0xc9   : > { %1635 = vmatmul.mubr.bf16.gmra.mrb[60].mxu1 %v3671_v31 }
  0xca   : > { %1924 = vmatmul.mubr.bf16.gmra.mrb[60].mxu0 %v3672_v32  ;;  %1642 = vmatprep.mubr.bf16.mxu1 %v3673_v33 }
  0xcb   : > { %1931 = vmatprep.mubr.bf16.mxu0 %v3675_v34 }
  0xd1   : > { %1643 = vmatmul.mubr.bf16.gmra.mrb[64].mxu1 %v3677_v35 }
  0xd2   : > { %1932 = vmatmul.mubr.bf16.gmra.mrb[64].mxu0 %v3678_v36  ;;  %1650 = vmatprep.mubr.bf16.mxu1 %v3679_v37  ;;  %v3749_v37 = vld [vmem:[%s3878_s23 + $0x380] ss:$16 sps:$4 sm:$0xff]  }
  0xd3   : > { %1939 = vmatprep.mubr.bf16.mxu0 %v3681_v38 }
  0xd9   : > { %1651 = vmatmul.mubr.bf16.gmra.mrb[68].mxu1 %v3683_v39 }
  0xda   : > { %1940 = vmatmul.mubr.bf16.gmra.mrb[68].mxu0 %v3684_v40  ;;  %1658 = vmatprep.mubr.bf16.mxu1 %v3685_v41  ;;  %v3750_v41 = vld [vmem:[%s3878_s23 + $0x388] ss:$16 sps:$4 sm:$0xff]  }
  0xdb   : > { %1947 = vmatprep.mubr.bf16.mxu0 %v3687_v42 }
  0xe1   : > { %1659 = vmatmul.mubr.bf16.gmra.mrb[72].mxu1 %v3689_v43 }
  0xe2   : > { %1948 = vmatmul.mubr.bf16.gmra.mrb[72].mxu0 %v3690_v44  ;;  %1666 = vmatprep.mubr.bf16.mxu1 %v3691_v45  ;;  %v3751_v44 = vld [vmem:[%s3878_s23 + $0x3a4] ss:$16 sps:$4 sm:$0xff]   ;;  %v3753_v45 = vld [vmem:[%s3878_s23 + $0x3ac] ss:$16 sps:$4 sm:$0xff]  }
  0xe3   : > { %1955 = vmatprep.mubr.bf16.mxu0 %v3693_v46 }
  0xe9   : > { %1667 = vmatmul.mubr.bf16.gmra.mrb[76].mxu1 %v3695_v47 }
  0xea   : > { %1956 = vmatmul.mubr.bf16.gmra.mrb[76].mxu0 %v3696_v48  ;;  %1674 = vmatprep.mubr.bf16.mxu1 %v3697_v49 }
  0xeb   : > { %1963 = vmatprep.mubr.bf16.mxu0 %v3699_v50 }
  0xf1   : > { %1675 = vmatmul.mubr.bf16.gmra.mrb[80].mxu1 %v3701_v51 }
  0xf2   : > { %1964 = vmatmul.mubr.bf16.gmra.mrb[80].mxu0 %v3702_v52  ;;  %1682 = vmatprep.mubr.bf16.mxu1 %v3703_v53 }
  0xf3   : > { %1971 = vmatprep.mubr.bf16.mxu0 %v3705_v54 }
  0xf9   : > { %1683 = vmatmul.mubr.bf16.gmra.mrb[84].mxu1 %v3707_v55 }
  0xfa   : > { %1972 = vmatmul.mubr.bf16.gmra.mrb[84].mxu0 %v3708_v56  ;;  %1690 = vmatprep.mubr.bf16.mxu1 %v3709_v57 }
  0xfb   : > { %1979 = vmatprep.mubr.bf16.mxu0 %v3711_v58  ;;  %v3755_v58 = vld [vmem:[%s3878_s23 + $0x3a0] ss:$16 sps:$4 sm:$0xff]  }
 0x101   : > { %1691 = vmatmul.mubr.bf16.gmra.mrb[88].mxu1 %v3713_v59 }
 0x102   : > { %1980 = vmatmul.mubr.bf16.gmra.mrb[88].mxu0 %v3714_v60  ;;  %1698 = vmatprep.mubr.bf16.mxu1 %v3715_v61 }
 0x103   : > { %1987 = vmatprep.mubr.bf16.mxu0 %v3717_v62  ;;  %v3756_v62 = vld [vmem:[%s3878_s23 + $0x3a8] ss:$16 sps:$4 sm:$0xff]  }
 0x109   : > { %1699 = vmatmul.mubr.bf16.gmra.mrb[92].mxu1 %v3719_v63 }
 0x10a   : > { %1988 = vmatmul.mubr.bf16.gmra.mrb[92].mxu0 %v3720_v0  ;;  %1706 = vmatprep.mubr.bf16.mxu1 %v3721_v1  ;;  %v3757_v1 = vld [vmem:[%s3878_s23 + $0x3c4] ss:$16 sps:$4 sm:$0xff]  }
 0x10b   : > { %1995 = vmatprep.mubr.bf16.mxu0 %v3723_v2  ;;  %v3759_v2 = vld [vmem:[%s3878_s23 + $0x3cc] ss:$16 sps:$4 sm:$0xff]  }
 0x111   : > { %1707 = vmatmul.mubr.bf16.gmra.mrb[96].mxu1 %v3725_v3 }
 0x112   : > { %1996 = vmatmul.mubr.bf16.gmra.mrb[96].mxu0 %v3726_v4  ;;  %1714 = vmatprep.mubr.bf16.mxu1 %v3727_v5 }
 0x113   : > { %2003 = vmatprep.mubr.bf16.mxu0 %v3729_v6 }
 0x119   : > { %1715 = vmatmul.mubr.bf16.gmra.mrb[100].mxu1 %v3731_v7 }
 0x11a   : > { %2004 = vmatmul.mubr.bf16.gmra.mrb[100].mxu0 %v3732_v8  ;;  %1722 = vmatprep.mubr.bf16.mxu1 %v3733_v9 }
 0x11b   : > { %2011 = vmatprep.mubr.bf16.mxu0 %v3735_v10 }
 0x121   : > { %1723 = vmatmul.mubr.bf16.gmra.mrb[104].mxu1 %v3737_v11 }
 0x122   : > { %2012 = vmatmul.mubr.bf16.gmra.mrb[104].mxu0 %v3738_v12  ;;  %1730 = vmatprep.mubr.bf16.mxu1 %v3739_v13 }
 0x123   : > { %2019 = vmatprep.mubr.bf16.mxu0 %v3741_v14 }
 0x124   : > { %v1516_v15 = vpop.f32.mrb[0].mxu1 }
 0x125   : > { %v1805_v16 = vpop.f32.mrb[0].mxu0  ;;  %v1518_v17 = vpop.f32.mrb[1].mxu1 }
 0x126   : > { %v1806_v19 = vadd.f32 %v1805_v16, %v1516_v15  ;;  %v1807_v20 = vpop.f32.mrb[1].mxu0  ;;  %v1519_v21 = vpop.f32.mrb[2].mxu1  ;;  %v3761_v15 = vld [vmem:[%s3878_s23 + $0x3c0] ss:$16 sps:$4 sm:$0xff]  }
 0x127   : > { %v1808_v24 = vpop.f32.mrb[2].mxu0  ;;  %v1521_v25 = vpop.f32.mrb[3].mxu1 }
 0x128   : > { %v1809_v27 = vadd.f32 %v1808_v24, %v1519_v21  ;;  %v1810_v28 = vpop.f32.mrb[3].mxu0  ;;  %v2325_v29 = vmul.f32 %v1806_v19, %v1806_v19 }
 0x129   : > { %1731 = vmatmul.mubr.bf16.gmra.mrb[108].mxu1 %v3743_v18 }
 0x12a   : > { %v2255_v30 = vadd.f32 %v1809_v27, %v1806_v19  ;;  %v2326_v31 = vmul.f32 %v1809_v27, %v1809_v27  ;;  %v3268_v32 = vpack.c.bf16 %v1809_v27, %v1806_v19  ;;  %2020 = vmatmul.mubr.bf16.gmra.mrb[108].mxu0 %v3744_v22  ;;  %1738 = vmatprep.mubr.bf16.mxu1 %v3745_v23  ;;  %v3762_v19 = vld [vmem:[%s3878_s23 + $0x3c8] ss:$16 sps:$4 sm:$0xff]   ;;  %v3763_v22 = vld [vmem:[%s3878_s23 + $0x3e4] ss:$16 sps:$4 sm:$0xff]   ;;  %v3765_v23 = vld [vmem:[%s3878_s23 + $0x3ec] ss:$16 sps:$4 sm:$0xff]  }
 0x12b   : > { %2027 = vmatprep.mubr.bf16.mxu0 %v3747_v26 }
 0x12c   : > { %v2389_v33 = vadd.f32 %v2326_v31, %v2325_v29  ;;  %3269 = vst [vmem:[%s4031_s26] sm:$0xff] %v3268_v32   ;;  %v1524_v34 = vpop.f32.mrb[4].mxu1 }
 0x12d   : > { %v1813_v35 = vpop.f32.mrb[4].mxu0  ;;  %v1526_v36 = vpop.f32.mrb[5].mxu1 }
 0x12e   : > { %v1814_v38 = vadd.f32 %v1813_v35, %v1524_v34  ;;  %v1815_v39 = vpop.f32.mrb[5].mxu0  ;;  %v1527_v40 = vpop.f32.mrb[6].mxu1  ;;  %v3767_v36 = vld [vmem:[%s3878_s23 + $0x3e0] ss:$16 sps:$4 sm:$0xff]  }
 0x12f   : > { %v1816_v42 = vpop.f32.mrb[6].mxu0  ;;  %v1529_v43 = vpop.f32.mrb[7].mxu1 }
 0x130   : > { %v2256_v46 = vadd.f32 %v2255_v30, %v1814_v38  ;;  %v2327_v47 = vmul.f32 %v1814_v38, %v1814_v38  ;;  %v1817_v48 = vadd.f32 %v1816_v42, %v1527_v40  ;;  %v1818_v49 = vpop.f32.mrb[7].mxu0  ;;  %v3768_v40 = vld [vmem:[%s3878_s23 + $0x3e8] ss:$16 sps:$4 sm:$0xff]  }
 0x131   : > { %1739 = vmatmul.mubr.bf16.gmra.mrb[112].mxu1 %v3749_v37 }
 0x132   : > { %v2390_v50 = vadd.f32 %v2389_v33, %v2327_v47  ;;  %v2257_v51 = vadd.f32 %v2256_v46, %v1817_v48  ;;  %v2328_v52 = vmul.f32 %v1817_v48, %v1817_v48  ;;  %v3273_v53 = vpack.c.bf16 %v1817_v48, %v1814_v38  ;;  %2028 = vmatmul.mubr.bf16.gmra.mrb[112].mxu0 %v3750_v41 }
 0x133   : > { %1746 = vmatprep.mubr.bf16.mxu1 %v3751_v44  ;;  %2035 = vmatprep.mubr.bf16.mxu0 %v3753_v45 }
 0x134   : > { %v2391_v54 = vadd.f32 %v2390_v50, %v2328_v52  ;;  %3425 = vst [vmem:[%s4031_s26 + $0x8] sm:$0xff] %v3273_v53   ;;  %v1532_v55 = vpop.f32.mrb[8].mxu1 }
 0x135   : > { %v1821_v56 = vpop.f32.mrb[8].mxu0  ;;  %v1534_v57 = vpop.f32.mrb[9].mxu1 }
 0x136   : > { %v1822_v59 = vadd.f32 %v1821_v56, %v1532_v55  ;;  %v1823_v60 = vpop.f32.mrb[9].mxu0  ;;  %v1535_v61 = vpop.f32.mrb[10].mxu1 }
 0x137   : > { %v1824_v63 = vpop.f32.mrb[10].mxu0  ;;  %v1537_v0 = vpop.f32.mrb[11].mxu1 }
 0x138   : > { %v2258_v3 = vadd.f32 %v2257_v51, %v1822_v59  ;;  %v2329_v4 = vmul.f32 %v1822_v59, %v1822_v59  ;;  %v1825_v5 = vadd.f32 %v1824_v63, %v1535_v61  ;;  %v1826_v6 = vpop.f32.mrb[11].mxu0 }
 0x139   : > { %1747 = vmatmul.mubr.bf16.gmra.mrb[116].mxu1 %v3755_v58 }
 0x13a   : > { %v2392_v7 = vadd.f32 %v2391_v54, %v2329_v4  ;;  %v2259_v8 = vadd.f32 %v2258_v3, %v1825_v5  ;;  %v2330_v9 = vmul.f32 %v1825_v5, %v1825_v5  ;;  %v3278_v10 = vpack.c.bf16 %v1825_v5, %v1822_v59  ;;  %2036 = vmatmul.mubr.bf16.gmra.mrb[116].mxu0 %v3756_v62 }
 0x13b   : > { %1754 = vmatprep.mubr.bf16.mxu1 %v3757_v1  ;;  %2043 = vmatprep.mubr.bf16.mxu0 %v3759_v2 }
 0x13c   : > { %v2393_v11 = vadd.f32 %v2392_v7, %v2330_v9  ;;  %3426 = vst [vmem:[%s4031_s26 + $0x10] sm:$0xff] %v3278_v10   ;;  %v1540_v12 = vpop.f32.mrb[12].mxu1 }
 0x13d   : > { %v1829_v13 = vpop.f32.mrb[12].mxu0  ;;  %v1542_v14 = vpop.f32.mrb[13].mxu1 }
 0x13e   : > { %v1830_v16 = vadd.f32 %v1829_v13, %v1540_v12  ;;  %v1831_v17 = vpop.f32.mrb[13].mxu0  ;;  %v1543_v18 = vpop.f32.mrb[14].mxu1 }
 0x13f   : > { %v1832_v20 = vpop.f32.mrb[14].mxu0  ;;  %v1545_v21 = vpop.f32.mrb[15].mxu1 }
 0x140   : > { %v2260_v24 = vadd.f32 %v2259_v8, %v1830_v16  ;;  %v2331_v25 = vmul.f32 %v1830_v16, %v1830_v16  ;;  %v1833_v26 = vadd.f32 %v1832_v20, %v1543_v18  ;;  %v1834_v27 = vpop.f32.mrb[15].mxu0 }
 0x141   : > { %1755 = vmatmul.mubr.bf16.gmra.mrb[120].mxu1 %v3761_v15 }
 0x142   : > { %v2394_v28 = vadd.f32 %v2393_v11, %v2331_v25  ;;  %v2261_v29 = vadd.f32 %v2260_v24, %v1833_v26  ;;  %v2332_v30 = vmul.f32 %v1833_v26, %v1833_v26  ;;  %v3283_v31 = vpack.c.bf16 %v1833_v26, %v1830_v16  ;;  %2044 = vmatmul.mubr.bf16.gmra.mrb[120].mxu0 %v3762_v19 }
 0x143   : > { %1762 = vmatprep.mubr.bf16.mxu1 %v3763_v22  ;;  %2051 = vmatprep.mubr.bf16.mxu0 %v3765_v23 }
 0x144   : > { %v2395_v32 = vadd.f32 %v2394_v28, %v2332_v30  ;;  %3427 = vst [vmem:[%s4031_s26 + $0x18] sm:$0xff] %v3283_v31   ;;  %v1548_v33 = vpop.f32.mrb[16].mxu1 }
 0x145   : > { %v1837_v34 = vpop.f32.mrb[16].mxu0  ;;  %v1550_v35 = vpop.f32.mrb[17].mxu1 }
 0x146   : > { %v1838_v37 = vadd.f32 %v1837_v34, %v1548_v33  ;;  %v1839_v38 = vpop.f32.mrb[17].mxu0  ;;  %v1551_v39 = vpop.f32.mrb[18].mxu1 }
 0x147   : > { %v1840_v41 = vpop.f32.mrb[18].mxu0  ;;  %v1553_v42 = vpop.f32.mrb[19].mxu1 }
 0x148   : > { %v2262_v43 = vadd.f32 %v2261_v29, %v1838_v37  ;;  %v2333_v44 = vmul.f32 %v1838_v37, %v1838_v37  ;;  %v1841_v45 = vadd.f32 %v1840_v41, %v1551_v39  ;;  %v1842_v46 = vpop.f32.mrb[19].mxu0 }
 0x149   : > { %1763 = vmatmul.mubr.bf16.gmra.mrb[124].mxu1 %v3767_v36 }
 0x14a   : > { %v2396_v47 = vadd.f32 %v2395_v32, %v2333_v44  ;;  %v2263_v48 = vadd.f32 %v2262_v43, %v1841_v45  ;;  %v2334_v49 = vmul.f32 %v1841_v45, %v1841_v45  ;;  %v3288_v50 = vpack.c.bf16 %v1841_v45, %v1838_v37  ;;  %2052 = vmatmul.mubr.bf16.gmra.mrb[124].mxu0 %v3768_v40 }
 0x14c   : > { %v2397_v51 = vadd.f32 %v2396_v47, %v2334_v49  ;;  %3428 = vst [vmem:[%s4031_s26 + $0x20] sm:$0xff] %v3288_v50   ;;  %v1556_v52 = vpop.f32.mrb[20].mxu1 }
 0x14d   : > { %v1845_v53 = vpop.f32.mrb[20].mxu0  ;;  %v1558_v54 = vpop.f32.mrb[21].mxu1 }
 0x14e   : > { %v1846_v55 = vadd.f32 %v1845_v53, %v1556_v52  ;;  %v1847_v56 = vpop.f32.mrb[21].mxu0  ;;  %v1559_v57 = vpop.f32.mrb[22].mxu1 }
 0x14f   : > { %v1848_v58 = vpop.f32.mrb[22].mxu0  ;;  %v1561_v59 = vpop.f32.mrb[23].mxu1 }
 0x150   : > { %v2264_v60 = vadd.f32 %v2263_v48, %v1846_v55  ;;  %v2335_v61 = vmul.f32 %v1846_v55, %v1846_v55  ;;  %v1849_v62 = vadd.f32 %v1848_v58, %v1559_v57  ;;  %v1850_v63 = vpop.f32.mrb[23].mxu0 }
 0x152   : > { %v2398_v0 = vadd.f32 %v2397_v51, %v2335_v61  ;;  %v2265_v1 = vadd.f32 %v2264_v60, %v1849_v62  ;;  %v2336_v2 = vmul.f32 %v1849_v62, %v1849_v62  ;;  %v3293_v3 = vpack.c.bf16 %v1849_v62, %v1846_v55 }
 0x154   : > { %v2399_v4 = vadd.f32 %v2398_v0, %v2336_v2  ;;  %3429 = vst [vmem:[%s4031_s26 + $0x28] sm:$0xff] %v3293_v3   ;;  %v1564_v5 = vpop.f32.mrb[24].mxu1 }
 0x155   : > { %v1853_v6 = vpop.f32.mrb[24].mxu0  ;;  %v1566_v7 = vpop.f32.mrb[25].mxu1 }
 0x156   : > { %v1854_v8 = vadd.f32 %v1853_v6, %v1564_v5  ;;  %v1855_v9 = vpop.f32.mrb[25].mxu0  ;;  %v1567_v10 = vpop.f32.mrb[26].mxu1 }
 0x157   : > { %v1856_v11 = vpop.f32.mrb[26].mxu0  ;;  %v1569_v12 = vpop.f32.mrb[27].mxu1 }
 0x158   : > { %v2266_v13 = vadd.f32 %v2265_v1, %v1854_v8  ;;  %v2337_v14 = vmul.f32 %v1854_v8, %v1854_v8  ;;  %v1857_v15 = vadd.f32 %v1856_v11, %v1567_v10  ;;  %v1858_v16 = vpop.f32.mrb[27].mxu0 }
 0x15a   : > { %v2400_v17 = vadd.f32 %v2399_v4, %v2337_v14  ;;  %v2267_v18 = vadd.f32 %v2266_v13, %v1857_v15  ;;  %v2338_v19 = vmul.f32 %v1857_v15, %v1857_v15  ;;  %v3298_v20 = vpack.c.bf16 %v1857_v15, %v1854_v8 }
 0x15c   : > { %v2401_v21 = vadd.f32 %v2400_v17, %v2338_v19  ;;  %3430 = vst [vmem:[%s4031_s26 + $0x30] sm:$0xff] %v3298_v20   ;;  %v1572_v22 = vpop.f32.mrb[28].mxu1 }
 0x15d   : > { %v1861_v23 = vpop.f32.mrb[28].mxu0  ;;  %v1574_v24 = vpop.f32.mrb[29].mxu1 }
 0x15e   : > { %v1862_v25 = vadd.f32 %v1861_v23, %v1572_v22  ;;  %v1863_v26 = vpop.f32.mrb[29].mxu0  ;;  %v1575_v27 = vpop.f32.mrb[30].mxu1 }
 0x15f   : > { %v1864_v28 = vpop.f32.mrb[30].mxu0  ;;  %v1577_v29 = vpop.f32.mrb[31].mxu1 }
 0x160   : > { %v2268_v30 = vadd.f32 %v2267_v18, %v1862_v25  ;;  %v2339_v31 = vmul.f32 %v1862_v25, %v1862_v25  ;;  %v1865_v32 = vadd.f32 %v1864_v28, %v1575_v27  ;;  %v1866_v33 = vpop.f32.mrb[31].mxu0 }
 0x162   : > { %v2402_v34 = vadd.f32 %v2401_v21, %v2339_v31  ;;  %v2269_v35 = vadd.f32 %v2268_v30, %v1865_v32  ;;  %v2340_v36 = vmul.f32 %v1865_v32, %v1865_v32  ;;  %v3303_v37 = vpack.c.bf16 %v1865_v32, %v1862_v25 }
 0x164   : > { %v2403_v38 = vadd.f32 %v2402_v34, %v2340_v36  ;;  %3431 = vst [vmem:[%s4031_s26 + $0x38] sm:$0xff] %v3303_v37   ;;  %v1580_v39 = vpop.f32.mrb[32].mxu1 }
 0x165   : > { %v1869_v40 = vpop.f32.mrb[32].mxu0  ;;  %v1582_v41 = vpop.f32.mrb[33].mxu1 }
 0x166   : > { %v1870_v42 = vadd.f32 %v1869_v40, %v1580_v39  ;;  %v1871_v43 = vpop.f32.mrb[33].mxu0  ;;  %v1583_v44 = vpop.f32.mrb[34].mxu1 }
 0x167   : > { %v1872_v45 = vpop.f32.mrb[34].mxu0  ;;  %v1585_v46 = vpop.f32.mrb[35].mxu1 }
 0x168   : > { %v2270_v47 = vadd.f32 %v2269_v35, %v1870_v42  ;;  %v2341_v48 = vmul.f32 %v1870_v42, %v1870_v42  ;;  %v1873_v49 = vadd.f32 %v1872_v45, %v1583_v44  ;;  %v1874_v50 = vpop.f32.mrb[35].mxu0 }
 0x16a   : > { %v2404_v51 = vadd.f32 %v2403_v38, %v2341_v48  ;;  %v2271_v52 = vadd.f32 %v2270_v47, %v1873_v49  ;;  %v2342_v53 = vmul.f32 %v1873_v49, %v1873_v49  ;;  %v3308_v54 = vpack.c.bf16 %v1873_v49, %v1870_v42 }
 0x16c   : > { %v2405_v55 = vadd.f32 %v2404_v51, %v2342_v53  ;;  %3432 = vst [vmem:[%s4031_s26 + $0x40] sm:$0xff] %v3308_v54   ;;  %v1588_v56 = vpop.f32.mrb[36].mxu1 }
 0x16d   : > { %v1877_v57 = vpop.f32.mrb[36].mxu0  ;;  %v1590_v58 = vpop.f32.mrb[37].mxu1 }
 0x16e   : > { %v1878_v59 = vadd.f32 %v1877_v57, %v1588_v56  ;;  %v1879_v60 = vpop.f32.mrb[37].mxu0  ;;  %v1591_v61 = vpop.f32.mrb[38].mxu1 }
 0x16f   : > { %v1880_v62 = vpop.f32.mrb[38].mxu0  ;;  %v1593_v63 = vpop.f32.mrb[39].mxu1 }
 0x170   : > { %v2272_v0 = vadd.f32 %v2271_v52, %v1878_v59  ;;  %v2343_v1 = vmul.f32 %v1878_v59, %v1878_v59  ;;  %v1881_v2 = vadd.f32 %v1880_v62, %v1591_v61  ;;  %v1882_v3 = vpop.f32.mrb[39].mxu0 }
 0x172   : > { %v2406_v4 = vadd.f32 %v2405_v55, %v2343_v1  ;;  %v2273_v5 = vadd.f32 %v2272_v0, %v1881_v2  ;;  %v2344_v6 = vmul.f32 %v1881_v2, %v1881_v2  ;;  %v3313_v7 = vpack.c.bf16 %v1881_v2, %v1878_v59 }
 0x174   : > { %v2407_v8 = vadd.f32 %v2406_v4, %v2344_v6  ;;  %3433 = vst [vmem:[%s4031_s26 + $0x48] sm:$0xff] %v3313_v7   ;;  %v1596_v9 = vpop.f32.mrb[40].mxu1 }
 0x175   : > { %v1885_v10 = vpop.f32.mrb[40].mxu0  ;;  %v1598_v11 = vpop.f32.mrb[41].mxu1 }
 0x176   : > { %v1886_v12 = vadd.f32 %v1885_v10, %v1596_v9  ;;  %v1887_v13 = vpop.f32.mrb[41].mxu0  ;;  %v1599_v14 = vpop.f32.mrb[42].mxu1 }
 0x177   : > { %v1888_v15 = vpop.f32.mrb[42].mxu0  ;;  %v1601_v16 = vpop.f32.mrb[43].mxu1 }
 0x178   : > { %v2274_v17 = vadd.f32 %v2273_v5, %v1886_v12  ;;  %v2345_v18 = vmul.f32 %v1886_v12, %v1886_v12  ;;  %v1889_v19 = vadd.f32 %v1888_v15, %v1599_v14  ;;  %v1890_v20 = vpop.f32.mrb[43].mxu0 }
 0x17a   : > { %v2408_v21 = vadd.f32 %v2407_v8, %v2345_v18  ;;  %v2275_v22 = vadd.f32 %v2274_v17, %v1889_v19  ;;  %v2346_v23 = vmul.f32 %v1889_v19, %v1889_v19  ;;  %v3318_v24 = vpack.c.bf16 %v1889_v19, %v1886_v12 }
 0x17c   : > { %v2409_v25 = vadd.f32 %v2408_v21, %v2346_v23  ;;  %3434 = vst [vmem:[%s4031_s26 + $0x50] sm:$0xff] %v3318_v24   ;;  %v1604_v26 = vpop.f32.mrb[44].mxu1 }
 0x17d   : > { %v1893_v27 = vpop.f32.mrb[44].mxu0  ;;  %v1606_v28 = vpop.f32.mrb[45].mxu1 }
 0x17e   : > { %v1894_v29 = vadd.f32 %v1893_v27, %v1604_v26  ;;  %v1895_v30 = vpop.f32.mrb[45].mxu0  ;;  %v1607_v31 = vpop.f32.mrb[46].mxu1 }
 0x17f   : > { %v1896_v32 = vpop.f32.mrb[46].mxu0  ;;  %v1609_v33 = vpop.f32.mrb[47].mxu1 }
 0x180   : > { %v2276_v34 = vadd.f32 %v2275_v22, %v1894_v29  ;;  %v2347_v35 = vmul.f32 %v1894_v29, %v1894_v29  ;;  %v1897_v36 = vadd.f32 %v1896_v32, %v1607_v31  ;;  %v1898_v37 = vpop.f32.mrb[47].mxu0 }
 0x182   : > { %v2410_v38 = vadd.f32 %v2409_v25, %v2347_v35  ;;  %v2277_v39 = vadd.f32 %v2276_v34, %v1897_v36  ;;  %v2348_v40 = vmul.f32 %v1897_v36, %v1897_v36  ;;  %v3323_v41 = vpack.c.bf16 %v1897_v36, %v1894_v29 }
 0x184   : > { %v2411_v42 = vadd.f32 %v2410_v38, %v2348_v40  ;;  %3435 = vst [vmem:[%s4031_s26 + $0x58] sm:$0xff] %v3323_v41   ;;  %v1612_v43 = vpop.f32.mrb[48].mxu1 }
 0x185   : > { %v1901_v44 = vpop.f32.mrb[48].mxu0  ;;  %v1614_v45 = vpop.f32.mrb[49].mxu1 }
 0x186   : > { %v1902_v46 = vadd.f32 %v1901_v44, %v1612_v43  ;;  %v1903_v47 = vpop.f32.mrb[49].mxu0  ;;  %v1615_v48 = vpop.f32.mrb[50].mxu1 }
 0x187   : > { %v1904_v49 = vpop.f32.mrb[50].mxu0  ;;  %v1617_v50 = vpop.f32.mrb[51].mxu1 }
 0x188   : > { %v2278_v51 = vadd.f32 %v2277_v39, %v1902_v46  ;;  %v2349_v52 = vmul.f32 %v1902_v46, %v1902_v46  ;;  %v1905_v53 = vadd.f32 %v1904_v49, %v1615_v48  ;;  %v1906_v54 = vpop.f32.mrb[51].mxu0 }
 0x18a   : > { %v2412_v55 = vadd.f32 %v2411_v42, %v2349_v52  ;;  %v2279_v56 = vadd.f32 %v2278_v51, %v1905_v53  ;;  %v2350_v57 = vmul.f32 %v1905_v53, %v1905_v53  ;;  %v3328_v58 = vpack.c.bf16 %v1905_v53, %v1902_v46 }
 0x18c   : > { %v2413_v59 = vadd.f32 %v2412_v55, %v2350_v57  ;;  %3436 = vst [vmem:[%s4031_s26 + $0x60] sm:$0xff] %v3328_v58   ;;  %v1620_v60 = vpop.f32.mrb[52].mxu1 }
 0x18d   : > { %v1909_v61 = vpop.f32.mrb[52].mxu0  ;;  %v1622_v62 = vpop.f32.mrb[53].mxu1 }
 0x18e   : > { %v1910_v63 = vadd.f32 %v1909_v61, %v1620_v60  ;;  %v1911_v0 = vpop.f32.mrb[53].mxu0  ;;  %v1623_v1 = vpop.f32.mrb[54].mxu1 }
 0x18f   : > { %v1912_v2 = vpop.f32.mrb[54].mxu0  ;;  %v1625_v3 = vpop.f32.mrb[55].mxu1 }
 0x190   : > { %v2280_v4 = vadd.f32 %v2279_v56, %v1910_v63  ;;  %v2351_v5 = vmul.f32 %v1910_v63, %v1910_v63  ;;  %v1913_v6 = vadd.f32 %v1912_v2, %v1623_v1  ;;  %v1914_v7 = vpop.f32.mrb[55].mxu0 }
 0x192   : > { %v2414_v8 = vadd.f32 %v2413_v59, %v2351_v5  ;;  %v2281_v9 = vadd.f32 %v2280_v4, %v1913_v6  ;;  %v2352_v10 = vmul.f32 %v1913_v6, %v1913_v6  ;;  %v3333_v11 = vpack.c.bf16 %v1913_v6, %v1910_v63 }
 0x194   : > { %v2415_v12 = vadd.f32 %v2414_v8, %v2352_v10  ;;  %3437 = vst [vmem:[%s4031_s26 + $0x68] sm:$0xff] %v3333_v11   ;;  %v1628_v13 = vpop.f32.mrb[56].mxu1 }
 0x195   : > { %v1917_v14 = vpop.f32.mrb[56].mxu0  ;;  %v1630_v15 = vpop.f32.mrb[57].mxu1 }
 0x196   : > { %v1918_v16 = vadd.f32 %v1917_v14, %v1628_v13  ;;  %v1919_v17 = vpop.f32.mrb[57].mxu0  ;;  %v1631_v18 = vpop.f32.mrb[58].mxu1 }
 0x197   : > { %v1920_v19 = vpop.f32.mrb[58].mxu0  ;;  %v1633_v20 = vpop.f32.mrb[59].mxu1 }
 0x198   : > { %v2282_v21 = vadd.f32 %v2281_v9, %v1918_v16  ;;  %v2353_v22 = vmul.f32 %v1918_v16, %v1918_v16  ;;  %v1921_v23 = vadd.f32 %v1920_v19, %v1631_v18  ;;  %v1922_v24 = vpop.f32.mrb[59].mxu0 }
 0x19a   : > { %v2416_v25 = vadd.f32 %v2415_v12, %v2353_v22  ;;  %v2283_v26 = vadd.f32 %v2282_v21, %v1921_v23  ;;  %v2354_v27 = vmul.f32 %v1921_v23, %v1921_v23  ;;  %v3338_v28 = vpack.c.bf16 %v1921_v23, %v1918_v16 }
 0x19c   : > { %v2417_v29 = vadd.f32 %v2416_v25, %v2354_v27  ;;  %3438 = vst [vmem:[%s4031_s26 + $0x70] sm:$0xff] %v3338_v28   ;;  %v1636_v30 = vpop.f32.mrb[60].mxu1 }
 0x19d   : > { %v1925_v31 = vpop.f32.mrb[60].mxu0  ;;  %v1638_v32 = vpop.f32.mrb[61].mxu1 }
 0x19e   : > { %v1926_v33 = vadd.f32 %v1925_v31, %v1636_v30  ;;  %v1927_v34 = vpop.f32.mrb[61].mxu0  ;;  %v1639_v35 = vpop.f32.mrb[62].mxu1 }
 0x19f   : > { %v1928_v36 = vpop.f32.mrb[62].mxu0  ;;  %v1641_v37 = vpop.f32.mrb[63].mxu1 }
 0x1a0   : > { %v2284_v38 = vadd.f32 %v2283_v26, %v1926_v33  ;;  %v2355_v39 = vmul.f32 %v1926_v33, %v1926_v33  ;;  %v1929_v40 = vadd.f32 %v1928_v36, %v1639_v35  ;;  %v1930_v41 = vpop.f32.mrb[63].mxu0 }
 0x1a2   : > { %v2418_v42 = vadd.f32 %v2417_v29, %v2355_v39  ;;  %v2285_v43 = vadd.f32 %v2284_v38, %v1929_v40  ;;  %v2356_v44 = vmul.f32 %v1929_v40, %v1929_v40  ;;  %v3343_v45 = vpack.c.bf16 %v1929_v40, %v1926_v33 }
 0x1a4   : > { %v2419_v46 = vadd.f32 %v2418_v42, %v2356_v44  ;;  %3439 = vst [vmem:[%s4031_s26 + $0x78] sm:$0xff] %v3343_v45   ;;  %v1644_v47 = vpop.f32.mrb[64].mxu1 }
 0x1a5   : > { %v1933_v48 = vpop.f32.mrb[64].mxu0  ;;  %v1646_v49 = vpop.f32.mrb[65].mxu1 }
 0x1a6   : > { %v1934_v50 = vadd.f32 %v1933_v48, %v1644_v47  ;;  %v1935_v51 = vpop.f32.mrb[65].mxu0  ;;  %v1647_v52 = vpop.f32.mrb[66].mxu1 }
 0x1a7   : > { %v1936_v53 = vpop.f32.mrb[66].mxu0  ;;  %v1649_v54 = vpop.f32.mrb[67].mxu1 }
 0x1a8   : > { %v2286_v55 = vadd.f32 %v2285_v43, %v1934_v50  ;;  %v2357_v56 = vmul.f32 %v1934_v50, %v1934_v50  ;;  %v1937_v57 = vadd.f32 %v1936_v53, %v1647_v52  ;;  %v1938_v58 = vpop.f32.mrb[67].mxu0 }
 0x1aa   : > { %v2420_v59 = vadd.f32 %v2419_v46, %v2357_v56  ;;  %v2287_v60 = vadd.f32 %v2286_v55, %v1937_v57  ;;  %v2358_v61 = vmul.f32 %v1937_v57, %v1937_v57  ;;  %v3348_v62 = vpack.c.bf16 %v1937_v57, %v1934_v50 }
 0x1ac   : > { %v2421_v63 = vadd.f32 %v2420_v59, %v2358_v61  ;;  %3440 = vst [vmem:[%s4031_s26 + $0x80] sm:$0xff] %v3348_v62   ;;  %v1652_v0 = vpop.f32.mrb[68].mxu1 }
 0x1ad   : > { %v1941_v1 = vpop.f32.mrb[68].mxu0  ;;  %v1654_v2 = vpop.f32.mrb[69].mxu1 }
 0x1ae   : > { %v1942_v3 = vadd.f32 %v1941_v1, %v1652_v0  ;;  %v1943_v4 = vpop.f32.mrb[69].mxu0  ;;  %v1655_v5 = vpop.f32.mrb[70].mxu1 }
 0x1af   : > { %v1944_v6 = vpop.f32.mrb[70].mxu0  ;;  %v1657_v7 = vpop.f32.mrb[71].mxu1 }
 0x1b0   : > { %v2288_v8 = vadd.f32 %v2287_v60, %v1942_v3  ;;  %v2359_v9 = vmul.f32 %v1942_v3, %v1942_v3  ;;  %v1945_v10 = vadd.f32 %v1944_v6, %v1655_v5  ;;  %v1946_v11 = vpop.f32.mrb[71].mxu0 }
 0x1b2   : > { %v2422_v12 = vadd.f32 %v2421_v63, %v2359_v9  ;;  %v2289_v13 = vadd.f32 %v2288_v8, %v1945_v10  ;;  %v2360_v14 = vmul.f32 %v1945_v10, %v1945_v10  ;;  %v3353_v15 = vpack.c.bf16 %v1945_v10, %v1942_v3 }
 0x1b4   : > { %v2423_v16 = vadd.f32 %v2422_v12, %v2360_v14  ;;  %3441 = vst [vmem:[%s4031_s26 + $0x88] sm:$0xff] %v3353_v15   ;;  %v1660_v17 = vpop.f32.mrb[72].mxu1 }
 0x1b5   : > { %v1949_v18 = vpop.f32.mrb[72].mxu0  ;;  %v1662_v19 = vpop.f32.mrb[73].mxu1 }
 0x1b6   : > { %v1950_v20 = vadd.f32 %v1949_v18, %v1660_v17  ;;  %v1951_v21 = vpop.f32.mrb[73].mxu0  ;;  %v1663_v22 = vpop.f32.mrb[74].mxu1 }
 0x1b7   : > { %v1952_v23 = vpop.f32.mrb[74].mxu0  ;;  %v1665_v24 = vpop.f32.mrb[75].mxu1 }
 0x1b8   : > { %v2290_v25 = vadd.f32 %v2289_v13, %v1950_v20  ;;  %v2361_v26 = vmul.f32 %v1950_v20, %v1950_v20  ;;  %v1953_v27 = vadd.f32 %v1952_v23, %v1663_v22  ;;  %v1954_v28 = vpop.f32.mrb[75].mxu0 }
 0x1ba   : > { %v2424_v29 = vadd.f32 %v2423_v16, %v2361_v26  ;;  %v2291_v30 = vadd.f32 %v2290_v25, %v1953_v27  ;;  %v2362_v31 = vmul.f32 %v1953_v27, %v1953_v27  ;;  %v3358_v32 = vpack.c.bf16 %v1953_v27, %v1950_v20 }
 0x1bc   : > { %v2425_v33 = vadd.f32 %v2424_v29, %v2362_v31  ;;  %3442 = vst [vmem:[%s4031_s26 + $0x90] sm:$0xff] %v3358_v32   ;;  %v1668_v34 = vpop.f32.mrb[76].mxu1 }
 0x1bd   : > { %v1957_v35 = vpop.f32.mrb[76].mxu0  ;;  %v1670_v36 = vpop.f32.mrb[77].mxu1 }
 0x1be   : > { %v1958_v37 = vadd.f32 %v1957_v35, %v1668_v34  ;;  %v1959_v38 = vpop.f32.mrb[77].mxu0  ;;  %v1671_v39 = vpop.f32.mrb[78].mxu1 }
 0x1bf   : > { %v1960_v40 = vpop.f32.mrb[78].mxu0  ;;  %v1673_v41 = vpop.f32.mrb[79].mxu1 }
 0x1c0   : > { %v2292_v42 = vadd.f32 %v2291_v30, %v1958_v37  ;;  %v2363_v43 = vmul.f32 %v1958_v37, %v1958_v37  ;;  %v1961_v44 = vadd.f32 %v1960_v40, %v1671_v39  ;;  %v1962_v45 = vpop.f32.mrb[79].mxu0 }
 0x1c2   : > { %v2426_v46 = vadd.f32 %v2425_v33, %v2363_v43  ;;  %v2293_v47 = vadd.f32 %v2292_v42, %v1961_v44  ;;  %v2364_v48 = vmul.f32 %v1961_v44, %v1961_v44  ;;  %v3363_v49 = vpack.c.bf16 %v1961_v44, %v1958_v37 }
 0x1c4   : > { %v2427_v50 = vadd.f32 %v2426_v46, %v2364_v48  ;;  %3443 = vst [vmem:[%s4031_s26 + $0x98] sm:$0xff] %v3363_v49   ;;  %v1676_v51 = vpop.f32.mrb[80].mxu1 }
 0x1c5   : > { %v1965_v52 = vpop.f32.mrb[80].mxu0  ;;  %v1678_v53 = vpop.f32.mrb[81].mxu1 }
 0x1c6   : > { %v1966_v54 = vadd.f32 %v1965_v52, %v1676_v51  ;;  %v1967_v55 = vpop.f32.mrb[81].mxu0  ;;  %v1679_v56 = vpop.f32.mrb[82].mxu1 }
 0x1c7   : > { %v1968_v57 = vpop.f32.mrb[82].mxu0  ;;  %v1681_v58 = vpop.f32.mrb[83].mxu1 }
 0x1c8   : > { %v2294_v59 = vadd.f32 %v2293_v47, %v1966_v54  ;;  %v2365_v60 = vmul.f32 %v1966_v54, %v1966_v54  ;;  %v1969_v61 = vadd.f32 %v1968_v57, %v1679_v56  ;;  %v1970_v62 = vpop.f32.mrb[83].mxu0 }
 0x1ca   : > { %v2428_v63 = vadd.f32 %v2427_v50, %v2365_v60  ;;  %v2295_v0 = vadd.f32 %v2294_v59, %v1969_v61  ;;  %v2366_v1 = vmul.f32 %v1969_v61, %v1969_v61  ;;  %v3368_v2 = vpack.c.bf16 %v1969_v61, %v1966_v54 }
 0x1cc   : > { %v2429_v3 = vadd.f32 %v2428_v63, %v2366_v1  ;;  %3444 = vst [vmem:[%s4031_s26 + $0xa0] sm:$0xff] %v3368_v2   ;;  %v1684_v4 = vpop.f32.mrb[84].mxu1 }
 0x1cd   : > { %v1973_v5 = vpop.f32.mrb[84].mxu0  ;;  %v1686_v6 = vpop.f32.mrb[85].mxu1 }
 0x1ce   : > { %v1974_v7 = vadd.f32 %v1973_v5, %v1684_v4  ;;  %v1975_v8 = vpop.f32.mrb[85].mxu0  ;;  %v1687_v9 = vpop.f32.mrb[86].mxu1 }
 0x1cf   : > { %v1976_v10 = vpop.f32.mrb[86].mxu0  ;;  %v1689_v11 = vpop.f32.mrb[87].mxu1 }
 0x1d0   : > { %v2296_v12 = vadd.f32 %v2295_v0, %v1974_v7  ;;  %v2367_v13 = vmul.f32 %v1974_v7, %v1974_v7  ;;  %v1977_v14 = vadd.f32 %v1976_v10, %v1687_v9  ;;  %v1978_v15 = vpop.f32.mrb[87].mxu0 }
 0x1d2   : > { %v2430_v16 = vadd.f32 %v2429_v3, %v2367_v13  ;;  %v2297_v17 = vadd.f32 %v2296_v12, %v1977_v14  ;;  %v2368_v18 = vmul.f32 %v1977_v14, %v1977_v14  ;;  %v3373_v19 = vpack.c.bf16 %v1977_v14, %v1974_v7 }
 0x1d4   : > { %v2431_v20 = vadd.f32 %v2430_v16, %v2368_v18  ;;  %3445 = vst [vmem:[%s4031_s26 + $0xa8] sm:$0xff] %v3373_v19   ;;  %v1692_v21 = vpop.f32.mrb[88].mxu1 }
 0x1d5   : > { %v1981_v22 = vpop.f32.mrb[88].mxu0  ;;  %v1694_v23 = vpop.f32.mrb[89].mxu1 }
 0x1d6   : > { %v1982_v24 = vadd.f32 %v1981_v22, %v1692_v21  ;;  %v1983_v25 = vpop.f32.mrb[89].mxu0  ;;  %v1695_v26 = vpop.f32.mrb[90].mxu1 }
 0x1d7   : > { %v1984_v27 = vpop.f32.mrb[90].mxu0  ;;  %v1697_v28 = vpop.f32.mrb[91].mxu1 }
 0x1d8   : > { %v2298_v29 = vadd.f32 %v2297_v17, %v1982_v24  ;;  %v2369_v30 = vmul.f32 %v1982_v24, %v1982_v24  ;;  %v1985_v31 = vadd.f32 %v1984_v27, %v1695_v26  ;;  %v1986_v32 = vpop.f32.mrb[91].mxu0 }
 0x1da   : > { %v2432_v33 = vadd.f32 %v2431_v20, %v2369_v30  ;;  %v2299_v34 = vadd.f32 %v2298_v29, %v1985_v31  ;;  %v2370_v35 = vmul.f32 %v1985_v31, %v1985_v31  ;;  %v3378_v36 = vpack.c.bf16 %v1985_v31, %v1982_v24 }
 0x1dc   : > { %v2433_v37 = vadd.f32 %v2432_v33, %v2370_v35  ;;  %3446 = vst [vmem:[%s4031_s26 + $0xb0] sm:$0xff] %v3378_v36   ;;  %v1700_v38 = vpop.f32.mrb[92].mxu1 }
 0x1dd   : > { %v1989_v39 = vpop.f32.mrb[92].mxu0  ;;  %v1702_v40 = vpop.f32.mrb[93].mxu1 }
 0x1de   : > { %v1990_v41 = vadd.f32 %v1989_v39, %v1700_v38  ;;  %v1991_v42 = vpop.f32.mrb[93].mxu0  ;;  %v1703_v43 = vpop.f32.mrb[94].mxu1 }
 0x1df   : > { %v1992_v44 = vpop.f32.mrb[94].mxu0  ;;  %v1705_v45 = vpop.f32.mrb[95].mxu1 }
 0x1e0   : > { %v2300_v46 = vadd.f32 %v2299_v34, %v1990_v41  ;;  %v2371_v47 = vmul.f32 %v1990_v41, %v1990_v41  ;;  %v1993_v48 = vadd.f32 %v1992_v44, %v1703_v43  ;;  %v1994_v49 = vpop.f32.mrb[95].mxu0 }
 0x1e2   : > { %v2434_v50 = vadd.f32 %v2433_v37, %v2371_v47  ;;  %v2301_v51 = vadd.f32 %v2300_v46, %v1993_v48  ;;  %v2372_v52 = vmul.f32 %v1993_v48, %v1993_v48  ;;  %v3383_v53 = vpack.c.bf16 %v1993_v48, %v1990_v41 }
 0x1e4   : > { %v2435_v54 = vadd.f32 %v2434_v50, %v2372_v52  ;;  %3447 = vst [vmem:[%s4031_s26 + $0xb8] sm:$0xff] %v3383_v53   ;;  %v1708_v55 = vpop.f32.mrb[96].mxu1 }
 0x1e5   : > { %v1997_v56 = vpop.f32.mrb[96].mxu0  ;;  %v1710_v57 = vpop.f32.mrb[97].mxu1 }
 0x1e6   : > { %v1998_v58 = vadd.f32 %v1997_v56, %v1708_v55  ;;  %v1999_v59 = vpop.f32.mrb[97].mxu0  ;;  %v1711_v60 = vpop.f32.mrb[98].mxu1 }
 0x1e7   : > { %v2000_v61 = vpop.f32.mrb[98].mxu0  ;;  %v1713_v62 = vpop.f32.mrb[99].mxu1 }
 0x1e8   : > { %v2302_v63 = vadd.f32 %v2301_v51, %v1998_v58  ;;  %v2373_v0 = vmul.f32 %v1998_v58, %v1998_v58  ;;  %v2001_v1 = vadd.f32 %v2000_v61, %v1711_v60  ;;  %v2002_v2 = vpop.f32.mrb[99].mxu0 }
 0x1ea   : > { %v2436_v3 = vadd.f32 %v2435_v54, %v2373_v0  ;;  %v2303_v4 = vadd.f32 %v2302_v63, %v2001_v1  ;;  %v2374_v5 = vmul.f32 %v2001_v1, %v2001_v1  ;;  %v3388_v6 = vpack.c.bf16 %v2001_v1, %v1998_v58 }
 0x1ec   : > { %v2437_v7 = vadd.f32 %v2436_v3, %v2374_v5  ;;  %3448 = vst [vmem:[%s4031_s26 + $0xc0] sm:$0xff] %v3388_v6   ;;  %v1716_v8 = vpop.f32.mrb[100].mxu1 }
 0x1ed   : > { %v2005_v9 = vpop.f32.mrb[100].mxu0  ;;  %v1718_v10 = vpop.f32.mrb[101].mxu1 }
 0x1ee   : > { %v2006_v11 = vadd.f32 %v2005_v9, %v1716_v8  ;;  %v2007_v12 = vpop.f32.mrb[101].mxu0  ;;  %v1719_v13 = vpop.f32.mrb[102].mxu1 }
 0x1ef   : > { %v2008_v14 = vpop.f32.mrb[102].mxu0  ;;  %v1721_v15 = vpop.f32.mrb[103].mxu1 }
 0x1f0   : > { %v2304_v16 = vadd.f32 %v2303_v4, %v2006_v11  ;;  %v2375_v17 = vmul.f32 %v2006_v11, %v2006_v11  ;;  %v2009_v18 = vadd.f32 %v2008_v14, %v1719_v13  ;;  %v2010_v19 = vpop.f32.mrb[103].mxu0 }
 0x1f2   : > { %v2438_v20 = vadd.f32 %v2437_v7, %v2375_v17  ;;  %v2305_v21 = vadd.f32 %v2304_v16, %v2009_v18  ;;  %v2376_v22 = vmul.f32 %v2009_v18, %v2009_v18  ;;  %v3393_v23 = vpack.c.bf16 %v2009_v18, %v2006_v11 }
 0x1f4   : > { %v2439_v24 = vadd.f32 %v2438_v20, %v2376_v22  ;;  %3449 = vst [vmem:[%s4031_s26 + $0xc8] sm:$0xff] %v3393_v23   ;;  %v1724_v25 = vpop.f32.mrb[104].mxu1 }
 0x1f5   : > { %v2013_v26 = vpop.f32.mrb[104].mxu0  ;;  %v1726_v27 = vpop.f32.mrb[105].mxu1 }
 0x1f6   : > { %v2014_v28 = vadd.f32 %v2013_v26, %v1724_v25  ;;  %v2015_v29 = vpop.f32.mrb[105].mxu0  ;;  %v1727_v30 = vpop.f32.mrb[106].mxu1 }
 0x1f7   : > { %v2016_v31 = vpop.f32.mrb[106].mxu0  ;;  %v1729_v32 = vpop.f32.mrb[107].mxu1 }
 0x1f8   : > { %v2306_v33 = vadd.f32 %v2305_v21, %v2014_v28  ;;  %v2377_v34 = vmul.f32 %v2014_v28, %v2014_v28  ;;  %v2017_v35 = vadd.f32 %v2016_v31, %v1727_v30  ;;  %v2018_v36 = vpop.f32.mrb[107].mxu0 }
 0x1fa   : > { %v2440_v37 = vadd.f32 %v2439_v24, %v2377_v34  ;;  %v2307_v38 = vadd.f32 %v2306_v33, %v2017_v35  ;;  %v2378_v39 = vmul.f32 %v2017_v35, %v2017_v35  ;;  %v3398_v40 = vpack.c.bf16 %v2017_v35, %v2014_v28 }
 0x1fc   : > { %v2441_v41 = vadd.f32 %v2440_v37, %v2378_v39  ;;  %3450 = vst [vmem:[%s4031_s26 + $0xd0] sm:$0xff] %v3398_v40   ;;  %v1732_v42 = vpop.f32.mrb[108].mxu1 }
 0x1fd   : > { %v2021_v43 = vpop.f32.mrb[108].mxu0  ;;  %v1734_v44 = vpop.f32.mrb[109].mxu1 }
 0x1fe   : > { %v2022_v45 = vadd.f32 %v2021_v43, %v1732_v42  ;;  %v2023_v46 = vpop.f32.mrb[109].mxu0  ;;  %v1735_v47 = vpop.f32.mrb[110].mxu1 }
 0x1ff   : > { %v2024_v48 = vpop.f32.mrb[110].mxu0  ;;  %v1737_v49 = vpop.f32.mrb[111].mxu1 }
 0x200   : > { %v2308_v50 = vadd.f32 %v2307_v38, %v2022_v45  ;;  %v2379_v51 = vmul.f32 %v2022_v45, %v2022_v45  ;;  %v2025_v52 = vadd.f32 %v2024_v48, %v1735_v47  ;;  %v2026_v53 = vpop.f32.mrb[111].mxu0 }
 0x202   : > { %v2442_v54 = vadd.f32 %v2441_v41, %v2379_v51  ;;  %v2309_v55 = vadd.f32 %v2308_v50, %v2025_v52  ;;  %v2380_v56 = vmul.f32 %v2025_v52, %v2025_v52  ;;  %v3403_v57 = vpack.c.bf16 %v2025_v52, %v2022_v45 }
 0x204   : > { %v2443_v58 = vadd.f32 %v2442_v54, %v2380_v56  ;;  %3451 = vst [vmem:[%s4031_s26 + $0xd8] sm:$0xff] %v3403_v57   ;;  %v1740_v59 = vpop.f32.mrb[112].mxu1 }
 0x205   : > { %v2029_v60 = vpop.f32.mrb[112].mxu0  ;;  %v1742_v61 = vpop.f32.mrb[113].mxu1 }
 0x206   : > { %v2030_v62 = vadd.f32 %v2029_v60, %v1740_v59  ;;  %v2031_v63 = vpop.f32.mrb[113].mxu0  ;;  %v1743_v0 = vpop.f32.mrb[114].mxu1 }
 0x207   : > { %v2032_v1 = vpop.f32.mrb[114].mxu0  ;;  %v1745_v2 = vpop.f32.mrb[115].mxu1 }
 0x208   : > { %v2310_v3 = vadd.f32 %v2309_v55, %v2030_v62  ;;  %v2381_v4 = vmul.f32 %v2030_v62, %v2030_v62  ;;  %v2033_v5 = vadd.f32 %v2032_v1, %v1743_v0  ;;  %v2034_v6 = vpop.f32.mrb[115].mxu0 }
 0x20a   : > { %v2444_v7 = vadd.f32 %v2443_v58, %v2381_v4  ;;  %v2311_v8 = vadd.f32 %v2310_v3, %v2033_v5  ;;  %v2382_v9 = vmul.f32 %v2033_v5, %v2033_v5  ;;  %v3408_v10 = vpack.c.bf16 %v2033_v5, %v2030_v62 }
 0x20c   : > { %v2445_v11 = vadd.f32 %v2444_v7, %v2382_v9  ;;  %3452 = vst [vmem:[%s4031_s26 + $0xe0] sm:$0xff] %v3408_v10   ;;  %v1748_v12 = vpop.f32.mrb[116].mxu1 }
 0x20d   : > { %v2037_v13 = vpop.f32.mrb[116].mxu0  ;;  %v1750_v14 = vpop.f32.mrb[117].mxu1 }
 0x20e   : > { %v2038_v15 = vadd.f32 %v2037_v13, %v1748_v12  ;;  %v2039_v16 = vpop.f32.mrb[117].mxu0  ;;  %v1751_v17 = vpop.f32.mrb[118].mxu1 }
 0x20f   : > { %v2040_v18 = vpop.f32.mrb[118].mxu0  ;;  %v1753_v19 = vpop.f32.mrb[119].mxu1 }
 0x210   : > { %v2312_v20 = vadd.f32 %v2311_v8, %v2038_v15  ;;  %v2383_v21 = vmul.f32 %v2038_v15, %v2038_v15  ;;  %v2041_v22 = vadd.f32 %v2040_v18, %v1751_v17  ;;  %v2042_v23 = vpop.f32.mrb[119].mxu0 }
 0x212   : > { %v2446_v24 = vadd.f32 %v2445_v11, %v2383_v21  ;;  %v2313_v25 = vadd.f32 %v2312_v20, %v2041_v22  ;;  %v2384_v26 = vmul.f32 %v2041_v22, %v2041_v22  ;;  %v3413_v27 = vpack.c.bf16 %v2041_v22, %v2038_v15 }
 0x214   : > { %v2447_v28 = vadd.f32 %v2446_v24, %v2384_v26  ;;  %3453 = vst [vmem:[%s4031_s26 + $0xe8] sm:$0xff] %v3413_v27   ;;  %v1756_v29 = vpop.f32.mrb[120].mxu1 }
 0x215   : > { %v2045_v30 = vpop.f32.mrb[120].mxu0  ;;  %v1758_v31 = vpop.f32.mrb[121].mxu1 }
 0x216   : > { %v2046_v32 = vadd.f32 %v2045_v30, %v1756_v29  ;;  %v2047_v33 = vpop.f32.mrb[121].mxu0  ;;  %v1759_v34 = vpop.f32.mrb[122].mxu1 }
 0x217   : > { %v2048_v35 = vpop.f32.mrb[122].mxu0  ;;  %v1761_v36 = vpop.f32.mrb[123].mxu1 }
 0x218   : > { %v2314_v37 = vadd.f32 %v2313_v25, %v2046_v32  ;;  %v2385_v38 = vmul.f32 %v2046_v32, %v2046_v32  ;;  %v2049_v39 = vadd.f32 %v2048_v35, %v1759_v34  ;;  %v2050_v40 = vpop.f32.mrb[123].mxu0 }
 0x21a   : > { %v2448_v41 = vadd.f32 %v2447_v28, %v2385_v38  ;;  %v2315_v42 = vadd.f32 %v2314_v37, %v2049_v39  ;;  %v2386_v43 = vmul.f32 %v2049_v39, %v2049_v39  ;;  %v3418_v44 = vpack.c.bf16 %v2049_v39, %v2046_v32 }
 0x21c   : > { %v2449_v45 = vadd.f32 %v2448_v41, %v2386_v43  ;;  %3454 = vst [vmem:[%s4031_s26 + $0xf0] sm:$0xff] %v3418_v44   ;;  %v1764_v46 = vpop.f32.mrb[124].mxu1 }
 0x21d   : > { %v2053_v47 = vpop.f32.mrb[124].mxu0  ;;  %v1766_v48 = vpop.f32.mrb[125].mxu1 }
 0x21e   : > { %v2054_v49 = vadd.f32 %v2053_v47, %v1764_v46  ;;  %v2055_v50 = vpop.f32.mrb[125].mxu0  ;;  %v1767_v51 = vpop.f32.mrb[126].mxu1 }
 0x21f   : > { %v2056_v52 = vpop.f32.mrb[126].mxu0  ;;  %v1769_v53 = vpop.f32.mrb[127].mxu1 }
 0x220   : > { %v2316_v54 = vadd.f32 %v2315_v42, %v2054_v49  ;;  %v2387_v55 = vmul.f32 %v2054_v49, %v2054_v49  ;;  %v2057_v56 = vadd.f32 %v2056_v52, %v1767_v51  ;;  %v2058_v57 = vpop.f32.mrb[127].mxu0 }
 0x222   : > { %v2450_v58 = vadd.f32 %v2449_v45, %v2387_v55  ;;  %v2317_v59 = vadd.f32 %v2316_v54, %v2057_v56  ;;  %v2388_v60 = vmul.f32 %v2057_v56, %v2057_v56  ;;  %v3423_v61 = vpack.c.bf16 %v2057_v56, %v2054_v49 }
 0x224   : > { %v2318_v62 = vrot.slane %v2317_v59, 4  ;;  %v2451_v63 = vadd.f32 %v2450_v58, %v2388_v60  ;;  %3455 = vst [vmem:[%s4031_s26 + $0xf8] sm:$0xff] %v3423_v61  }
 0x226   : > { %v2319_v0 = vadd.f32 %v2318_v62, %v2317_v59  ;;  %v2452_v1 = vrot.slane %v2451_v63, 4 }
 0x228   : > { %v2320_v2 = vrot.slane %v2319_v0, 2  ;;  %v2453_v3 = vadd.f32 %v2452_v1, %v2451_v63 }
 0x22a   : > { %v2321_v4 = vadd.f32 %v2320_v2, %v2319_v0  ;;  %v2454_v5 = vrot.slane %v2453_v3, 2 }
 0x22c   : > { %v2322_v6 = vrot.slane %v2321_v4, 1  ;;  %v2455_v7 = vadd.f32 %v2454_v5, %v2453_v3 }
 0x22e   : > { %v2323_v8 = vadd.f32 %v2322_v6, %v2321_v4  ;;  %v2456_v9 = vrot.slane %v2455_v7, 1 }
 0x230   : > { %2324 = vst [vmem:[%s324_s30] sm:$0x1] %v2323_v8  ;;  %v2457_v10 = vadd.f32 %v2456_v9, %v2455_v7 }
 0x232   : > { %2458 = vst [vmem:[%s324_s30 + $0x1] sm:$0x1] %v2457_v10 }
 0x233 PF: > { %s14_s14 = sadd.s32 1, %s3791_s14   ;;  %s4096_s12 = smov %s3787_s13 }
 0x234   : > { %p11_p5 = scmp.ge.s32.totalorder %s14_s14, 6   ;;  %s4097_s13 = smov %s4099_s15 }
 0x236   :  { %13 = sbr.rel (!%p11_p5) target bundleno = 2 (0x2), region = 81 }

// kernel: generator_forward.16
= control target key start
LH: loop header
LB: loop body
LE: loop exit
PB: predicated region body
PF: predicated region fallthrough
CT: control target
= control target key end

     0   :  { %s5846_s0 = inlined_call_operand.vmem [shape: bf16[2048,128], index: 0, kind: input, shape index: {}]   ;;  %s5847_s1 = inlined_call_operand.vmem [shape: f32[1,128], index: 1, kind: input, shape index: {}]   ;;  %s5848_s2 = inlined_call_operand.vmem [shape: f32[1,128], index: 2, kind: input, shape index: {}]   ;;  %s5849_s3 = inlined_call_operand.vmem [shape: bf16[2048,128], index: 3, kind: output, shape index: {}]  }
   0x1   :  { %v3107_v0 = vld [vmem:[%s5846_s0] sm:$0xff]   ;;  %v4258_v4 = vld [vmem:[%s5846_s0 + $0x8] sm:$0xff]   ;;  %v4259_v5 = vld [vmem:[%s5846_s0 + $0x10] sm:$0xff]  }
   0x2   :  { %v4542_v1 = vld [vmem:[%s5847_s1] ss:$0 sm:$0xff]  ;;  %v3108_v2 = vunpack.c.l.bf16 %v3107_v0  ;;  %v3109_v3 = vunpack.c.h.bf16 %v3107_v0  ;;  %v4260_v6 = vld [vmem:[%s5846_s0 + $0x18] sm:$0xff]   ;;  %v3112_v8 = vunpack.c.l.bf16 %v4258_v4  ;;  %v3113_v9 = vunpack.c.h.bf16 %v4258_v4  ;;  %v4262_v33 = vld [vmem:[%s5846_s0 + $0x28] sm:$0xff]  }
   0x3   :  { %v4556_v7 = vld [vmem:[%s5848_s2] ss:$0 sm:$0xff]  ;;  %v3116_v10 = vunpack.c.l.bf16 %v4259_v5  ;;  %v3117_v11 = vunpack.c.h.bf16 %v4259_v5  ;;  %v3120_v14 = vunpack.c.l.bf16 %v4260_v6  ;;  %v3121_v15 = vunpack.c.h.bf16 %v4260_v6  ;;  %v4263_v38 = vld [vmem:[%s5846_s0 + $0x30] sm:$0xff]   ;;  %v4264_v43 = vld [vmem:[%s5846_s0 + $0x38] sm:$0xff]  }
   0x4   :  { %v533_v12 = vmul.f32 %v3108_v2, %v4542_v1  ;;  %v534_v13 = vmul.f32 %v3109_v3, %v4542_v1  ;;  %v535_v16 = vmul.f32 %v3112_v8, %v4542_v1  ;;  %v536_v17 = vmul.f32 %v3113_v9, %v4542_v1  ;;  %v4261_v28 = vld [vmem:[%s5846_s0 + $0x20] sm:$0xff]  }
   0x5   :  { %v537_v18 = vmul.f32 %v3116_v10, %v4542_v1  ;;  %v538_v19 = vmul.f32 %v3117_v11, %v4542_v1  ;;  %v539_v22 = vmul.f32 %v3120_v14, %v4542_v1  ;;  %v540_v23 = vmul.f32 %v3121_v15, %v4542_v1  ;;  %v4265_v0 = vld [vmem:[%s5846_s0 + $0x40] sm:$0xff]   ;;  %v4266_v11 = vld [vmem:[%s5846_s0 + $0x48] sm:$0xff]  }
   0x6   :  { %v796_v20 = vadd.f32 %v4556_v7, %v533_v12  ;;  %v797_v21 = vadd.f32 %v4556_v7, %v534_v13  ;;  %v798_v24 = vadd.f32 %v4556_v7, %v535_v16  ;;  %v799_v25 = vadd.f32 %v4556_v7, %v536_v17  ;;  %v4267_v16 = vld [vmem:[%s5846_s0 + $0x50] sm:$0xff]  }
   0x7   :  { %v800_v26 = vadd.f32 %v4556_v7, %v537_v18  ;;  %v801_v27 = vadd.f32 %v4556_v7, %v538_v19  ;;  %v802_v31 = vadd.f32 %v4556_v7, %v539_v22  ;;  %v803_v32 = vadd.f32 %v4556_v7, %v540_v23 }
   0x8   :  { %v1052_v29 = vmax.f32 %v796_v20, 0.0  ;;  %v1053_v30 = vmax.f32 %v797_v21, 0.0  ;;  %v1054_v34 = vmax.f32 %v798_v24, 0.0  ;;  %v1055_v35 = vmax.f32 %v799_v25, 0.0  ;;  %v4268_v25 = vld [vmem:[%s5846_s0 + $0x58] sm:$0xff]  }
   0x9   :  { %v1056_v36 = vmax.f32 %v800_v26, 0.0  ;;  %v1057_v37 = vmax.f32 %v801_v27, 0.0  ;;  %v1058_v40 = vmax.f32 %v802_v31, 0.0  ;;  %v1059_v41 = vmax.f32 %v803_v32, 0.0 }
   0xa   :  { %v3621_v39 = vpack.c.bf16 %v1053_v30, %v1052_v29  ;;  %v3124_v42 = vunpack.c.l.bf16 %v4261_v28  ;;  %v3626_v44 = vpack.c.bf16 %v1055_v35, %v1054_v34  ;;  %v3125_v46 = vunpack.c.h.bf16 %v4261_v28 }
   0xb   :  { %v3631_v45 = vpack.c.bf16 %v1057_v37, %v1056_v36  ;;  %v3128_v47 = vunpack.c.l.bf16 %v4262_v33  ;;  %v3636_v48 = vpack.c.bf16 %v1059_v41, %v1058_v40  ;;  %v3129_v50 = vunpack.c.h.bf16 %v4262_v33 }
   0xc   :  { %3622 = vst [vmem:[%s5849_s3] sm:$0xff] %v3621_v39   ;;  %v541_v49 = vmul.f32 %v3124_v42, %v4542_v1  ;;  %v3132_v51 = vunpack.c.l.bf16 %v4263_v38  ;;  %4385 = vst [vmem:[%s5849_s3 + $0x8] sm:$0xff] %v3626_v44   ;;  %v542_v52 = vmul.f32 %v3125_v46, %v4542_v1  ;;  %v3133_v54 = vunpack.c.h.bf16 %v4263_v38  ;;  %v4269_v38 = vld [vmem:[%s5846_s0 + $0x60] sm:$0xff]  }
   0xd   :  { %4386 = vst [vmem:[%s5849_s3 + $0x10] sm:$0xff] %v3631_v45   ;;  %v543_v53 = vmul.f32 %v3128_v47, %v4542_v1  ;;  %v3136_v55 = vunpack.c.l.bf16 %v4264_v43  ;;  %4387 = vst [vmem:[%s5849_s3 + $0x18] sm:$0xff] %v3636_v48   ;;  %v544_v57 = vmul.f32 %v3129_v50, %v4542_v1  ;;  %v3137_v59 = vunpack.c.h.bf16 %v4264_v43 }
   0xe   :  { %v804_v56 = vadd.f32 %v4556_v7, %v541_v49  ;;  %v545_v58 = vmul.f32 %v3132_v51, %v4542_v1  ;;  %v805_v60 = vadd.f32 %v4556_v7, %v542_v52  ;;  %v546_v62 = vmul.f32 %v3133_v54, %v4542_v1  ;;  %v4270_v51 = vld [vmem:[%s5846_s0 + $0x68] sm:$0xff]  }
   0xf   :  { %v806_v61 = vadd.f32 %v4556_v7, %v543_v53  ;;  %v547_v63 = vmul.f32 %v3136_v55, %v4542_v1  ;;  %v807_v3 = vadd.f32 %v4556_v7, %v544_v57  ;;  %v548_v5 = vmul.f32 %v3137_v59, %v4542_v1 }
  0x10   :  { %v1060_v2 = vmax.f32 %v804_v56, 0.0  ;;  %v808_v4 = vadd.f32 %v4556_v7, %v545_v58  ;;  %v1061_v6 = vmax.f32 %v805_v60, 0.0  ;;  %v809_v9 = vadd.f32 %v4556_v7, %v546_v62  ;;  %v4271_v60 = vld [vmem:[%s5846_s0 + $0x70] sm:$0xff]  }
  0x11   :  { %v1062_v8 = vmax.f32 %v806_v61, 0.0  ;;  %v810_v10 = vadd.f32 %v4556_v7, %v547_v63  ;;  %v1063_v12 = vmax.f32 %v807_v3, 0.0  ;;  %v811_v14 = vadd.f32 %v4556_v7, %v548_v5 }
  0x12   :  { %v1064_v13 = vmax.f32 %v808_v4, 0.0  ;;  %v3140_v15 = vunpack.c.l.bf16 %v4265_v0  ;;  %v3641_v17 = vpack.c.bf16 %v1061_v6, %v1060_v2  ;;  %v1065_v18 = vmax.f32 %v809_v9, 0.0  ;;  %v4272_v2 = vld [vmem:[%s5846_s0 + $0x78] sm:$0xff]  }
  0x13   :  { %v1066_v19 = vmax.f32 %v810_v10, 0.0  ;;  %v3141_v20 = vunpack.c.h.bf16 %v4265_v0  ;;  %v3646_v21 = vpack.c.bf16 %v1063_v12, %v1062_v8  ;;  %v1067_v22 = vmax.f32 %v811_v14, 0.0  ;;  %v4273_v12 = vld [vmem:[%s5846_s0 + $0x80] sm:$0xff]  }
  0x14   :  { %v549_v23 = vmul.f32 %v3140_v15, %v4542_v1  ;;  %v3144_v24 = vunpack.c.l.bf16 %v4266_v11  ;;  %4388 = vst [vmem:[%s5849_s3 + $0x20] sm:$0xff] %v3641_v17   ;;  %v3651_v26 = vpack.c.bf16 %v1065_v18, %v1064_v13  ;;  %v3145_v28 = vunpack.c.h.bf16 %v4266_v11 }
  0x15   :  { %v550_v27 = vmul.f32 %v3141_v20, %v4542_v1  ;;  %v3148_v29 = vunpack.c.l.bf16 %v4267_v16  ;;  %4389 = vst [vmem:[%s5849_s3 + $0x28] sm:$0xff] %v3646_v21   ;;  %v3656_v30 = vpack.c.bf16 %v1067_v22, %v1066_v19  ;;  %v3149_v33 = vunpack.c.h.bf16 %v4267_v16 }
  0x16   :  { %v812_v31 = vadd.f32 %v4556_v7, %v549_v23  ;;  %v551_v32 = vmul.f32 %v3144_v24, %v4542_v1  ;;  %4390 = vst [vmem:[%s5849_s3 + $0x30] sm:$0xff] %v3651_v26   ;;  %v552_v35 = vmul.f32 %v3145_v28, %v4542_v1  ;;  %v3152_v37 = vunpack.c.l.bf16 %v4268_v25 }
  0x17   :  { %v813_v34 = vadd.f32 %v4556_v7, %v550_v27  ;;  %v553_v36 = vmul.f32 %v3148_v29, %v4542_v1  ;;  %4391 = vst [vmem:[%s5849_s3 + $0x38] sm:$0xff] %v3656_v30   ;;  %v554_v41 = vmul.f32 %v3149_v33, %v4542_v1  ;;  %v3153_v42 = vunpack.c.h.bf16 %v4268_v25  ;;  %v4274_v29 = vld [vmem:[%s5846_s0 + $0x88] sm:$0xff]  }
  0x18   :  { %v1068_v39 = vmax.f32 %v812_v31, 0.0  ;;  %v814_v40 = vadd.f32 %v4556_v7, %v551_v32  ;;  %v815_v44 = vadd.f32 %v4556_v7, %v552_v35  ;;  %v555_v46 = vmul.f32 %v3152_v37, %v4542_v1 }
  0x19   :  { %v1069_v43 = vmax.f32 %v813_v34, 0.0  ;;  %v816_v45 = vadd.f32 %v4556_v7, %v553_v36  ;;  %v817_v48 = vadd.f32 %v4556_v7, %v554_v41  ;;  %v556_v49 = vmul.f32 %v3153_v42, %v4542_v1  ;;  %v4275_v34 = vld [vmem:[%s5846_s0 + $0x90] sm:$0xff]  }
  0x1a   :  { %v1070_v47 = vmax.f32 %v814_v40, 0.0  ;;  %v3156_v50 = vunpack.c.l.bf16 %v4269_v38  ;;  %v1071_v53 = vmax.f32 %v815_v44, 0.0  ;;  %v818_v55 = vadd.f32 %v4556_v7, %v555_v46 }
  0x1b   :  { %v3661_v52 = vpack.c.bf16 %v1069_v43, %v1068_v39  ;;  %v1072_v54 = vmax.f32 %v816_v45, 0.0  ;;  %v1073_v56 = vmax.f32 %v817_v48, 0.0  ;;  %v819_v57 = vadd.f32 %v4556_v7, %v556_v49  ;;  %v4276_v43 = vld [vmem:[%s5846_s0 + $0x98] sm:$0xff]  }
  0x1c   :  { %v3157_v58 = vunpack.c.h.bf16 %v4269_v38  ;;  %v557_v59 = vmul.f32 %v3156_v50, %v4542_v1  ;;  %v3666_v61 = vpack.c.bf16 %v1071_v53, %v1070_v47  ;;  %v1074_v62 = vmax.f32 %v818_v55, 0.0 }
  0x1d   :  { %4392 = vst [vmem:[%s5849_s3 + $0x40] sm:$0xff] %v3661_v52   ;;  %v3160_v63 = vunpack.c.l.bf16 %v4270_v51  ;;  %v3161_v0 = vunpack.c.h.bf16 %v4270_v51  ;;  %v3671_v3 = vpack.c.bf16 %v1073_v56, %v1072_v54  ;;  %v1075_v4 = vmax.f32 %v819_v57, 0.0  ;;  %v4277_v56 = vld [vmem:[%s5846_s0 + $0xa0] sm:$0xff]  }
  0x1e   :  { %v558_v5 = vmul.f32 %v3157_v58, %v4542_v1  ;;  %v820_v6 = vadd.f32 %v4556_v7, %v557_v59  ;;  %4393 = vst [vmem:[%s5849_s3 + $0x48] sm:$0xff] %v3666_v61   ;;  %v3164_v10 = vunpack.c.l.bf16 %v4271_v60  ;;  %v3165_v11 = vunpack.c.h.bf16 %v4271_v60 }
  0x1f   :  { %v559_v8 = vmul.f32 %v3160_v63, %v4542_v1  ;;  %v560_v9 = vmul.f32 %v3161_v0, %v4542_v1  ;;  %4394 = vst [vmem:[%s5849_s3 + $0x50] sm:$0xff] %v3671_v3   ;;  %v3676_v13 = vpack.c.bf16 %v1075_v4, %v1074_v62  ;;  %v3168_v16 = vunpack.c.l.bf16 %v4272_v2 }
  0x20   :  { %v821_v14 = vadd.f32 %v4556_v7, %v558_v5  ;;  %v1076_v15 = vmax.f32 %v820_v6, 0.0  ;;  %v561_v19 = vmul.f32 %v3164_v10, %v4542_v1  ;;  %v562_v20 = vmul.f32 %v3165_v11, %v4542_v1 }
  0x21   :  { %v822_v17 = vadd.f32 %v4556_v7, %v559_v8  ;;  %v823_v18 = vadd.f32 %v4556_v7, %v560_v9  ;;  %4395 = vst [vmem:[%s5849_s3 + $0x58] sm:$0xff] %v3676_v13   ;;  %v3169_v22 = vunpack.c.h.bf16 %v4272_v2  ;;  %v563_v23 = vmul.f32 %v3168_v16, %v4542_v1  ;;  %v4278_v2 = vld [vmem:[%s5846_s0 + $0xa8] sm:$0xff]   ;;  %v4279_v16 = vld [vmem:[%s5846_s0 + $0xb0] sm:$0xff]  }
  0x22   :  { %v1077_v21 = vmax.f32 %v821_v14, 0.0  ;;  %v3172_v24 = vunpack.c.l.bf16 %v4273_v12  ;;  %v824_v27 = vadd.f32 %v4556_v7, %v561_v19  ;;  %v825_v28 = vadd.f32 %v4556_v7, %v562_v20 }
  0x23   :  { %v1078_v25 = vmax.f32 %v822_v17, 0.0  ;;  %v1079_v26 = vmax.f32 %v823_v18, 0.0  ;;  %v564_v31 = vmul.f32 %v3169_v22, %v4542_v1  ;;  %v826_v32 = vadd.f32 %v4556_v7, %v563_v23 }
  0x24   :  { %v3681_v30 = vpack.c.bf16 %v1077_v21, %v1076_v15  ;;  %v3173_v33 = vunpack.c.h.bf16 %v4273_v12  ;;  %v1080_v36 = vmax.f32 %v824_v27, 0.0  ;;  %v1081_v37 = vmax.f32 %v825_v28, 0.0  ;;  %v4280_v21 = vld [vmem:[%s5846_s0 + $0xb8] sm:$0xff]  }
  0x25   :  { %v3686_v35 = vpack.c.bf16 %v1079_v26, %v1078_v25  ;;  %v565_v38 = vmul.f32 %v3172_v24, %v4542_v1  ;;  %v827_v39 = vadd.f32 %v4556_v7, %v564_v31  ;;  %v1082_v40 = vmax.f32 %v826_v32, 0.0 }
  0x26   :  { %4396 = vst [vmem:[%s5849_s3 + $0x60] sm:$0xff] %v3681_v30   ;;  %v566_v41 = vmul.f32 %v3173_v33, %v4542_v1  ;;  %v3176_v42 = vunpack.c.l.bf16 %v4274_v29  ;;  %v3691_v44 = vpack.c.bf16 %v1081_v37, %v1080_v36  ;;  %v3177_v46 = vunpack.c.h.bf16 %v4274_v29 }
  0x27   :  { %4397 = vst [vmem:[%s5849_s3 + $0x68] sm:$0xff] %v3686_v35   ;;  %v828_v45 = vadd.f32 %v4556_v7, %v565_v38  ;;  %v3180_v47 = vunpack.c.l.bf16 %v4275_v34  ;;  %v1083_v48 = vmax.f32 %v827_v39, 0.0  ;;  %v3181_v51 = vunpack.c.h.bf16 %v4275_v34  ;;  %v4281_v34 = vld [vmem:[%s5846_s0 + $0xc0] sm:$0xff]  }
  0x28   :  { %v829_v49 = vadd.f32 %v4556_v7, %v566_v41  ;;  %v567_v50 = vmul.f32 %v3176_v42, %v4542_v1  ;;  %4398 = vst [vmem:[%s5849_s3 + $0x70] sm:$0xff] %v3691_v44   ;;  %v568_v53 = vmul.f32 %v3177_v46, %v4542_v1  ;;  %v3184_v55 = vunpack.c.l.bf16 %v4276_v43 }
  0x29   :  { %v1084_v52 = vmax.f32 %v828_v45, 0.0  ;;  %v569_v54 = vmul.f32 %v3180_v47, %v4542_v1  ;;  %v3696_v57 = vpack.c.bf16 %v1083_v48, %v1082_v40  ;;  %v570_v60 = vmul.f32 %v3181_v51, %v4542_v1  ;;  %v4282_v47 = vld [vmem:[%s5846_s0 + $0xc8] sm:$0xff]  }
  0x2a   :  { %v1085_v58 = vmax.f32 %v829_v49, 0.0  ;;  %v830_v59 = vadd.f32 %v4556_v7, %v567_v50  ;;  %v831_v61 = vadd.f32 %v4556_v7, %v568_v53  ;;  %v3185_v63 = vunpack.c.h.bf16 %v4276_v43 }
  0x2b   :  { %v832_v62 = vadd.f32 %v4556_v7, %v569_v54  ;;  %v571_v0 = vmul.f32 %v3184_v55, %v4542_v1  ;;  %4399 = vst [vmem:[%s5849_s3 + $0x78] sm:$0xff] %v3696_v57   ;;  %v833_v5 = vadd.f32 %v4556_v7, %v570_v60  ;;  %v3188_v6 = vunpack.c.l.bf16 %v4277_v56 }
  0x2c   :  { %v3701_v3 = vpack.c.bf16 %v1085_v58, %v1084_v52  ;;  %v1086_v4 = vmax.f32 %v830_v59, 0.0  ;;  %v1087_v8 = vmax.f32 %v831_v61, 0.0  ;;  %v572_v10 = vmul.f32 %v3185_v63, %v4542_v1  ;;  %v4283_v52 = vld [vmem:[%s5846_s0 + $0xd0] sm:$0xff]   ;;  %v4284_v61 = vld [vmem:[%s5846_s0 + $0xd8] sm:$0xff]  }
  0x2d   :  { %v1088_v9 = vmax.f32 %v832_v62, 0.0  ;;  %v834_v11 = vadd.f32 %v4556_v7, %v571_v0  ;;  %v1089_v12 = vmax.f32 %v833_v5, 0.0  ;;  %v3189_v13 = vunpack.c.h.bf16 %v4277_v56 }
  0x2e   :  { %4400 = vst [vmem:[%s5849_s3 + $0x80] sm:$0xff] %v3701_v3   ;;  %v573_v14 = vmul.f32 %v3188_v6, %v4542_v1  ;;  %v3192_v15 = vunpack.c.l.bf16 %v4278_v2  ;;  %v3706_v17 = vpack.c.bf16 %v1087_v8, %v1086_v4  ;;  %v835_v18 = vadd.f32 %v4556_v7, %v572_v10 }
  0x2f   :  { %v1090_v19 = vmax.f32 %v834_v11, 0.0  ;;  %v3193_v20 = vunpack.c.h.bf16 %v4278_v2  ;;  %v3711_v22 = vpack.c.bf16 %v1089_v12, %v1088_v9  ;;  %v574_v23 = vmul.f32 %v3189_v13, %v4542_v1  ;;  %v4285_v12 = vld [vmem:[%s5846_s0 + $0xe0] sm:$0xff]  }
  0x30   :  { %v836_v24 = vadd.f32 %v4556_v7, %v573_v14  ;;  %v575_v25 = vmul.f32 %v3192_v15, %v4542_v1  ;;  %4401 = vst [vmem:[%s5849_s3 + $0x88] sm:$0xff] %v3706_v17   ;;  %v1091_v26 = vmax.f32 %v835_v18, 0.0  ;;  %v3196_v28 = vunpack.c.l.bf16 %v4279_v16 }
  0x31   :  { %v576_v27 = vmul.f32 %v3193_v20, %v4542_v1  ;;  %v3197_v29 = vunpack.c.h.bf16 %v4279_v16  ;;  %4402 = vst [vmem:[%s5849_s3 + $0x90] sm:$0xff] %v3711_v22   ;;  %v837_v30 = vadd.f32 %v4556_v7, %v574_v23  ;;  %v3200_v33 = vunpack.c.l.bf16 %v4280_v21 }
  0x32   :  { %v1092_v31 = vmax.f32 %v836_v24, 0.0  ;;  %v838_v32 = vadd.f32 %v4556_v7, %v575_v25  ;;  %v3716_v35 = vpack.c.bf16 %v1091_v26, %v1090_v19  ;;  %v577_v37 = vmul.f32 %v3196_v28, %v4542_v1 }
  0x33   :  { %v839_v36 = vadd.f32 %v4556_v7, %v576_v27  ;;  %v578_v38 = vmul.f32 %v3197_v29, %v4542_v1  ;;  %v1093_v39 = vmax.f32 %v837_v30, 0.0  ;;  %v3201_v41 = vunpack.c.h.bf16 %v4280_v21  ;;  %v4286_v21 = vld [vmem:[%s5846_s0 + $0xe8] sm:$0xff]  }
  0x34   :  { %v1094_v40 = vmax.f32 %v838_v32, 0.0  ;;  %v579_v42 = vmul.f32 %v3200_v33, %v4542_v1  ;;  %4403 = vst [vmem:[%s5849_s3 + $0x98] sm:$0xff] %v3716_v35   ;;  %v840_v44 = vadd.f32 %v4556_v7, %v577_v37  ;;  %v3204_v46 = vunpack.c.l.bf16 %v4281_v34 }
  0x35   :  { %v1095_v43 = vmax.f32 %v839_v36, 0.0  ;;  %v841_v45 = vadd.f32 %v4556_v7, %v578_v38  ;;  %v3721_v48 = vpack.c.bf16 %v1093_v39, %v1092_v31  ;;  %v580_v49 = vmul.f32 %v3201_v41, %v4542_v1  ;;  %v4288_v39 = vld [vmem:[%s5846_s0 + $0xf8] sm:$0xff]  }
  0x36   :  { %v842_v50 = vadd.f32 %v4556_v7, %v579_v42  ;;  %v3205_v51 = vunpack.c.h.bf16 %v4281_v34  ;;  %v1096_v54 = vmax.f32 %v840_v44, 0.0  ;;  %v581_v56 = vmul.f32 %v3204_v46, %v4542_v1  ;;  %v4287_v34 = vld [vmem:[%s5846_s0 + $0xf0] sm:$0xff]  }
  0x37   :  { %v3726_v53 = vpack.c.bf16 %v1095_v43, %v1094_v40  ;;  %v1097_v55 = vmax.f32 %v841_v45, 0.0  ;;  %4404 = vst [vmem:[%s5849_s3 + $0xa0] sm:$0xff] %v3721_v48   ;;  %v843_v57 = vadd.f32 %v4556_v7, %v580_v49  ;;  %v3208_v60 = vunpack.c.l.bf16 %v4282_v47 }
  0x38   :  { %v1098_v58 = vmax.f32 %v842_v50, 0.0  ;;  %v582_v59 = vmul.f32 %v3205_v51, %v4542_v1  ;;  %v844_v63 = vadd.f32 %v4556_v7, %v581_v56  ;;  %v3209_v0 = vunpack.c.h.bf16 %v4282_v47 }
  0x39   :  { %4405 = vst [vmem:[%s5849_s3 + $0xa8] sm:$0xff] %v3726_v53   ;;  %v3731_v62 = vpack.c.bf16 %v1097_v55, %v1096_v54  ;;  %v3212_v2 = vunpack.c.l.bf16 %v4283_v52  ;;  %v1099_v3 = vmax.f32 %v843_v57, 0.0  ;;  %v583_v5 = vmul.f32 %v3208_v60, %v4542_v1 }
  0x3a   :  { %v845_v4 = vadd.f32 %v4556_v7, %v582_v59  ;;  %v3213_v6 = vunpack.c.h.bf16 %v4283_v52  ;;  %v1100_v8 = vmax.f32 %v844_v63, 0.0  ;;  %v584_v9 = vmul.f32 %v3209_v0, %v4542_v1  ;;  %v4289_v52 = vld [vmem:[%s5846_s0 + $0x100] sm:$0xff]  }
  0x3b   :  { %4406 = vst [vmem:[%s5849_s3 + $0xb0] sm:$0xff] %v3731_v62   ;;  %v585_v10 = vmul.f32 %v3212_v2, %v4542_v1  ;;  %v3216_v11 = vunpack.c.l.bf16 %v4284_v61  ;;  %v3736_v13 = vpack.c.bf16 %v1099_v3, %v1098_v58  ;;  %v846_v15 = vadd.f32 %v4556_v7, %v583_v5  ;;  %v4290_v2 = vld [vmem:[%s5846_s0 + $0x108] sm:$0xff]  }
  0x3c   :  { %v1101_v14 = vmax.f32 %v845_v4, 0.0  ;;  %v586_v16 = vmul.f32 %v3213_v6, %v4542_v1  ;;  %v847_v17 = vadd.f32 %v4556_v7, %v584_v9  ;;  %v3217_v19 = vunpack.c.h.bf16 %v4284_v61 }
  0x3d   :  { %v848_v18 = vadd.f32 %v4556_v7, %v585_v10  ;;  %v587_v20 = vmul.f32 %v3216_v11, %v4542_v1  ;;  %4407 = vst [vmem:[%s5849_s3 + $0xb8] sm:$0xff] %v3736_v13   ;;  %v1102_v23 = vmax.f32 %v846_v15, 0.0  ;;  %v3220_v25 = vunpack.c.l.bf16 %v4285_v12 }
  0x3e   :  { %v3741_v22 = vpack.c.bf16 %v1101_v14, %v1100_v8  ;;  %v849_v24 = vadd.f32 %v4556_v7, %v586_v16  ;;  %v1103_v26 = vmax.f32 %v847_v17, 0.0  ;;  %v588_v28 = vmul.f32 %v3217_v19, %v4542_v1  ;;  %v4291_v8 = vld [vmem:[%s5846_s0 + $0x110] sm:$0xff]   ;;  %v4292_v17 = vld [vmem:[%s5846_s0 + $0x118] sm:$0xff]  }
  0x3f   :  { %v1104_v27 = vmax.f32 %v848_v18, 0.0  ;;  %v850_v29 = vadd.f32 %v4556_v7, %v587_v20  ;;  %v3221_v31 = vunpack.c.h.bf16 %v4285_v12  ;;  %v589_v32 = vmul.f32 %v3220_v25, %v4542_v1 }
  0x40   :  { %4408 = vst [vmem:[%s5849_s3 + $0xc0] sm:$0xff] %v3741_v22   ;;  %v1105_v30 = vmax.f32 %v849_v24, 0.0  ;;  %v3224_v33 = vunpack.c.l.bf16 %v4286_v21  ;;  %v3746_v35 = vpack.c.bf16 %v1103_v26, %v1102_v23  ;;  %v851_v36 = vadd.f32 %v4556_v7, %v588_v28 }
  0x41   :  { %v1106_v37 = vmax.f32 %v850_v29, 0.0  ;;  %v3225_v38 = vunpack.c.h.bf16 %v4286_v21  ;;  %v590_v41 = vmul.f32 %v3221_v31, %v4542_v1  ;;  %v852_v42 = vadd.f32 %v4556_v7, %v589_v32 }
  0x42   :  { %v3751_v40 = vpack.c.bf16 %v1105_v30, %v1104_v27  ;;  %v591_v43 = vmul.f32 %v3224_v33, %v4542_v1  ;;  %4409 = vst [vmem:[%s5849_s3 + $0xc8] sm:$0xff] %v3746_v35   ;;  %v1107_v44 = vmax.f32 %v851_v36, 0.0  ;;  %v3228_v46 = vunpack.c.l.bf16 %v4287_v34  ;;  %v4293_v30 = vld [vmem:[%s5846_s0 + $0x120] sm:$0xff]  }
  0x43   :  { %v592_v45 = vmul.f32 %v3225_v38, %v4542_v1  ;;  %v3229_v47 = vunpack.c.h.bf16 %v4287_v34  ;;  %v853_v48 = vadd.f32 %v4556_v7, %v590_v41  ;;  %v1108_v49 = vmax.f32 %v852_v42, 0.0 }
  0x44   :  { %4410 = vst [vmem:[%s5849_s3 + $0xd0] sm:$0xff] %v3751_v40   ;;  %v854_v50 = vadd.f32 %v4556_v7, %v591_v43  ;;  %v3232_v51 = vunpack.c.l.bf16 %v4288_v39  ;;  %v3756_v53 = vpack.c.bf16 %v1107_v44, %v1106_v37  ;;  %v593_v55 = vmul.f32 %v3228_v46, %v4542_v1 }
  0x45   :  { %v855_v54 = vadd.f32 %v4556_v7, %v592_v45  ;;  %v594_v56 = vmul.f32 %v3229_v47, %v4542_v1  ;;  %v1109_v57 = vmax.f32 %v853_v48, 0.0  ;;  %v3233_v59 = vunpack.c.h.bf16 %v4288_v39  ;;  %v4294_v39 = vld [vmem:[%s5846_s0 + $0x128] sm:$0xff]  }
  0x46   :  { %v1110_v58 = vmax.f32 %v854_v50, 0.0  ;;  %v595_v60 = vmul.f32 %v3232_v51, %v4542_v1  ;;  %4411 = vst [vmem:[%s5849_s3 + $0xd8] sm:$0xff] %v3756_v53   ;;  %v856_v62 = vadd.f32 %v4556_v7, %v593_v55  ;;  %v3236_v0 = vunpack.c.l.bf16 %v4289_v52 }
  0x47   :  { %v1111_v61 = vmax.f32 %v855_v54, 0.0  ;;  %v857_v63 = vadd.f32 %v4556_v7, %v594_v56  ;;  %v3761_v3 = vpack.c.bf16 %v1109_v57, %v1108_v49  ;;  %v596_v4 = vmul.f32 %v3233_v59, %v4542_v1  ;;  %v4296_v57 = vld [vmem:[%s5846_s0 + $0x138] sm:$0xff]  }
  0x48   :  { %v858_v5 = vadd.f32 %v4556_v7, %v595_v60  ;;  %v3237_v6 = vunpack.c.h.bf16 %v4289_v52  ;;  %v1112_v10 = vmax.f32 %v856_v62, 0.0  ;;  %v597_v12 = vmul.f32 %v3236_v0, %v4542_v1  ;;  %v4295_v52 = vld [vmem:[%s5846_s0 + $0x130] sm:$0xff]  }
  0x49   :  { %v3766_v9 = vpack.c.bf16 %v1111_v61, %v1110_v58  ;;  %v1113_v11 = vmax.f32 %v857_v63, 0.0  ;;  %4412 = vst [vmem:[%s5849_s3 + $0xe0] sm:$0xff] %v3761_v3   ;;  %v859_v13 = vadd.f32 %v4556_v7, %v596_v4  ;;  %v3240_v16 = vunpack.c.l.bf16 %v4290_v2 }
  0x4a   :  { %v1114_v14 = vmax.f32 %v858_v5, 0.0  ;;  %v598_v15 = vmul.f32 %v3237_v6, %v4542_v1  ;;  %v860_v19 = vadd.f32 %v4556_v7, %v597_v12  ;;  %v3241_v20 = vunpack.c.h.bf16 %v4290_v2 }
  0x4b   :  { %4413 = vst [vmem:[%s5849_s3 + $0xe8] sm:$0xff] %v3766_v9   ;;  %v3771_v18 = vpack.c.bf16 %v1113_v11, %v1112_v10  ;;  %v3244_v21 = vunpack.c.l.bf16 %v4291_v8  ;;  %v1115_v22 = vmax.f32 %v859_v13, 0.0  ;;  %v599_v24 = vmul.f32 %v3240_v16, %v4542_v1 }
  0x4c   :  { %v861_v23 = vadd.f32 %v4556_v7, %v598_v15  ;;  %v3245_v25 = vunpack.c.h.bf16 %v4291_v8  ;;  %v1116_v26 = vmax.f32 %v860_v19, 0.0  ;;  %v600_v27 = vmul.f32 %v3241_v20, %v4542_v1  ;;  %v4297_v8 = vld [vmem:[%s5846_s0 + $0x140] sm:$0xff]  }
  0x4d   :  { %4414 = vst [vmem:[%s5849_s3 + $0xf0] sm:$0xff] %v3771_v18   ;;  %v601_v28 = vmul.f32 %v3244_v21, %v4542_v1  ;;  %v3248_v29 = vunpack.c.l.bf16 %v4292_v17  ;;  %v3776_v31 = vpack.c.bf16 %v1115_v22, %v1114_v14  ;;  %v862_v33 = vadd.f32 %v4556_v7, %v599_v24  ;;  %v4298_v21 = vld [vmem:[%s5846_s0 + $0x148] sm:$0xff]  }
  0x4e   :  { %v1117_v32 = vmax.f32 %v861_v23, 0.0  ;;  %v602_v34 = vmul.f32 %v3245_v25, %v4542_v1  ;;  %v863_v35 = vadd.f32 %v4556_v7, %v600_v27  ;;  %v3249_v37 = vunpack.c.h.bf16 %v4292_v17 }
  0x4f   :  { %v864_v36 = vadd.f32 %v4556_v7, %v601_v28  ;;  %v603_v38 = vmul.f32 %v3248_v29, %v4542_v1  ;;  %4415 = vst [vmem:[%s5849_s3 + $0xf8] sm:$0xff] %v3776_v31   ;;  %v1118_v41 = vmax.f32 %v862_v33, 0.0  ;;  %v3252_v43 = vunpack.c.l.bf16 %v4293_v30 }
  0x50   :  { %v3781_v40 = vpack.c.bf16 %v1117_v32, %v1116_v26  ;;  %v865_v42 = vadd.f32 %v4556_v7, %v602_v34  ;;  %v1119_v44 = vmax.f32 %v863_v35, 0.0  ;;  %v604_v46 = vmul.f32 %v3249_v37, %v4542_v1  ;;  %v4299_v26 = vld [vmem:[%s5846_s0 + $0x150] sm:$0xff]   ;;  %v4300_v35 = vld [vmem:[%s5846_s0 + $0x158] sm:$0xff]  }
  0x51   :  { %v1120_v45 = vmax.f32 %v864_v36, 0.0  ;;  %v866_v47 = vadd.f32 %v4556_v7, %v603_v38  ;;  %v3253_v49 = vunpack.c.h.bf16 %v4293_v30  ;;  %v605_v50 = vmul.f32 %v3252_v43, %v4542_v1 }
  0x52   :  { %4416 = vst [vmem:[%s5849_s3 + $0x100] sm:$0xff] %v3781_v40   ;;  %v1121_v48 = vmax.f32 %v865_v42, 0.0  ;;  %v3256_v51 = vunpack.c.l.bf16 %v4294_v39  ;;  %v3786_v53 = vpack.c.bf16 %v1119_v44, %v1118_v41  ;;  %v867_v54 = vadd.f32 %v4556_v7, %v604_v46 }
  0x53   :  { %v1122_v55 = vmax.f32 %v866_v47, 0.0  ;;  %v3257_v56 = vunpack.c.h.bf16 %v4294_v39  ;;  %v606_v59 = vmul.f32 %v3253_v49, %v4542_v1  ;;  %v868_v60 = vadd.f32 %v4556_v7, %v605_v50 }
  0x54   :  { %v3791_v58 = vpack.c.bf16 %v1121_v48, %v1120_v45  ;;  %v607_v61 = vmul.f32 %v3256_v51, %v4542_v1  ;;  %4417 = vst [vmem:[%s5849_s3 + $0x108] sm:$0xff] %v3786_v53   ;;  %v1123_v62 = vmax.f32 %v867_v54, 0.0  ;;  %v3260_v0 = vunpack.c.l.bf16 %v4295_v52  ;;  %v4301_v48 = vld [vmem:[%s5846_s0 + $0x160] sm:$0xff]  }
  0x55   :  { %v608_v63 = vmul.f32 %v3257_v56, %v4542_v1  ;;  %v3261_v2 = vunpack.c.h.bf16 %v4295_v52  ;;  %v869_v3 = vadd.f32 %v4556_v7, %v606_v59  ;;  %v1124_v4 = vmax.f32 %v868_v60, 0.0 }
  0x56   :  { %4418 = vst [vmem:[%s5849_s3 + $0x110] sm:$0xff] %v3791_v58   ;;  %v870_v5 = vadd.f32 %v4556_v7, %v607_v61  ;;  %v3264_v6 = vunpack.c.l.bf16 %v4296_v57  ;;  %v3796_v9 = vpack.c.bf16 %v1123_v62, %v1122_v55  ;;  %v609_v11 = vmul.f32 %v3260_v0, %v4542_v1 }
  0x57   :  { %v871_v10 = vadd.f32 %v4556_v7, %v608_v63  ;;  %v610_v12 = vmul.f32 %v3261_v2, %v4542_v1  ;;  %v1125_v13 = vmax.f32 %v869_v3, 0.0  ;;  %v3265_v15 = vunpack.c.h.bf16 %v4296_v57  ;;  %v4302_v57 = vld [vmem:[%s5846_s0 + $0x168] sm:$0xff]  }
  0x58   :  { %v1126_v14 = vmax.f32 %v870_v5, 0.0  ;;  %v611_v16 = vmul.f32 %v3264_v6, %v4542_v1  ;;  %4419 = vst [vmem:[%s5849_s3 + $0x118] sm:$0xff] %v3796_v9   ;;  %v872_v18 = vadd.f32 %v4556_v7, %v609_v11  ;;  %v3268_v20 = vunpack.c.l.bf16 %v4297_v8 }
  0x59   :  { %v1127_v17 = vmax.f32 %v871_v10, 0.0  ;;  %v873_v19 = vadd.f32 %v4556_v7, %v610_v12  ;;  %v3801_v22 = vpack.c.bf16 %v1125_v13, %v1124_v4  ;;  %v612_v23 = vmul.f32 %v3265_v15, %v4542_v1  ;;  %v4304_v13 = vld [vmem:[%s5846_s0 + $0x178] sm:$0xff]  }
  0x5a   :  { %v874_v24 = vadd.f32 %v4556_v7, %v611_v16  ;;  %v3269_v25 = vunpack.c.h.bf16 %v4297_v8  ;;  %v1128_v28 = vmax.f32 %v872_v18, 0.0  ;;  %v613_v30 = vmul.f32 %v3268_v20, %v4542_v1  ;;  %v4303_v8 = vld [vmem:[%s5846_s0 + $0x170] sm:$0xff]  }
  0x5b   :  { %v3806_v27 = vpack.c.bf16 %v1127_v17, %v1126_v14  ;;  %v1129_v29 = vmax.f32 %v873_v19, 0.0  ;;  %4420 = vst [vmem:[%s5849_s3 + $0x120] sm:$0xff] %v3801_v22   ;;  %v875_v31 = vadd.f32 %v4556_v7, %v612_v23  ;;  %v3272_v34 = vunpack.c.l.bf16 %v4298_v21 }
  0x5c   :  { %v1130_v32 = vmax.f32 %v874_v24, 0.0  ;;  %v614_v33 = vmul.f32 %v3269_v25, %v4542_v1  ;;  %v876_v37 = vadd.f32 %v4556_v7, %v613_v30  ;;  %v3273_v38 = vunpack.c.h.bf16 %v4298_v21 }
  0x5d   :  { %4421 = vst [vmem:[%s5849_s3 + $0x128] sm:$0xff] %v3806_v27   ;;  %v3811_v36 = vpack.c.bf16 %v1129_v29, %v1128_v28  ;;  %v3276_v39 = vunpack.c.l.bf16 %v4299_v26  ;;  %v1131_v40 = vmax.f32 %v875_v31, 0.0  ;;  %v615_v42 = vmul.f32 %v3272_v34, %v4542_v1 }
  0x5e   :  { %v877_v41 = vadd.f32 %v4556_v7, %v614_v33  ;;  %v3277_v43 = vunpack.c.h.bf16 %v4299_v26  ;;  %v1132_v44 = vmax.f32 %v876_v37, 0.0  ;;  %v616_v45 = vmul.f32 %v3273_v38, %v4542_v1  ;;  %v4305_v26 = vld [vmem:[%s5846_s0 + $0x180] sm:$0xff]  }
  0x5f   :  { %4422 = vst [vmem:[%s5849_s3 + $0x130] sm:$0xff] %v3811_v36   ;;  %v617_v46 = vmul.f32 %v3276_v39, %v4542_v1  ;;  %v3280_v47 = vunpack.c.l.bf16 %v4300_v35  ;;  %v3816_v49 = vpack.c.bf16 %v1131_v40, %v1130_v32  ;;  %v878_v51 = vadd.f32 %v4556_v7, %v615_v42  ;;  %v4306_v39 = vld [vmem:[%s5846_s0 + $0x188] sm:$0xff]   ;;  %v5026_v42 = vld [vmem:[%s5848_s2] ss:$0 sm:$0xff] }
  0x60   :  { %v1133_v50 = vmax.f32 %v877_v41, 0.0  ;;  %v618_v52 = vmul.f32 %v3277_v43, %v4542_v1  ;;  %v879_v53 = vadd.f32 %v4556_v7, %v616_v45  ;;  %v3281_v55 = vunpack.c.h.bf16 %v4300_v35  ;;  %v5020_v41 = vld [vmem:[%s5847_s1] ss:$0 sm:$0xff] }
  0x61   :  { %v880_v54 = vadd.f32 %v4556_v7, %v617_v46  ;;  %v619_v56 = vmul.f32 %v3280_v47, %v4542_v1  ;;  %4423 = vst [vmem:[%s5849_s3 + $0x138] sm:$0xff] %v3816_v49   ;;  %v1134_v59 = vmax.f32 %v878_v51, 0.0  ;;  %v3284_v61 = vunpack.c.l.bf16 %v4301_v48 }
  0x62   :  { %v3821_v58 = vpack.c.bf16 %v1133_v50, %v1132_v44  ;;  %v881_v60 = vadd.f32 %v4556_v7, %v618_v52  ;;  %v1135_v62 = vmax.f32 %v879_v53, 0.0  ;;  %v620_v0 = vmul.f32 %v3281_v55, %v4542_v1  ;;  %v4307_v44 = vld [vmem:[%s5846_s0 + $0x190] sm:$0xff]   ;;  %v4308_v53 = vld [vmem:[%s5846_s0 + $0x198] sm:$0xff]  }
  0x63   :  { %v1136_v63 = vmax.f32 %v880_v54, 0.0  ;;  %v882_v2 = vadd.f32 %v4556_v7, %v619_v56  ;;  %v3285_v4 = vunpack.c.h.bf16 %v4301_v48  ;;  %v621_v5 = vmul.f32 %v3284_v61, %v4542_v1 }
  0x64   :  { %4424 = vst [vmem:[%s5849_s3 + $0x140] sm:$0xff] %v3821_v58   ;;  %v1137_v3 = vmax.f32 %v881_v60, 0.0  ;;  %v3288_v6 = vunpack.c.l.bf16 %v4302_v57  ;;  %v3826_v9 = vpack.c.bf16 %v1135_v62, %v1134_v59  ;;  %v883_v10 = vadd.f32 %v4556_v7, %v620_v0 }
  0x65   :  { %v1138_v11 = vmax.f32 %v882_v2, 0.0  ;;  %v3289_v12 = vunpack.c.h.bf16 %v4302_v57  ;;  %v622_v15 = vmul.f32 %v3285_v4, %v4542_v1  ;;  %v884_v16 = vadd.f32 %v4556_v7, %v621_v5 }
  0x66   :  { %v3831_v14 = vpack.c.bf16 %v1137_v3, %v1136_v63  ;;  %v623_v17 = vmul.f32 %v3288_v6, %v4542_v1  ;;  %4425 = vst [vmem:[%s5849_s3 + $0x148] sm:$0xff] %v3826_v9   ;;  %v1139_v18 = vmax.f32 %v883_v10, 0.0  ;;  %v3292_v20 = vunpack.c.l.bf16 %v4303_v8  ;;  %v4309_v3 = vld [vmem:[%s5846_s0 + $0x1a0] sm:$0xff]  }
  0x67   :  { %v624_v19 = vmul.f32 %v3289_v12, %v4542_v1  ;;  %v3293_v21 = vunpack.c.h.bf16 %v4303_v8  ;;  %v885_v22 = vadd.f32 %v4556_v7, %v622_v15  ;;  %v1140_v23 = vmax.f32 %v884_v16, 0.0 }
  0x68   :  { %4426 = vst [vmem:[%s5849_s3 + $0x150] sm:$0xff] %v3831_v14   ;;  %v886_v24 = vadd.f32 %v4556_v7, %v623_v17  ;;  %v3296_v25 = vunpack.c.l.bf16 %v4304_v13  ;;  %v3836_v27 = vpack.c.bf16 %v1139_v18, %v1138_v11  ;;  %v625_v29 = vmul.f32 %v3292_v20, %v4542_v1 }
  0x69   :  { %v887_v28 = vadd.f32 %v4556_v7, %v624_v19  ;;  %v626_v30 = vmul.f32 %v3293_v21, %v4542_v1  ;;  %v1141_v31 = vmax.f32 %v885_v22, 0.0  ;;  %v3297_v33 = vunpack.c.h.bf16 %v4304_v13  ;;  %v4310_v13 = vld [vmem:[%s5846_s0 + $0x1a8] sm:$0xff]  }
  0x6a   :  { %v1142_v32 = vmax.f32 %v886_v24, 0.0  ;;  %v627_v34 = vmul.f32 %v3296_v25, %v4542_v1  ;;  %4427 = vst [vmem:[%s5849_s3 + $0x158] sm:$0xff] %v3836_v27   ;;  %v888_v36 = vadd.f32 %v4556_v7, %v625_v29  ;;  %v3300_v38 = vunpack.c.l.bf16 %v4305_v26 }
  0x6b   :  { %v1143_v35 = vmax.f32 %v887_v28, 0.0  ;;  %v889_v37 = vadd.f32 %v4556_v7, %v626_v30  ;;  %v3841_v40 = vpack.c.bf16 %v1141_v31, %v1140_v23  ;;  %v628_v1 = vmul.f32 %v5020_v41, %v3297_v33  ;;  %v4312_v31 = vld [vmem:[%s5846_s0 + $0x1b8] sm:$0xff]  }
  0x6c   :  { %v890_v7 = vadd.f32 %v5026_v42, %v627_v34  ;;  %v3301_v43 = vunpack.c.h.bf16 %v4305_v26  ;;  %v1144_v46 = vmax.f32 %v888_v36, 0.0  ;;  %v629_v48 = vmul.f32 %v5020_v41, %v3300_v38  ;;  %v4311_v26 = vld [vmem:[%s5846_s0 + $0x1b0] sm:$0xff]  }
  0x6d   :  { %v3846_v45 = vpack.c.bf16 %v1143_v35, %v1142_v32  ;;  %v1145_v47 = vmax.f32 %v889_v37, 0.0  ;;  %4428 = vst [vmem:[%s5849_s3 + $0x160] sm:$0xff] %v3841_v40   ;;  %v891_v49 = vadd.f32 %v5026_v42, %v628_v1  ;;  %v3304_v52 = vunpack.c.l.bf16 %v4306_v39 }
  0x6e   :  { %v1146_v50 = vmax.f32 %v890_v7, 0.0  ;;  %v630_v51 = vmul.f32 %v5020_v41, %v3301_v43  ;;  %v892_v55 = vadd.f32 %v5026_v42, %v629_v48  ;;  %v3305_v56 = vunpack.c.h.bf16 %v4306_v39 }
  0x6f   :  { %4429 = vst [vmem:[%s5849_s3 + $0x168] sm:$0xff] %v3846_v45   ;;  %v3851_v54 = vpack.c.bf16 %v1145_v47, %v1144_v46  ;;  %v3308_v57 = vunpack.c.l.bf16 %v4307_v44  ;;  %v1147_v58 = vmax.f32 %v891_v49, 0.0  ;;  %v631_v60 = vmul.f32 %v5020_v41, %v3304_v52 }
  0x70   :  { %v893_v59 = vadd.f32 %v5026_v42, %v630_v51  ;;  %v3309_v61 = vunpack.c.h.bf16 %v4307_v44  ;;  %v1148_v62 = vmax.f32 %v892_v55, 0.0  ;;  %v632_v63 = vmul.f32 %v5020_v41, %v3305_v56  ;;  %v4313_v44 = vld [vmem:[%s5846_s0 + $0x1c0] sm:$0xff]  }
  0x71   :  { %4430 = vst [vmem:[%s5849_s3 + $0x170] sm:$0xff] %v3851_v54   ;;  %v633_v0 = vmul.f32 %v5020_v41, %v3308_v57  ;;  %v3312_v2 = vunpack.c.l.bf16 %v4308_v53  ;;  %v3856_v4 = vpack.c.bf16 %v1147_v58, %v1146_v50  ;;  %v894_v6 = vadd.f32 %v5026_v42, %v631_v60  ;;  %v4314_v57 = vld [vmem:[%s5846_s0 + $0x1c8] sm:$0xff]  }
  0x72   :  { %v1149_v5 = vmax.f32 %v893_v59, 0.0  ;;  %v634_v8 = vmul.f32 %v5020_v41, %v3309_v61  ;;  %v895_v9 = vadd.f32 %v5026_v42, %v632_v63  ;;  %v3313_v11 = vunpack.c.h.bf16 %v4308_v53 }
  0x73   :  { %v896_v10 = vadd.f32 %v5026_v42, %v633_v0  ;;  %v635_v12 = vmul.f32 %v5020_v41, %v3312_v2  ;;  %4431 = vst [vmem:[%s5849_s3 + $0x178] sm:$0xff] %v3856_v4   ;;  %v1150_v15 = vmax.f32 %v894_v6, 0.0  ;;  %v3316_v17 = vunpack.c.l.bf16 %v4309_v3 }
  0x74   :  { %v3861_v14 = vpack.c.bf16 %v1149_v5, %v1148_v62  ;;  %v897_v16 = vadd.f32 %v5026_v42, %v634_v8  ;;  %v1151_v18 = vmax.f32 %v895_v9, 0.0  ;;  %v636_v20 = vmul.f32 %v5020_v41, %v3313_v11  ;;  %v4315_v62 = vld [vmem:[%s5846_s0 + $0x1d0] sm:$0xff]   ;;  %v4316_v9 = vld [vmem:[%s5846_s0 + $0x1d8] sm:$0xff]  }
  0x75   :  { %v1152_v19 = vmax.f32 %v896_v10, 0.0  ;;  %v898_v21 = vadd.f32 %v5026_v42, %v635_v12  ;;  %v3317_v23 = vunpack.c.h.bf16 %v4309_v3  ;;  %v637_v24 = vmul.f32 %v5020_v41, %v3316_v17 }
  0x76   :  { %4432 = vst [vmem:[%s5849_s3 + $0x180] sm:$0xff] %v3861_v14   ;;  %v1153_v22 = vmax.f32 %v897_v16, 0.0  ;;  %v3320_v25 = vunpack.c.l.bf16 %v4310_v13  ;;  %v3866_v27 = vpack.c.bf16 %v1151_v18, %v1150_v15  ;;  %v899_v28 = vadd.f32 %v5026_v42, %v636_v20 }
  0x77   :  { %v1154_v29 = vmax.f32 %v898_v21, 0.0  ;;  %v3321_v30 = vunpack.c.h.bf16 %v4310_v13  ;;  %v638_v33 = vmul.f32 %v5020_v41, %v3317_v23  ;;  %v900_v34 = vadd.f32 %v5026_v42, %v637_v24 }
  0x78   :  { %v3871_v32 = vpack.c.bf16 %v1153_v22, %v1152_v19  ;;  %v639_v35 = vmul.f32 %v5020_v41, %v3320_v25  ;;  %4433 = vst [vmem:[%s5849_s3 + $0x188] sm:$0xff] %v3866_v27   ;;  %v1155_v36 = vmax.f32 %v899_v28, 0.0  ;;  %v3324_v38 = vunpack.c.l.bf16 %v4311_v26  ;;  %v4317_v22 = vld [vmem:[%s5846_s0 + $0x1e0] sm:$0xff]  }
  0x79   :  { %v640_v37 = vmul.f32 %v5020_v41, %v3321_v30  ;;  %v3325_v39 = vunpack.c.h.bf16 %v4311_v26  ;;  %v901_v40 = vadd.f32 %v5026_v42, %v638_v33  ;;  %v1156_v1 = vmax.f32 %v900_v34, 0.0 }
  0x7a   :  { %4434 = vst [vmem:[%s5849_s3 + $0x190] sm:$0xff] %v3871_v32   ;;  %v902_v7 = vadd.f32 %v5026_v42, %v639_v35  ;;  %v3328_v43 = vunpack.c.l.bf16 %v4312_v31  ;;  %v3876_v45 = vpack.c.bf16 %v1155_v36, %v1154_v29  ;;  %v641_v47 = vmul.f32 %v5020_v41, %v3324_v38 }
  0x7b   :  { %v903_v46 = vadd.f32 %v5026_v42, %v640_v37  ;;  %v642_v48 = vmul.f32 %v5020_v41, %v3325_v39  ;;  %v1157_v49 = vmax.f32 %v901_v40, 0.0  ;;  %v3329_v51 = vunpack.c.h.bf16 %v4312_v31  ;;  %v4318_v31 = vld [vmem:[%s5846_s0 + $0x1e8] sm:$0xff]  }
  0x7c   :  { %v1158_v50 = vmax.f32 %v902_v7, 0.0  ;;  %v643_v52 = vmul.f32 %v5020_v41, %v3328_v43  ;;  %4435 = vst [vmem:[%s5849_s3 + $0x198] sm:$0xff] %v3876_v45   ;;  %v904_v54 = vadd.f32 %v5026_v42, %v641_v47  ;;  %v3332_v56 = vunpack.c.l.bf16 %v4313_v44 }
  0x7d   :  { %v1159_v53 = vmax.f32 %v903_v46, 0.0  ;;  %v905_v55 = vadd.f32 %v5026_v42, %v642_v48  ;;  %v3881_v58 = vpack.c.bf16 %v1157_v49, %v1156_v1  ;;  %v644_v59 = vmul.f32 %v5020_v41, %v3329_v51  ;;  %v4320_v49 = vld [vmem:[%s5846_s0 + $0x1f8] sm:$0xff]  }
  0x7e   :  { %v906_v60 = vadd.f32 %v5026_v42, %v643_v52  ;;  %v3333_v61 = vunpack.c.h.bf16 %v4313_v44  ;;  %v1160_v0 = vmax.f32 %v904_v54, 0.0  ;;  %v645_v3 = vmul.f32 %v5020_v41, %v3332_v56  ;;  %v4319_v44 = vld [vmem:[%s5846_s0 + $0x1f0] sm:$0xff]  }
  0x7f   :  { %v3886_v63 = vpack.c.bf16 %v1159_v53, %v1158_v50  ;;  %v1161_v2 = vmax.f32 %v905_v55, 0.0  ;;  %4436 = vst [vmem:[%s5849_s3 + $0x1a0] sm:$0xff] %v3881_v58   ;;  %v907_v4 = vadd.f32 %v5026_v42, %v644_v59  ;;  %v3336_v8 = vunpack.c.l.bf16 %v4314_v57 }
  0x80   :  { %v1162_v5 = vmax.f32 %v906_v60, 0.0  ;;  %v646_v6 = vmul.f32 %v5020_v41, %v3333_v61  ;;  %v908_v11 = vadd.f32 %v5026_v42, %v645_v3  ;;  %v3337_v12 = vunpack.c.h.bf16 %v4314_v57 }
  0x81   :  { %4437 = vst [vmem:[%s5849_s3 + $0x1a8] sm:$0xff] %v3886_v63   ;;  %v3891_v10 = vpack.c.bf16 %v1161_v2, %v1160_v0  ;;  %v3340_v13 = vunpack.c.l.bf16 %v4315_v62  ;;  %v1163_v14 = vmax.f32 %v907_v4, 0.0  ;;  %v647_v16 = vmul.f32 %v5020_v41, %v3336_v8 }
  0x82   :  { %v909_v15 = vadd.f32 %v5026_v42, %v646_v6  ;;  %v3341_v17 = vunpack.c.h.bf16 %v4315_v62  ;;  %v1164_v18 = vmax.f32 %v908_v11, 0.0  ;;  %v648_v19 = vmul.f32 %v5020_v41, %v3337_v12  ;;  %v4321_v62 = vld [vmem:[%s5846_s0 + $0x200] sm:$0xff]  }
  0x83   :  { %4438 = vst [vmem:[%s5849_s3 + $0x1b0] sm:$0xff] %v3891_v10   ;;  %v649_v20 = vmul.f32 %v5020_v41, %v3340_v13  ;;  %v3344_v21 = vunpack.c.l.bf16 %v4316_v9  ;;  %v3896_v23 = vpack.c.bf16 %v1163_v14, %v1162_v5  ;;  %v910_v25 = vadd.f32 %v5026_v42, %v647_v16  ;;  %v4322_v13 = vld [vmem:[%s5846_s0 + $0x208] sm:$0xff]  }
  0x84   :  { %v1165_v24 = vmax.f32 %v909_v15, 0.0  ;;  %v650_v26 = vmul.f32 %v5020_v41, %v3341_v17  ;;  %v911_v27 = vadd.f32 %v5026_v42, %v648_v19  ;;  %v3345_v29 = vunpack.c.h.bf16 %v4316_v9 }
  0x85   :  { %v912_v28 = vadd.f32 %v5026_v42, %v649_v20  ;;  %v651_v30 = vmul.f32 %v5020_v41, %v3344_v21  ;;  %4439 = vst [vmem:[%s5849_s3 + $0x1b8] sm:$0xff] %v3896_v23   ;;  %v1166_v33 = vmax.f32 %v910_v25, 0.0  ;;  %v3348_v35 = vunpack.c.l.bf16 %v4317_v22 }
  0x86   :  { %v3901_v32 = vpack.c.bf16 %v1165_v24, %v1164_v18  ;;  %v913_v34 = vadd.f32 %v5026_v42, %v650_v26  ;;  %v1167_v36 = vmax.f32 %v911_v27, 0.0  ;;  %v652_v38 = vmul.f32 %v5020_v41, %v3345_v29  ;;  %v4323_v18 = vld [vmem:[%s5846_s0 + $0x210] sm:$0xff]   ;;  %v4324_v27 = vld [vmem:[%s5846_s0 + $0x218] sm:$0xff]  }
  0x87   :  { %v1168_v37 = vmax.f32 %v912_v28, 0.0  ;;  %v914_v39 = vadd.f32 %v5026_v42, %v651_v30  ;;  %v3349_v1 = vunpack.c.h.bf16 %v4317_v22  ;;  %v653_v7 = vmul.f32 %v5020_v41, %v3348_v35 }
  0x88   :  { %4440 = vst [vmem:[%s5849_s3 + $0x1c0] sm:$0xff] %v3901_v32   ;;  %v1169_v40 = vmax.f32 %v913_v34, 0.0  ;;  %v3352_v43 = vunpack.c.l.bf16 %v4318_v31  ;;  %v3906_v45 = vpack.c.bf16 %v1167_v36, %v1166_v33  ;;  %v915_v46 = vadd.f32 %v5026_v42, %v652_v38 }
  0x89   :  { %v1170_v47 = vmax.f32 %v914_v39, 0.0  ;;  %v3353_v48 = vunpack.c.h.bf16 %v4318_v31  ;;  %v654_v51 = vmul.f32 %v5020_v41, %v3349_v1  ;;  %v916_v52 = vadd.f32 %v5026_v42, %v653_v7 }
  0x8a   :  { %v3911_v50 = vpack.c.bf16 %v1169_v40, %v1168_v37  ;;  %v655_v53 = vmul.f32 %v5020_v41, %v3352_v43  ;;  %4441 = vst [vmem:[%s5849_s3 + $0x1c8] sm:$0xff] %v3906_v45   ;;  %v1171_v54 = vmax.f32 %v915_v46, 0.0  ;;  %v3356_v56 = vunpack.c.l.bf16 %v4319_v44  ;;  %v4325_v40 = vld [vmem:[%s5846_s0 + $0x220] sm:$0xff]  }
  0x8b   :  { %v656_v55 = vmul.f32 %v5020_v41, %v3353_v48  ;;  %v3357_v57 = vunpack.c.h.bf16 %v4319_v44  ;;  %v917_v58 = vadd.f32 %v5026_v42, %v654_v51  ;;  %v1172_v59 = vmax.f32 %v916_v52, 0.0 }
  0x8c   :  { %4442 = vst [vmem:[%s5849_s3 + $0x1d0] sm:$0xff] %v3911_v50   ;;  %v918_v60 = vadd.f32 %v5026_v42, %v655_v53  ;;  %v3360_v61 = vunpack.c.l.bf16 %v4320_v49  ;;  %v3916_v63 = vpack.c.bf16 %v1171_v54, %v1170_v47  ;;  %v657_v2 = vmul.f32 %v5020_v41, %v3356_v56 }
  0x8d   :  { %v919_v0 = vadd.f32 %v5026_v42, %v656_v55  ;;  %v658_v3 = vmul.f32 %v5020_v41, %v3357_v57  ;;  %v1173_v4 = vmax.f32 %v917_v58, 0.0  ;;  %v3361_v6 = vunpack.c.h.bf16 %v4320_v49  ;;  %v4326_v49 = vld [vmem:[%s5846_s0 + $0x228] sm:$0xff]  }
  0x8e   :  { %v1174_v5 = vmax.f32 %v918_v60, 0.0  ;;  %v659_v8 = vmul.f32 %v5020_v41, %v3360_v61  ;;  %4443 = vst [vmem:[%s5849_s3 + $0x1d8] sm:$0xff] %v3916_v63   ;;  %v920_v10 = vadd.f32 %v5026_v42, %v657_v2  ;;  %v3364_v12 = vunpack.c.l.bf16 %v4321_v62 }
  0x8f   :  { %v1175_v9 = vmax.f32 %v919_v0, 0.0  ;;  %v921_v11 = vadd.f32 %v5026_v42, %v658_v3  ;;  %v3921_v14 = vpack.c.bf16 %v1173_v4, %v1172_v59  ;;  %v660_v15 = vmul.f32 %v5020_v41, %v3361_v6  ;;  %v4328_v4 = vld [vmem:[%s5846_s0 + $0x238] sm:$0xff]  }
  0x90   :  { %v922_v16 = vadd.f32 %v5026_v42, %v659_v8  ;;  %v3365_v17 = vunpack.c.h.bf16 %v4321_v62  ;;  %v1176_v20 = vmax.f32 %v920_v10, 0.0  ;;  %v661_v22 = vmul.f32 %v5020_v41, %v3364_v12  ;;  %v4327_v62 = vld [vmem:[%s5846_s0 + $0x230] sm:$0xff]  }
  0x91   :  { %v3926_v19 = vpack.c.bf16 %v1175_v9, %v1174_v5  ;;  %v1177_v21 = vmax.f32 %v921_v11, 0.0  ;;  %4444 = vst [vmem:[%s5849_s3 + $0x1e0] sm:$0xff] %v3921_v14   ;;  %v923_v23 = vadd.f32 %v5026_v42, %v660_v15  ;;  %v3368_v26 = vunpack.c.l.bf16 %v4322_v13 }
  0x92   :  { %v1178_v24 = vmax.f32 %v922_v16, 0.0  ;;  %v662_v25 = vmul.f32 %v5020_v41, %v3365_v17  ;;  %v924_v29 = vadd.f32 %v5026_v42, %v661_v22  ;;  %v3369_v30 = vunpack.c.h.bf16 %v4322_v13 }
  0x93   :  { %4445 = vst [vmem:[%s5849_s3 + $0x1e8] sm:$0xff] %v3926_v19   ;;  %v3931_v28 = vpack.c.bf16 %v1177_v21, %v1176_v20  ;;  %v3372_v31 = vunpack.c.l.bf16 %v4323_v18  ;;  %v1179_v32 = vmax.f32 %v923_v23, 0.0  ;;  %v663_v34 = vmul.f32 %v5020_v41, %v3368_v26 }
  0x94   :  { %v925_v33 = vadd.f32 %v5026_v42, %v662_v25  ;;  %v3373_v35 = vunpack.c.h.bf16 %v4323_v18  ;;  %v1180_v36 = vmax.f32 %v924_v29, 0.0  ;;  %v664_v37 = vmul.f32 %v5020_v41, %v3369_v30  ;;  %v4329_v18 = vld [vmem:[%s5846_s0 + $0x240] sm:$0xff]  }
  0x95   :  { %4446 = vst [vmem:[%s5849_s3 + $0x1f0] sm:$0xff] %v3931_v28   ;;  %v665_v38 = vmul.f32 %v5020_v41, %v3372_v31  ;;  %v3376_v39 = vunpack.c.l.bf16 %v4324_v27  ;;  %v3936_v1 = vpack.c.bf16 %v1179_v32, %v1178_v24  ;;  %v926_v43 = vadd.f32 %v5026_v42, %v663_v34  ;;  %v4330_v31 = vld [vmem:[%s5846_s0 + $0x248] sm:$0xff]  }
  0x96   :  { %v1181_v7 = vmax.f32 %v925_v33, 0.0  ;;  %v666_v44 = vmul.f32 %v5020_v41, %v3373_v35  ;;  %v927_v45 = vadd.f32 %v5026_v42, %v664_v37  ;;  %v3377_v47 = vunpack.c.h.bf16 %v4324_v27 }
  0x97   :  { %v928_v46 = vadd.f32 %v5026_v42, %v665_v38  ;;  %v667_v48 = vmul.f32 %v5020_v41, %v3376_v39  ;;  %4447 = vst [vmem:[%s5849_s3 + $0x1f8] sm:$0xff] %v3936_v1   ;;  %v1182_v51 = vmax.f32 %v926_v43, 0.0  ;;  %v3380_v53 = vunpack.c.l.bf16 %v4325_v40 }
  0x98   :  { %v3941_v50 = vpack.c.bf16 %v1181_v7, %v1180_v36  ;;  %v929_v52 = vadd.f32 %v5026_v42, %v666_v44  ;;  %v1183_v54 = vmax.f32 %v927_v45, 0.0  ;;  %v668_v56 = vmul.f32 %v5020_v41, %v3377_v47  ;;  %v4331_v36 = vld [vmem:[%s5846_s0 + $0x250] sm:$0xff]   ;;  %v4332_v45 = vld [vmem:[%s5846_s0 + $0x258] sm:$0xff]  }
  0x99   :  { %v1184_v55 = vmax.f32 %v928_v46, 0.0  ;;  %v930_v57 = vadd.f32 %v5026_v42, %v667_v48  ;;  %v3381_v59 = vunpack.c.h.bf16 %v4325_v40  ;;  %v669_v60 = vmul.f32 %v5020_v41, %v3380_v53 }
  0x9a   :  { %4448 = vst [vmem:[%s5849_s3 + $0x200] sm:$0xff] %v3941_v50   ;;  %v1185_v58 = vmax.f32 %v929_v52, 0.0  ;;  %v3384_v61 = vunpack.c.l.bf16 %v4326_v49  ;;  %v3946_v63 = vpack.c.bf16 %v1183_v54, %v1182_v51  ;;  %v931_v0 = vadd.f32 %v5026_v42, %v668_v56 }
  0x9b   :  { %v1186_v2 = vmax.f32 %v930_v57, 0.0  ;;  %v3385_v3 = vunpack.c.h.bf16 %v4326_v49  ;;  %v670_v6 = vmul.f32 %v5020_v41, %v3381_v59  ;;  %v932_v8 = vadd.f32 %v5026_v42, %v669_v60 }
  0x9c   :  { %v3951_v5 = vpack.c.bf16 %v1185_v58, %v1184_v55  ;;  %v671_v9 = vmul.f32 %v5020_v41, %v3384_v61  ;;  %4449 = vst [vmem:[%s5849_s3 + $0x208] sm:$0xff] %v3946_v63   ;;  %v1187_v10 = vmax.f32 %v931_v0, 0.0  ;;  %v3388_v12 = vunpack.c.l.bf16 %v4327_v62  ;;  %v4333_v58 = vld [vmem:[%s5846_s0 + $0x260] sm:$0xff]  }
  0x9d   :  { %v672_v11 = vmul.f32 %v5020_v41, %v3385_v3  ;;  %v3389_v13 = vunpack.c.h.bf16 %v4327_v62  ;;  %v933_v14 = vadd.f32 %v5026_v42, %v670_v6  ;;  %v1188_v15 = vmax.f32 %v932_v8, 0.0 }
  0x9e   :  { %4450 = vst [vmem:[%s5849_s3 + $0x210] sm:$0xff] %v3951_v5   ;;  %v934_v16 = vadd.f32 %v5026_v42, %v671_v9  ;;  %v3392_v17 = vunpack.c.l.bf16 %v4328_v4  ;;  %v3956_v19 = vpack.c.bf16 %v1187_v10, %v1186_v2  ;;  %v673_v21 = vmul.f32 %v5020_v41, %v3388_v12 }
  0x9f   :  { %v935_v20 = vadd.f32 %v5026_v42, %v672_v11  ;;  %v674_v22 = vmul.f32 %v5020_v41, %v3389_v13  ;;  %v1189_v23 = vmax.f32 %v933_v14, 0.0  ;;  %v3393_v25 = vunpack.c.h.bf16 %v4328_v4  ;;  %v4334_v4 = vld [vmem:[%s5846_s0 + $0x268] sm:$0xff]  }
  0xa0   :  { %v1190_v24 = vmax.f32 %v934_v16, 0.0  ;;  %v675_v26 = vmul.f32 %v5020_v41, %v3392_v17  ;;  %4451 = vst [vmem:[%s5849_s3 + $0x218] sm:$0xff] %v3956_v19   ;;  %v936_v28 = vadd.f32 %v5026_v42, %v673_v21  ;;  %v3396_v30 = vunpack.c.l.bf16 %v4329_v18 }
  0xa1   :  { %v1191_v27 = vmax.f32 %v935_v20, 0.0  ;;  %v937_v29 = vadd.f32 %v5026_v42, %v674_v22  ;;  %v3961_v32 = vpack.c.bf16 %v1189_v23, %v1188_v15  ;;  %v676_v33 = vmul.f32 %v5020_v41, %v3393_v25  ;;  %v4336_v23 = vld [vmem:[%s5846_s0 + $0x278] sm:$0xff]  }
  0xa2   :  { %v938_v34 = vadd.f32 %v5026_v42, %v675_v26  ;;  %v3397_v35 = vunpack.c.h.bf16 %v4329_v18  ;;  %v1192_v38 = vmax.f32 %v936_v28, 0.0  ;;  %v677_v40 = vmul.f32 %v5020_v41, %v3396_v30  ;;  %v4335_v18 = vld [vmem:[%s5846_s0 + $0x270] sm:$0xff]  }
  0xa3   :  { %v3966_v37 = vpack.c.bf16 %v1191_v27, %v1190_v24  ;;  %v1193_v39 = vmax.f32 %v937_v29, 0.0  ;;  %4452 = vst [vmem:[%s5849_s3 + $0x220] sm:$0xff] %v3961_v32   ;;  %v939_v1 = vadd.f32 %v5026_v42, %v676_v33  ;;  %v3400_v44 = vunpack.c.l.bf16 %v4330_v31 }
  0xa4   :  { %v1194_v7 = vmax.f32 %v938_v34, 0.0  ;;  %v678_v43 = vmul.f32 %v5020_v41, %v3397_v35  ;;  %v940_v47 = vadd.f32 %v5026_v42, %v677_v40  ;;  %v3401_v48 = vunpack.c.h.bf16 %v4330_v31 }
  0xa5   :  { %4453 = vst [vmem:[%s5849_s3 + $0x228] sm:$0xff] %v3966_v37   ;;  %v3971_v46 = vpack.c.bf16 %v1193_v39, %v1192_v38  ;;  %v3404_v49 = vunpack.c.l.bf16 %v4331_v36  ;;  %v1195_v50 = vmax.f32 %v939_v1, 0.0  ;;  %v679_v52 = vmul.f32 %v5020_v41, %v3400_v44 }
  0xa6   :  { %v941_v51 = vadd.f32 %v5026_v42, %v678_v43  ;;  %v3405_v53 = vunpack.c.h.bf16 %v4331_v36  ;;  %v1196_v54 = vmax.f32 %v940_v47, 0.0  ;;  %v680_v55 = vmul.f32 %v5020_v41, %v3401_v48  ;;  %v4337_v36 = vld [vmem:[%s5846_s0 + $0x280] sm:$0xff]  }
  0xa7   :  { %4454 = vst [vmem:[%s5849_s3 + $0x230] sm:$0xff] %v3971_v46   ;;  %v681_v56 = vmul.f32 %v5020_v41, %v3404_v49  ;;  %v3408_v57 = vunpack.c.l.bf16 %v4332_v45  ;;  %v3976_v59 = vpack.c.bf16 %v1195_v50, %v1194_v7  ;;  %v942_v61 = vadd.f32 %v5026_v42, %v679_v52  ;;  %v4338_v49 = vld [vmem:[%s5846_s0 + $0x288] sm:$0xff]  }
  0xa8   :  { %v1197_v60 = vmax.f32 %v941_v51, 0.0  ;;  %v682_v62 = vmul.f32 %v5020_v41, %v3405_v53  ;;  %v943_v63 = vadd.f32 %v5026_v42, %v680_v55  ;;  %v3409_v2 = vunpack.c.h.bf16 %v4332_v45 }
  0xa9   :  { %v944_v0 = vadd.f32 %v5026_v42, %v681_v56  ;;  %v683_v3 = vmul.f32 %v5020_v41, %v3408_v57  ;;  %4455 = vst [vmem:[%s5849_s3 + $0x238] sm:$0xff] %v3976_v59   ;;  %v1198_v6 = vmax.f32 %v942_v61, 0.0  ;;  %v3412_v9 = vunpack.c.l.bf16 %v4333_v58 }
  0xaa   :  { %v3981_v5 = vpack.c.bf16 %v1197_v60, %v1196_v54  ;;  %v945_v8 = vadd.f32 %v5026_v42, %v682_v62  ;;  %v1199_v10 = vmax.f32 %v943_v63, 0.0  ;;  %v684_v12 = vmul.f32 %v5020_v41, %v3409_v2  ;;  %v4339_v54 = vld [vmem:[%s5846_s0 + $0x290] sm:$0xff]   ;;  %v4340_v63 = vld [vmem:[%s5846_s0 + $0x298] sm:$0xff]  }
  0xab   :  { %v1200_v11 = vmax.f32 %v944_v0, 0.0  ;;  %v946_v13 = vadd.f32 %v5026_v42, %v683_v3  ;;  %v3413_v15 = vunpack.c.h.bf16 %v4333_v58  ;;  %v685_v16 = vmul.f32 %v5020_v41, %v3412_v9 }
  0xac   :  { %4456 = vst [vmem:[%s5849_s3 + $0x240] sm:$0xff] %v3981_v5   ;;  %v1201_v14 = vmax.f32 %v945_v8, 0.0  ;;  %v3416_v17 = vunpack.c.l.bf16 %v4334_v4  ;;  %v3986_v19 = vpack.c.bf16 %v1199_v10, %v1198_v6  ;;  %v947_v20 = vadd.f32 %v5026_v42, %v684_v12 }
  0xad   :  { %v1202_v21 = vmax.f32 %v946_v13, 0.0  ;;  %v3417_v22 = vunpack.c.h.bf16 %v4334_v4  ;;  %v686_v25 = vmul.f32 %v5020_v41, %v3413_v15  ;;  %v948_v26 = vadd.f32 %v5026_v42, %v685_v16 }
  0xae   :  { %v3991_v24 = vpack.c.bf16 %v1201_v14, %v1200_v11  ;;  %v687_v27 = vmul.f32 %v5020_v41, %v3416_v17  ;;  %4457 = vst [vmem:[%s5849_s3 + $0x248] sm:$0xff] %v3986_v19   ;;  %v1203_v28 = vmax.f32 %v947_v20, 0.0  ;;  %v3420_v30 = vunpack.c.l.bf16 %v4335_v18  ;;  %v4341_v14 = vld [vmem:[%s5846_s0 + $0x2a0] sm:$0xff]  }
  0xaf   :  { %v688_v29 = vmul.f32 %v5020_v41, %v3417_v22  ;;  %v3421_v31 = vunpack.c.h.bf16 %v4335_v18  ;;  %v949_v32 = vadd.f32 %v5026_v42, %v686_v25  ;;  %v1204_v33 = vmax.f32 %v948_v26, 0.0 }
  0xb0   :  { %4458 = vst [vmem:[%s5849_s3 + $0x250] sm:$0xff] %v3991_v24   ;;  %v950_v34 = vadd.f32 %v5026_v42, %v687_v27  ;;  %v3424_v35 = vunpack.c.l.bf16 %v4336_v23  ;;  %v3996_v37 = vpack.c.bf16 %v1203_v28, %v1202_v21  ;;  %v689_v39 = vmul.f32 %v5020_v41, %v3420_v30 }
  0xb1   :  { %v951_v38 = vadd.f32 %v5026_v42, %v688_v29  ;;  %v690_v40 = vmul.f32 %v5020_v41, %v3421_v31  ;;  %v1205_v1 = vmax.f32 %v949_v32, 0.0  ;;  %v3425_v43 = vunpack.c.h.bf16 %v4336_v23  ;;  %v4342_v23 = vld [vmem:[%s5846_s0 + $0x2a8] sm:$0xff]  }
  0xb2   :  { %v1206_v7 = vmax.f32 %v950_v34, 0.0  ;;  %v691_v44 = vmul.f32 %v5020_v41, %v3424_v35  ;;  %4459 = vst [vmem:[%s5849_s3 + $0x258] sm:$0xff] %v3996_v37   ;;  %v952_v46 = vadd.f32 %v5026_v42, %v689_v39  ;;  %v3428_v48 = vunpack.c.l.bf16 %v4337_v36 }
  0xb3   :  { %v1207_v45 = vmax.f32 %v951_v38, 0.0  ;;  %v953_v47 = vadd.f32 %v5026_v42, %v690_v40  ;;  %v4001_v50 = vpack.c.bf16 %v1205_v1, %v1204_v33  ;;  %v692_v51 = vmul.f32 %v5020_v41, %v3425_v43  ;;  %v4344_v1 = vld [vmem:[%s5846_s0 + $0x2b8] sm:$0xff]  }
  0xb4   :  { %v954_v52 = vadd.f32 %v5026_v42, %v691_v44  ;;  %v3429_v53 = vunpack.c.h.bf16 %v4337_v36  ;;  %v1208_v56 = vmax.f32 %v952_v46, 0.0  ;;  %v693_v58 = vmul.f32 %v5020_v41, %v3428_v48  ;;  %v4343_v36 = vld [vmem:[%s5846_s0 + $0x2b0] sm:$0xff]  }
  0xb5   :  { %v4006_v55 = vpack.c.bf16 %v1207_v45, %v1206_v7  ;;  %v1209_v57 = vmax.f32 %v953_v47, 0.0  ;;  %4460 = vst [vmem:[%s5849_s3 + $0x260] sm:$0xff] %v4001_v50   ;;  %v955_v59 = vadd.f32 %v5026_v42, %v692_v51  ;;  %v3432_v62 = vunpack.c.l.bf16 %v4338_v49 }
  0xb6   :  { %v1210_v60 = vmax.f32 %v954_v52, 0.0  ;;  %v694_v61 = vmul.f32 %v5020_v41, %v3429_v53  ;;  %v956_v2 = vadd.f32 %v5026_v42, %v693_v58  ;;  %v3433_v3 = vunpack.c.h.bf16 %v4338_v49 }
  0xb7   :  { %4461 = vst [vmem:[%s5849_s3 + $0x268] sm:$0xff] %v4006_v55   ;;  %v4011_v0 = vpack.c.bf16 %v1209_v57, %v1208_v56  ;;  %v3436_v4 = vunpack.c.l.bf16 %v4339_v54  ;;  %v1211_v5 = vmax.f32 %v955_v59, 0.0  ;;  %v695_v8 = vmul.f32 %v5020_v41, %v3432_v62 }
  0xb8   :  { %v957_v6 = vadd.f32 %v5026_v42, %v694_v61  ;;  %v3437_v9 = vunpack.c.h.bf16 %v4339_v54  ;;  %v1212_v10 = vmax.f32 %v956_v2, 0.0  ;;  %v696_v11 = vmul.f32 %v5020_v41, %v3433_v3  ;;  %v4345_v54 = vld [vmem:[%s5846_s0 + $0x2c0] sm:$0xff]  }
  0xb9   :  { %4462 = vst [vmem:[%s5849_s3 + $0x270] sm:$0xff] %v4011_v0   ;;  %v697_v12 = vmul.f32 %v5020_v41, %v3436_v4  ;;  %v3440_v13 = vunpack.c.l.bf16 %v4340_v63  ;;  %v4016_v15 = vpack.c.bf16 %v1211_v5, %v1210_v60  ;;  %v958_v17 = vadd.f32 %v5026_v42, %v695_v8  ;;  %v4346_v4 = vld [vmem:[%s5846_s0 + $0x2c8] sm:$0xff]  }
  0xba   :  { %v1213_v16 = vmax.f32 %v957_v6, 0.0  ;;  %v698_v18 = vmul.f32 %v5020_v41, %v3437_v9  ;;  %v959_v19 = vadd.f32 %v5026_v42, %v696_v11  ;;  %v3441_v21 = vunpack.c.h.bf16 %v4340_v63 }
  0xbb   :  { %v960_v20 = vadd.f32 %v5026_v42, %v697_v12  ;;  %v699_v22 = vmul.f32 %v5020_v41, %v3440_v13  ;;  %4463 = vst [vmem:[%s5849_s3 + $0x278] sm:$0xff] %v4016_v15   ;;  %v1214_v25 = vmax.f32 %v958_v17, 0.0  ;;  %v3444_v27 = vunpack.c.l.bf16 %v4341_v14 }
  0xbc   :  { %v4021_v24 = vpack.c.bf16 %v1213_v16, %v1212_v10  ;;  %v961_v26 = vadd.f32 %v5026_v42, %v698_v18  ;;  %v1215_v28 = vmax.f32 %v959_v19, 0.0  ;;  %v700_v30 = vmul.f32 %v5020_v41, %v3441_v21  ;;  %v4347_v10 = vld [vmem:[%s5846_s0 + $0x2d0] sm:$0xff]   ;;  %v4348_v19 = vld [vmem:[%s5846_s0 + $0x2d8] sm:$0xff]  }
  0xbd   :  { %v1216_v29 = vmax.f32 %v960_v20, 0.0  ;;  %v962_v31 = vadd.f32 %v5026_v42, %v699_v22  ;;  %v3445_v33 = vunpack.c.h.bf16 %v4341_v14  ;;  %v701_v34 = vmul.f32 %v5020_v41, %v3444_v27 }
  0xbe   :  { %4464 = vst [vmem:[%s5849_s3 + $0x280] sm:$0xff] %v4021_v24   ;;  %v1217_v32 = vmax.f32 %v961_v26, 0.0  ;;  %v3448_v35 = vunpack.c.l.bf16 %v4342_v23  ;;  %v4026_v37 = vpack.c.bf16 %v1215_v28, %v1214_v25  ;;  %v963_v38 = vadd.f32 %v5026_v42, %v700_v30 }
  0xbf   :  { %v1218_v39 = vmax.f32 %v962_v31, 0.0  ;;  %v3449_v40 = vunpack.c.h.bf16 %v4342_v23  ;;  %v702_v43 = vmul.f32 %v5020_v41, %v3445_v33  ;;  %v964_v44 = vadd.f32 %v5026_v42, %v701_v34 }
  0xc0   :  { %v4031_v7 = vpack.c.bf16 %v1217_v32, %v1216_v29  ;;  %v703_v45 = vmul.f32 %v5020_v41, %v3448_v35  ;;  %4465 = vst [vmem:[%s5849_s3 + $0x288] sm:$0xff] %v4026_v37   ;;  %v1219_v46 = vmax.f32 %v963_v38, 0.0  ;;  %v3452_v48 = vunpack.c.l.bf16 %v4343_v36  ;;  %v4349_v32 = vld [vmem:[%s5846_s0 + $0x2e0] sm:$0xff]  }
  0xc1   :  { %v704_v47 = vmul.f32 %v5020_v41, %v3449_v40  ;;  %v3453_v49 = vunpack.c.h.bf16 %v4343_v36  ;;  %v965_v50 = vadd.f32 %v5026_v42, %v702_v43  ;;  %v1220_v51 = vmax.f32 %v964_v44, 0.0 }
  0xc2   :  { %4466 = vst [vmem:[%s5849_s3 + $0x290] sm:$0xff] %v4031_v7   ;;  %v966_v52 = vadd.f32 %v5026_v42, %v703_v45  ;;  %v3456_v53 = vunpack.c.l.bf16 %v4344_v1  ;;  %v4036_v55 = vpack.c.bf16 %v1219_v46, %v1218_v39  ;;  %v705_v57 = vmul.f32 %v5020_v41, %v3452_v48 }
  0xc3   :  { %v967_v56 = vadd.f32 %v5026_v42, %v704_v47  ;;  %v706_v58 = vmul.f32 %v5020_v41, %v3453_v49  ;;  %v1221_v59 = vmax.f32 %v965_v50, 0.0  ;;  %v3457_v61 = vunpack.c.h.bf16 %v4344_v1  ;;  %v4350_v1 = vld [vmem:[%s5846_s0 + $0x2e8] sm:$0xff]  }
  0xc4   :  { %v1222_v60 = vmax.f32 %v966_v52, 0.0  ;;  %v707_v62 = vmul.f32 %v5020_v41, %v3456_v53  ;;  %4467 = vst [vmem:[%s5849_s3 + $0x298] sm:$0xff] %v4036_v55   ;;  %v968_v0 = vadd.f32 %v5026_v42, %v705_v57  ;;  %v3460_v3 = vunpack.c.l.bf16 %v4345_v54 }
  0xc5   :  { %v1223_v63 = vmax.f32 %v967_v56, 0.0  ;;  %v969_v2 = vadd.f32 %v5026_v42, %v706_v58  ;;  %v4041_v5 = vpack.c.bf16 %v1221_v59, %v1220_v51  ;;  %v708_v6 = vmul.f32 %v5020_v41, %v3457_v61  ;;  %v4352_v59 = vld [vmem:[%s5846_s0 + $0x2f8] sm:$0xff]  }
  0xc6   :  { %v970_v8 = vadd.f32 %v5026_v42, %v707_v62  ;;  %v3461_v9 = vunpack.c.h.bf16 %v4345_v54  ;;  %v1224_v12 = vmax.f32 %v968_v0, 0.0  ;;  %v709_v14 = vmul.f32 %v5020_v41, %v3460_v3  ;;  %v4351_v54 = vld [vmem:[%s5846_s0 + $0x2f0] sm:$0xff]  }
  0xc7   :  { %v4046_v11 = vpack.c.bf16 %v1223_v63, %v1222_v60  ;;  %v1225_v13 = vmax.f32 %v969_v2, 0.0  ;;  %4468 = vst [vmem:[%s5849_s3 + $0x2a0] sm:$0xff] %v4041_v5   ;;  %v971_v15 = vadd.f32 %v5026_v42, %v708_v6  ;;  %v3464_v18 = vunpack.c.l.bf16 %v4346_v4 }
  0xc8   :  { %v1226_v16 = vmax.f32 %v970_v8, 0.0  ;;  %v710_v17 = vmul.f32 %v5020_v41, %v3461_v9  ;;  %v972_v21 = vadd.f32 %v5026_v42, %v709_v14  ;;  %v3465_v22 = vunpack.c.h.bf16 %v4346_v4 }
  0xc9   :  { %4469 = vst [vmem:[%s5849_s3 + $0x2a8] sm:$0xff] %v4046_v11   ;;  %v4051_v20 = vpack.c.bf16 %v1225_v13, %v1224_v12  ;;  %v3468_v23 = vunpack.c.l.bf16 %v4347_v10  ;;  %v1227_v24 = vmax.f32 %v971_v15, 0.0  ;;  %v711_v26 = vmul.f32 %v5020_v41, %v3464_v18  ;;  %v5504_v13 = vld [vmem:[%s5847_s1] ss:$0 sm:$0xff] }
  0xca   :  { %v973_v25 = vadd.f32 %v5026_v42, %v710_v17  ;;  %v3469_v27 = vunpack.c.h.bf16 %v4347_v10  ;;  %v1228_v28 = vmax.f32 %v972_v21, 0.0  ;;  %v712_v29 = vmul.f32 %v5020_v41, %v3465_v22  ;;  %v4353_v10 = vld [vmem:[%s5846_s0 + $0x300] sm:$0xff]  }
  0xcb   :  { %4470 = vst [vmem:[%s5849_s3 + $0x2b0] sm:$0xff] %v4051_v20   ;;  %v713_v30 = vmul.f32 %v5020_v41, %v3468_v23  ;;  %v3472_v31 = vunpack.c.l.bf16 %v4348_v19  ;;  %v4056_v33 = vpack.c.bf16 %v1227_v24, %v1226_v16  ;;  %v974_v35 = vadd.f32 %v5026_v42, %v711_v26  ;;  %v4354_v23 = vld [vmem:[%s5846_s0 + $0x308] sm:$0xff]  }
  0xcc   :  { %v1229_v34 = vmax.f32 %v973_v25, 0.0  ;;  %v714_v36 = vmul.f32 %v5020_v41, %v3469_v27  ;;  %v975_v37 = vadd.f32 %v5026_v42, %v712_v29  ;;  %v3473_v39 = vunpack.c.h.bf16 %v4348_v19 }
  0xcd   :  { %v976_v38 = vadd.f32 %v5026_v42, %v713_v30  ;;  %v715_v40 = vmul.f32 %v5020_v41, %v3472_v31  ;;  %4471 = vst [vmem:[%s5849_s3 + $0x2b8] sm:$0xff] %v4056_v33   ;;  %v1230_v43 = vmax.f32 %v974_v35, 0.0  ;;  %v3476_v45 = vunpack.c.l.bf16 %v4349_v32 }
  0xce   :  { %v4061_v7 = vpack.c.bf16 %v1229_v34, %v1228_v28  ;;  %v977_v44 = vadd.f32 %v5026_v42, %v714_v36  ;;  %v1231_v46 = vmax.f32 %v975_v37, 0.0  ;;  %v716_v48 = vmul.f32 %v5020_v41, %v3473_v39  ;;  %v4355_v28 = vld [vmem:[%s5846_s0 + $0x310] sm:$0xff]   ;;  %v4356_v37 = vld [vmem:[%s5846_s0 + $0x318] sm:$0xff]  }
  0xcf   :  { %v1232_v47 = vmax.f32 %v976_v38, 0.0  ;;  %v978_v49 = vadd.f32 %v5026_v42, %v715_v40  ;;  %v3477_v51 = vunpack.c.h.bf16 %v4349_v32  ;;  %v717_v52 = vmul.f32 %v5020_v41, %v3476_v45 }
  0xd0   :  { %4472 = vst [vmem:[%s5849_s3 + $0x2c0] sm:$0xff] %v4061_v7   ;;  %v1233_v50 = vmax.f32 %v977_v44, 0.0  ;;  %v3480_v53 = vunpack.c.l.bf16 %v4350_v1  ;;  %v4066_v55 = vpack.c.bf16 %v1231_v46, %v1230_v43  ;;  %v979_v56 = vadd.f32 %v5026_v42, %v716_v48 }
  0xd1   :  { %v1234_v57 = vmax.f32 %v978_v49, 0.0  ;;  %v3481_v58 = vunpack.c.h.bf16 %v4350_v1  ;;  %v718_v61 = vmul.f32 %v5020_v41, %v3477_v51  ;;  %v980_v62 = vadd.f32 %v5026_v42, %v717_v52 }
  0xd2   :  { %v4071_v60 = vpack.c.bf16 %v1233_v50, %v1232_v47  ;;  %v719_v63 = vmul.f32 %v5020_v41, %v3480_v53  ;;  %4473 = vst [vmem:[%s5849_s3 + $0x2c8] sm:$0xff] %v4066_v55   ;;  %v1235_v0 = vmax.f32 %v979_v56, 0.0  ;;  %v3484_v3 = vunpack.c.l.bf16 %v4351_v54  ;;  %v4357_v50 = vld [vmem:[%s5846_s0 + $0x320] sm:$0xff]  }
  0xd3   :  { %v720_v2 = vmul.f32 %v5020_v41, %v3481_v58  ;;  %v3485_v4 = vunpack.c.h.bf16 %v4351_v54  ;;  %v981_v5 = vadd.f32 %v5026_v42, %v718_v61  ;;  %v1236_v6 = vmax.f32 %v980_v62, 0.0  ;;  %v5498_v41 = vld [vmem:[%s5848_s2] ss:$0 sm:$0xff] }
  0xd4   :  { %4474 = vst [vmem:[%s5849_s3 + $0x2d0] sm:$0xff] %v4071_v60   ;;  %v982_v8 = vadd.f32 %v5026_v42, %v719_v63  ;;  %v3488_v9 = vunpack.c.l.bf16 %v4352_v59  ;;  %v4076_v11 = vpack.c.bf16 %v1235_v0, %v1234_v57  ;;  %v721_v42 = vmul.f32 %v5504_v13, %v3484_v3 }
  0xd5   :  { %v983_v12 = vadd.f32 %v5498_v41, %v720_v2  ;;  %v722_v14 = vmul.f32 %v5504_v13, %v3485_v4  ;;  %v1237_v15 = vmax.f32 %v981_v5, 0.0  ;;  %v3489_v17 = vunpack.c.h.bf16 %v4352_v59  ;;  %v4358_v59 = vld [vmem:[%s5846_s0 + $0x328] sm:$0xff]  }
  0xd6   :  { %v1238_v16 = vmax.f32 %v982_v8, 0.0  ;;  %v723_v18 = vmul.f32 %v5504_v13, %v3488_v9  ;;  %4475 = vst [vmem:[%s5849_s3 + $0x2d8] sm:$0xff] %v4076_v11   ;;  %v984_v20 = vadd.f32 %v5498_v41, %v721_v42  ;;  %v3492_v22 = vunpack.c.l.bf16 %v4353_v10 }
  0xd7   :  { %v1239_v19 = vmax.f32 %v983_v12, 0.0  ;;  %v985_v21 = vadd.f32 %v5498_v41, %v722_v14  ;;  %v4081_v24 = vpack.c.bf16 %v1237_v15, %v1236_v6  ;;  %v724_v25 = vmul.f32 %v5504_v13, %v3489_v17  ;;  %v4360_v15 = vld [vmem:[%s5846_s0 + $0x338] sm:$0xff]  }
  0xd8   :  { %v986_v26 = vadd.f32 %v5498_v41, %v723_v18  ;;  %v3493_v27 = vunpack.c.h.bf16 %v4353_v10  ;;  %v1240_v30 = vmax.f32 %v984_v20, 0.0  ;;  %v725_v32 = vmul.f32 %v5504_v13, %v3492_v22  ;;  %v4359_v10 = vld [vmem:[%s5846_s0 + $0x330] sm:$0xff]  }
  0xd9   :  { %v4086_v29 = vpack.c.bf16 %v1239_v19, %v1238_v16  ;;  %v1241_v31 = vmax.f32 %v985_v21, 0.0  ;;  %4476 = vst [vmem:[%s5849_s3 + $0x2e0] sm:$0xff] %v4081_v24   ;;  %v987_v33 = vadd.f32 %v5498_v41, %v724_v25  ;;  %v3496_v36 = vunpack.c.l.bf16 %v4354_v23 }
  0xda   :  { %v1242_v34 = vmax.f32 %v986_v26, 0.0  ;;  %v726_v35 = vmul.f32 %v5504_v13, %v3493_v27  ;;  %v988_v39 = vadd.f32 %v5498_v41, %v725_v32  ;;  %v3497_v40 = vunpack.c.h.bf16 %v4354_v23 }
  0xdb   :  { %4477 = vst [vmem:[%s5849_s3 + $0x2e8] sm:$0xff] %v4086_v29   ;;  %v4091_v38 = vpack.c.bf16 %v1241_v31, %v1240_v30  ;;  %v3500_v1 = vunpack.c.l.bf16 %v4355_v28  ;;  %v1243_v7 = vmax.f32 %v987_v33, 0.0  ;;  %v727_v44 = vmul.f32 %v5504_v13, %v3496_v36 }
  0xdc   :  { %v989_v43 = vadd.f32 %v5498_v41, %v726_v35  ;;  %v3501_v45 = vunpack.c.h.bf16 %v4355_v28  ;;  %v1244_v46 = vmax.f32 %v988_v39, 0.0  ;;  %v728_v47 = vmul.f32 %v5504_v13, %v3497_v40  ;;  %v4361_v28 = vld [vmem:[%s5846_s0 + $0x340] sm:$0xff]  }
  0xdd   :  { %4478 = vst [vmem:[%s5849_s3 + $0x2f0] sm:$0xff] %v4091_v38   ;;  %v729_v48 = vmul.f32 %v5504_v13, %v3500_v1  ;;  %v3504_v49 = vunpack.c.l.bf16 %v4356_v37  ;;  %v4096_v51 = vpack.c.bf16 %v1243_v7, %v1242_v34  ;;  %v990_v53 = vadd.f32 %v5498_v41, %v727_v44  ;;  %v4362_v1 = vld [vmem:[%s5846_s0 + $0x348] sm:$0xff]  }
  0xde   :  { %v1245_v52 = vmax.f32 %v989_v43, 0.0  ;;  %v730_v54 = vmul.f32 %v5504_v13, %v3501_v45  ;;  %v991_v55 = vadd.f32 %v5498_v41, %v728_v47  ;;  %v3505_v57 = vunpack.c.h.bf16 %v4356_v37 }
  0xdf   :  { %v992_v56 = vadd.f32 %v5498_v41, %v729_v48  ;;  %v731_v58 = vmul.f32 %v5504_v13, %v3504_v49  ;;  %4479 = vst [vmem:[%s5849_s3 + $0x2f8] sm:$0xff] %v4096_v51   ;;  %v1246_v61 = vmax.f32 %v990_v53, 0.0  ;;  %v3508_v63 = vunpack.c.l.bf16 %v4357_v50 }
  0xe0   :  { %v4101_v60 = vpack.c.bf16 %v1245_v52, %v1244_v46  ;;  %v993_v62 = vadd.f32 %v5498_v41, %v730_v54  ;;  %v1247_v0 = vmax.f32 %v991_v55, 0.0  ;;  %v732_v3 = vmul.f32 %v5504_v13, %v3505_v57  ;;  %v4363_v46 = vld [vmem:[%s5846_s0 + $0x350] sm:$0xff]   ;;  %v4364_v55 = vld [vmem:[%s5846_s0 + $0x358] sm:$0xff]  }
  0xe1   :  { %v1248_v2 = vmax.f32 %v992_v56, 0.0  ;;  %v994_v4 = vadd.f32 %v5498_v41, %v731_v58  ;;  %v3509_v6 = vunpack.c.h.bf16 %v4357_v50  ;;  %v733_v8 = vmul.f32 %v5504_v13, %v3508_v63 }
  0xe2   :  { %4480 = vst [vmem:[%s5849_s3 + $0x300] sm:$0xff] %v4101_v60   ;;  %v1249_v5 = vmax.f32 %v993_v62, 0.0  ;;  %v3512_v9 = vunpack.c.l.bf16 %v4358_v59  ;;  %v4106_v11 = vpack.c.bf16 %v1247_v0, %v1246_v61  ;;  %v995_v12 = vadd.f32 %v5498_v41, %v732_v3 }
  0xe3   :  { %v1250_v42 = vmax.f32 %v994_v4, 0.0  ;;  %v3513_v14 = vunpack.c.h.bf16 %v4358_v59  ;;  %v734_v17 = vmul.f32 %v5504_v13, %v3509_v6  ;;  %v996_v18 = vadd.f32 %v5498_v41, %v733_v8 }
  0xe4   :  { %v4111_v16 = vpack.c.bf16 %v1249_v5, %v1248_v2  ;;  %v735_v19 = vmul.f32 %v5504_v13, %v3512_v9  ;;  %4481 = vst [vmem:[%s5849_s3 + $0x308] sm:$0xff] %v4106_v11   ;;  %v1251_v20 = vmax.f32 %v995_v12, 0.0  ;;  %v3516_v22 = vunpack.c.l.bf16 %v4359_v10  ;;  %v4365_v5 = vld [vmem:[%s5846_s0 + $0x360] sm:$0xff]  }
  0xe5   :  { %v736_v21 = vmul.f32 %v5504_v13, %v3513_v14  ;;  %v3517_v23 = vunpack.c.h.bf16 %v4359_v10  ;;  %v997_v24 = vadd.f32 %v5498_v41, %v734_v17  ;;  %v1252_v25 = vmax.f32 %v996_v18, 0.0 }
  0xe6   :  { %4482 = vst [vmem:[%s5849_s3 + $0x310] sm:$0xff] %v4111_v16   ;;  %v998_v26 = vadd.f32 %v5498_v41, %v735_v19  ;;  %v3520_v27 = vunpack.c.l.bf16 %v4360_v15  ;;  %v4116_v29 = vpack.c.bf16 %v1251_v20, %v1250_v42  ;;  %v737_v31 = vmul.f32 %v5504_v13, %v3516_v22 }
  0xe7   :  { %v999_v30 = vadd.f32 %v5498_v41, %v736_v21  ;;  %v738_v32 = vmul.f32 %v5504_v13, %v3517_v23  ;;  %v1253_v33 = vmax.f32 %v997_v24, 0.0  ;;  %v3521_v35 = vunpack.c.h.bf16 %v4360_v15  ;;  %v4366_v15 = vld [vmem:[%s5846_s0 + $0x368] sm:$0xff]  }
  0xe8   :  { %v1254_v34 = vmax.f32 %v998_v26, 0.0  ;;  %v739_v36 = vmul.f32 %v5504_v13, %v3520_v27  ;;  %4483 = vst [vmem:[%s5849_s3 + $0x318] sm:$0xff] %v4116_v29   ;;  %v1000_v38 = vadd.f32 %v5498_v41, %v737_v31  ;;  %v3524_v40 = vunpack.c.l.bf16 %v4361_v28 }
  0xe9   :  { %v1255_v37 = vmax.f32 %v999_v30, 0.0  ;;  %v1001_v39 = vadd.f32 %v5498_v41, %v738_v32  ;;  %v4121_v7 = vpack.c.bf16 %v1253_v33, %v1252_v25  ;;  %v740_v43 = vmul.f32 %v5504_v13, %v3521_v35  ;;  %v4368_v33 = vld [vmem:[%s5846_s0 + $0x378] sm:$0xff]  }
  0xea   :  { %v1002_v44 = vadd.f32 %v5498_v41, %v739_v36  ;;  %v3525_v45 = vunpack.c.h.bf16 %v4361_v28  ;;  %v1256_v48 = vmax.f32 %v1000_v38, 0.0  ;;  %v741_v50 = vmul.f32 %v5504_v13, %v3524_v40  ;;  %v4367_v28 = vld [vmem:[%s5846_s0 + $0x370] sm:$0xff]  }
  0xeb   :  { %v4126_v47 = vpack.c.bf16 %v1255_v37, %v1254_v34  ;;  %v1257_v49 = vmax.f32 %v1001_v39, 0.0  ;;  %4484 = vst [vmem:[%s5849_s3 + $0x320] sm:$0xff] %v4121_v7   ;;  %v1003_v51 = vadd.f32 %v5498_v41, %v740_v43  ;;  %v3528_v54 = vunpack.c.l.bf16 %v4362_v1 }
  0xec   :  { %v1258_v52 = vmax.f32 %v1002_v44, 0.0  ;;  %v742_v53 = vmul.f32 %v5504_v13, %v3525_v45  ;;  %v1004_v57 = vadd.f32 %v5498_v41, %v741_v50  ;;  %v3529_v58 = vunpack.c.h.bf16 %v4362_v1 }
  0xed   :  { %4485 = vst [vmem:[%s5849_s3 + $0x328] sm:$0xff] %v4126_v47   ;;  %v4131_v56 = vpack.c.bf16 %v1257_v49, %v1256_v48  ;;  %v3532_v59 = vunpack.c.l.bf16 %v4363_v46  ;;  %v1259_v60 = vmax.f32 %v1003_v51, 0.0  ;;  %v743_v62 = vmul.f32 %v5504_v13, %v3528_v54 }
  0xee   :  { %v1005_v61 = vadd.f32 %v5498_v41, %v742_v53  ;;  %v3533_v63 = vunpack.c.h.bf16 %v4363_v46  ;;  %v1260_v0 = vmax.f32 %v1004_v57, 0.0  ;;  %v744_v2 = vmul.f32 %v5504_v13, %v3529_v58  ;;  %v4369_v46 = vld [vmem:[%s5846_s0 + $0x380] sm:$0xff]  }
  0xef   :  { %4486 = vst [vmem:[%s5849_s3 + $0x330] sm:$0xff] %v4131_v56   ;;  %v745_v3 = vmul.f32 %v5504_v13, %v3532_v59  ;;  %v3536_v4 = vunpack.c.l.bf16 %v4364_v55  ;;  %v4136_v6 = vpack.c.bf16 %v1259_v60, %v1258_v52  ;;  %v1006_v9 = vadd.f32 %v5498_v41, %v743_v62  ;;  %v4370_v59 = vld [vmem:[%s5846_s0 + $0x388] sm:$0xff]  }
  0xf0   :  { %v1261_v8 = vmax.f32 %v1005_v61, 0.0  ;;  %v746_v10 = vmul.f32 %v5504_v13, %v3533_v63  ;;  %v1007_v11 = vadd.f32 %v5498_v41, %v744_v2  ;;  %v3537_v42 = vunpack.c.h.bf16 %v4364_v55 }
  0xf1   :  { %v1008_v12 = vadd.f32 %v5498_v41, %v745_v3  ;;  %v747_v14 = vmul.f32 %v5504_v13, %v3536_v4  ;;  %4487 = vst [vmem:[%s5849_s3 + $0x338] sm:$0xff] %v4136_v6   ;;  %v1262_v17 = vmax.f32 %v1006_v9, 0.0  ;;  %v3540_v19 = vunpack.c.l.bf16 %v4365_v5 }
  0xf2   :  { %v4141_v16 = vpack.c.bf16 %v1261_v8, %v1260_v0  ;;  %v1009_v18 = vadd.f32 %v5498_v41, %v746_v10  ;;  %v1263_v20 = vmax.f32 %v1007_v11, 0.0  ;;  %v748_v22 = vmul.f32 %v5504_v13, %v3537_v42  ;;  %v4371_v0 = vld [vmem:[%s5846_s0 + $0x390] sm:$0xff]   ;;  %v4372_v11 = vld [vmem:[%s5846_s0 + $0x398] sm:$0xff]  }
  0xf3   :  { %v1264_v21 = vmax.f32 %v1008_v12, 0.0  ;;  %v1010_v23 = vadd.f32 %v5498_v41, %v747_v14  ;;  %v3541_v25 = vunpack.c.h.bf16 %v4365_v5  ;;  %v749_v26 = vmul.f32 %v5504_v13, %v3540_v19 }
  0xf4   :  { %4488 = vst [vmem:[%s5849_s3 + $0x340] sm:$0xff] %v4141_v16   ;;  %v1265_v24 = vmax.f32 %v1009_v18, 0.0  ;;  %v3544_v27 = vunpack.c.l.bf16 %v4366_v15  ;;  %v4146_v29 = vpack.c.bf16 %v1263_v20, %v1262_v17  ;;  %v1011_v30 = vadd.f32 %v5498_v41, %v748_v22 }
  0xf5   :  { %v1266_v31 = vmax.f32 %v1010_v23, 0.0  ;;  %v3545_v32 = vunpack.c.h.bf16 %v4366_v15  ;;  %v750_v35 = vmul.f32 %v5504_v13, %v3541_v25  ;;  %v1012_v36 = vadd.f32 %v5498_v41, %v749_v26 }
  0xf6   :  { %v4151_v34 = vpack.c.bf16 %v1265_v24, %v1264_v21  ;;  %v751_v37 = vmul.f32 %v5504_v13, %v3544_v27  ;;  %4489 = vst [vmem:[%s5849_s3 + $0x348] sm:$0xff] %v4146_v29   ;;  %v1267_v38 = vmax.f32 %v1011_v30, 0.0  ;;  %v3548_v40 = vunpack.c.l.bf16 %v4367_v28  ;;  %v4373_v24 = vld [vmem:[%s5846_s0 + $0x3a0] sm:$0xff]  }
  0xf7   :  { %v752_v39 = vmul.f32 %v5504_v13, %v3545_v32  ;;  %v3549_v1 = vunpack.c.h.bf16 %v4367_v28  ;;  %v1013_v7 = vadd.f32 %v5498_v41, %v750_v35  ;;  %v1268_v43 = vmax.f32 %v1012_v36, 0.0 }
  0xf8   :  { %4490 = vst [vmem:[%s5849_s3 + $0x350] sm:$0xff] %v4151_v34   ;;  %v1014_v44 = vadd.f32 %v5498_v41, %v751_v37  ;;  %v3552_v45 = vunpack.c.l.bf16 %v4368_v33  ;;  %v4156_v47 = vpack.c.bf16 %v1267_v38, %v1266_v31  ;;  %v753_v49 = vmul.f32 %v5504_v13, %v3548_v40 }
  0xf9   :  { %v1015_v48 = vadd.f32 %v5498_v41, %v752_v39  ;;  %v754_v50 = vmul.f32 %v5504_v13, %v3549_v1  ;;  %v1269_v51 = vmax.f32 %v1013_v7, 0.0  ;;  %v3553_v53 = vunpack.c.h.bf16 %v4368_v33  ;;  %v4374_v33 = vld [vmem:[%s5846_s0 + $0x3a8] sm:$0xff]  }
  0xfa   :  { %v1270_v52 = vmax.f32 %v1014_v44, 0.0  ;;  %v755_v54 = vmul.f32 %v5504_v13, %v3552_v45  ;;  %4491 = vst [vmem:[%s5849_s3 + $0x358] sm:$0xff] %v4156_v47   ;;  %v1016_v56 = vadd.f32 %v5498_v41, %v753_v49  ;;  %v3556_v58 = vunpack.c.l.bf16 %v4369_v46 }
  0xfb   :  { %v1271_v55 = vmax.f32 %v1015_v48, 0.0  ;;  %v1017_v57 = vadd.f32 %v5498_v41, %v754_v50  ;;  %v4161_v60 = vpack.c.bf16 %v1269_v51, %v1268_v43  ;;  %v756_v61 = vmul.f32 %v5504_v13, %v3553_v53  ;;  %v4376_v51 = vld [vmem:[%s5846_s0 + $0x3b8] sm:$0xff]  }
  0xfc   :  { %v1018_v62 = vadd.f32 %v5498_v41, %v755_v54  ;;  %v3557_v63 = vunpack.c.h.bf16 %v4369_v46  ;;  %v1272_v3 = vmax.f32 %v1016_v56, 0.0  ;;  %v757_v5 = vmul.f32 %v5504_v13, %v3556_v58  ;;  %v4375_v46 = vld [vmem:[%s5846_s0 + $0x3b0] sm:$0xff]  }
  0xfd   :  { %v4166_v2 = vpack.c.bf16 %v1271_v55, %v1270_v52  ;;  %v1273_v4 = vmax.f32 %v1017_v57, 0.0  ;;  %4492 = vst [vmem:[%s5849_s3 + $0x360] sm:$0xff] %v4161_v60   ;;  %v1019_v6 = vadd.f32 %v5498_v41, %v756_v61  ;;  %v3560_v10 = vunpack.c.l.bf16 %v4370_v59 }
  0xfe   :  { %v1274_v8 = vmax.f32 %v1018_v62, 0.0  ;;  %v758_v9 = vmul.f32 %v5504_v13, %v3557_v63  ;;  %v1020_v42 = vadd.f32 %v5498_v41, %v757_v5  ;;  %v3561_v14 = vunpack.c.h.bf16 %v4370_v59 }
  0xff   :  { %4493 = vst [vmem:[%s5849_s3 + $0x368] sm:$0xff] %v4166_v2   ;;  %v4171_v12 = vpack.c.bf16 %v1273_v4, %v1272_v3  ;;  %v3564_v15 = vunpack.c.l.bf16 %v4371_v0  ;;  %v1275_v16 = vmax.f32 %v1019_v6, 0.0  ;;  %v759_v18 = vmul.f32 %v5504_v13, %v3560_v10 }
 0x100   :  { %v1021_v17 = vadd.f32 %v5498_v41, %v758_v9  ;;  %v3565_v19 = vunpack.c.h.bf16 %v4371_v0  ;;  %v1276_v20 = vmax.f32 %v1020_v42, 0.0  ;;  %v760_v21 = vmul.f32 %v5504_v13, %v3561_v14  ;;  %v4377_v0 = vld [vmem:[%s5846_s0 + $0x3c0] sm:$0xff]  }
 0x101   :  { %4494 = vst [vmem:[%s5849_s3 + $0x370] sm:$0xff] %v4171_v12   ;;  %v761_v22 = vmul.f32 %v5504_v13, %v3564_v15  ;;  %v3568_v23 = vunpack.c.l.bf16 %v4372_v11  ;;  %v4176_v25 = vpack.c.bf16 %v1275_v16, %v1274_v8  ;;  %v1022_v27 = vadd.f32 %v5498_v41, %v759_v18  ;;  %v4378_v15 = vld [vmem:[%s5846_s0 + $0x3c8] sm:$0xff]  }
 0x102   :  { %v1277_v26 = vmax.f32 %v1021_v17, 0.0  ;;  %v762_v28 = vmul.f32 %v5504_v13, %v3565_v19  ;;  %v1023_v29 = vadd.f32 %v5498_v41, %v760_v21  ;;  %v3569_v31 = vunpack.c.h.bf16 %v4372_v11 }
 0x103   :  { %v1024_v30 = vadd.f32 %v5498_v41, %v761_v22  ;;  %v763_v32 = vmul.f32 %v5504_v13, %v3568_v23  ;;  %4495 = vst [vmem:[%s5849_s3 + $0x378] sm:$0xff] %v4176_v25   ;;  %v1278_v35 = vmax.f32 %v1022_v27, 0.0  ;;  %v3572_v37 = vunpack.c.l.bf16 %v4373_v24 }
 0x104   :  { %v4181_v34 = vpack.c.bf16 %v1277_v26, %v1276_v20  ;;  %v1025_v36 = vadd.f32 %v5498_v41, %v762_v28  ;;  %v1279_v38 = vmax.f32 %v1023_v29, 0.0  ;;  %v764_v40 = vmul.f32 %v5504_v13, %v3569_v31  ;;  %v4379_v20 = vld [vmem:[%s5846_s0 + $0x3d0] sm:$0xff]   ;;  %v4380_v29 = vld [vmem:[%s5846_s0 + $0x3d8] sm:$0xff]  }
 0x105   :  { %v1280_v39 = vmax.f32 %v1024_v30, 0.0  ;;  %v1026_v1 = vadd.f32 %v5498_v41, %v763_v32  ;;  %v3573_v43 = vunpack.c.h.bf16 %v4373_v24  ;;  %v765_v44 = vmul.f32 %v5504_v13, %v3572_v37 }
 0x106   :  { %4496 = vst [vmem:[%s5849_s3 + $0x380] sm:$0xff] %v4181_v34   ;;  %v1281_v7 = vmax.f32 %v1025_v36, 0.0  ;;  %v3576_v45 = vunpack.c.l.bf16 %v4374_v33  ;;  %v4186_v47 = vpack.c.bf16 %v1279_v38, %v1278_v35  ;;  %v1027_v48 = vadd.f32 %v5498_v41, %v764_v40 }
 0x107   :  { %v1282_v49 = vmax.f32 %v1026_v1, 0.0  ;;  %v3577_v50 = vunpack.c.h.bf16 %v4374_v33  ;;  %v766_v53 = vmul.f32 %v5504_v13, %v3573_v43  ;;  %v1028_v54 = vadd.f32 %v5498_v41, %v765_v44 }
 0x108   :  { %v4191_v52 = vpack.c.bf16 %v1281_v7, %v1280_v39  ;;  %v767_v55 = vmul.f32 %v5504_v13, %v3576_v45  ;;  %4497 = vst [vmem:[%s5849_s3 + $0x388] sm:$0xff] %v4186_v47   ;;  %v1283_v56 = vmax.f32 %v1027_v48, 0.0  ;;  %v3580_v58 = vunpack.c.l.bf16 %v4375_v46  ;;  %v4381_v7 = vld [vmem:[%s5846_s0 + $0x3e0] sm:$0xff]  }
 0x109   :  { %v768_v57 = vmul.f32 %v5504_v13, %v3577_v50  ;;  %v3581_v59 = vunpack.c.h.bf16 %v4375_v46  ;;  %v1029_v60 = vadd.f32 %v5498_v41, %v766_v53  ;;  %v1284_v61 = vmax.f32 %v1028_v54, 0.0 }
 0x10a   :  { %4498 = vst [vmem:[%s5849_s3 + $0x390] sm:$0xff] %v4191_v52   ;;  %v1030_v62 = vadd.f32 %v5498_v41, %v767_v55  ;;  %v3584_v63 = vunpack.c.l.bf16 %v4376_v51  ;;  %v4196_v2 = vpack.c.bf16 %v1283_v56, %v1282_v49  ;;  %v769_v4 = vmul.f32 %v5504_v13, %v3580_v58 }
 0x10b   :  { %v1031_v3 = vadd.f32 %v5498_v41, %v768_v57  ;;  %v770_v5 = vmul.f32 %v5504_v13, %v3581_v59  ;;  %v1285_v6 = vmax.f32 %v1029_v60, 0.0  ;;  %v3585_v9 = vunpack.c.h.bf16 %v4376_v51  ;;  %v4382_v51 = vld [vmem:[%s5846_s0 + $0x3e8] sm:$0xff]  }
 0x10c   :  { %v1286_v8 = vmax.f32 %v1030_v62, 0.0  ;;  %v771_v10 = vmul.f32 %v5504_v13, %v3584_v63  ;;  %4499 = vst [vmem:[%s5849_s3 + $0x398] sm:$0xff] %v4196_v2   ;;  %v1032_v12 = vadd.f32 %v5498_v41, %v769_v4  ;;  %v3588_v14 = vunpack.c.l.bf16 %v4377_v0 }
 0x10d   :  { %v1287_v11 = vmax.f32 %v1031_v3, 0.0  ;;  %v1033_v42 = vadd.f32 %v5498_v41, %v770_v5  ;;  %v4201_v16 = vpack.c.bf16 %v1285_v6, %v1284_v61  ;;  %v772_v17 = vmul.f32 %v5504_v13, %v3585_v9  ;;  %v4384_v6 = vld [vmem:[%s5846_s0 + $0x3f8] sm:$0xff]  }
 0x10e   :  { %v1034_v18 = vadd.f32 %v5498_v41, %v771_v10  ;;  %v3589_v19 = vunpack.c.h.bf16 %v4377_v0  ;;  %v1288_v22 = vmax.f32 %v1032_v12, 0.0  ;;  %v773_v24 = vmul.f32 %v5504_v13, %v3588_v14  ;;  %v4383_v0 = vld [vmem:[%s5846_s0 + $0x3f0] sm:$0xff]  }
 0x10f   :  { %v4206_v21 = vpack.c.bf16 %v1287_v11, %v1286_v8  ;;  %v1289_v23 = vmax.f32 %v1033_v42, 0.0  ;;  %4500 = vst [vmem:[%s5849_s3 + $0x3a0] sm:$0xff] %v4201_v16   ;;  %v1035_v25 = vadd.f32 %v5498_v41, %v772_v17  ;;  %v3592_v28 = vunpack.c.l.bf16 %v4378_v15 }
 0x110   :  { %v1290_v26 = vmax.f32 %v1034_v18, 0.0  ;;  %v774_v27 = vmul.f32 %v5504_v13, %v3589_v19  ;;  %v1036_v31 = vadd.f32 %v5498_v41, %v773_v24  ;;  %v3593_v32 = vunpack.c.h.bf16 %v4378_v15 }
 0x111   :  { %4501 = vst [vmem:[%s5849_s3 + $0x3a8] sm:$0xff] %v4206_v21   ;;  %v4211_v30 = vpack.c.bf16 %v1289_v23, %v1288_v22  ;;  %v3596_v33 = vunpack.c.l.bf16 %v4379_v20  ;;  %v1291_v34 = vmax.f32 %v1035_v25, 0.0  ;;  %v775_v36 = vmul.f32 %v5504_v13, %v3592_v28 }
 0x112   :  { %v1037_v35 = vadd.f32 %v5498_v41, %v774_v27  ;;  %v3597_v37 = vunpack.c.h.bf16 %v4379_v20  ;;  %v1292_v38 = vmax.f32 %v1036_v31, 0.0  ;;  %v776_v39 = vmul.f32 %v5504_v13, %v3593_v32 }
 0x113   :  { %4502 = vst [vmem:[%s5849_s3 + $0x3b0] sm:$0xff] %v4211_v30   ;;  %v777_v40 = vmul.f32 %v5504_v13, %v3596_v33  ;;  %v3600_v1 = vunpack.c.l.bf16 %v4380_v29  ;;  %v4216_v43 = vpack.c.bf16 %v1291_v34, %v1290_v26  ;;  %v1038_v45 = vadd.f32 %v5498_v41, %v775_v36 }
 0x114   :  { %v1293_v44 = vmax.f32 %v1037_v35, 0.0  ;;  %v778_v46 = vmul.f32 %v5504_v13, %v3597_v37  ;;  %v1039_v47 = vadd.f32 %v5498_v41, %v776_v39  ;;  %v3601_v49 = vunpack.c.h.bf16 %v4380_v29 }
 0x115   :  { %v1040_v48 = vadd.f32 %v5498_v41, %v777_v40  ;;  %v779_v50 = vmul.f32 %v5504_v13, %v3600_v1  ;;  %4503 = vst [vmem:[%s5849_s3 + $0x3b8] sm:$0xff] %v4216_v43   ;;  %v1294_v53 = vmax.f32 %v1038_v45, 0.0  ;;  %v3604_v55 = vunpack.c.l.bf16 %v4381_v7 }
 0x116   :  { %v4221_v52 = vpack.c.bf16 %v1293_v44, %v1292_v38  ;;  %v1041_v54 = vadd.f32 %v5498_v41, %v778_v46  ;;  %v1295_v56 = vmax.f32 %v1039_v47, 0.0  ;;  %v780_v58 = vmul.f32 %v5504_v13, %v3601_v49 }
 0x117   :  { %v1296_v57 = vmax.f32 %v1040_v48, 0.0  ;;  %v1042_v59 = vadd.f32 %v5498_v41, %v779_v50  ;;  %v3605_v61 = vunpack.c.h.bf16 %v4381_v7  ;;  %v781_v62 = vmul.f32 %v5504_v13, %v3604_v55 }
 0x118   :  { %4504 = vst [vmem:[%s5849_s3 + $0x3c0] sm:$0xff] %v4221_v52   ;;  %v1297_v60 = vmax.f32 %v1041_v54, 0.0  ;;  %v3608_v63 = vunpack.c.l.bf16 %v4382_v51  ;;  %v4226_v2 = vpack.c.bf16 %v1295_v56, %v1294_v53  ;;  %v1043_v3 = vadd.f32 %v5498_v41, %v780_v58 }
 0x119   :  { %v1298_v4 = vmax.f32 %v1042_v59, 0.0  ;;  %v3609_v5 = vunpack.c.h.bf16 %v4382_v51  ;;  %v782_v9 = vmul.f32 %v5504_v13, %v3605_v61  ;;  %v1044_v10 = vadd.f32 %v5498_v41, %v781_v62 }
 0x11a   :  { %v4231_v8 = vpack.c.bf16 %v1297_v60, %v1296_v57  ;;  %v783_v11 = vmul.f32 %v5504_v13, %v3608_v63  ;;  %4505 = vst [vmem:[%s5849_s3 + $0x3c8] sm:$0xff] %v4226_v2   ;;  %v1299_v12 = vmax.f32 %v1043_v3, 0.0  ;;  %v3612_v14 = vunpack.c.l.bf16 %v4383_v0 }
 0x11b   :  { %v784_v42 = vmul.f32 %v5504_v13, %v3609_v5  ;;  %v3613_v15 = vunpack.c.h.bf16 %v4383_v0  ;;  %v1045_v16 = vadd.f32 %v5498_v41, %v782_v9  ;;  %v1300_v17 = vmax.f32 %v1044_v10, 0.0 }
 0x11c   :  { %4506 = vst [vmem:[%s5849_s3 + $0x3d0] sm:$0xff] %v4231_v8   ;;  %v1046_v18 = vadd.f32 %v5498_v41, %v783_v11  ;;  %v3616_v19 = vunpack.c.l.bf16 %v4384_v6  ;;  %v4236_v20 = vpack.c.bf16 %v1299_v12, %v1298_v4  ;;  %v785_v22 = vmul.f32 %v5504_v13, %v3612_v14 }
 0x11d   :  { %v1047_v21 = vadd.f32 %v5498_v41, %v784_v42  ;;  %v786_v23 = vmul.f32 %v5504_v13, %v3613_v15  ;;  %v1301_v24 = vmax.f32 %v1045_v16, 0.0  ;;  %v3617_v26 = vunpack.c.h.bf16 %v4384_v6 }
 0x11e   :  { %v1302_v25 = vmax.f32 %v1046_v18, 0.0  ;;  %v787_v27 = vmul.f32 %v5504_v13, %v3616_v19  ;;  %4507 = vst [vmem:[%s5849_s3 + $0x3d8] sm:$0xff] %v4236_v20   ;;  %v1048_v29 = vadd.f32 %v5498_v41, %v785_v22 }
 0x11f   :  { %v1303_v28 = vmax.f32 %v1047_v21, 0.0  ;;  %v1049_v30 = vadd.f32 %v5498_v41, %v786_v23  ;;  %v4241_v31 = vpack.c.bf16 %v1301_v24, %v1300_v17  ;;  %v788_v32 = vmul.f32 %v5504_v13, %v3617_v26 }
 0x120   :  { %v1050_v33 = vadd.f32 %v5498_v41, %v787_v27  ;;  %v1304_v35 = vmax.f32 %v1048_v29, 0.0 }
 0x121   :  { %v4246_v34 = vpack.c.bf16 %v1303_v28, %v1302_v25  ;;  %v1305_v36 = vmax.f32 %v1049_v30, 0.0  ;;  %4508 = vst [vmem:[%s5849_s3 + $0x3e0] sm:$0xff] %v4241_v31   ;;  %v1051_v37 = vadd.f32 %v5498_v41, %v788_v32 }
 0x122   :  { %v1306_v38 = vmax.f32 %v1050_v33, 0.0 }
 0x123   :  { %4509 = vst [vmem:[%s5849_s3 + $0x3e8] sm:$0xff] %v4246_v34   ;;  %v4251_v39 = vpack.c.bf16 %v1305_v36, %v1304_v35  ;;  %v1307_v40 = vmax.f32 %v1051_v37, 0.0 }
 0x125   :  { %4510 = vst [vmem:[%s5849_s3 + $0x3f0] sm:$0xff] %v4251_v39   ;;  %v4256_v13 = vpack.c.bf16 %v1307_v40, %v1306_v38 }
 0x127   :  { %4511 = vst [vmem:[%s5849_s3 + $0x3f8] sm:$0xff] %v4256_v13  }

// kernel: generator_forward.17
= control target key start
LH: loop header
LB: loop body
LE: loop exit
PB: predicated region body
PF: predicated region fallthrough
CT: control target
= control target key end

     0   :  { %s2702_s9 = smov 0   ;;  %s2704_s10 = smov 0   ;;  %s2909_s0 = inlined_call_operand.vmem [shape: bf16[4,2048,256], index: 0, kind: input, shape index: {}]   ;;  %s2910_s1 = inlined_call_operand.vmem [shape: bf16[4,256,128], index: 1, kind: input, shape index: {}]   ;;  %s2911_s2 = inlined_call_operand.vmem [shape: bf16[4,2048,128], index: 2, kind: output, shape index: {}]  }
   0x1   :  { %s2706_s11 = smov 0   ;;  %s2708_s12 = smov 0  }
   0x2   :  { %s2710_s13 = smov 0  }
   0x3 LB: > { %s34_s14 = sadd.s32 1, %s2676_s11  ;;  %s38_s15 = sadd.s32 1, %s2680_s12  ;;  %s2684_s13 = sphi %s2710_s13, %s12_s13   ;;  %s2680_s12 = sphi %s2708_s12, %s2915_s12   ;;  %s2676_s11 = sphi %s2706_s11, %s2914_s11   ;;  %s2672_s10 = sphi %s2704_s10, %s2913_s10   ;;  %s2668_s9 = sphi %s2702_s9, %s2912_s9  }
   0x4   : > { %p36_p0 = scmp.ge.s32.totalorder %s34_s14, 4  ;;  %p1921_p1 = scmp.ge.s32.totalorder %s2684_s13, 1 }
   0x5   : > { %p179_p2 = scmp.lt.s32.totalorder %s2684_s13, 17 }
   0x6   : > { %s2917_s14 = smov (%p36_p0, %s34_s14), 0  ;;  %s2919_s15 = smov (!%p36_p0, %s38_s15), %s2680_s12 }
   0x7   : > { %p180_p3 = pnand %p1921_p1, %p179_p2  ;;  %p40_p4 = scmp.ge.s32.totalorder %s2919_s15, 4 }
   0x8   : > { %s1922_s16 = sshll.u32 (!%p180_p3), %s2668_s9, 6  ;;  %p231_p5 = scmp.lt.s32.totalorder (!%p180_p3), %s2672_s10, 3  ;;  %v2686_v0 = vmov (!%p180_p3), 0  }
   0x9   : > { %s2921_s15 = smov (%p40_p4, %s2919_s15), 0  ;;  %183 = sbr.rel (%p180_p3) target bundleno = 432 (0x1b0), region = 28 }
   0xa   : > { %916 = vmatprep.subr.bf16.mxu0 (!%p180_p3), %v2686_v0  ;;  %2333 = vmatprep.subr.bf16.mxu1 (!%p180_p3), %v2686_v0  ;;  %p233_p6 = scmp.lt.s32.totalorder (!%p180_p3), %s1922_s16, 255 }
  0x10   : > { %s2923_s10 = smov (!%p231_p5, %s2672_s10), 3  ;;  %s2925_s16 = smov (!%p233_p6, %s1922_s16), 255 }
  0x11   : > { %s2077_s17 = sshll.u32 %s2923_s10, 7  ;;  %s1929_s21 = sshll.u32 %s2923_s10, 8 }
  0x12   : > { %s2737_s20 = scalar_lea.vmem %s2910_s1, %s2077_s17  ;;  %s2740_s22 = sadd.s32 %s1929_s21, %s2925_s16 }
  0x13   : > { %v2406_v1 = vld [vmem:[%s2737_s20] sm:$0xff]   ;;  %v2407_v2 = vld [vmem:[%s2737_s20 + $0x8] sm:$0xff]   ;;  %s1923_s23 = sshll.u32 %s2925_s16, 1  ;;  %s1924_s24 = sshll.u32 %s2923_s10, 9  ;;  %v2408_v3 = vld [vmem:[%s2737_s20 + $0x10] sm:$0xff]  }
  0x14   : > { %917 = vmatpush1.bf16.msra.mxu0 %v2406_v1  ;;  %2349 = vmatpush1.bf16.msra.mxu1 %v2406_v1  ;;  %s240_s25 = sadd.s32 %s1924_s24, %s1923_s23  ;;  %v2409_v4 = vld [vmem:[%s2737_s20 + $0x18] sm:$0xff]   ;;  %v2410_v5 = vld [vmem:[%s2737_s20 + $0x20] sm:$0xff]   ;;  %v2411_v7 = vld [vmem:[%s2737_s20 + $0x28] sm:$0xff]   ;;  %s1930_s30 = sshll.u32 %s2740_s22, 2 }
  0x15   : > { %918 = vmatprep.subr.bf16.mxu0 %v2686_v0  ;;  %2334 = vmatprep.subr.bf16.mxu1 %v2686_v0  ;;  %s1925_s26 = sshll.u32 %s240_s25, 2  ;;  %v2412_v9 = vld [vmem:[%s2737_s20 + $0x30] sm:$0xff]   ;;  %v2413_v10 = vld [vmem:[%s2737_s20 + $0x38] sm:$0xff]   ;;  %v2414_v11 = vld [vmem:[%s2737_s20 + $0x40] sm:$0xff]   ;;  %s2860_s5 = scalar_lea.vmem %s2911_s2, %s1930_s30 }
  0x16   : > { %s2754_s29 = scalar_lea.vmem %s2909_s0, %s1925_s26  ;;  %v2415_v12 = vld [vmem:[%s2737_s20 + $0x48] sm:$0xff]   ;;  %v2416_v13 = vld [vmem:[%s2737_s20 + $0x50] sm:$0xff]   ;;  %v2417_v14 = vld [vmem:[%s2737_s20 + $0x58] sm:$0xff]  }
  0x17   : > { %v2424_v6 = vld [vmem:[%s2754_s29 + $0x4] ss:$8 sps:$4 sm:$0xff]   ;;  %v2420_v17 = vld [vmem:[%s2737_s20 + $0x70] sm:$0xff]   ;;  %v2421_v18 = vld [vmem:[%s2737_s20 + $0x78] sm:$0xff]  }
  0x18   : > { %919 = vmatpush1.bf16.msra.mxu0 %v2407_v2  ;;  %2350 = vmatpush1.bf16.msra.mxu1 %v2407_v2  ;;  %v2427_v8 = vld [vmem:[%s2754_s29 + $0x104] ss:$8 sps:$4 sm:$0xff]   ;;  %v2422_v19 = vld [vmem:[%s2754_s29] ss:$8 sps:$4 sm:$0xff]   ;;  %v2428_v21 = vld [vmem:[%s2754_s29 + $0x14] ss:$8 sps:$4 sm:$0xff]  }
  0x19   : > { %920 = vmatprep.subr.bf16.mxu0 %v2686_v0  ;;  %2335 = vmatprep.subr.bf16.mxu1 %v2686_v0  ;;  %v2418_v15 = vld [vmem:[%s2737_s20 + $0x60] sm:$0xff]   ;;  %v2419_v16 = vld [vmem:[%s2737_s20 + $0x68] sm:$0xff]   ;;  %v2430_v22 = vld [vmem:[%s2754_s29 + $0x114] ss:$8 sps:$4 sm:$0xff]  }
  0x1a   : > { %948 = vmatprep.mubr.bf16.mxu0 %v2424_v6  ;;  %1076 = vmatprep.mubr.bf16.mxu1 %v2427_v8  ;;  %v2425_v20 = vld [vmem:[%s2754_s29 + $0x100] ss:$8 sps:$4 sm:$0xff]   ;;  %v2432_v23 = vld [vmem:[%s2754_s29 + $0x10] ss:$8 sps:$4 sm:$0xff]   ;;  %v2434_v25 = vld [vmem:[%s2754_s29 + $0x24] ss:$8 sps:$4 sm:$0xff]  }
  0x1b   : > { %v2433_v24 = vld [vmem:[%s2754_s29 + $0x110] ss:$8 sps:$4 sm:$0xff]   ;;  %v2436_v26 = vld [vmem:[%s2754_s29 + $0x124] ss:$8 sps:$4 sm:$0xff]   ;;  %v2438_v27 = vld [vmem:[%s2754_s29 + $0x20] ss:$8 sps:$4 sm:$0xff]  }
  0x1c   : > { %921 = vmatpush1.bf16.msra.mxu0 %v2408_v3  ;;  %2351 = vmatpush1.bf16.msra.mxu1 %v2408_v3  ;;  %v2439_v28 = vld [vmem:[%s2754_s29 + $0x120] ss:$8 sps:$4 sm:$0xff]   ;;  %v2440_v29 = vld [vmem:[%s2754_s29 + $0x34] ss:$8 sps:$4 sm:$0xff]   ;;  %v2444_v31 = vld [vmem:[%s2754_s29 + $0x30] ss:$8 sps:$4 sm:$0xff]  }
  0x1d   : > { %922 = vmatprep.subr.bf16.mxu0 %v2686_v0  ;;  %2336 = vmatprep.subr.bf16.mxu1 %v2686_v0  ;;  %v2442_v30 = vld [vmem:[%s2754_s29 + $0x134] ss:$8 sps:$4 sm:$0xff]   ;;  %v2445_v32 = vld [vmem:[%s2754_s29 + $0x130] ss:$8 sps:$4 sm:$0xff]   ;;  %v2446_v33 = vld [vmem:[%s2754_s29 + $0x44] ss:$8 sps:$4 sm:$0xff]  }
  0x1e   : > { %v2448_v34 = vld [vmem:[%s2754_s29 + $0x144] ss:$8 sps:$4 sm:$0xff]   ;;  %v2450_v35 = vld [vmem:[%s2754_s29 + $0x40] ss:$8 sps:$4 sm:$0xff]   ;;  %v2452_v37 = vld [vmem:[%s2754_s29 + $0x54] ss:$8 sps:$4 sm:$0xff]  }
  0x1f   : > { %v2451_v36 = vld [vmem:[%s2754_s29 + $0x140] ss:$8 sps:$4 sm:$0xff]   ;;  %v2454_v38 = vld [vmem:[%s2754_s29 + $0x154] ss:$8 sps:$4 sm:$0xff]   ;;  %v2456_v39 = vld [vmem:[%s2754_s29 + $0x50] ss:$8 sps:$4 sm:$0xff]  }
  0x20   : > { %923 = vmatpush1.bf16.msra.mxu0 %v2409_v4  ;;  %2352 = vmatpush1.bf16.msra.mxu1 %v2409_v4  ;;  %v2457_v40 = vld [vmem:[%s2754_s29 + $0x150] ss:$8 sps:$4 sm:$0xff]   ;;  %v2458_v41 = vld [vmem:[%s2754_s29 + $0x64] ss:$8 sps:$4 sm:$0xff]   ;;  %v2462_v43 = vld [vmem:[%s2754_s29 + $0x60] ss:$8 sps:$4 sm:$0xff]  }
  0x21   : > { %924 = vmatprep.subr.bf16.mxu0 %v2686_v0  ;;  %2337 = vmatprep.subr.bf16.mxu1 %v2686_v0  ;;  %v2460_v42 = vld [vmem:[%s2754_s29 + $0x164] ss:$8 sps:$4 sm:$0xff]   ;;  %v2463_v44 = vld [vmem:[%s2754_s29 + $0x160] ss:$8 sps:$4 sm:$0xff]   ;;  %v2464_v45 = vld [vmem:[%s2754_s29 + $0x74] ss:$8 sps:$4 sm:$0xff]  }
  0x22   : > { %v2466_v46 = vld [vmem:[%s2754_s29 + $0x174] ss:$8 sps:$4 sm:$0xff]   ;;  %v2468_v47 = vld [vmem:[%s2754_s29 + $0x70] ss:$8 sps:$4 sm:$0xff]   ;;  %v2470_v49 = vld [vmem:[%s2754_s29 + $0x84] ss:$8 sps:$4 sm:$0xff]  }
  0x23   : > { %v2469_v48 = vld [vmem:[%s2754_s29 + $0x170] ss:$8 sps:$4 sm:$0xff]   ;;  %v2472_v50 = vld [vmem:[%s2754_s29 + $0x184] ss:$8 sps:$4 sm:$0xff]   ;;  %v2474_v51 = vld [vmem:[%s2754_s29 + $0x80] ss:$8 sps:$4 sm:$0xff]  }
  0x24   : > { %925 = vmatpush1.bf16.msra.mxu0 %v2410_v5  ;;  %2353 = vmatpush1.bf16.msra.mxu1 %v2410_v5  ;;  %v2475_v52 = vld [vmem:[%s2754_s29 + $0x180] ss:$8 sps:$4 sm:$0xff]   ;;  %v2476_v53 = vld [vmem:[%s2754_s29 + $0x94] ss:$8 sps:$4 sm:$0xff]   ;;  %v2480_v55 = vld [vmem:[%s2754_s29 + $0x90] ss:$8 sps:$4 sm:$0xff]  }
  0x25   : > { %926 = vmatprep.subr.bf16.mxu0 %v2686_v0  ;;  %2338 = vmatprep.subr.bf16.mxu1 %v2686_v0  ;;  %v2478_v54 = vld [vmem:[%s2754_s29 + $0x194] ss:$8 sps:$4 sm:$0xff]   ;;  %v2481_v56 = vld [vmem:[%s2754_s29 + $0x190] ss:$8 sps:$4 sm:$0xff]   ;;  %v2482_v57 = vld [vmem:[%s2754_s29 + $0xa4] ss:$8 sps:$4 sm:$0xff]  }
  0x26   : > { %v2484_v58 = vld [vmem:[%s2754_s29 + $0x1a4] ss:$8 sps:$4 sm:$0xff]   ;;  %v2486_v59 = vld [vmem:[%s2754_s29 + $0xa0] ss:$8 sps:$4 sm:$0xff]   ;;  %v2488_v61 = vld [vmem:[%s2754_s29 + $0xb4] ss:$8 sps:$4 sm:$0xff]  }
  0x27   : > { %v2487_v60 = vld [vmem:[%s2754_s29 + $0x1a0] ss:$8 sps:$4 sm:$0xff]   ;;  %v2490_v62 = vld [vmem:[%s2754_s29 + $0x1b4] ss:$8 sps:$4 sm:$0xff]   ;;  %v2492_v63 = vld [vmem:[%s2754_s29 + $0xb0] ss:$8 sps:$4 sm:$0xff]  }
  0x28   : > { %927 = vmatpush1.bf16.msra.mxu0 %v2411_v7  ;;  %2354 = vmatpush1.bf16.msra.mxu1 %v2411_v7  ;;  %v2494_v1 = vld [vmem:[%s2754_s29 + $0xc4] ss:$8 sps:$4 sm:$0xff]   ;;  %v2498_v3 = vld [vmem:[%s2754_s29 + $0xc0] ss:$8 sps:$4 sm:$0xff]   ;;  %v2500_v5 = vld [vmem:[%s2754_s29 + $0xd4] ss:$8 sps:$4 sm:$0xff]  }
  0x29   : > { %928 = vmatprep.subr.bf16.mxu0 %v2686_v0  ;;  %2339 = vmatprep.subr.bf16.mxu1 %v2686_v0  ;;  %v2496_v2 = vld [vmem:[%s2754_s29 + $0x1c4] ss:$8 sps:$4 sm:$0xff]   ;;  %v2499_v4 = vld [vmem:[%s2754_s29 + $0x1c0] ss:$8 sps:$4 sm:$0xff]   ;;  %v2502_v6 = vld [vmem:[%s2754_s29 + $0x1d4] ss:$8 sps:$4 sm:$0xff]  }
  0x2a   : > { %v2504_v7 = vld [vmem:[%s2754_s29 + $0xd0] ss:$8 sps:$4 sm:$0xff]  }
  0x2b   : > { %v2505_v8 = vld [vmem:[%s2754_s29 + $0x1d0] ss:$8 sps:$4 sm:$0xff]  }
  0x2c   : > { %929 = vmatpush1.bf16.msra.mxu0 %v2412_v9  ;;  %2355 = vmatpush1.bf16.msra.mxu1 %v2412_v9  ;;  %v2506_v9 = vld [vmem:[%s2754_s29 + $0xe4] ss:$8 sps:$4 sm:$0xff]  }
  0x2d   : > { %930 = vmatprep.subr.bf16.mxu0 %v2686_v0  ;;  %2340 = vmatprep.subr.bf16.mxu1 %v2686_v0 }
  0x30   : > { %931 = vmatpush1.bf16.msra.mxu0 %v2413_v10  ;;  %2356 = vmatpush1.bf16.msra.mxu1 %v2413_v10  ;;  %v2508_v10 = vld [vmem:[%s2754_s29 + $0x1e4] ss:$8 sps:$4 sm:$0xff]  }
  0x31   : > { %932 = vmatprep.subr.bf16.mxu0 %v2686_v0  ;;  %2341 = vmatprep.subr.bf16.mxu1 %v2686_v0 }
  0x34   : > { %933 = vmatpush1.bf16.msra.mxu0 %v2414_v11  ;;  %2357 = vmatpush1.bf16.msra.mxu1 %v2414_v11  ;;  %v2510_v11 = vld [vmem:[%s2754_s29 + $0xe0] ss:$8 sps:$4 sm:$0xff]  }
  0x35   : > { %934 = vmatprep.subr.bf16.mxu0 %v2686_v0  ;;  %2342 = vmatprep.subr.bf16.mxu1 %v2686_v0 }
  0x38   : > { %935 = vmatpush1.bf16.msra.mxu0 %v2415_v12  ;;  %2358 = vmatpush1.bf16.msra.mxu1 %v2415_v12  ;;  %v2511_v12 = vld [vmem:[%s2754_s29 + $0x1e0] ss:$8 sps:$4 sm:$0xff]  }
  0x39   : > { %936 = vmatprep.subr.bf16.mxu0 %v2686_v0  ;;  %2343 = vmatprep.subr.bf16.mxu1 %v2686_v0 }
  0x3c   : > { %937 = vmatpush1.bf16.msra.mxu0 %v2416_v13  ;;  %2359 = vmatpush1.bf16.msra.mxu1 %v2416_v13  ;;  %v2512_v13 = vld [vmem:[%s2754_s29 + $0xf4] ss:$8 sps:$4 sm:$0xff]  }
  0x3d   : > { %938 = vmatprep.subr.bf16.mxu0 %v2686_v0  ;;  %2344 = vmatprep.subr.bf16.mxu1 %v2686_v0 }
  0x40   : > { %939 = vmatpush1.bf16.msra.mxu0 %v2417_v14  ;;  %2360 = vmatpush1.bf16.msra.mxu1 %v2417_v14  ;;  %v2514_v14 = vld [vmem:[%s2754_s29 + $0x1f4] ss:$8 sps:$4 sm:$0xff]  }
  0x41   : > { %940 = vmatprep.subr.bf16.mxu0 %v2686_v0  ;;  %2345 = vmatprep.subr.bf16.mxu1 %v2686_v0 }
  0x44   : > { %941 = vmatpush1.bf16.msra.mxu0 %v2418_v15  ;;  %2361 = vmatpush1.bf16.msra.mxu1 %v2418_v15  ;;  %v2516_v15 = vld [vmem:[%s2754_s29 + $0xf0] ss:$8 sps:$4 sm:$0xff]  }
  0x45   : > { %942 = vmatprep.subr.bf16.mxu0 %v2686_v0  ;;  %2346 = vmatprep.subr.bf16.mxu1 %v2686_v0 }
  0x48   : > { %943 = vmatpush1.bf16.msra.mxu0 %v2419_v16  ;;  %2362 = vmatpush1.bf16.msra.mxu1 %v2419_v16  ;;  %v2517_v16 = vld [vmem:[%s2754_s29 + $0x1f0] ss:$8 sps:$4 sm:$0xff]  }
  0x49   : > { %944 = vmatprep.subr.bf16.mxu0 %v2686_v0  ;;  %2347 = vmatprep.subr.bf16.mxu1 %v2686_v0 }
  0x4c   : > { %945 = vmatpush1.bf16.msra.mxu0 %v2420_v17  ;;  %2363 = vmatpush1.bf16.msra.mxu1 %v2420_v17 }
  0x4d   : > { %946 = vmatprep.subr.bf16.mxu0 %v2686_v0  ;;  %2348 = vmatprep.subr.bf16.mxu1 %v2686_v0  ;;  %v2493_v0 = vld [vmem:[%s2754_s29 + $0x1b0] ss:$8 sps:$4 sm:$0xff]  }
  0x50   : > { %947 = vmatpush1.bf16.msra.mxu0 %v2421_v18  ;;  %2364 = vmatpush1.bf16.msra.mxu1 %v2421_v18 }
  0x53   : > { %949 = vmatmul.mubr.bf16.vlgmr.msra.gmra.mrb[0].mxu0 %v2422_v19  ;;  %1077 = vmatmul.mubr.bf16.vlgmr.msra.gmra.mrb[0].mxu1 %v2425_v20 }
  0x54   : > { %956 = vmatprep.mubr.bf16.mxu0 %v2428_v21  ;;  %1084 = vmatprep.mubr.bf16.mxu1 %v2430_v22 }
  0x5b   : > { %957 = vmatmul.mubr.bf16.gmra.mrb[4].mxu0 %v2432_v23  ;;  %1085 = vmatmul.mubr.bf16.gmra.mrb[4].mxu1 %v2433_v24 }
  0x5c   : > { %964 = vmatprep.mubr.bf16.mxu0 %v2434_v25  ;;  %1092 = vmatprep.mubr.bf16.mxu1 %v2436_v26 }
  0x63   : > { %965 = vmatmul.mubr.bf16.gmra.mrb[8].mxu0 %v2438_v27  ;;  %1093 = vmatmul.mubr.bf16.gmra.mrb[8].mxu1 %v2439_v28 }
  0x64   : > { %972 = vmatprep.mubr.bf16.mxu0 %v2440_v29  ;;  %1100 = vmatprep.mubr.bf16.mxu1 %v2442_v30 }
  0x6b   : > { %973 = vmatmul.mubr.bf16.gmra.mrb[12].mxu0 %v2444_v31  ;;  %1101 = vmatmul.mubr.bf16.gmra.mrb[12].mxu1 %v2445_v32 }
  0x6c   : > { %980 = vmatprep.mubr.bf16.mxu0 %v2446_v33  ;;  %1108 = vmatprep.mubr.bf16.mxu1 %v2448_v34 }
  0x73   : > { %981 = vmatmul.mubr.bf16.gmra.mrb[16].mxu0 %v2450_v35  ;;  %1109 = vmatmul.mubr.bf16.gmra.mrb[16].mxu1 %v2451_v36 }
  0x74   : > { %988 = vmatprep.mubr.bf16.mxu0 %v2452_v37  ;;  %1116 = vmatprep.mubr.bf16.mxu1 %v2454_v38 }
  0x7b   : > { %989 = vmatmul.mubr.bf16.gmra.mrb[20].mxu0 %v2456_v39  ;;  %1117 = vmatmul.mubr.bf16.gmra.mrb[20].mxu1 %v2457_v40 }
  0x7c   : > { %996 = vmatprep.mubr.bf16.mxu0 %v2458_v41  ;;  %1124 = vmatprep.mubr.bf16.mxu1 %v2460_v42 }
  0x83   : > { %997 = vmatmul.mubr.bf16.gmra.mrb[24].mxu0 %v2462_v43  ;;  %1125 = vmatmul.mubr.bf16.gmra.mrb[24].mxu1 %v2463_v44 }
  0x84   : > { %1004 = vmatprep.mubr.bf16.mxu0 %v2464_v45  ;;  %1132 = vmatprep.mubr.bf16.mxu1 %v2466_v46 }
  0x8b   : > { %1005 = vmatmul.mubr.bf16.gmra.mrb[28].mxu0 %v2468_v47  ;;  %1133 = vmatmul.mubr.bf16.gmra.mrb[28].mxu1 %v2469_v48 }
  0x8c   : > { %1012 = vmatprep.mubr.bf16.mxu0 %v2470_v49  ;;  %1140 = vmatprep.mubr.bf16.mxu1 %v2472_v50 }
  0x93   : > { %1013 = vmatmul.mubr.bf16.gmra.mrb[32].mxu0 %v2474_v51  ;;  %1141 = vmatmul.mubr.bf16.gmra.mrb[32].mxu1 %v2475_v52 }
  0x94   : > { %1020 = vmatprep.mubr.bf16.mxu0 %v2476_v53  ;;  %1148 = vmatprep.mubr.bf16.mxu1 %v2478_v54 }
  0x9b   : > { %1021 = vmatmul.mubr.bf16.gmra.mrb[36].mxu0 %v2480_v55  ;;  %1149 = vmatmul.mubr.bf16.gmra.mrb[36].mxu1 %v2481_v56 }
  0x9c   : > { %1028 = vmatprep.mubr.bf16.mxu0 %v2482_v57  ;;  %1156 = vmatprep.mubr.bf16.mxu1 %v2484_v58 }
  0xa3   : > { %1029 = vmatmul.mubr.bf16.gmra.mrb[40].mxu0 %v2486_v59  ;;  %1157 = vmatmul.mubr.bf16.gmra.mrb[40].mxu1 %v2487_v60 }
  0xa4   : > { %1036 = vmatprep.mubr.bf16.mxu0 %v2488_v61  ;;  %1164 = vmatprep.mubr.bf16.mxu1 %v2490_v62 }
  0xab   : > { %1037 = vmatmul.mubr.bf16.gmra.mrb[44].mxu0 %v2492_v63  ;;  %1165 = vmatmul.mubr.bf16.gmra.mrb[44].mxu1 %v2493_v0 }
  0xac   : > { %1044 = vmatprep.mubr.bf16.mxu0 %v2494_v1  ;;  %1172 = vmatprep.mubr.bf16.mxu1 %v2496_v2 }
  0xb3   : > { %1045 = vmatmul.mubr.bf16.gmra.mrb[48].mxu0 %v2498_v3  ;;  %1173 = vmatmul.mubr.bf16.gmra.mrb[48].mxu1 %v2499_v4 }
  0xb4   : > { %1052 = vmatprep.mubr.bf16.mxu0 %v2500_v5  ;;  %1180 = vmatprep.mubr.bf16.mxu1 %v2502_v6 }
  0xbb   : > { %1053 = vmatmul.mubr.bf16.gmra.mrb[52].mxu0 %v2504_v7  ;;  %1181 = vmatmul.mubr.bf16.gmra.mrb[52].mxu1 %v2505_v8 }
  0xbc   : > { %1060 = vmatprep.mubr.bf16.mxu0 %v2506_v9  ;;  %1188 = vmatprep.mubr.bf16.mxu1 %v2508_v10 }
  0xc3   : > { %1061 = vmatmul.mubr.bf16.gmra.mrb[56].mxu0 %v2510_v11  ;;  %1189 = vmatmul.mubr.bf16.gmra.mrb[56].mxu1 %v2511_v12 }
  0xc4   : > { %1068 = vmatprep.mubr.bf16.mxu0 %v2512_v13  ;;  %1196 = vmatprep.mubr.bf16.mxu1 %v2514_v14 }
  0xcb   : > { %1069 = vmatmul.mubr.bf16.gmra.mrb[60].mxu0 %v2516_v15  ;;  %1197 = vmatmul.mubr.bf16.gmra.mrb[60].mxu1 %v2517_v16 }
 0x126   : > { %v950_v17 = vpop.f32.mrb[0].mxu0  ;;  %v1078_v18 = vpop.f32.mrb[0].mxu1 }
 0x127   : > { %2518 = vtanh.f32 %v950_v17  ;;  %v952_v19 = vpop.f32.mrb[1].mxu0  ;;  %v1080_v20 = vpop.f32.mrb[1].mxu1 }
 0x128   : > { %2520 = vtanh.f32 %v1078_v18  ;;  %v953_v21 = vpop.f32.mrb[2].mxu0  ;;  %v1081_v22 = vpop.f32.mrb[2].mxu1 }
 0x129   : > { %2522 = vtanh.f32 %v953_v21  ;;  %v955_v23 = vpop.f32.mrb[3].mxu0  ;;  %v1083_v24 = vpop.f32.mrb[3].mxu1 }
 0x12a   : > { %2524 = vtanh.f32 %v1081_v22 }
 0x12e   : > { %v958_v25 = vpop.f32.mrb[4].mxu0  ;;  %v1086_v26 = vpop.f32.mrb[4].mxu1 }
 0x12f   : > { %2526 = vtanh.f32 %v958_v25  ;;  %v960_v27 = vpop.f32.mrb[5].mxu0  ;;  %v1088_v28 = vpop.f32.mrb[5].mxu1 }
 0x130   : > { %2528 = vtanh.f32 %v1086_v26  ;;  %v961_v29 = vpop.f32.mrb[6].mxu0  ;;  %v1089_v30 = vpop.f32.mrb[6].mxu1 }
 0x131   : > { %v2519_v31 = vpop.eup %2518  ;;  %2530 = vtanh.f32 %v961_v29  ;;  %v963_v32 = vpop.f32.mrb[7].mxu0 }
 0x132   : > { %v1091_v33 = vpop.f32.mrb[7].mxu1  ;;  %v2521_v34 = vpop.eup %2520  ;;  %2532 = vtanh.f32 %v1089_v30 }
 0x133   : > { %v2523_v35 = vpop.eup %2522 }
 0x134   : > { %v2525_v36 = vpop.eup %2524  ;;  %v2145_v37 = vpack.c.bf16 %v2523_v35, %v2519_v31 }
 0x135   : > { %v2225_v38 = vpack.c.bf16 %v2525_v36, %v2521_v34 }
 0x136   : > { %2146 = vst [vmem:[%s2860_s5] sm:$0xff] %v2145_v37   ;;  %v966_v39 = vpop.f32.mrb[8].mxu0  ;;  %v1094_v40 = vpop.f32.mrb[8].mxu1 }
 0x137   : > { %2317 = vst [vmem:[%s2860_s5 + $0x80] sm:$0xff] %v2225_v38   ;;  %2534 = vtanh.f32 %v966_v39  ;;  %v968_v41 = vpop.f32.mrb[9].mxu0  ;;  %v1096_v42 = vpop.f32.mrb[9].mxu1 }
 0x138   : > { %2536 = vtanh.f32 %v1094_v40  ;;  %v969_v43 = vpop.f32.mrb[10].mxu0  ;;  %v1097_v44 = vpop.f32.mrb[10].mxu1 }
 0x139   : > { %v2527_v45 = vpop.eup %2526  ;;  %2538 = vtanh.f32 %v969_v43  ;;  %v971_v46 = vpop.f32.mrb[11].mxu0 }
 0x13a   : > { %v1099_v47 = vpop.f32.mrb[11].mxu1  ;;  %v2529_v48 = vpop.eup %2528  ;;  %2540 = vtanh.f32 %v1097_v44 }
 0x13b   : > { %v2531_v49 = vpop.eup %2530 }
 0x13c   : > { %v2533_v50 = vpop.eup %2532  ;;  %v2150_v51 = vpack.c.bf16 %v2531_v49, %v2527_v45 }
 0x13d   : > { %v2230_v52 = vpack.c.bf16 %v2533_v50, %v2529_v48 }
 0x13e   : > { %2302 = vst [vmem:[%s2860_s5 + $0x8] sm:$0xff] %v2150_v51   ;;  %v974_v53 = vpop.f32.mrb[12].mxu0  ;;  %v1102_v54 = vpop.f32.mrb[12].mxu1 }
 0x13f   : > { %2318 = vst [vmem:[%s2860_s5 + $0x88] sm:$0xff] %v2230_v52   ;;  %2542 = vtanh.f32 %v974_v53  ;;  %v976_v55 = vpop.f32.mrb[13].mxu0  ;;  %v1104_v56 = vpop.f32.mrb[13].mxu1 }
 0x140   : > { %2544 = vtanh.f32 %v1102_v54  ;;  %v977_v57 = vpop.f32.mrb[14].mxu0  ;;  %v1105_v58 = vpop.f32.mrb[14].mxu1 }
 0x141   : > { %v2535_v59 = vpop.eup %2534  ;;  %2546 = vtanh.f32 %v977_v57  ;;  %v979_v60 = vpop.f32.mrb[15].mxu0 }
 0x142   : > { %v1107_v61 = vpop.f32.mrb[15].mxu1  ;;  %v2537_v62 = vpop.eup %2536  ;;  %2548 = vtanh.f32 %v1105_v58 }
 0x143   : > { %v2539_v63 = vpop.eup %2538 }
 0x144   : > { %v2541_v0 = vpop.eup %2540  ;;  %v2155_v1 = vpack.c.bf16 %v2539_v63, %v2535_v59 }
 0x145   : > { %v2235_v2 = vpack.c.bf16 %v2541_v0, %v2537_v62 }
 0x146   : > { %2303 = vst [vmem:[%s2860_s5 + $0x10] sm:$0xff] %v2155_v1   ;;  %v982_v3 = vpop.f32.mrb[16].mxu0  ;;  %v1110_v4 = vpop.f32.mrb[16].mxu1 }
 0x147   : > { %2319 = vst [vmem:[%s2860_s5 + $0x90] sm:$0xff] %v2235_v2   ;;  %2550 = vtanh.f32 %v982_v3  ;;  %v984_v5 = vpop.f32.mrb[17].mxu0  ;;  %v1112_v6 = vpop.f32.mrb[17].mxu1 }
 0x148   : > { %2552 = vtanh.f32 %v1110_v4  ;;  %v985_v7 = vpop.f32.mrb[18].mxu0  ;;  %v1113_v8 = vpop.f32.mrb[18].mxu1 }
 0x149   : > { %v2543_v9 = vpop.eup %2542  ;;  %2554 = vtanh.f32 %v985_v7  ;;  %v987_v10 = vpop.f32.mrb[19].mxu0 }
 0x14a   : > { %v1115_v11 = vpop.f32.mrb[19].mxu1  ;;  %v2545_v12 = vpop.eup %2544  ;;  %2556 = vtanh.f32 %v1113_v8 }
 0x14b   : > { %v2547_v13 = vpop.eup %2546 }
 0x14c   : > { %v2549_v14 = vpop.eup %2548  ;;  %v2160_v15 = vpack.c.bf16 %v2547_v13, %v2543_v9 }
 0x14d   : > { %v2240_v16 = vpack.c.bf16 %v2549_v14, %v2545_v12 }
 0x14e   : > { %2304 = vst [vmem:[%s2860_s5 + $0x18] sm:$0xff] %v2160_v15   ;;  %v990_v17 = vpop.f32.mrb[20].mxu0  ;;  %v1118_v18 = vpop.f32.mrb[20].mxu1 }
 0x14f   : > { %2320 = vst [vmem:[%s2860_s5 + $0x98] sm:$0xff] %v2240_v16   ;;  %2558 = vtanh.f32 %v990_v17  ;;  %v992_v19 = vpop.f32.mrb[21].mxu0  ;;  %v1120_v20 = vpop.f32.mrb[21].mxu1 }
 0x150   : > { %2560 = vtanh.f32 %v1118_v18  ;;  %v993_v21 = vpop.f32.mrb[22].mxu0  ;;  %v1121_v22 = vpop.f32.mrb[22].mxu1 }
 0x151   : > { %v2551_v23 = vpop.eup %2550  ;;  %2562 = vtanh.f32 %v993_v21  ;;  %v995_v24 = vpop.f32.mrb[23].mxu0 }
 0x152   : > { %v1123_v25 = vpop.f32.mrb[23].mxu1  ;;  %v2553_v26 = vpop.eup %2552  ;;  %2564 = vtanh.f32 %v1121_v22 }
 0x153   : > { %v2555_v27 = vpop.eup %2554 }
 0x154   : > { %v2557_v28 = vpop.eup %2556  ;;  %v2165_v29 = vpack.c.bf16 %v2555_v27, %v2551_v23 }
 0x155   : > { %v2245_v30 = vpack.c.bf16 %v2557_v28, %v2553_v26 }
 0x156   : > { %2305 = vst [vmem:[%s2860_s5 + $0x20] sm:$0xff] %v2165_v29   ;;  %v998_v31 = vpop.f32.mrb[24].mxu0  ;;  %v1126_v32 = vpop.f32.mrb[24].mxu1 }
 0x157   : > { %2321 = vst [vmem:[%s2860_s5 + $0xa0] sm:$0xff] %v2245_v30   ;;  %2566 = vtanh.f32 %v998_v31  ;;  %v1000_v33 = vpop.f32.mrb[25].mxu0  ;;  %v1128_v34 = vpop.f32.mrb[25].mxu1 }
 0x158   : > { %2568 = vtanh.f32 %v1126_v32  ;;  %v1001_v35 = vpop.f32.mrb[26].mxu0  ;;  %v1129_v36 = vpop.f32.mrb[26].mxu1 }
 0x159   : > { %v2559_v37 = vpop.eup %2558  ;;  %2570 = vtanh.f32 %v1001_v35  ;;  %v1003_v38 = vpop.f32.mrb[27].mxu0 }
 0x15a   : > { %v1131_v39 = vpop.f32.mrb[27].mxu1  ;;  %v2561_v40 = vpop.eup %2560  ;;  %2572 = vtanh.f32 %v1129_v36 }
 0x15b   : > { %v2563_v41 = vpop.eup %2562 }
 0x15c   : > { %v2565_v42 = vpop.eup %2564  ;;  %v2170_v43 = vpack.c.bf16 %v2563_v41, %v2559_v37 }
 0x15d   : > { %v2250_v44 = vpack.c.bf16 %v2565_v42, %v2561_v40 }
 0x15e   : > { %2306 = vst [vmem:[%s2860_s5 + $0x28] sm:$0xff] %v2170_v43   ;;  %v1006_v45 = vpop.f32.mrb[28].mxu0  ;;  %v1134_v46 = vpop.f32.mrb[28].mxu1 }
 0x15f   : > { %2322 = vst [vmem:[%s2860_s5 + $0xa8] sm:$0xff] %v2250_v44   ;;  %2574 = vtanh.f32 %v1006_v45  ;;  %v1008_v47 = vpop.f32.mrb[29].mxu0  ;;  %v1136_v48 = vpop.f32.mrb[29].mxu1 }
 0x160   : > { %2576 = vtanh.f32 %v1134_v46  ;;  %v1009_v49 = vpop.f32.mrb[30].mxu0  ;;  %v1137_v50 = vpop.f32.mrb[30].mxu1 }
 0x161   : > { %v2567_v51 = vpop.eup %2566  ;;  %2578 = vtanh.f32 %v1009_v49  ;;  %v1011_v52 = vpop.f32.mrb[31].mxu0 }
 0x162   : > { %v1139_v53 = vpop.f32.mrb[31].mxu1  ;;  %v2569_v54 = vpop.eup %2568  ;;  %2580 = vtanh.f32 %v1137_v50 }
 0x163   : > { %v2571_v55 = vpop.eup %2570 }
 0x164   : > { %v2573_v56 = vpop.eup %2572  ;;  %v2175_v57 = vpack.c.bf16 %v2571_v55, %v2567_v51 }
 0x165   : > { %v2255_v58 = vpack.c.bf16 %v2573_v56, %v2569_v54 }
 0x166   : > { %2307 = vst [vmem:[%s2860_s5 + $0x30] sm:$0xff] %v2175_v57   ;;  %v1014_v59 = vpop.f32.mrb[32].mxu0  ;;  %v1142_v60 = vpop.f32.mrb[32].mxu1 }
 0x167   : > { %2323 = vst [vmem:[%s2860_s5 + $0xb0] sm:$0xff] %v2255_v58   ;;  %2582 = vtanh.f32 %v1014_v59  ;;  %v1016_v61 = vpop.f32.mrb[33].mxu0  ;;  %v1144_v62 = vpop.f32.mrb[33].mxu1 }
 0x168   : > { %2584 = vtanh.f32 %v1142_v60  ;;  %v1017_v63 = vpop.f32.mrb[34].mxu0  ;;  %v1145_v0 = vpop.f32.mrb[34].mxu1 }
 0x169   : > { %v2575_v1 = vpop.eup %2574  ;;  %2586 = vtanh.f32 %v1017_v63  ;;  %v1019_v2 = vpop.f32.mrb[35].mxu0 }
 0x16a   : > { %v1147_v3 = vpop.f32.mrb[35].mxu1  ;;  %v2577_v4 = vpop.eup %2576  ;;  %2588 = vtanh.f32 %v1145_v0 }
 0x16b   : > { %v2579_v5 = vpop.eup %2578 }
 0x16c   : > { %v2581_v6 = vpop.eup %2580  ;;  %v2180_v7 = vpack.c.bf16 %v2579_v5, %v2575_v1 }
 0x16d   : > { %v2260_v8 = vpack.c.bf16 %v2581_v6, %v2577_v4 }
 0x16e   : > { %2308 = vst [vmem:[%s2860_s5 + $0x38] sm:$0xff] %v2180_v7   ;;  %v1022_v9 = vpop.f32.mrb[36].mxu0  ;;  %v1150_v10 = vpop.f32.mrb[36].mxu1 }
 0x16f   : > { %2324 = vst [vmem:[%s2860_s5 + $0xb8] sm:$0xff] %v2260_v8   ;;  %2590 = vtanh.f32 %v1022_v9  ;;  %v1024_v11 = vpop.f32.mrb[37].mxu0  ;;  %v1152_v12 = vpop.f32.mrb[37].mxu1 }
 0x170   : > { %2592 = vtanh.f32 %v1150_v10  ;;  %v1025_v13 = vpop.f32.mrb[38].mxu0  ;;  %v1153_v14 = vpop.f32.mrb[38].mxu1 }
 0x171   : > { %v2583_v15 = vpop.eup %2582  ;;  %2594 = vtanh.f32 %v1025_v13  ;;  %v1027_v16 = vpop.f32.mrb[39].mxu0 }
 0x172   : > { %v1155_v17 = vpop.f32.mrb[39].mxu1  ;;  %v2585_v18 = vpop.eup %2584  ;;  %2596 = vtanh.f32 %v1153_v14 }
 0x173   : > { %v2587_v19 = vpop.eup %2586 }
 0x174   : > { %v2589_v20 = vpop.eup %2588  ;;  %v2185_v21 = vpack.c.bf16 %v2587_v19, %v2583_v15 }
 0x175   : > { %v2265_v22 = vpack.c.bf16 %v2589_v20, %v2585_v18 }
 0x176   : > { %2309 = vst [vmem:[%s2860_s5 + $0x40] sm:$0xff] %v2185_v21   ;;  %v1030_v23 = vpop.f32.mrb[40].mxu0  ;;  %v1158_v24 = vpop.f32.mrb[40].mxu1 }
 0x177   : > { %2325 = vst [vmem:[%s2860_s5 + $0xc0] sm:$0xff] %v2265_v22   ;;  %2598 = vtanh.f32 %v1030_v23  ;;  %v1032_v25 = vpop.f32.mrb[41].mxu0  ;;  %v1160_v26 = vpop.f32.mrb[41].mxu1 }
 0x178   : > { %2600 = vtanh.f32 %v1158_v24  ;;  %v1033_v27 = vpop.f32.mrb[42].mxu0  ;;  %v1161_v28 = vpop.f32.mrb[42].mxu1 }
 0x179   : > { %v2591_v29 = vpop.eup %2590  ;;  %2602 = vtanh.f32 %v1033_v27  ;;  %v1035_v30 = vpop.f32.mrb[43].mxu0 }
 0x17a   : > { %v1163_v31 = vpop.f32.mrb[43].mxu1  ;;  %v2593_v32 = vpop.eup %2592  ;;  %2604 = vtanh.f32 %v1161_v28 }
 0x17b   : > { %v2595_v33 = vpop.eup %2594 }
 0x17c   : > { %v2597_v34 = vpop.eup %2596  ;;  %v2190_v35 = vpack.c.bf16 %v2595_v33, %v2591_v29 }
 0x17d   : > { %v2270_v36 = vpack.c.bf16 %v2597_v34, %v2593_v32 }
 0x17e   : > { %2310 = vst [vmem:[%s2860_s5 + $0x48] sm:$0xff] %v2190_v35   ;;  %v1038_v37 = vpop.f32.mrb[44].mxu0  ;;  %v1166_v38 = vpop.f32.mrb[44].mxu1 }
 0x17f   : > { %2326 = vst [vmem:[%s2860_s5 + $0xc8] sm:$0xff] %v2270_v36   ;;  %2606 = vtanh.f32 %v1038_v37  ;;  %v1040_v39 = vpop.f32.mrb[45].mxu0  ;;  %v1168_v40 = vpop.f32.mrb[45].mxu1 }
 0x180   : > { %2608 = vtanh.f32 %v1166_v38  ;;  %v1041_v41 = vpop.f32.mrb[46].mxu0  ;;  %v1169_v42 = vpop.f32.mrb[46].mxu1 }
 0x181   : > { %v2599_v43 = vpop.eup %2598  ;;  %2610 = vtanh.f32 %v1041_v41  ;;  %v1043_v44 = vpop.f32.mrb[47].mxu0 }
 0x182   : > { %v1171_v45 = vpop.f32.mrb[47].mxu1  ;;  %v2601_v46 = vpop.eup %2600  ;;  %2612 = vtanh.f32 %v1169_v42 }
 0x183   : > { %v2603_v47 = vpop.eup %2602 }
 0x184   : > { %v2605_v48 = vpop.eup %2604  ;;  %v2195_v49 = vpack.c.bf16 %v2603_v47, %v2599_v43 }
 0x185   : > { %v2275_v50 = vpack.c.bf16 %v2605_v48, %v2601_v46 }
 0x186   : > { %2311 = vst [vmem:[%s2860_s5 + $0x50] sm:$0xff] %v2195_v49   ;;  %v1046_v51 = vpop.f32.mrb[48].mxu0  ;;  %v1174_v52 = vpop.f32.mrb[48].mxu1 }
 0x187   : > { %2327 = vst [vmem:[%s2860_s5 + $0xd0] sm:$0xff] %v2275_v50   ;;  %2614 = vtanh.f32 %v1046_v51  ;;  %v1048_v53 = vpop.f32.mrb[49].mxu0  ;;  %v1176_v54 = vpop.f32.mrb[49].mxu1 }
 0x188   : > { %2616 = vtanh.f32 %v1174_v52  ;;  %v1049_v55 = vpop.f32.mrb[50].mxu0  ;;  %v1177_v56 = vpop.f32.mrb[50].mxu1 }
 0x189   : > { %v2607_v57 = vpop.eup %2606  ;;  %2618 = vtanh.f32 %v1049_v55  ;;  %v1051_v58 = vpop.f32.mrb[51].mxu0 }
 0x18a   : > { %v1179_v59 = vpop.f32.mrb[51].mxu1  ;;  %v2609_v60 = vpop.eup %2608  ;;  %2620 = vtanh.f32 %v1177_v56 }
 0x18b   : > { %v2611_v61 = vpop.eup %2610 }
 0x18c   : > { %v2613_v62 = vpop.eup %2612  ;;  %v2200_v63 = vpack.c.bf16 %v2611_v61, %v2607_v57 }
 0x18d   : > { %v2280_v0 = vpack.c.bf16 %v2613_v62, %v2609_v60 }
 0x18e   : > { %2312 = vst [vmem:[%s2860_s5 + $0x58] sm:$0xff] %v2200_v63   ;;  %v1054_v1 = vpop.f32.mrb[52].mxu0  ;;  %v1182_v2 = vpop.f32.mrb[52].mxu1 }
 0x18f   : > { %2328 = vst [vmem:[%s2860_s5 + $0xd8] sm:$0xff] %v2280_v0   ;;  %2622 = vtanh.f32 %v1054_v1  ;;  %v1056_v3 = vpop.f32.mrb[53].mxu0  ;;  %v1184_v4 = vpop.f32.mrb[53].mxu1 }
 0x190   : > { %2624 = vtanh.f32 %v1182_v2  ;;  %v1057_v5 = vpop.f32.mrb[54].mxu0  ;;  %v1185_v6 = vpop.f32.mrb[54].mxu1 }
 0x191   : > { %v2615_v7 = vpop.eup %2614  ;;  %2626 = vtanh.f32 %v1057_v5  ;;  %v1059_v8 = vpop.f32.mrb[55].mxu0 }
 0x192   : > { %v1187_v9 = vpop.f32.mrb[55].mxu1  ;;  %v2617_v10 = vpop.eup %2616  ;;  %2628 = vtanh.f32 %v1185_v6 }
 0x193   : > { %v2619_v11 = vpop.eup %2618 }
 0x194   : > { %v2621_v12 = vpop.eup %2620  ;;  %v2205_v13 = vpack.c.bf16 %v2619_v11, %v2615_v7 }
 0x195   : > { %v2285_v14 = vpack.c.bf16 %v2621_v12, %v2617_v10 }
 0x196   : > { %2313 = vst [vmem:[%s2860_s5 + $0x60] sm:$0xff] %v2205_v13   ;;  %v1062_v15 = vpop.f32.mrb[56].mxu0  ;;  %v1190_v16 = vpop.f32.mrb[56].mxu1 }
 0x197   : > { %2329 = vst [vmem:[%s2860_s5 + $0xe0] sm:$0xff] %v2285_v14   ;;  %2630 = vtanh.f32 %v1062_v15  ;;  %v1064_v17 = vpop.f32.mrb[57].mxu0  ;;  %v1192_v18 = vpop.f32.mrb[57].mxu1 }
 0x198   : > { %2632 = vtanh.f32 %v1190_v16  ;;  %v1065_v19 = vpop.f32.mrb[58].mxu0  ;;  %v1193_v20 = vpop.f32.mrb[58].mxu1 }
 0x199   : > { %v2623_v21 = vpop.eup %2622  ;;  %2634 = vtanh.f32 %v1065_v19  ;;  %v1067_v22 = vpop.f32.mrb[59].mxu0 }
 0x19a   : > { %v1195_v23 = vpop.f32.mrb[59].mxu1  ;;  %v2625_v24 = vpop.eup %2624  ;;  %2636 = vtanh.f32 %v1193_v20 }
 0x19b   : > { %v2627_v25 = vpop.eup %2626 }
 0x19c   : > { %v2629_v26 = vpop.eup %2628  ;;  %v2210_v27 = vpack.c.bf16 %v2627_v25, %v2623_v21 }
 0x19d   : > { %v2290_v28 = vpack.c.bf16 %v2629_v26, %v2625_v24 }
 0x19e   : > { %2314 = vst [vmem:[%s2860_s5 + $0x68] sm:$0xff] %v2210_v27   ;;  %v1070_v29 = vpop.f32.mrb[60].mxu0  ;;  %v1198_v30 = vpop.f32.mrb[60].mxu1 }
 0x19f   : > { %2330 = vst [vmem:[%s2860_s5 + $0xe8] sm:$0xff] %v2290_v28   ;;  %2638 = vtanh.f32 %v1070_v29  ;;  %v1072_v31 = vpop.f32.mrb[61].mxu0  ;;  %v1200_v32 = vpop.f32.mrb[61].mxu1 }
 0x1a0   : > { %2640 = vtanh.f32 %v1198_v30  ;;  %v1073_v33 = vpop.f32.mrb[62].mxu0  ;;  %v1201_v34 = vpop.f32.mrb[62].mxu1 }
 0x1a1   : > { %v2631_v35 = vpop.eup %2630  ;;  %2642 = vtanh.f32 %v1073_v33  ;;  %v1075_v36 = vpop.f32.mrb[63].mxu0 }
 0x1a2   : > { %v1203_v37 = vpop.f32.mrb[63].mxu1  ;;  %v2633_v38 = vpop.eup %2632  ;;  %2644 = vtanh.f32 %v1201_v34 }
 0x1a3   : > { %v2635_v39 = vpop.eup %2634 }
 0x1a4   : > { %v2637_v40 = vpop.eup %2636  ;;  %v2215_v41 = vpack.c.bf16 %v2635_v39, %v2631_v35 }
 0x1a5   : > { %v2295_v42 = vpack.c.bf16 %v2637_v40, %v2633_v38 }
 0x1a6   : > { %2315 = vst [vmem:[%s2860_s5 + $0x70] sm:$0xff] %v2215_v41  }
 0x1a7   : > { %2331 = vst [vmem:[%s2860_s5 + $0xf0] sm:$0xff] %v2295_v42  }
 0x1a9   : > { %v2639_v43 = vpop.eup %2638 }
 0x1aa   : > { %v2641_v44 = vpop.eup %2640 }
 0x1ab   : > { %v2643_v45 = vpop.eup %2642 }
 0x1ac   : > { %v2645_v46 = vpop.eup %2644  ;;  %v2220_v47 = vpack.c.bf16 %v2643_v45, %v2639_v43 }
 0x1ad   : > { %v2300_v48 = vpack.c.bf16 %v2645_v46, %v2641_v44 }
 0x1ae   : > { %2316 = vst [vmem:[%s2860_s5 + $0x78] sm:$0xff] %v2220_v47  }
 0x1af   : > { %2332 = vst [vmem:[%s2860_s5 + $0xf8] sm:$0xff] %v2300_v48  }
 0x1b0 PF: > { %s12_s13 = sadd.s32 1, %s2684_s13   ;;  %s2912_s9 = smov %s2676_s11 }
 0x1b1   : > { %p9_p7 = scmp.ge.s32.totalorder %s12_s13, 18   ;;  %s2913_s10 = smov %s2680_s12 }
 0x1b2   : > { %s2914_s11 = smov %s2917_s14  ;;  %s2915_s12 = smov %s2921_s15 }
 0x1b3   :  { %11 = sbr.rel (!%p9_p7) target bundleno = 3 (0x3), region = 69 }

</bundles_post_ra>
